<compile_context>
chip_gen: v7x
topology: tpu7x:2x2x1
jax: 0.10.0
libtpu: 0.0.40
codegen_flags: <defaults>
</compile_context>

<pallas_src>
from functools import partial

import jax
import jax.numpy as jnp
from jax.experimental import pallas as pl
from jax.experimental.pallas import tpu as pltpu

# ----------------------- static sizes implied by the module ------------------
H, W, CIN = 68, 28, 3            # input spatial / channels
C1, C2 = 16, 32                  # conv output channels
H1, W1 = H // 2, W // 2          # 34, 14   after pool1
HP, WP = H1 + 2, W1 + 2          # 36, 16   pool1 grid zero-padded for conv2
QH, QW = HP // 2, WP // 2        # 18, 8    parity-block quotients
BLK = QH * QW                    # 144      rows per parity block
S_ROWS = HP * WP                 # 576      rows of padded pooled-1 activation
H2, W2 = H1 // 2, W1 // 2        # 17, 7    after pool2
P2 = H2 * 8 - 1                  # 135      pool2 rows (incl. 16 junk w3==7 rows)
FLAT = P2 * C2                   # 4320     padded flatten fed to fc1
K1 = 9 * CIN                     # 27       merged conv1 contraction


# ------------------------------ Pallas kernels -------------------------------

def conv_stack_kernel(xs_ref, mask_ref, w1_ref, b1_ref, w2_ref, b2_ref,
                      out_ref, s_ref):
    # xs_ref  : (4, 576, 27)  pool-1-tap-major im2col of the padded input
    # mask_ref: (576, 1)      1.0 on valid (non-halo) rows of the 36x16 grid
    # w1_ref  : (27, 16)      conv1 weight, rows ordered (kh, kw, cin)
    # b1_ref  : (1, 16)
    # w2_ref  : (9, 16, 32)   conv2 weight, leading index = kh*3 + kw
    # b2_ref  : (1, 32)
    # out_ref : (135, 32)     pooled conv2 output, row = 8*h3 + w3 (w3==7 junk)
    # s_ref   : (576, 16)     scratch: padded pooled-1 act in parity-block order

    # ---- conv1 (one K=27 matmul per pool tap) + bias + ReLU + maxpool 2x2 ----
    z1 = jnp.dot(xs_ref[0], w1_ref[...], preferred_element_type=jnp.float32)
    for t in range(1, 4):
        z1 = jnp.maximum(
            z1, jnp.dot(xs_ref[t], w1_ref[...],
                        preferred_element_type=jnp.float32))
    # bias/ReLU commute with the pool max; mask zeroes conv2's halo rows.
    s_ref[...] = jnp.maximum(z1 + b1_ref[...], 0.0) * mask_ref[...]

    # ---- conv2 + bias + ReLU + maxpool 2x2 -----------------------------------
    z2 = None
    for dh in range(2):                      # pool-2 tap
        for dw in range(2):
            acc = jnp.zeros((P2, C2), jnp.float32)
            for kh in range(3):              # conv-2 tap
                for kw in range(3):
                    a, b = dh + kh, dw + kw
                    start = ((a % 2) * 2 + (b % 2)) * BLK + (a // 2) * QW + (b // 2)
                    lhs = s_ref[pl.ds(start, P2), :]          # (135, 16)
                    acc = acc + jnp.dot(lhs, w2_ref[kh * 3 + kw],
                                        preferred_element_type=jnp.float32)
            z2 = acc if z2 is None else jnp.maximum(z2, acc)
    out_ref[...] = jnp.maximum(z2 + b2_ref[...], 0.0)


def mlp_kernel(x_ref, w1_ref, b1_ref, w2_ref, b2_ref, o_ref):
    # x: (N, 4320), w1: (4320, 64), b1: (1, 64), w2: (64, 2), b2: (1, 2)
    h = jnp.dot(x_ref[...], w1_ref[...],
                preferred_element_type=jnp.float32) + b1_ref[...]
    h = jnp.maximum(h, 0.0)
    o_ref[...] = jnp.dot(h, w2_ref[...],
                         preferred_element_type=jnp.float32) + b2_ref[...]


# ------------------------------ layer wrappers --------------------------------

def build_conv1_inputs(x_nchw):
    """im2col for conv1 (K merged to 9*Cin) with the 4 pool taps on a leading
    axis, rows ordered in the parity-block layout of the padded 36x16 grid."""
    N = x_nchw.shape[0]
    x = jnp.transpose(x_nchw, (0, 2, 3, 1))                      # NCHW -> NHWC
    xp = jnp.pad(x, ((0, 0), (1, 1), (1, 1), (0, 0)))            # (N,70,30,3)
    cols = jnp.concatenate(
        [xp[:, kh:kh + H, kw:kw + W, :] for kh in range(3) for kw in range(3)],
        axis=-1)                                                 # (N,68,28,27)
    taps = []
    for dh in range(2):
        for dw in range(2):
            t = cols[:, dh::2, dw::2, :]                         # (N,34,14,27)
            t = jnp.pad(t, ((0, 0), (1, 1), (1, 1), (0, 0)))     # (N,36,16,27)
            t = t.reshape(N, QH, 2, QW, 2, K1)
            t = t.transpose(0, 2, 4, 1, 3, 5).reshape(N, S_ROWS, K1)
            taps.append(t)
    xs1 = jnp.stack(taps, axis=1)                                # (N,4,576,27)
    m = jnp.zeros((HP, WP), jnp.float32).at[1:1 + H1, 1:1 + W1].set(1.0)
    mask = m.reshape(QH, 2, QW, 2).transpose(1, 3, 0, 2).reshape(S_ROWS, 1)
    return xs1, mask


def conv_stack(xs1, mask, w1, b1, w2, b2):
    N = xs1.shape[0]
    flops = N * 2 * (4 * S_ROWS * K1 * C1 + 36 * P2 * C1 * C2)
    bytes_acc = 4 * (xs1.size + mask.size + w1.size + b1.size + w2.size
                     + b2.size + N * P2 * C2)
    return pl.pallas_call(
        conv_stack_kernel,
        out_shape=jax.ShapeDtypeStruct((N, P2, C2), jnp.float32),
        grid=(N,),
        in_specs=[
            pl.BlockSpec((None, 4, S_ROWS, K1), lambda n: (n, 0, 0, 0)),
            pl.BlockSpec((S_ROWS, 1), lambda n: (0, 0)),
            pl.BlockSpec((K1, C1), lambda n: (0, 0)),
            pl.BlockSpec((1, C1), lambda n: (0, 0)),
            pl.BlockSpec((9, C1, C2), lambda n: (0, 0, 0)),
            pl.BlockSpec((1, C2), lambda n: (0, 0)),
        ],
        out_specs=pl.BlockSpec((None, P2, C2), lambda n: (n, 0, 0)),
        scratch_shapes=[pltpu.VMEM((S_ROWS, C1), jnp.float32)],
        compiler_params=pltpu.CompilerParams(
            dimension_semantics=("parallel",)),
        cost_estimate=pl.CostEstimate(flops=flops, transcendentals=0,
                                      bytes_accessed=bytes_acc),
    )(xs1, mask, w1, b1, w2, b2)


def mlp_head(x, w1, b1, w2, b2):
    N = x.shape[0]
    vmem = pl.BlockSpec(memory_space=pltpu.MemorySpace.VMEM)
    flops = N * 2 * (x.shape[1] * w1.shape[1] + w1.shape[1] * w2.shape[1])
    bytes_acc = 4 * (x.size + w1.size + b1.size + w2.size + b2.size
                     + N * w2.shape[1])
    return pl.pallas_call(
        mlp_kernel,
        out_shape=jax.ShapeDtypeStruct((N, w2.shape[1]), jnp.float32),
        in_specs=[vmem] * 5,
        out_specs=vmem,
        cost_estimate=pl.CostEstimate(flops=flops, transcendentals=0,
                                      bytes_accessed=bytes_acc),
    )(x, w1, b1, w2, b2)


# ---------------------------------- forward -----------------------------------

def small_cnn_forward(x_nchw, params):
    xs1, mask = build_conv1_inputs(x_nchw)
    a2 = conv_stack(xs1, mask, params["w1"], params["b1"],
                    params["w2"], params["b2"])          # (N, 135, 32)
    x = a2.reshape(a2.shape[0], FLAT)                    # free row-major flatten
    return mlp_head(x, params["wf1"], params["bf1"],
                    params["wf2"], params["bf2"])


# ------------------------------- parameter init --------------------------------

def init_params(key):
    ks = jax.random.split(key, 8)

    def u(k, shape, fan_in):
        bound = 1.0 / (fan_in ** 0.5)
        return jax.random.uniform(k, shape, jnp.float32, -bound, bound)

    # conv weights drawn in torch layout (Cout, Cin, kh, kw), then packed for
    # the fused kernel: conv1 -> (kh*kw*Cin, Cout) = (27,16); conv2 -> (9, Cin, Cout).
    w1 = u(ks[0], (C1, CIN, 3, 3), CIN * 9)
    w1 = jnp.transpose(w1, (2, 3, 1, 0)).reshape(K1, C1)
    b1 = u(ks[1], (1, C1), CIN * 9)
    w2 = u(ks[2], (C2, C1, 3, 3), C1 * 9)
    w2 = jnp.transpose(w2, (2, 3, 1, 0)).reshape(9, C1, C2)
    b2 = u(ks[3], (1, C2), C1 * 9)

    # fc1 drawn in torch layout (64, 32*17*7); torch Flatten index = c*119 + h3*7 + w3.
    # Fold that permutation (plus zero rows for the 16 junk w3==7 rows of the
    # padded pool-2 layout) into the weight so no activation transpose is needed.
    nin = C2 * H2 * W2                                     # 3808
    wf1 = u(ks[4], (64, nin), nin)                         # torch (out, in)
    wf1 = wf1.reshape(64, C2, H2, W2)                      # (out, c, h3, w3)
    wf1 = jnp.pad(wf1, ((0, 0), (0, 0), (0, 0), (0, 1)))   # w3 padded to 8 (zeros)
    wf1 = jnp.transpose(wf1, (2, 3, 1, 0)).reshape(H2 * 8 * C2, 64)[:FLAT]
    bf1 = u(ks[5], (1, 64), nin)
    wf2 = jnp.transpose(u(ks[6], (2, 64), 64), (1, 0))     # (64, 2)
    bf2 = u(ks[7], (1, 2), 64)
    return dict(w1=w1, b1=b1, w2=w2, b2=b2, wf1=wf1, bf1=bf1, wf2=wf2, bf2=bf2)


if __name__ == "__main__":
    key = jax.random.PRNGKey(0)
    kx, kp = jax.random.split(key)
    # Input (N=2, C=3, H=68, W=28): spatial implied by fc in-features 32*17*7.
    x = jax.random.normal(kx, (2, CIN, H, W), jnp.float32)
    params = init_params(kp)

    fwd = jax.jit(partial(small_cnn_forward, params=params))
    out = fwd(x)
    jax.block_until_ready(out)
    assert out.shape == (2, 2) and out.dtype == jnp.float32
    print("KERNEL_OK")
</pallas_src>

<mosaic_0001>
module attributes {stable_mosaic.version = 11 : i64} {
  func.func @conv_stack_kernel(%arg0: i32, %arg1: memref<1x4x576x27xf32, #tpu.memory_space<vmem>>, %arg2: memref<576x1xf32, #tpu.memory_space<vmem>>, %arg3: memref<27x16xf32, #tpu.memory_space<vmem>>, %arg4: memref<1x16xf32, #tpu.memory_space<vmem>>, %arg5: memref<9x16x32xf32, #tpu.memory_space<vmem>>, %arg6: memref<1x32xf32, #tpu.memory_space<vmem>>, %arg7: memref<1x135x32xf32, #tpu.memory_space<vmem>>, %arg8: memref<576x16xf32, #tpu.memory_space<vmem>>) attributes {dimension_semantics = [#tpu.dimension_semantics<parallel>], iteration_bounds = array<i64: 2>, scalar_prefetch = 0 : i64, scratch_operands = 1 : i64, tpu.core_type = #tpu.core_type<tc>, window_params = [{transform_indices = @transform_0, window_bounds = array<i64: 1, 4, 576, 27>}, {pipeline_mode = #tpu.pipeline_mode<synchronous>, transform_indices = @transform_1, window_bounds = array<i64: 576, 1>}, {pipeline_mode = #tpu.pipeline_mode<synchronous>, transform_indices = @transform_2, window_bounds = array<i64: 27, 16>}, {pipeline_mode = #tpu.pipeline_mode<synchronous>, transform_indices = @transform_3, window_bounds = array<i64: 1, 16>}, {pipeline_mode = #tpu.pipeline_mode<synchronous>, transform_indices = @transform_4, window_bounds = array<i64: 9, 16, 32>}, {pipeline_mode = #tpu.pipeline_mode<synchronous>, transform_indices = @transform_5, window_bounds = array<i64: 1, 32>}, {transform_indices = @transform_6, window_bounds = array<i64: 1, 135, 32>}]} {
    %c0 = arith.constant 0 : index
    %c0_0 = arith.constant 0 : index
    %c0_1 = arith.constant 0 : index
    %c0_2 = arith.constant 0 : index
    %0 = vector.load %arg1[%c0, %c0_0, %c0_1, %c0_2] : memref<1x4x576x27xf32, #tpu.memory_space<vmem>>, vector<1x1x576x27xf32>
    %1 = vector.shape_cast %0 : vector<1x1x576x27xf32> to vector<576x27xf32>
    %c0_3 = arith.constant 0 : index
    %c0_4 = arith.constant 0 : index
    %2 = vector.load %arg3[%c0_3, %c0_4] : memref<27x16xf32, #tpu.memory_space<vmem>>, vector<27x16xf32>
    %cst = arith.constant dense<0.000000e+00> : vector<576x16xf32>
    %3 = tpu.matmul %1, %2, %cst {dimension_numbers = #tpu.dot_dimension_numbers<[1], [0], [0], [1], [0, 0, 1, 1], [], []>} : vector<576x27xf32>, vector<27x16xf32>, vector<576x16xf32> -> vector<576x16xf32>
    %c0_5 = arith.constant 0 : index
    %c1 = arith.constant 1 : index
    %c0_6 = arith.constant 0 : index
    %c0_7 = arith.constant 0 : index
    %4 = vector.load %arg1[%c0_5, %c1, %c0_6, %c0_7] : memref<1x4x576x27xf32, #tpu.memory_space<vmem>>, vector<1x1x576x27xf32>
    %5 = vector.shape_cast %4 : vector<1x1x576x27xf32> to vector<576x27xf32>
    %c0_8 = arith.constant 0 : index
    %c0_9 = arith.constant 0 : index
    %6 = vector.load %arg3[%c0_8, %c0_9] : memref<27x16xf32, #tpu.memory_space<vmem>>, vector<27x16xf32>
    %cst_10 = arith.constant dense<0.000000e+00> : vector<576x16xf32>
    %7 = tpu.matmul %5, %6, %cst_10 {dimension_numbers = #tpu.dot_dimension_numbers<[1], [0], [0], [1], [0, 0, 1, 1], [], []>} : vector<576x27xf32>, vector<27x16xf32>, vector<576x16xf32> -> vector<576x16xf32>
    %8 = arith.maximumf %3, %7 : vector<576x16xf32>
    %c0_11 = arith.constant 0 : index
    %c2 = arith.constant 2 : index
    %c0_12 = arith.constant 0 : index
    %c0_13 = arith.constant 0 : index
    %9 = vector.load %arg1[%c0_11, %c2, %c0_12, %c0_13] : memref<1x4x576x27xf32, #tpu.memory_space<vmem>>, vector<1x1x576x27xf32>
    %10 = vector.shape_cast %9 : vector<1x1x576x27xf32> to vector<576x27xf32>
    %c0_14 = arith.constant 0 : index
    %c0_15 = arith.constant 0 : index
    %11 = vector.load %arg3[%c0_14, %c0_15] : memref<27x16xf32, #tpu.memory_space<vmem>>, vector<27x16xf32>
    %cst_16 = arith.constant dense<0.000000e+00> : vector<576x16xf32>
    %12 = tpu.matmul %10, %11, %cst_16 {dimension_numbers = #tpu.dot_dimension_numbers<[1], [0], [0], [1], [0, 0, 1, 1], [], []>} : vector<576x27xf32>, vector<27x16xf32>, vector<576x16xf32> -> vector<576x16xf32>
    %13 = arith.maximumf %8, %12 : vector<576x16xf32>
    %c0_17 = arith.constant 0 : index
    %c3 = arith.constant 3 : index
    %c0_18 = arith.constant 0 : index
    %c0_19 = arith.constant 0 : index
    %14 = vector.load %arg1[%c0_17, %c3, %c0_18, %c0_19] : memref<1x4x576x27xf32, #tpu.memory_space<vmem>>, vector<1x1x576x27xf32>
    %15 = vector.shape_cast %14 : vector<1x1x576x27xf32> to vector<576x27xf32>
    %c0_20 = arith.constant 0 : index
    %c0_21 = arith.constant 0 : index
    %16 = vector.load %arg3[%c0_20, %c0_21] : memref<27x16xf32, #tpu.memory_space<vmem>>, vector<27x16xf32>
    %cst_22 = arith.constant dense<0.000000e+00> : vector<576x16xf32>
    %17 = tpu.matmul %15, %16, %cst_22 {dimension_numbers = #tpu.dot_dimension_numbers<[1], [0], [0], [1], [0, 0, 1, 1], [], []>} : vector<576x27xf32>, vector<27x16xf32>, vector<576x16xf32> -> vector<576x16xf32>
    %18 = arith.maximumf %13, %17 : vector<576x16xf32>
    %c0_23 = arith.constant 0 : index
    %c0_24 = arith.constant 0 : index
    %19 = vector.load %arg4[%c0_23, %c0_24] : memref<1x16xf32, #tpu.memory_space<vmem>>, vector<1x16xf32>
    %20 = vector.broadcast %19 : vector<1x16xf32> to vector<576x16xf32>
    %21 = arith.addf %18, %20 : vector<576x16xf32>
    %cst_25 = arith.constant 0.000000e+00 : f32
    %22 = vector.broadcast %cst_25 : f32 to vector<576x16xf32>
    %23 = arith.maximumf %21, %22 : vector<576x16xf32>
    %c0_26 = arith.constant 0 : index
    %c0_27 = arith.constant 0 : index
    %24 = vector.load %arg2[%c0_26, %c0_27] : memref<576x1xf32, #tpu.memory_space<vmem>>, vector<576x1xf32>
    %25 = vector.broadcast %24 : vector<576x1xf32> to vector<576x16xf32>
    %26 = arith.mulf %23, %25 : vector<576x16xf32>
    %c0_28 = arith.constant 0 : index
    %c0_29 = arith.constant 0 : index
    %27 = vector.load %arg8[%c0_28, %c0_29] : memref<576x16xf32, #tpu.memory_space<vmem>>, vector<576x16xf32>
    tpu.vector_store %arg8[%c0_28, %c0_29], %26 {strides = array<i32>} : memref<576x16xf32, #tpu.memory_space<vmem>>, vector<576x16xf32>,
    %cst_30 = arith.constant 0.000000e+00 : f32
    %28 = vector.broadcast %cst_30 : f32 to vector<135x32xf32>
    %c0_31 = arith.constant 0 : index
    %c0_32 = arith.constant 0 : index
    %29 = vector.load %arg8[%c0_31, %c0_32] : memref<576x16xf32, #tpu.memory_space<vmem>>, vector<135x16xf32>
    %c0_33 = arith.constant 0 : index
    %c0_34 = arith.constant 0 : index
    %c0_35 = arith.constant 0 : index
    %30 = vector.load %arg5[%c0_33, %c0_34, %c0_35] : memref<9x16x32xf32, #tpu.memory_space<vmem>>, vector<1x16x32xf32>
    %31 = vector.shape_cast %30 : vector<1x16x32xf32> to vector<16x32xf32>
    %cst_36 = arith.constant dense<0.000000e+00> : vector<135x32xf32>
    %32 = tpu.matmul %29, %31, %cst_36 {dimension_numbers = #tpu.dot_dimension_numbers<[1], [0], [0], [1], [0, 0, 1, 1], [], []>} : vector<135x16xf32>, vector<16x32xf32>, vector<135x32xf32> -> vector<135x32xf32>
    %33 = arith.addf %28, %32 : vector<135x32xf32>
    %c144 = arith.constant 144 : index
    %c0_37 = arith.constant 0 : index
    %34 = vector.load %arg8[%c144, %c0_37] : memref<576x16xf32, #tpu.memory_space<vmem>>, vector<135x16xf32>
    %c1_38 = arith.constant 1 : index
    %c0_39 = arith.constant 0 : index
    %c0_40 = arith.constant 0 : index
    %35 = vector.load %arg5[%c1_38, %c0_39, %c0_40] : memref<9x16x32xf32, #tpu.memory_space<vmem>>, vector<1x16x32xf32>
    %36 = vector.shape_cast %35 : vector<1x16x32xf32> to vector<16x32xf32>
    %cst_41 = arith.constant dense<0.000000e+00> : vector<135x32xf32>
    %37 = tpu.matmul %34, %36, %cst_41 {dimension_numbers = #tpu.dot_dimension_numbers<[1], [0], [0], [1], [0, 0, 1, 1], [], []>} : vector<135x16xf32>, vector<16x32xf32>, vector<135x32xf32> -> vector<135x32xf32>
    %38 = arith.addf %33, %37 : vector<135x32xf32>
    %c1_42 = arith.constant 1 : index
    %c0_43 = arith.constant 0 : index
    %39 = vector.load %arg8[%c1_42, %c0_43] : memref<576x16xf32, #tpu.memory_space<vmem>>, vector<135x16xf32>
    %c2_44 = arith.constant 2 : index
    %c0_45 = arith.constant 0 : index
    %c0_46 = arith.constant 0 : index
    %40 = vector.load %arg5[%c2_44, %c0_45, %c0_46] : memref<9x16x32xf32, #tpu.memory_space<vmem>>, vector<1x16x32xf32>
    %41 = vector.shape_cast %40 : vector<1x16x32xf32> to vector<16x32xf32>
    %cst_47 = arith.constant dense<0.000000e+00> : vector<135x32xf32>
    %42 = tpu.matmul %39, %41, %cst_47 {dimension_numbers = #tpu.dot_dimension_numbers<[1], [0], [0], [1], [0, 0, 1, 1], [], []>} : vector<135x16xf32>, vector<16x32xf32>, vector<135x32xf32> -> vector<135x32xf32>
    %43 = arith.addf %38, %42 : vector<135x32xf32>
    %c288 = arith.constant 288 : index
    %c0_48 = arith.constant 0 : index
    %44 = vector.load %arg8[%c288, %c0_48] : memref<576x16xf32, #tpu.memory_space<vmem>>, vector<135x16xf32>
    %c3_49 = arith.constant 3 : index
    %c0_50 = arith.constant 0 : index
    %c0_51 = arith.constant 0 : index
    %45 = vector.load %arg5[%c3_49, %c0_50, %c0_51] : memref<9x16x32xf32, #tpu.memory_space<vmem>>, vector<1x16x32xf32>
    %46 = vector.shape_cast %45 : vector<1x16x32xf32> to vector<16x32xf32>
    %cst_52 = arith.constant dense<0.000000e+00> : vector<135x32xf32>
    %47 = tpu.matmul %44, %46, %cst_52 {dimension_numbers = #tpu.dot_dimension_numbers<[1], [0], [0], [1], [0, 0, 1, 1], [], []>} : vector<135x16xf32>, vector<16x32xf32>, vector<135x32xf32> -> vector<135x32xf32>
    %48 = arith.addf %43, %47 : vector<135x32xf32>
    %c432 = arith.constant 432 : index
    %c0_53 = arith.constant 0 : index
    %49 = vector.load %arg8[%c432, %c0_53] : memref<576x16xf32, #tpu.memory_space<vmem>>, vector<135x16xf32>
    %c4 = arith.constant 4 : index
    %c0_54 = arith.constant 0 : index
    %c0_55 = arith.constant 0 : index
    %50 = vector.load %arg5[%c4, %c0_54, %c0_55] : memref<9x16x32xf32, #tpu.memory_space<vmem>>, vector<1x16x32xf32>
    %51 = vector.shape_cast %50 : vector<1x16x32xf32> to vector<16x32xf32>
    %cst_56 = arith.constant dense<0.000000e+00> : vector<135x32xf32>
    %52 = tpu.matmul %49, %51, %cst_56 {dimension_numbers = #tpu.dot_dimension_numbers<[1], [0], [0], [1], [0, 0, 1, 1], [], []>} : vector<135x16xf32>, vector<16x32xf32>, vector<135x32xf32> -> vector<135x32xf32>
    %53 = arith.addf %48, %52 : vector<135x32xf32>
    %c289 = arith.constant 289 : index
    %c0_57 = arith.constant 0 : index
    %54 = vector.load %arg8[%c289, %c0_57] : memref<576x16xf32, #tpu.memory_space<vmem>>, vector<135x16xf32>
    %c5 = arith.constant 5 : index
    %c0_58 = arith.constant 0 : index
    %c0_59 = arith.constant 0 : index
    %55 = vector.load %arg5[%c5, %c0_58, %c0_59] : memref<9x16x32xf32, #tpu.memory_space<vmem>>, vector<1x16x32xf32>
    %56 = vector.shape_cast %55 : vector<1x16x32xf32> to vector<16x32xf32>
    %cst_60 = arith.constant dense<0.000000e+00> : vector<135x32xf32>
    %57 = tpu.matmul %54, %56, %cst_60 {dimension_numbers = #tpu.dot_dimension_numbers<[1], [0], [0], [1], [0, 0, 1, 1], [], []>} : vector<135x16xf32>, vector<16x32xf32>, vector<135x32xf32> -> vector<135x32xf32>
    %58 = arith.addf %53, %57 : vector<135x32xf32>
    %c8 = arith.constant 8 : index
    %c0_61 = arith.constant 0 : index
    %59 = vector.load %arg8[%c8, %c0_61] : memref<576x16xf32, #tpu.memory_space<vmem>>, vector<135x16xf32>
    %c6 = arith.constant 6 : index
    %c0_62 = arith.constant 0 : index
    %c0_63 = arith.constant 0 : index
    %60 = vector.load %arg5[%c6, %c0_62, %c0_63] : memref<9x16x32xf32, #tpu.memory_space<vmem>>, vector<1x16x32xf32>
    %61 = vector.shape_cast %60 : vector<1x16x32xf32> to vector<16x32xf32>
    %cst_64 = arith.constant dense<0.000000e+00> : vector<135x32xf32>
    %62 = tpu.matmul %59, %61, %cst_64 {dimension_numbers = #tpu.dot_dimension_numbers<[1], [0], [0], [1], [0, 0, 1, 1], [], []>} : vector<135x16xf32>, vector<16x32xf32>, vector<135x32xf32> -> vector<135x32xf32>
    %63 = arith.addf %58, %62 : vector<135x32xf32>
    %c152 = arith.constant 152 : index
    %c0_65 = arith.constant 0 : index
    %64 = vector.load %arg8[%c152, %c0_65] : memref<576x16xf32, #tpu.memory_space<vmem>>, vector<135x16xf32>
    %c7 = arith.constant 7 : index
    %c0_66 = arith.constant 0 : index
    %c0_67 = arith.constant 0 : index
    %65 = vector.load %arg5[%c7, %c0_66, %c0_67] : memref<9x16x32xf32, #tpu.memory_space<vmem>>, vector<1x16x32xf32>
    %66 = vector.shape_cast %65 : vector<1x16x32xf32> to vector<16x32xf32>
    %cst_68 = arith.constant dense<0.000000e+00> : vector<135x32xf32>
    %67 = tpu.matmul %64, %66, %cst_68 {dimension_numbers = #tpu.dot_dimension_numbers<[1], [0], [0], [1], [0, 0, 1, 1], [], []>} : vector<135x16xf32>, vector<16x32xf32>, vector<135x32xf32> -> vector<135x32xf32>
    %68 = arith.addf %63, %67 : vector<135x32xf32>
    %c9 = arith.constant 9 : index
    %c0_69 = arith.constant 0 : index
    %69 = vector.load %arg8[%c9, %c0_69] : memref<576x16xf32, #tpu.memory_space<vmem>>, vector<135x16xf32>
    %c8_70 = arith.constant 8 : index
    %c0_71 = arith.constant 0 : index
    %c0_72 = arith.constant 0 : index
    %70 = vector.load %arg5[%c8_70, %c0_71, %c0_72] : memref<9x16x32xf32, #tpu.memory_space<vmem>>, vector<1x16x32xf32>
    %71 = vector.shape_cast %70 : vector<1x16x32xf32> to vector<16x32xf32>
    %cst_73 = arith.constant dense<0.000000e+00> : vector<135x32xf32>
    %72 = tpu.matmul %69, %71, %cst_73 {dimension_numbers = #tpu.dot_dimension_numbers<[1], [0], [0], [1], [0, 0, 1, 1], [], []>} : vector<135x16xf32>, vector<16x32xf32>, vector<135x32xf32> -> vector<135x32xf32>
    %73 = arith.addf %68, %72 : vector<135x32xf32>
    %cst_74 = arith.constant 0.000000e+00 : f32
    %74 = vector.broadcast %cst_74 : f32 to vector<135x32xf32>
    %c144_75 = arith.constant 144 : index
    %c0_76 = arith.constant 0 : index
    %75 = vector.load %arg8[%c144_75, %c0_76] : memref<576x16xf32, #tpu.memory_space<vmem>>, vector<135x16xf32>
    %c0_77 = arith.constant 0 : index
    %c0_78 = arith.constant 0 : index
    %c0_79 = arith.constant 0 : index
    %76 = vector.load %arg5[%c0_77, %c0_78, %c0_79] : memref<9x16x32xf32, #tpu.memory_space<vmem>>, vector<1x16x32xf32>
    %77 = vector.shape_cast %76 : vector<1x16x32xf32> to vector<16x32xf32>
    %cst_80 = arith.constant dense<0.000000e+00> : vector<135x32xf32>
    %78 = tpu.matmul %75, %77, %cst_80 {dimension_numbers = #tpu.dot_dimension_numbers<[1], [0], [0], [1], [0, 0, 1, 1], [], []>} : vector<135x16xf32>, vector<16x32xf32>, vector<135x32xf32> -> vector<135x32xf32>
    %79 = arith.addf %74, %78 : vector<135x32xf32>
    %c1_81 = arith.constant 1 : index
    %c0_82 = arith.constant 0 : index
    %80 = vector.load %arg8[%c1_81, %c0_82] : memref<576x16xf32, #tpu.memory_space<vmem>>, vector<135x16xf32>
    %c1_83 = arith.constant 1 : index
    %c0_84 = arith.constant 0 : index
    %c0_85 = arith.constant 0 : index
    %81 = vector.load %arg5[%c1_83, %c0_84, %c0_85] : memref<9x16x32xf32, #tpu.memory_space<vmem>>, vector<1x16x32xf32>
    %82 = vector.shape_cast %81 : vector<1x16x32xf32> to vector<16x32xf32>
    %cst_86 = arith.constant dense<0.000000e+00> : vector<135x32xf32>
    %83 = tpu.matmul %80, %82, %cst_86 {dimension_numbers = #tpu.dot_dimension_numbers<[1], [0], [0], [1], [0, 0, 1, 1], [], []>} : vector<135x16xf32>, vector<16x32xf32>, vector<135x32xf32> -> vector<135x32xf32>
    %84 = arith.addf %79, %83 : vector<135x32xf32>
    %c145 = arith.constant 145 : index
    %c0_87 = arith.constant 0 : index
    %85 = vector.load %arg8[%c145, %c0_87] : memref<576x16xf32, #tpu.memory_space<vmem>>, vector<135x16xf32>
    %c2_88 = arith.constant 2 : index
    %c0_89 = arith.constant 0 : index
    %c0_90 = arith.constant 0 : index
    %86 = vector.load %arg5[%c2_88, %c0_89, %c0_90] : memref<9x16x32xf32, #tpu.memory_space<vmem>>, vector<1x16x32xf32>
    %87 = vector.shape_cast %86 : vector<1x16x32xf32> to vector<16x32xf32>
    %cst_91 = arith.constant dense<0.000000e+00> : vector<135x32xf32>
    %88 = tpu.matmul %85, %87, %cst_91 {dimension_numbers = #tpu.dot_dimension_numbers<[1], [0], [0], [1], [0, 0, 1, 1], [], []>} : vector<135x16xf32>, vector<16x32xf32>, vector<135x32xf32> -> vector<135x32xf32>
    %89 = arith.addf %84, %88 : vector<135x32xf32>
    %c432_92 = arith.constant 432 : index
    %c0_93 = arith.constant 0 : index
    %90 = vector.load %arg8[%c432_92, %c0_93] : memref<576x16xf32, #tpu.memory_space<vmem>>, vector<135x16xf32>
    %c3_94 = arith.constant 3 : index
    %c0_95 = arith.constant 0 : index
    %c0_96 = arith.constant 0 : index
    %91 = vector.load %arg5[%c3_94, %c0_95, %c0_96] : memref<9x16x32xf32, #tpu.memory_space<vmem>>, vector<1x16x32xf32>
    %92 = vector.shape_cast %91 : vector<1x16x32xf32> to vector<16x32xf32>
    %cst_97 = arith.constant dense<0.000000e+00> : vector<135x32xf32>
    %93 = tpu.matmul %90, %92, %cst_97 {dimension_numbers = #tpu.dot_dimension_numbers<[1], [0], [0], [1], [0, 0, 1, 1], [], []>} : vector<135x16xf32>, vector<16x32xf32>, vector<135x32xf32> -> vector<135x32xf32>
    %94 = arith.addf %89, %93 : vector<135x32xf32>
    %c289_98 = arith.constant 289 : index
    %c0_99 = arith.constant 0 : index
    %95 = vector.load %arg8[%c289_98, %c0_99] : memref<576x16xf32, #tpu.memory_space<vmem>>, vector<135x16xf32>
    %c4_100 = arith.constant 4 : index
    %c0_101 = arith.constant 0 : index
    %c0_102 = arith.constant 0 : index
    %96 = vector.load %arg5[%c4_100, %c0_101, %c0_102] : memref<9x16x32xf32, #tpu.memory_space<vmem>>, vector<1x16x32xf32>
    %97 = vector.shape_cast %96 : vector<1x16x32xf32> to vector<16x32xf32>
    %cst_103 = arith.constant dense<0.000000e+00> : vector<135x32xf32>
    %98 = tpu.matmul %95, %97, %cst_103 {dimension_numbers = #tpu.dot_dimension_numbers<[1], [0], [0], [1], [0, 0, 1, 1], [], []>} : vector<135x16xf32>, vector<16x32xf32>, vector<135x32xf32> -> vector<135x32xf32>
    %99 = arith.addf %94, %98 : vector<135x32xf32>
    %c433 = arith.constant 433 : index
    %c0_104 = arith.constant 0 : index
    %100 = vector.load %arg8[%c433, %c0_104] : memref<576x16xf32, #tpu.memory_space<vmem>>, vector<135x16xf32>
    %c5_105 = arith.constant 5 : index
    %c0_106 = arith.constant 0 : index
    %c0_107 = arith.constant 0 : index
    %101 = vector.load %arg5[%c5_105, %c0_106, %c0_107] : memref<9x16x32xf32, #tpu.memory_space<vmem>>, vector<1x16x32xf32>
    %102 = vector.shape_cast %101 : vector<1x16x32xf32> to vector<16x32xf32>
    %cst_108 = arith.constant dense<0.000000e+00> : vector<135x32xf32>
    %103 = tpu.matmul %100, %102, %cst_108 {dimension_numbers = #tpu.dot_dimension_numbers<[1], [0], [0], [1], [0, 0, 1, 1], [], []>} : vector<135x16xf32>, vector<16x32xf32>, vector<135x32xf32> -> vector<135x32xf32>
    %104 = arith.addf %99, %103 : vector<135x32xf32>
    %c152_109 = arith.constant 152 : index
    %c0_110 = arith.constant 0 : index
    %105 = vector.load %arg8[%c152_109, %c0_110] : memref<576x16xf32, #tpu.memory_space<vmem>>, vector<135x16xf32>
    %c6_111 = arith.constant 6 : index
    %c0_112 = arith.constant 0 : index
    %c0_113 = arith.constant 0 : index
    %106 = vector.load %arg5[%c6_111, %c0_112, %c0_113] : memref<9x16x32xf32, #tpu.memory_space<vmem>>, vector<1x16x32xf32>
    %107 = vector.shape_cast %106 : vector<1x16x32xf32> to vector<16x32xf32>
    %cst_114 = arith.constant dense<0.000000e+00> : vector<135x32xf32>
    %108 = tpu.matmul %105, %107, %cst_114 {dimension_numbers = #tpu.dot_dimension_numbers<[1], [0], [0], [1], [0, 0, 1, 1], [], []>} : vector<135x16xf32>, vector<16x32xf32>, vector<135x32xf32> -> vector<135x32xf32>
    %109 = arith.addf %104, %108 : vector<135x32xf32>
    %c9_115 = arith.constant 9 : index
    %c0_116 = arith.constant 0 : index
    %110 = vector.load %arg8[%c9_115, %c0_116] : memref<576x16xf32, #tpu.memory_space<vmem>>, vector<135x16xf32>
    %c7_117 = arith.constant 7 : index
    %c0_118 = arith.constant 0 : index
    %c0_119 = arith.constant 0 : index
    %111 = vector.load %arg5[%c7_117, %c0_118, %c0_119] : memref<9x16x32xf32, #tpu.memory_space<vmem>>, vector<1x16x32xf32>
    %112 = vector.shape_cast %111 : vector<1x16x32xf32> to vector<16x32xf32>
    %cst_120 = arith.constant dense<0.000000e+00> : vector<135x32xf32>
    %113 = tpu.matmul %110, %112, %cst_120 {dimension_numbers = #tpu.dot_dimension_numbers<[1], [0], [0], [1], [0, 0, 1, 1], [], []>} : vector<135x16xf32>, vector<16x32xf32>, vector<135x32xf32> -> vector<135x32xf32>
    %114 = arith.addf %109, %113 : vector<135x32xf32>
    %c153 = arith.constant 153 : index
    %c0_121 = arith.constant 0 : index
    %115 = vector.load %arg8[%c153, %c0_121] : memref<576x16xf32, #tpu.memory_space<vmem>>, vector<135x16xf32>
    %c8_122 = arith.constant 8 : index
    %c0_123 = arith.constant 0 : index
    %c0_124 = arith.constant 0 : index
    %116 = vector.load %arg5[%c8_122, %c0_123, %c0_124] : memref<9x16x32xf32, #tpu.memory_space<vmem>>, vector<1x16x32xf32>
    %117 = vector.shape_cast %116 : vector<1x16x32xf32> to vector<16x32xf32>
    %cst_125 = arith.constant dense<0.000000e+00> : vector<135x32xf32>
    %118 = tpu.matmul %115, %117, %cst_125 {dimension_numbers = #tpu.dot_dimension_numbers<[1], [0], [0], [1], [0, 0, 1, 1], [], []>} : vector<135x16xf32>, vector<16x32xf32>, vector<135x32xf32> -> vector<135x32xf32>
    %119 = arith.addf %114, %118 : vector<135x32xf32>
    %120 = arith.maximumf %73, %119 : vector<135x32xf32>
    %cst_126 = arith.constant 0.000000e+00 : f32
    %121 = vector.broadcast %cst_126 : f32 to vector<135x32xf32>
    %c288_127 = arith.constant 288 : index
    %c0_128 = arith.constant 0 : index
    %122 = vector.load %arg8[%c288_127, %c0_128] : memref<576x16xf32, #tpu.memory_space<vmem>>, vector<135x16xf32>
    %c0_129 = arith.constant 0 : index
    %c0_130 = arith.constant 0 : index
    %c0_131 = arith.constant 0 : index
    %123 = vector.load %arg5[%c0_129, %c0_130, %c0_131] : memref<9x16x32xf32, #tpu.memory_space<vmem>>, vector<1x16x32xf32>
    %124 = vector.shape_cast %123 : vector<1x16x32xf32> to vector<16x32xf32>
    %cst_132 = arith.constant dense<0.000000e+00> : vector<135x32xf32>
    %125 = tpu.matmul %122, %124, %cst_132 {dimension_numbers = #tpu.dot_dimension_numbers<[1], [0], [0], [1], [0, 0, 1, 1], [], []>} : vector<135x16xf32>, vector<16x32xf32>, vector<135x32xf32> -> vector<135x32xf32>
    %126 = arith.addf %121, %125 : vector<135x32xf32>
    %c432_133 = arith.constant 432 : index
    %c0_134 = arith.constant 0 : index
    %127 = vector.load %arg8[%c432_133, %c0_134] : memref<576x16xf32, #tpu.memory_space<vmem>>, vector<135x16xf32>
    %c1_135 = arith.constant 1 : index
    %c0_136 = arith.constant 0 : index
    %c0_137 = arith.constant 0 : index
    %128 = vector.load %arg5[%c1_135, %c0_136, %c0_137] : memref<9x16x32xf32, #tpu.memory_space<vmem>>, vector<1x16x32xf32>
    %129 = vector.shape_cast %128 : vector<1x16x32xf32> to vector<16x32xf32>
    %cst_138 = arith.constant dense<0.000000e+00> : vector<135x32xf32>
    %130 = tpu.matmul %127, %129, %cst_138 {dimension_numbers = #tpu.dot_dimension_numbers<[1], [0], [0], [1], [0, 0, 1, 1], [], []>} : vector<135x16xf32>, vector<16x32xf32>, vector<135x32xf32> -> vector<135x32xf32>
    %131 = arith.addf %126, %130 : vector<135x32xf32>
    %c289_139 = arith.constant 289 : index
    %c0_140 = arith.constant 0 : index
    %132 = vector.load %arg8[%c289_139, %c0_140] : memref<576x16xf32, #tpu.memory_space<vmem>>, vector<135x16xf32>
    %c2_141 = arith.constant 2 : index
    %c0_142 = arith.constant 0 : index
    %c0_143 = arith.constant 0 : index
    %133 = vector.load %arg5[%c2_141, %c0_142, %c0_143] : memref<9x16x32xf32, #tpu.memory_space<vmem>>, vector<1x16x32xf32>
    %134 = vector.shape_cast %133 : vector<1x16x32xf32> to vector<16x32xf32>
    %cst_144 = arith.constant dense<0.000000e+00> : vector<135x32xf32>
    %135 = tpu.matmul %132, %134, %cst_144 {dimension_numbers = #tpu.dot_dimension_numbers<[1], [0], [0], [1], [0, 0, 1, 1], [], []>} : vector<135x16xf32>, vector<16x32xf32>, vector<135x32xf32> -> vector<135x32xf32>
    %136 = arith.addf %131, %135 : vector<135x32xf32>
    %c8_145 = arith.constant 8 : index
    %c0_146 = arith.constant 0 : index
    %137 = vector.load %arg8[%c8_145, %c0_146] : memref<576x16xf32, #tpu.memory_space<vmem>>, vector<135x16xf32>
    %c3_147 = arith.constant 3 : index
    %c0_148 = arith.constant 0 : index
    %c0_149 = arith.constant 0 : index
    %138 = vector.load %arg5[%c3_147, %c0_148, %c0_149] : memref<9x16x32xf32, #tpu.memory_space<vmem>>, vector<1x16x32xf32>
    %139 = vector.shape_cast %138 : vector<1x16x32xf32> to vector<16x32xf32>
    %cst_150 = arith.constant dense<0.000000e+00> : vector<135x32xf32>
    %140 = tpu.matmul %137, %139, %cst_150 {dimension_numbers = #tpu.dot_dimension_numbers<[1], [0], [0], [1], [0, 0, 1, 1], [], []>} : vector<135x16xf32>, vector<16x32xf32>, vector<135x32xf32> -> vector<135x32xf32>
    %141 = arith.addf %136, %140 : vector<135x32xf32>
    %c152_151 = arith.constant 152 : index
    %c0_152 = arith.constant 0 : index
    %142 = vector.load %arg8[%c152_151, %c0_152] : memref<576x16xf32, #tpu.memory_space<vmem>>, vector<135x16xf32>
    %c4_153 = arith.constant 4 : index
    %c0_154 = arith.constant 0 : index
    %c0_155 = arith.constant 0 : index
    %143 = vector.load %arg5[%c4_153, %c0_154, %c0_155] : memref<9x16x32xf32, #tpu.memory_space<vmem>>, vector<1x16x32xf32>
    %144 = vector.shape_cast %143 : vector<1x16x32xf32> to vector<16x32xf32>
    %cst_156 = arith.constant dense<0.000000e+00> : vector<135x32xf32>
    %145 = tpu.matmul %142, %144, %cst_156 {dimension_numbers = #tpu.dot_dimension_numbers<[1], [0], [0], [1], [0, 0, 1, 1], [], []>} : vector<135x16xf32>, vector<16x32xf32>, vector<135x32xf32> -> vector<135x32xf32>
    %146 = arith.addf %141, %145 : vector<135x32xf32>
    %c9_157 = arith.constant 9 : index
    %c0_158 = arith.constant 0 : index
    %147 = vector.load %arg8[%c9_157, %c0_158] : memref<576x16xf32, #tpu.memory_space<vmem>>, vector<135x16xf32>
    %c5_159 = arith.constant 5 : index
    %c0_160 = arith.constant 0 : index
    %c0_161 = arith.constant 0 : index
    %148 = vector.load %arg5[%c5_159, %c0_160, %c0_161] : memref<9x16x32xf32, #tpu.memory_space<vmem>>, vector<1x16x32xf32>
    %149 = vector.shape_cast %148 : vector<1x16x32xf32> to vector<16x32xf32>
    %cst_162 = arith.constant dense<0.000000e+00> : vector<135x32xf32>
    %150 = tpu.matmul %147, %149, %cst_162 {dimension_numbers = #tpu.dot_dimension_numbers<[1], [0], [0], [1], [0, 0, 1, 1], [], []>} : vector<135x16xf32>, vector<16x32xf32>, vector<135x32xf32> -> vector<135x32xf32>
    %151 = arith.addf %146, %150 : vector<135x32xf32>
    %c296 = arith.constant 296 : index
    %c0_163 = arith.constant 0 : index
    %152 = vector.load %arg8[%c296, %c0_163] : memref<576x16xf32, #tpu.memory_space<vmem>>, vector<135x16xf32>
    %c6_164 = arith.constant 6 : index
    %c0_165 = arith.constant 0 : index
    %c0_166 = arith.constant 0 : index
    %153 = vector.load %arg5[%c6_164, %c0_165, %c0_166] : memref<9x16x32xf32, #tpu.memory_space<vmem>>, vector<1x16x32xf32>
    %154 = vector.shape_cast %153 : vector<1x16x32xf32> to vector<16x32xf32>
    %cst_167 = arith.constant dense<0.000000e+00> : vector<135x32xf32>
    %155 = tpu.matmul %152, %154, %cst_167 {dimension_numbers = #tpu.dot_dimension_numbers<[1], [0], [0], [1], [0, 0, 1, 1], [], []>} : vector<135x16xf32>, vector<16x32xf32>, vector<135x32xf32> -> vector<135x32xf32>
    %156 = arith.addf %151, %155 : vector<135x32xf32>
    %c440 = arith.constant 440 : index
    %c0_168 = arith.constant 0 : index
    %157 = vector.load %arg8[%c440, %c0_168] : memref<576x16xf32, #tpu.memory_space<vmem>>, vector<135x16xf32>
    %c7_169 = arith.constant 7 : index
    %c0_170 = arith.constant 0 : index
    %c0_171 = arith.constant 0 : index
    %158 = vector.load %arg5[%c7_169, %c0_170, %c0_171] : memref<9x16x32xf32, #tpu.memory_space<vmem>>, vector<1x16x32xf32>
    %159 = vector.shape_cast %158 : vector<1x16x32xf32> to vector<16x32xf32>
    %cst_172 = arith.constant dense<0.000000e+00> : vector<135x32xf32>
    %160 = tpu.matmul %157, %159, %cst_172 {dimension_numbers = #tpu.dot_dimension_numbers<[1], [0], [0], [1], [0, 0, 1, 1], [], []>} : vector<135x16xf32>, vector<16x32xf32>, vector<135x32xf32> -> vector<135x32xf32>
    %161 = arith.addf %156, %160 : vector<135x32xf32>
    %c297 = arith.constant 297 : index
    %c0_173 = arith.constant 0 : index
    %162 = vector.load %arg8[%c297, %c0_173] : memref<576x16xf32, #tpu.memory_space<vmem>>, vector<135x16xf32>
    %c8_174 = arith.constant 8 : index
    %c0_175 = arith.constant 0 : index
    %c0_176 = arith.constant 0 : index
    %163 = vector.load %arg5[%c8_174, %c0_175, %c0_176] : memref<9x16x32xf32, #tpu.memory_space<vmem>>, vector<1x16x32xf32>
    %164 = vector.shape_cast %163 : vector<1x16x32xf32> to vector<16x32xf32>
    %cst_177 = arith.constant dense<0.000000e+00> : vector<135x32xf32>
    %165 = tpu.matmul %162, %164, %cst_177 {dimension_numbers = #tpu.dot_dimension_numbers<[1], [0], [0], [1], [0, 0, 1, 1], [], []>} : vector<135x16xf32>, vector<16x32xf32>, vector<135x32xf32> -> vector<135x32xf32>
    %166 = arith.addf %161, %165 : vector<135x32xf32>
    %167 = arith.maximumf %120, %166 : vector<135x32xf32>
    %cst_178 = arith.constant 0.000000e+00 : f32
    %168 = vector.broadcast %cst_178 : f32 to vector<135x32xf32>
    %c432_179 = arith.constant 432 : index
    %c0_180 = arith.constant 0 : index
    %169 = vector.load %arg8[%c432_179, %c0_180] : memref<576x16xf32, #tpu.memory_space<vmem>>, vector<135x16xf32>
    %c0_181 = arith.constant 0 : index
    %c0_182 = arith.constant 0 : index
    %c0_183 = arith.constant 0 : index
    %170 = vector.load %arg5[%c0_181, %c0_182, %c0_183] : memref<9x16x32xf32, #tpu.memory_space<vmem>>, vector<1x16x32xf32>
    %171 = vector.shape_cast %170 : vector<1x16x32xf32> to vector<16x32xf32>
    %cst_184 = arith.constant dense<0.000000e+00> : vector<135x32xf32>
    %172 = tpu.matmul %169, %171, %cst_184 {dimension_numbers = #tpu.dot_dimension_numbers<[1], [0], [0], [1], [0, 0, 1, 1], [], []>} : vector<135x16xf32>, vector<16x32xf32>, vector<135x32xf32> -> vector<135x32xf32>
    %173 = arith.addf %168, %172 : vector<135x32xf32>
    %c289_185 = arith.constant 289 : index
    %c0_186 = arith.constant 0 : index
    %174 = vector.load %arg8[%c289_185, %c0_186] : memref<576x16xf32, #tpu.memory_space<vmem>>, vector<135x16xf32>
    %c1_187 = arith.constant 1 : index
    %c0_188 = arith.constant 0 : index
    %c0_189 = arith.constant 0 : index
    %175 = vector.load %arg5[%c1_187, %c0_188, %c0_189] : memref<9x16x32xf32, #tpu.memory_space<vmem>>, vector<1x16x32xf32>
    %176 = vector.shape_cast %175 : vector<1x16x32xf32> to vector<16x32xf32>
    %cst_190 = arith.constant dense<0.000000e+00> : vector<135x32xf32>
    %177 = tpu.matmul %174, %176, %cst_190 {dimension_numbers = #tpu.dot_dimension_numbers<[1], [0], [0], [1], [0, 0, 1, 1], [], []>} : vector<135x16xf32>, vector<16x32xf32>, vector<135x32xf32> -> vector<135x32xf32>
    %178 = arith.addf %173, %177 : vector<135x32xf32>
    %c433_191 = arith.constant 433 : index
    %c0_192 = arith.constant 0 : index
    %179 = vector.load %arg8[%c433_191, %c0_192] : memref<576x16xf32, #tpu.memory_space<vmem>>, vector<135x16xf32>
    %c2_193 = arith.constant 2 : index
    %c0_194 = arith.constant 0 : index
    %c0_195 = arith.constant 0 : index
    %180 = vector.load %arg5[%c2_193, %c0_194, %c0_195] : memref<9x16x32xf32, #tpu.memory_space<vmem>>, vector<1x16x32xf32>
    %181 = vector.shape_cast %180 : vector<1x16x32xf32> to vector<16x32xf32>
    %cst_196 = arith.constant dense<0.000000e+00> : vector<135x32xf32>
    %182 = tpu.matmul %179, %181, %cst_196 {dimension_numbers = #tpu.dot_dimension_numbers<[1], [0], [0], [1], [0, 0, 1, 1], [], []>} : vector<135x16xf32>, vector<16x32xf32>, vector<135x32xf32> -> vector<135x32xf32>
    %183 = arith.addf %178, %182 : vector<135x32xf32>
    %c152_197 = arith.constant 152 : index
    %c0_198 = arith.constant 0 : index
    %184 = vector.load %arg8[%c152_197, %c0_198] : memref<576x16xf32, #tpu.memory_space<vmem>>, vector<135x16xf32>
    %c3_199 = arith.constant 3 : index
    %c0_200 = arith.constant 0 : index
    %c0_201 = arith.constant 0 : index
    %185 = vector.load %arg5[%c3_199, %c0_200, %c0_201] : memref<9x16x32xf32, #tpu.memory_space<vmem>>, vector<1x16x32xf32>
    %186 = vector.shape_cast %185 : vector<1x16x32xf32> to vector<16x32xf32>
    %cst_202 = arith.constant dense<0.000000e+00> : vector<135x32xf32>
    %187 = tpu.matmul %184, %186, %cst_202 {dimension_numbers = #tpu.dot_dimension_numbers<[1], [0], [0], [1], [0, 0, 1, 1], [], []>} : vector<135x16xf32>, vector<16x32xf32>, vector<135x32xf32> -> vector<135x32xf32>
    %188 = arith.addf %183, %187 : vector<135x32xf32>
    %c9_203 = arith.constant 9 : index
    %c0_204 = arith.constant 0 : index
    %189 = vector.load %arg8[%c9_203, %c0_204] : memref<576x16xf32, #tpu.memory_space<vmem>>, vector<135x16xf32>
    %c4_205 = arith.constant 4 : index
    %c0_206 = arith.constant 0 : index
    %c0_207 = arith.constant 0 : index
    %190 = vector.load %arg5[%c4_205, %c0_206, %c0_207] : memref<9x16x32xf32, #tpu.memory_space<vmem>>, vector<1x16x32xf32>
    %191 = vector.shape_cast %190 : vector<1x16x32xf32> to vector<16x32xf32>
    %cst_208 = arith.constant dense<0.000000e+00> : vector<135x32xf32>
    %192 = tpu.matmul %189, %191, %cst_208 {dimension_numbers = #tpu.dot_dimension_numbers<[1], [0], [0], [1], [0, 0, 1, 1], [], []>} : vector<135x16xf32>, vector<16x32xf32>, vector<135x32xf32> -> vector<135x32xf32>
    %193 = arith.addf %188, %192 : vector<135x32xf32>
    %c153_209 = arith.constant 153 : index
    %c0_210 = arith.constant 0 : index
    %194 = vector.load %arg8[%c153_209, %c0_210] : memref<576x16xf32, #tpu.memory_space<vmem>>, vector<135x16xf32>
    %c5_211 = arith.constant 5 : index
    %c0_212 = arith.constant 0 : index
    %c0_213 = arith.constant 0 : index
    %195 = vector.load %arg5[%c5_211, %c0_212, %c0_213] : memref<9x16x32xf32, #tpu.memory_space<vmem>>, vector<1x16x32xf32>
    %196 = vector.shape_cast %195 : vector<1x16x32xf32> to vector<16x32xf32>
    %cst_214 = arith.constant dense<0.000000e+00> : vector<135x32xf32>
    %197 = tpu.matmul %194, %196, %cst_214 {dimension_numbers = #tpu.dot_dimension_numbers<[1], [0], [0], [1], [0, 0, 1, 1], [], []>} : vector<135x16xf32>, vector<16x32xf32>, vector<135x32xf32> -> vector<135x32xf32>
    %198 = arith.addf %193, %197 : vector<135x32xf32>
    %c440_215 = arith.constant 440 : index
    %c0_216 = arith.constant 0 : index
    %199 = vector.load %arg8[%c440_215, %c0_216] : memref<576x16xf32, #tpu.memory_space<vmem>>, vector<135x16xf32>
    %c6_217 = arith.constant 6 : index
    %c0_218 = arith.constant 0 : index
    %c0_219 = arith.constant 0 : index
    %200 = vector.load %arg5[%c6_217, %c0_218, %c0_219] : memref<9x16x32xf32, #tpu.memory_space<vmem>>, vector<1x16x32xf32>
    %201 = vector.shape_cast %200 : vector<1x16x32xf32> to vector<16x32xf32>
    %cst_220 = arith.constant dense<0.000000e+00> : vector<135x32xf32>
    %202 = tpu.matmul %199, %201, %cst_220 {dimension_numbers = #tpu.dot_dimension_numbers<[1], [0], [0], [1], [0, 0, 1, 1], [], []>} : vector<135x16xf32>, vector<16x32xf32>, vector<135x32xf32> -> vector<135x32xf32>
    %203 = arith.addf %198, %202 : vector<135x32xf32>
    %c297_221 = arith.constant 297 : index
    %c0_222 = arith.constant 0 : index
    %204 = vector.load %arg8[%c297_221, %c0_222] : memref<576x16xf32, #tpu.memory_space<vmem>>, vector<135x16xf32>
    %c7_223 = arith.constant 7 : index
    %c0_224 = arith.constant 0 : index
    %c0_225 = arith.constant 0 : index
    %205 = vector.load %arg5[%c7_223, %c0_224, %c0_225] : memref<9x16x32xf32, #tpu.memory_space<vmem>>, vector<1x16x32xf32>
    %206 = vector.shape_cast %205 : vector<1x16x32xf32> to vector<16x32xf32>
    %cst_226 = arith.constant dense<0.000000e+00> : vector<135x32xf32>
    %207 = tpu.matmul %204, %206, %cst_226 {dimension_numbers = #tpu.dot_dimension_numbers<[1], [0], [0], [1], [0, 0, 1, 1], [], []>} : vector<135x16xf32>, vector<16x32xf32>, vector<135x32xf32> -> vector<135x32xf32>
    %208 = arith.addf %203, %207 : vector<135x32xf32>
    %c441 = arith.constant 441 : index
    %c0_227 = arith.constant 0 : index
    %209 = vector.load %arg8[%c441, %c0_227] : memref<576x16xf32, #tpu.memory_space<vmem>>, vector<135x16xf32>
    %c8_228 = arith.constant 8 : index
    %c0_229 = arith.constant 0 : index
    %c0_230 = arith.constant 0 : index
    %210 = vector.load %arg5[%c8_228, %c0_229, %c0_230] : memref<9x16x32xf32, #tpu.memory_space<vmem>>, vector<1x16x32xf32>
    %211 = vector.shape_cast %210 : vector<1x16x32xf32> to vector<16x32xf32>
    %cst_231 = arith.constant dense<0.000000e+00> : vector<135x32xf32>
    %212 = tpu.matmul %209, %211, %cst_231 {dimension_numbers = #tpu.dot_dimension_numbers<[1], [0], [0], [1], [0, 0, 1, 1], [], []>} : vector<135x16xf32>, vector<16x32xf32>, vector<135x32xf32> -> vector<135x32xf32>
    %213 = arith.addf %208, %212 : vector<135x32xf32>
    %214 = arith.maximumf %167, %213 : vector<135x32xf32>
    %c0_232 = arith.constant 0 : index
    %c0_233 = arith.constant 0 : index
    %215 = vector.load %arg6[%c0_232, %c0_233] : memref<1x32xf32, #tpu.memory_space<vmem>>, vector<1x32xf32>
    %216 = vector.broadcast %215 : vector<1x32xf32> to vector<135x32xf32>
    %217 = arith.addf %214, %216 : vector<135x32xf32>
    %cst_234 = arith.constant 0.000000e+00 : f32
    %218 = vector.broadcast %cst_234 : f32 to vector<135x32xf32>
    %219 = arith.maximumf %217, %218 : vector<135x32xf32>
    %c0_235 = arith.constant 0 : index
    %c0_236 = arith.constant 0 : index
    %c0_237 = arith.constant 0 : index
    %220 = vector.load %arg7[%c0_235, %c0_236, %c0_237] : memref<1x135x32xf32, #tpu.memory_space<vmem>>, vector<1x135x32xf32>
    %221 = vector.shape_cast %220 : vector<1x135x32xf32> to vector<135x32xf32>
    %222 = vector.shape_cast %219 : vector<135x32xf32> to vector<1x135x32xf32>
    tpu.vector_store %arg7[%c0_235, %c0_236, %c0_237], %222 {strides = array<i32>} : memref<1x135x32xf32, #tpu.memory_space<vmem>>, vector<1x135x32xf32>,
    return
  }
  func.func @transform_0(%arg0: i32) -> (i32, i32, i32, i32) {
    %c0_i32 = arith.constant 0 : i32
    %c0_i32_0 = arith.constant 0 : i32
    %c0_i32_1 = arith.constant 0 : i32
    %c0_i32_2 = arith.constant 0 : i32
    return %arg0, %c0_i32, %c0_i32_0, %c0_i32_1 : i32, i32, i32, i32
  }
  func.func @transform_1(%arg0: i32) -> (i32, i32) {
    %c0_i32 = arith.constant 0 : i32
    %c0_i32_0 = arith.constant 0 : i32
    %c0_i32_1 = arith.constant 0 : i32
    return %c0_i32, %c0_i32_0 : i32, i32
  }
  func.func @transform_2(%arg0: i32) -> (i32, i32) {
    %c0_i32 = arith.constant 0 : i32
    %c0_i32_0 = arith.constant 0 : i32
    %c0_i32_1 = arith.constant 0 : i32
    return %c0_i32, %c0_i32_0 : i32, i32
  }
  func.func @transform_3(%arg0: i32) -> (i32, i32) {
    %c0_i32 = arith.constant 0 : i32
    %c0_i32_0 = arith.constant 0 : i32
    %c0_i32_1 = arith.constant 0 : i32
    return %c0_i32, %c0_i32_0 : i32, i32
  }
  func.func @transform_4(%arg0: i32) -> (i32, i32, i32) {
    %c0_i32 = arith.constant 0 : i32
    %c0_i32_0 = arith.constant 0 : i32
    %c0_i32_1 = arith.constant 0 : i32
    %c0_i32_2 = arith.constant 0 : i32
    return %c0_i32, %c0_i32_0, %c0_i32_1 : i32, i32, i32
  }
  func.func @transform_5(%arg0: i32) -> (i32, i32) {
    %c0_i32 = arith.constant 0 : i32
    %c0_i32_0 = arith.constant 0 : i32
    %c0_i32_1 = arith.constant 0 : i32
    return %c0_i32, %c0_i32_0 : i32, i32
  }
  func.func @transform_6(%arg0: i32) -> (i32, i32, i32) {
    %c0_i32 = arith.constant 0 : i32
    %c0_i32_0 = arith.constant 0 : i32
    %c0_i32_1 = arith.constant 0 : i32
    return %arg0, %c0_i32, %c0_i32_0 : i32, i32, i32
  }
}

module attributes {stable_mosaic.version = 11 : i64} {
  func.func @mlp_kernel(%arg0: memref<2x4320xf32, #tpu.memory_space<vmem>>, %arg1: memref<4320x64xf32, #tpu.memory_space<vmem>>, %arg2: memref<1x64xf32, #tpu.memory_space<vmem>>, %arg3: memref<64x2xf32, #tpu.memory_space<vmem>>, %arg4: memref<1x2xf32, #tpu.memory_space<vmem>>, %arg5: memref<2x2xf32, #tpu.memory_space<vmem>>) attributes {dimension_semantics = [], scalar_prefetch = 0 : i64, scratch_operands = 0 : i64, tpu.core_type = #tpu.core_type<tc>} {
    %c0 = arith.constant 0 : index
    %c0_0 = arith.constant 0 : index
    %0 = vector.load %arg0[%c0, %c0_0] : memref<2x4320xf32, #tpu.memory_space<vmem>>, vector<2x4320xf32>
    %c0_1 = arith.constant 0 : index
    %c0_2 = arith.constant 0 : index
    %1 = vector.load %arg1[%c0_1, %c0_2] : memref<4320x64xf32, #tpu.memory_space<vmem>>, vector<4320x64xf32>
    %cst = arith.constant dense<0.000000e+00> : vector<2x64xf32>
    %2 = tpu.matmul %0, %1, %cst {dimension_numbers = #tpu.dot_dimension_numbers<[1], [0], [0], [1], [0, 0, 1, 1], [], []>} : vector<2x4320xf32>, vector<4320x64xf32>, vector<2x64xf32> -> vector<2x64xf32>
    %c0_3 = arith.constant 0 : index
    %c0_4 = arith.constant 0 : index
    %3 = vector.load %arg2[%c0_3, %c0_4] : memref<1x64xf32, #tpu.memory_space<vmem>>, vector<1x64xf32>
    %4 = vector.broadcast %3 : vector<1x64xf32> to vector<2x64xf32>
    %5 = arith.addf %2, %4 : vector<2x64xf32>
    %cst_5 = arith.constant 0.000000e+00 : f32
    %6 = vector.broadcast %cst_5 : f32 to vector<2x64xf32>
    %7 = arith.maximumf %5, %6 : vector<2x64xf32>
    %c0_6 = arith.constant 0 : index
    %c0_7 = arith.constant 0 : index
    %8 = vector.load %arg3[%c0_6, %c0_7] : memref<64x2xf32, #tpu.memory_space<vmem>>, vector<64x2xf32>
    %cst_8 = arith.constant dense<0.000000e+00> : vector<2x2xf32>
    %9 = tpu.matmul %7, %8, %cst_8 {dimension_numbers = #tpu.dot_dimension_numbers<[1], [0], [0], [1], [0, 0, 1, 1], [], []>} : vector<2x64xf32>, vector<64x2xf32>, vector<2x2xf32> -> vector<2x2xf32>
    %c0_9 = arith.constant 0 : index
    %c0_10 = arith.constant 0 : index
    %10 = vector.load %arg4[%c0_9, %c0_10] : memref<1x2xf32, #tpu.memory_space<vmem>>, vector<1x2xf32>
    %11 = vector.broadcast %10 : vector<1x2xf32> to vector<2x2xf32>
    %12 = arith.addf %9, %11 : vector<2x2xf32>
    %c0_11 = arith.constant 0 : index
    %c0_12 = arith.constant 0 : index
    %13 = vector.load %arg5[%c0_11, %c0_12] : memref<2x2xf32, #tpu.memory_space<vmem>>, vector<2x2xf32>
    tpu.vector_store %arg5[%c0_11, %c0_12], %12 {strides = array<i32>} : memref<2x2xf32, #tpu.memory_space<vmem>>, vector<2x2xf32>,
    return
  }
}

</mosaic_0001>

<bundles_post_ra>
// kernel: small_cnn_forward.3
= control target key start
LH: loop header
LB: loop body
LE: loop exit
PB: predicated region body
PF: predicated region fallthrough
CT: control target
= control target key end

     0   :  { %v3258_v24 = vmov 1983009808   ;;  %v590_v26 = vlaneseq  ;;  %s5139_s0 = inlined_call_operand.vmem [shape: f32[2,4320], index: 0, kind: input, shape index: {}]   ;;  %s5140_s1 = inlined_call_operand.vmem [shape: f32[4320,64], index: 1, kind: input, shape index: {}]   ;;  %s5141_s2 = inlined_call_operand.vmem [shape: f32[1,64], index: 2, kind: input, shape index: {}]   ;;  %s5142_s3 = inlined_call_operand.vmem [shape: f32[64,2], index: 3, kind: input, shape index: {}]   ;;  %s5143_s4 = inlined_call_operand.vmem [shape: f32[1,2], index: 4, kind: input, shape index: {}]   ;;  %s5144_s5 = inlined_call_operand.hbm [shape: f32[2,2], index: 5, kind: output, shape index: {}]  }
   0x1   :  { %v46_v0 = vld [vmem:[%s5140_s1 + $0x80] sm:$0xff]  ;;  %v47_v1 = vld [vmem:[%s5140_s1 + $0x88] sm:$0xff]  ;;  %v48_v5 = vld [vmem:[%s5140_s1 + $0x90] sm:$0xff]  ;;  %v588_v25 = vunpack.c.l.s4 %v3258_v24 }
   0x2   :  { %v30_v2 = vld [vmem:[%s5140_s1] sm:$0xff]  ;;  %v2655_v3 = vpack.c.bf16 %v47_v1, %v46_v0  ;;  %v31_v4 = vld [vmem:[%s5140_s1 + $0x8] sm:$0xff]  ;;  %v49_v6 = vld [vmem:[%s5140_s1 + $0x98] sm:$0xff]  ;;  %v591_v43 = vshrl.u32 %v590_v26, 7 }
   0x3   :  { %v2657_v7 = vpack.c.bf16 %v31_v4, %v30_v2  ;;  %v2659_v8 = vpack.c.bf16 %v49_v6, %v48_v5  ;;  %v32_v9 = vld [vmem:[%s5140_s1 + $0x10] sm:$0xff]  ;;  %v33_v10 = vld [vmem:[%s5140_s1 + $0x18] sm:$0xff]  ;;  %v50_v11 = vld [vmem:[%s5140_s1 + $0xa0] sm:$0xff]  ;;  %v589_v42 = vunpack.c.0.s8 %v588_v25 }
   0x4   :  { %2656 = vmatprep.subr.bf16.mxu1 %v2655_v3  ;;  %v51_v12 = vld [vmem:[%s5140_s1 + $0xa8] sm:$0xff]  ;;  %v2661_v13 = vpack.c.bf16 %v33_v10, %v32_v9  ;;  %v34_v14 = vld [vmem:[%s5140_s1 + $0x20] sm:$0xff]  ;;  %v52_v18 = vld [vmem:[%s5140_s1 + $0xb0] sm:$0xff] }
   0x5   :  { %2658 = vmatpush3.bf16.msra.mxu1 %v2657_v7  ;;  %v110_v15 = vld [vmem:[%s5140_s1 + $0x280] sm:$0xff]  ;;  %v2663_v16 = vpack.c.bf16 %v51_v12, %v50_v11  ;;  %v35_v17 = vld [vmem:[%s5140_s1 + $0x28] sm:$0xff]  ;;  %v53_v20 = vld [vmem:[%s5140_s1 + $0xb8] sm:$0xff]  ;;  %v3407_v59 = vsub.s32 %v589_v42, %v591_v43 }
   0x6   :  { %2660 = vmatprep.subr.bf16.mxu1 %v2659_v8  ;;  %v111_v19 = vld [vmem:[%s5140_s1 + $0x288] sm:$0xff]  ;;  %v94_v22 = vld [vmem:[%s5140_s1 + $0x200] sm:$0xff]  ;;  %v112_v28 = vld [vmem:[%s5140_s1 + $0x290] sm:$0xff]  ;;  %v2665_v30 = vpack.c.bf16 %v35_v17, %v34_v14  ;;  %v2667_v34 = vpack.c.bf16 %v53_v20, %v52_v18 }
   0x7   :  { %v2719_v21 = vpack.c.bf16 %v111_v19, %v110_v15  ;;  %v95_v23 = vld [vmem:[%s5140_s1 + $0x208] sm:$0xff]  ;;  %v113_v29 = vld [vmem:[%s5140_s1 + $0x298] sm:$0xff]  ;;  %v36_v31 = vld [vmem:[%s5140_s1 + $0x30] sm:$0xff] }
   0x8   :  { %v2721_v27 = vpack.c.bf16 %v95_v23, %v94_v22  ;;  %v2723_v32 = vpack.c.bf16 %v113_v29, %v112_v28  ;;  %v96_v33 = vld [vmem:[%s5140_s1 + $0x210] sm:$0xff]  ;;  %v37_v35 = vld [vmem:[%s5140_s1 + $0x38] sm:$0xff]  ;;  %v54_v36 = vld [vmem:[%s5140_s1 + $0xc0] sm:$0xff] }
   0x9   :  { %2662 = vmatpush3.bf16.msra.mxu1 %v2661_v13  ;;  %2720 = vmatprep.subr.bf16.mxu0 %v2719_v21  ;;  %v97_v37 = vld [vmem:[%s5140_s1 + $0x218] sm:$0xff]  ;;  %v55_v38 = vld [vmem:[%s5140_s1 + $0xc8] sm:$0xff]  ;;  %v114_v40 = vld [vmem:[%s5140_s1 + $0x2a0] sm:$0xff]  ;;  %v2669_v47 = vpack.c.bf16 %v37_v35, %v36_v31 }
   0xa   :  { %2664 = vmatprep.subr.bf16.mxu1 %v2663_v16  ;;  %2722 = vmatpush3.bf16.msra.mxu0 %v2721_v27  ;;  %v2725_v39 = vpack.c.bf16 %v97_v37, %v96_v33  ;;  %v115_v41 = vld [vmem:[%s5140_s1 + $0x2a8] sm:$0xff]  ;;  %v98_v45 = vld [vmem:[%s5140_s1 + $0x220] sm:$0xff]  ;;  %v116_v49 = vld [vmem:[%s5140_s1 + $0x2b0] sm:$0xff]  ;;  %v2671_v50 = vpack.c.bf16 %v55_v38, %v54_v36 }
   0xb   :  { %2724 = vmatprep.subr.bf16.mxu0 %v2723_v32  ;;  %v2727_v44 = vpack.c.bf16 %v115_v41, %v114_v40  ;;  %v99_v46 = vld [vmem:[%s5140_s1 + $0x228] sm:$0xff]  ;;  %v38_v48 = vld [vmem:[%s5140_s1 + $0x40] sm:$0xff]  ;;  %v56_v52 = vld [vmem:[%s5140_s1 + $0xd0] sm:$0xff] }
   0xc   :  { %v39_v51 = vld [vmem:[%s5140_s1 + $0x48] sm:$0xff]  ;;  %v2729_v53 = vpack.c.bf16 %v99_v46, %v98_v45  ;;  %v117_v54 = vld [vmem:[%s5140_s1 + $0x2b8] sm:$0xff]  ;;  %v100_v57 = vld [vmem:[%s5140_s1 + $0x230] sm:$0xff] }
   0xd   :  { %2666 = vmatpush3.bf16.msra.mxu1 %v2665_v30  ;;  %v57_v55 = vld [vmem:[%s5140_s1 + $0xd8] sm:$0xff]  ;;  %v2731_v56 = vpack.c.bf16 %v117_v54, %v116_v49  ;;  %v118_v60 = vld [vmem:[%s5140_s1 + $0x2c0] sm:$0xff]  ;;  %v119_v61 = vld [vmem:[%s5140_s1 + $0x2c8] sm:$0xff]  ;;  %v2673_v62 = vpack.c.bf16 %v39_v51, %v38_v48 }
   0xe   :  { %2668 = vmatprep.subr.bf16.mxu1 %v2667_v34  ;;  %2726 = vmatpush3.bf16.msra.mxu0 %v2725_v39  ;;  %v101_v58 = vld [vmem:[%s5140_s1 + $0x238] sm:$0xff]  ;;  %v40_v63 = vld [vmem:[%s5140_s1 + $0x50] sm:$0xff]  ;;  %v2675_v0 = vpack.c.bf16 %v57_v55, %v56_v52  ;;  %v58_v2 = vld [vmem:[%s5140_s1 + $0xe0] sm:$0xff]  ;;  %v2735_v6 = vpack.c.bf16 %v119_v61, %v118_v60 }
   0xf   :  { %2728 = vmatprep.subr.bf16.mxu0 %v2727_v44  ;;  %v41_v1 = vld [vmem:[%s5140_s1 + $0x58] sm:$0xff]  ;;  %v2733_v3 = vpack.c.bf16 %v101_v58, %v100_v57  ;;  %v21_v4 = vld [vmem:[%s5139_s0] sm:$0xff]  ;;  %v59_v5 = vld [vmem:[%s5140_s1 + $0xe8] sm:$0xff] }
  0x10   :  { %v102_v7 = vld [vmem:[%s5140_s1 + $0x240] sm:$0xff]  ;;  %v103_v8 = vld [vmem:[%s5140_s1 + $0x248] sm:$0xff]  ;;  %v3437_v9 = vrot.slane %v21_v4, %v3407_v59  ;;  %v120_v10 = vld [vmem:[%s5140_s1 + $0x2d0] sm:$0xff]  ;;  %v2677_v12 = vpack.c.bf16 %v41_v1, %v40_v63  ;;  %v2679_v14 = vpack.c.bf16 %v59_v5, %v58_v2  ;;  %v586_v27 = vcombine.high %v21_v4, %v21_v4 }
  0x11   :  { %2670 = vmatpush3.bf16.msra.mxu1 %v2669_v47  ;;  %v121_v11 = vld [vmem:[%s5140_s1 + $0x2d8] sm:$0xff]  ;;  %v42_v15 = vld [vmem:[%s5140_s1 + $0x60] sm:$0xff]  ;;  %v43_v16 = vld [vmem:[%s5140_s1 + $0x68] sm:$0xff]  ;;  %v2737_v18 = vpack.c.bf16 %v103_v8, %v102_v7 }
  0x12   :  { %2672 = vmatprep.subr.bf16.mxu1 %v2671_v50  ;;  %2730 = vmatpush3.bf16.msra.mxu0 %v2729_v53  ;;  %v601_v13 = vcombine.high %v3437_v9, %v3437_v9  ;;  %v60_v17 = vld [vmem:[%s5140_s1 + $0xf0] sm:$0xff]  ;;  %v61_v19 = vld [vmem:[%s5140_s1 + $0xf8] sm:$0xff]  ;;  %v2739_v20 = vpack.c.bf16 %v121_v11, %v120_v10  ;;  %v122_v23 = vld [vmem:[%s5140_s1 + $0x2e0] sm:$0xff]  ;;  %v2681_v25 = vpack.c.bf16 %v43_v16, %v42_v15 }
  0x13   :  { %2732 = vmatprep.subr.bf16.mxu0 %v2731_v56  ;;  %v104_v21 = vld [vmem:[%s5140_s1 + $0x250] sm:$0xff]  ;;  %v105_v22 = vld [vmem:[%s5140_s1 + $0x258] sm:$0xff]  ;;  %v123_v24 = vld [vmem:[%s5140_s1 + $0x2e8] sm:$0xff]  ;;  %v2683_v28 = vpack.c.bf16 %v61_v19, %v60_v17  ;;  %v3503_v41 = vrot.slane %v586_v27, %v3407_v59 }
  0x14   :  { %830 = vmatprep.mubr.f32.mxu1 %v601_v13  ;;  %v44_v26 = vld [vmem:[%s5140_s1 + $0x70] sm:$0xff]  ;;  %v45_v29 = vld [vmem:[%s5140_s1 + $0x78] sm:$0xff]  ;;  %v78_v30 = vld [vmem:[%s5140_s1 + $0x180] sm:$0xff]  ;;  %v2741_v32 = vpack.c.bf16 %v105_v22, %v104_v21  ;;  %v2743_v33 = vpack.c.bf16 %v123_v24, %v122_v23 }
  0x15   :  { %2674 = vmatpush3.bf16.msra.mxu1 %v2673_v62  ;;  %v79_v31 = vld [vmem:[%s5140_s1 + $0x188] sm:$0xff]  ;;  %v106_v34 = vld [vmem:[%s5140_s1 + $0x260] sm:$0xff]  ;;  %v124_v37 = vld [vmem:[%s5140_s1 + $0x2f0] sm:$0xff]  ;;  %v2685_v40 = vpack.c.bf16 %v45_v29, %v44_v26  ;;  %v602_v55 = vcombine.high %v3503_v41, %v3503_v41 }
  0x16   :  { %2676 = vmatprep.subr.bf16.mxu1 %v2675_v0  ;;  %2734 = vmatpush3.bf16.msra.mxu0 %v2733_v3  ;;  %v107_v35 = vld [vmem:[%s5140_s1 + $0x268] sm:$0xff]  ;;  %v125_v38 = vld [vmem:[%s5140_s1 + $0x2f8] sm:$0xff]  ;;  %v2687_v42 = vpack.c.bf16 %v79_v31, %v78_v30  ;;  %v62_v43 = vld [vmem:[%s5140_s1 + $0x100] sm:$0xff] }
  0x17   :  { %2736 = vmatprep.subr.bf16.mxu0 %v2735_v6  ;;  %v3492_v36 = vld [vmem:[%s5139_s0 + $0x8] sm:$0xff]  ;;  %v80_v45 = vld [vmem:[%s5140_s1 + $0x190] sm:$0xff]  ;;  %v2745_v46 = vpack.c.bf16 %v107_v35, %v106_v34  ;;  %v81_v48 = vld [vmem:[%s5140_s1 + $0x198] sm:$0xff]  ;;  %v2747_v49 = vpack.c.bf16 %v125_v38, %v124_v37 }
  0x18   :  { %v610_v39 = vrot.slane %v3492_v36, %v3407_v59  ;;  %v63_v44 = vld [vmem:[%s5140_s1 + $0x108] sm:$0xff]  ;;  %v108_v50 = vld [vmem:[%s5140_s1 + $0x270] sm:$0xff]  ;;  %v109_v51 = vld [vmem:[%s5140_s1 + $0x278] sm:$0xff]  ;;  %v2691_v56 = vpack.c.bf16 %v81_v48, %v80_v45 }
  0x19   :  { %2678 = vmatpush3.bf16.msra.mxu1 %v2677_v12  ;;  %v174_v52 = vld [vmem:[%s5140_s1 + $0x480] sm:$0xff]  ;;  %v175_v53 = vld [vmem:[%s5140_s1 + $0x488] sm:$0xff]  ;;  %v2689_v54 = vpack.c.bf16 %v63_v44, %v62_v43  ;;  %v64_v57 = vld [vmem:[%s5140_s1 + $0x110] sm:$0xff]  ;;  %v2749_v61 = vpack.c.bf16 %v109_v51, %v108_v50 }
  0x1a   :  { %2680 = vmatprep.subr.bf16.mxu1 %v2679_v14  ;;  %2738 = vmatpush3.bf16.msra.mxu0 %v2737_v18  ;;  %v618_v47 = vcombine.high %v610_v39, %v610_v39  ;;  %v65_v58 = vld [vmem:[%s5140_s1 + $0x118] sm:$0xff]  ;;  %v82_v60 = vld [vmem:[%s5140_s1 + $0x1a0] sm:$0xff]  ;;  %v83_v62 = vld [vmem:[%s5140_s1 + $0x1a8] sm:$0xff]  ;;  %v2783_v63 = vpack.c.bf16 %v175_v53, %v174_v52 }
  0x1b   :  { %2740 = vmatprep.subr.bf16.mxu0 %v2739_v20  ;;  %v158_v0 = vld [vmem:[%s5140_s1 + $0x400] sm:$0xff]  ;;  %v159_v1 = vld [vmem:[%s5140_s1 + $0x408] sm:$0xff]  ;;  %v176_v2 = vld [vmem:[%s5140_s1 + $0x490] sm:$0xff]  ;;  %v2693_v4 = vpack.c.bf16 %v65_v58, %v64_v57  ;;  %v2695_v5 = vpack.c.bf16 %v83_v62, %v82_v60 }
  0x1c   :  { %970 = vmatprep.mubr.f32.mxu0 %v618_v47  ;;  %v177_v3 = vld [vmem:[%s5140_s1 + $0x498] sm:$0xff]  ;;  %v66_v6 = vld [vmem:[%s5140_s1 + $0x120] sm:$0xff]  ;;  %v67_v7 = vld [vmem:[%s5140_s1 + $0x128] sm:$0xff] }
  0x1d   :  { %2682 = vmatpush3.bf16.msra.mxu1 %v2681_v25  ;;  %v84_v8 = vld [vmem:[%s5140_s1 + $0x1b0] sm:$0xff]  ;;  %v85_v10 = vld [vmem:[%s5140_s1 + $0x1b8] sm:$0xff]  ;;  %v2787_v11 = vpack.c.bf16 %v177_v3, %v176_v2  ;;  %v178_v14 = vld [vmem:[%s5140_s1 + $0x4a0] sm:$0xff]  ;;  %v2697_v16 = vpack.c.bf16 %v67_v7, %v66_v6  ;;  %v603_v6 = vcombine.high %v3492_v36, %v3492_v36 }
  0x1e   :  { %2684 = vmatprep.subr.bf16.mxu1 %v2683_v28  ;;  %2742 = vmatpush3.bf16.msra.mxu0 %v2741_v32  ;;  %v160_v12 = vld [vmem:[%s5140_s1 + $0x410] sm:$0xff]  ;;  %v161_v13 = vld [vmem:[%s5140_s1 + $0x418] sm:$0xff]  ;;  %v179_v15 = vld [vmem:[%s5140_s1 + $0x4a8] sm:$0xff]  ;;  %v2699_v17 = vpack.c.bf16 %v85_v10, %v84_v8 }
  0x1f   :  { %2744 = vmatprep.subr.bf16.mxu0 %v2743_v33  ;;  %v68_v18 = vld [vmem:[%s5140_s1 + $0x130] sm:$0xff]  ;;  %v69_v19 = vld [vmem:[%s5140_s1 + $0x138] sm:$0xff]  ;;  %v86_v20 = vld [vmem:[%s5140_s1 + $0x1c0] sm:$0xff]  ;;  %v2789_v21 = vpack.c.bf16 %v161_v13, %v160_v12  ;;  %v2791_v23 = vpack.c.bf16 %v179_v15, %v178_v14 }
  0x20   :  { %v87_v22 = vld [vmem:[%s5140_s1 + $0x1c8] sm:$0xff]  ;;  %v162_v24 = vld [vmem:[%s5140_s1 + $0x420] sm:$0xff]  ;;  %v180_v26 = vld [vmem:[%s5140_s1 + $0x4b0] sm:$0xff]  ;;  %v2701_v28 = vpack.c.bf16 %v69_v19, %v68_v18  ;;  %v3714_v19 = vrot.slane %v603_v6, %v3407_v59 }
  0x21   :  { %2686 = vmatpush3.bf16.msra.mxu1 %v2685_v40  ;;  %v163_v25 = vld [vmem:[%s5140_s1 + $0x428] sm:$0xff]  ;;  %v181_v27 = vld [vmem:[%s5140_s1 + $0x4b8] sm:$0xff]  ;;  %v2703_v29 = vpack.c.bf16 %v87_v22, %v86_v20  ;;  %v70_v30 = vld [vmem:[%s5140_s1 + $0x140] sm:$0xff] }
  0x22   :  { %2688 = vmatprep.subr.bf16.mxu1 %v2687_v42  ;;  %2746 = vmatpush3.bf16.msra.mxu0 %v2745_v46  ;;  %v71_v31 = vld [vmem:[%s5140_s1 + $0x148] sm:$0xff]  ;;  %v88_v32 = vld [vmem:[%s5140_s1 + $0x1d0] sm:$0xff]  ;;  %v2793_v33 = vpack.c.bf16 %v163_v25, %v162_v24  ;;  %v89_v34 = vld [vmem:[%s5140_s1 + $0x1d8] sm:$0xff]  ;;  %v2795_v35 = vpack.c.bf16 %v181_v27, %v180_v26 }
  0x23   :  { %2748 = vmatprep.subr.bf16.mxu0 %v2747_v49  ;;  %v164_v37 = vld [vmem:[%s5140_s1 + $0x430] sm:$0xff]  ;;  %v165_v38 = vld [vmem:[%s5140_s1 + $0x438] sm:$0xff]  ;;  %v183_v40 = vld [vmem:[%s5140_s1 + $0x4c8] sm:$0xff]  ;;  %v2705_v42 = vpack.c.bf16 %v71_v31, %v70_v30  ;;  %v2707_v44 = vpack.c.bf16 %v89_v34, %v88_v32  ;;  %v619_v32 = vcombine.high %v3714_v19, %v3714_v19 }
  0x24   :  { %831 = vmatmul.mubr.f32.vlgmr.msra.gmra.mrb[0].mxu1 %v3437_v9  ;;  %v2785_v9 = vpack.c.bf16 %v159_v1, %v158_v0  ;;  %v3631_v43 = vld [vmem:[%s5139_s0 + $0x10] sm:$0xff]  ;;  %v73_v46 = vld [vmem:[%s5140_s1 + $0x158] sm:$0xff]  ;;  %v90_v47 = vld [vmem:[%s5140_s1 + $0x1e0] sm:$0xff]  ;;  %v2797_v48 = vpack.c.bf16 %v165_v38, %v164_v37 }
  0x25   :  { %2690 = vmatpush3.bf16.msra.mxu1 %v2689_v54  ;;  %900 = vmatprep.mubr.f32.mxu1 %v602_v55  ;;  %v72_v45 = vld [vmem:[%s5140_s1 + $0x150] sm:$0xff]  ;;  %v3644_v49 = vrot.slane %v3631_v43, %v3407_v59  ;;  %v91_v50 = vld [vmem:[%s5140_s1 + $0x1e8] sm:$0xff]  ;;  %v166_v52 = vld [vmem:[%s5140_s1 + $0x440] sm:$0xff] }
  0x26   :  { %2692 = vmatprep.subr.bf16.mxu1 %v2691_v56  ;;  %2750 = vmatpush3.bf16.msra.mxu0 %v2749_v61  ;;  %v167_v53 = vld [vmem:[%s5140_s1 + $0x448] sm:$0xff]  ;;  %v184_v54 = vld [vmem:[%s5140_s1 + $0x4d0] sm:$0xff]  ;;  %v185_v55 = vld [vmem:[%s5140_s1 + $0x4d8] sm:$0xff]  ;;  %v2709_v57 = vpack.c.bf16 %v73_v46, %v72_v45  ;;  %v2711_v58 = vpack.c.bf16 %v91_v50, %v90_v47 }
  0x27   :  { %2784 = vmatprep.subr.bf16.mxu0 %v2783_v63  ;;  %v635_v56 = vcombine.high %v3644_v49, %v3644_v49  ;;  %v74_v60 = vld [vmem:[%s5140_s1 + $0x160] sm:$0xff]  ;;  %v75_v61 = vld [vmem:[%s5140_s1 + $0x168] sm:$0xff]  ;;  %v92_v62 = vld [vmem:[%s5140_s1 + $0x1f0] sm:$0xff]  ;;  %v2801_v63 = vpack.c.bf16 %v167_v53, %v166_v52  ;;  %v2803_v1 = vpack.c.bf16 %v185_v55, %v184_v54 }
  0x28   :  { %v93_v0 = vld [vmem:[%s5140_s1 + $0x1f8] sm:$0xff]  ;;  %v168_v2 = vld [vmem:[%s5140_s1 + $0x450] sm:$0xff]  ;;  %v2713_v7 = vpack.c.bf16 %v75_v61, %v74_v60  ;;  %v143_v36 = vld [vmem:[%s5140_s1 + $0x388] sm:$0xff] }
  0x29   :  { %2694 = vmatpush3.bf16.msra.mxu1 %v2693_v4  ;;  %971 = vmatmul.mubr.f32.vlgmr.msra.gmra.mrb[0].mxu0 %v610_v39  ;;  %v182_v39 = vld [vmem:[%s5140_s1 + $0x4c0] sm:$0xff]  ;;  %v169_v3 = vld [vmem:[%s5140_s1 + $0x458] sm:$0xff]  ;;  %v2715_v8 = vpack.c.bf16 %v93_v0, %v92_v62  ;;  %v171_v15 = vld [vmem:[%s5140_s1 + $0x468] sm:$0xff] }
  0x2a   :  { %2696 = vmatprep.subr.bf16.mxu1 %v2695_v5  ;;  %2786 = vmatpush3.bf16.msra.mxu0 %v2785_v9  ;;  %v2799_v51 = vpack.c.bf16 %v183_v40, %v182_v39  ;;  %v186_v4 = vld [vmem:[%s5140_s1 + $0x4e0] sm:$0xff]  ;;  %v187_v5 = vld [vmem:[%s5140_s1 + $0x4e8] sm:$0xff]  ;;  %v76_v9 = vld [vmem:[%s5140_s1 + $0x170] sm:$0xff]  ;;  %v2805_v12 = vpack.c.bf16 %v169_v3, %v168_v2 }
  0x2b   :  { %2788 = vmatprep.subr.bf16.mxu0 %v2787_v11  ;;  %1110 = vmatprep.mubr.f32.mxu0 %v635_v56  ;;  %v77_v10 = vld [vmem:[%s5140_s1 + $0x178] sm:$0xff]  ;;  %v142_v11 = vld [vmem:[%s5140_s1 + $0x380] sm:$0xff]  ;;  %v2807_v13 = vpack.c.bf16 %v187_v5, %v186_v4  ;;  %v127_v22 = vld [vmem:[%s5140_s1 + $0x308] sm:$0xff] }
  0x2c   :  { %v170_v14 = vld [vmem:[%s5140_s1 + $0x460] sm:$0xff]  ;;  %v2717_v18 = vpack.c.bf16 %v77_v10, %v76_v9  ;;  %v2751_v20 = vpack.c.bf16 %v143_v36, %v142_v11  ;;  %v145_v25 = vld [vmem:[%s5140_s1 + $0x398] sm:$0xff]  ;;  %v172_v27 = vld [vmem:[%s5140_s1 + $0x470] sm:$0xff] }
  0x2d   :  { %2698 = vmatpush3.bf16.msra.mxu1 %v2697_v16  ;;  %v188_v16 = vld [vmem:[%s5140_s1 + $0x4f0] sm:$0xff]  ;;  %v2809_v24 = vpack.c.bf16 %v171_v15, %v170_v14  ;;  %v239_v30 = vld [vmem:[%s5140_s1 + $0x688] sm:$0xff]  ;;  %v146_v37 = vld [vmem:[%s5140_s1 + $0x3a0] sm:$0xff] }
  0x2e   :  { %2700 = vmatprep.subr.bf16.mxu1 %v2699_v17  ;;  %2790 = vmatpush3.bf16.msra.mxu0 %v2789_v21  ;;  %v189_v17 = vld [vmem:[%s5140_s1 + $0x4f8] sm:$0xff]  ;;  %v126_v21 = vld [vmem:[%s5140_s1 + $0x300] sm:$0xff]  ;;  %v128_v34 = vld [vmem:[%s5140_s1 + $0x310] sm:$0xff] }
  0x2f   :  { %2792 = vmatprep.subr.bf16.mxu0 %v2791_v23  ;;  %v144_v23 = vld [vmem:[%s5140_s1 + $0x390] sm:$0xff]  ;;  %v2811_v26 = vpack.c.bf16 %v189_v17, %v188_v16  ;;  %v2753_v31 = vpack.c.bf16 %v127_v22, %v126_v21  ;;  %v147_v39 = vld [vmem:[%s5140_s1 + $0x3a8] sm:$0xff]  ;;  %v241_v46 = vld [vmem:[%s5140_s1 + $0x698] sm:$0xff] }
  0x30   :  { %v240_v45 = vld [vmem:[%s5140_s1 + $0x690] sm:$0xff]  ;;  %v2759_v50 = vpack.c.bf16 %v147_v39, %v146_v37  ;;  %v3779_v53 = vld [vmem:[%s5139_s0 + $0x18] sm:$0xff]  ;;  %v242_v60 = vld [vmem:[%s5140_s1 + $0x6a0] sm:$0xff] }
  0x31   :  { %2702 = vmatpush3.bf16.msra.mxu1 %v2701_v28  ;;  %v173_v28 = vld [vmem:[%s5140_s1 + $0x478] sm:$0xff]  ;;  %v2851_v55 = vpack.c.bf16 %v241_v46, %v240_v45  ;;  %v224_v56 = vld [vmem:[%s5140_s1 + $0x610] sm:$0xff]  ;;  %v243_v61 = vld [vmem:[%s5140_s1 + $0x6a8] sm:$0xff] }
  0x32   :  { %2704 = vmatprep.subr.bf16.mxu1 %v2703_v29  ;;  %2794 = vmatpush3.bf16.msra.mxu0 %v2793_v33  ;;  %v238_v29 = vld [vmem:[%s5140_s1 + $0x680] sm:$0xff]  ;;  %v2755_v33 = vpack.c.bf16 %v145_v25, %v144_v23  ;;  %v2813_v38 = vpack.c.bf16 %v173_v28, %v172_v27  ;;  %v149_v54 = vld [vmem:[%s5140_s1 + $0x3b8] sm:$0xff]  ;;  %v2855_v5 = vpack.c.bf16 %v243_v61, %v242_v60  ;;  %v135_v36 = vld [vmem:[%s5140_s1 + $0x348] sm:$0xff] }
  0x33   :  { %2796 = vmatprep.subr.bf16.mxu0 %v2795_v35  ;;  %v129_v35 = vld [vmem:[%s5140_s1 + $0x318] sm:$0xff]  ;;  %v2847_v40 = vpack.c.bf16 %v239_v30, %v238_v29  ;;  %v150_v3 = vld [vmem:[%s5140_s1 + $0x3c0] sm:$0xff]  ;;  %v228_v17 = vld [vmem:[%s5140_s1 + $0x630] sm:$0xff] }
  0x34   :  { %v2757_v47 = vpack.c.bf16 %v129_v35, %v128_v34  ;;  %v133_v2 = vld [vmem:[%s5140_s1 + $0x338] sm:$0xff]  ;;  %v226_v6 = vld [vmem:[%s5140_s1 + $0x620] sm:$0xff]  ;;  %v247_v21 = vld [vmem:[%s5140_s1 + $0x6c8] sm:$0xff] }
  0x35   :  { %2706 = vmatpush3.bf16.msra.mxu1 %v2705_v42  ;;  %v222_v42 = vld [vmem:[%s5140_s1 + $0x600] sm:$0xff]  ;;  %v245_v9 = vld [vmem:[%s5140_s1 + $0x6b8] sm:$0xff]  ;;  %v155_v28 = vld [vmem:[%s5140_s1 + $0x3e8] sm:$0xff] }
  0x36   :  { %2708 = vmatprep.subr.bf16.mxu1 %v2707_v44  ;;  %2798 = vmatpush3.bf16.msra.mxu0 %v2797_v48  ;;  %v223_v44 = vld [vmem:[%s5140_s1 + $0x608] sm:$0xff]  ;;  %v130_v48 = vld [vmem:[%s5140_s1 + $0x320] sm:$0xff]  ;;  %v153_v15 = vld [vmem:[%s5140_s1 + $0x3d8] sm:$0xff] }
  0x37   :  { %2800 = vmatprep.subr.bf16.mxu0 %v2799_v51  ;;  %v148_v51 = vld [vmem:[%s5140_s1 + $0x3b0] sm:$0xff]  ;;  %v2849_v52 = vpack.c.bf16 %v223_v44, %v222_v42  ;;  %v137_v25 = vld [vmem:[%s5140_s1 + $0x358] sm:$0xff]  ;;  %v230_v30 = vld [vmem:[%s5140_s1 + $0x640] sm:$0xff] }
  0x38   :  { %v2763_v0 = vpack.c.bf16 %v149_v54, %v148_v51  ;;  %v138_v37 = vld [vmem:[%s5140_s1 + $0x360] sm:$0xff]  ;;  %v156_v39 = vld [vmem:[%s5140_s1 + $0x3f0] sm:$0xff]  ;;  %v157_v42 = vld [vmem:[%s5140_s1 + $0x3f8] sm:$0xff] }
  0x39   :  { %2710 = vmatpush3.bf16.msra.mxu1 %v2709_v57  ;;  %v225_v57 = vld [vmem:[%s5140_s1 + $0x618] sm:$0xff]  ;;  %v232_v45 = vld [vmem:[%s5140_s1 + $0x650] sm:$0xff]  ;;  %v2779_v51 = vpack.c.bf16 %v157_v42, %v156_v39  ;;  %v234_v60 = vld [vmem:[%s5140_s1 + $0x660] sm:$0xff] }
  0x3a   :  { %2712 = vmatprep.subr.bf16.mxu1 %v2711_v58  ;;  %2802 = vmatpush3.bf16.msra.mxu0 %v2801_v63  ;;  %v3792_v58 = vrot.slane %v3779_v53, %v3407_v59  ;;  %v2853_v4 = vpack.c.bf16 %v225_v57, %v224_v56  ;;  %v233_v46 = vld [vmem:[%s5140_s1 + $0x658] sm:$0xff]  ;;  %v235_v61 = vld [vmem:[%s5140_s1 + $0x668] sm:$0xff] }
  0x3b   :  { %2804 = vmatprep.subr.bf16.mxu0 %v2803_v1  ;;  %v132_v1 = vld [vmem:[%s5140_s1 + $0x330] sm:$0xff]  ;;  %v141_v54 = vld [vmem:[%s5140_s1 + $0x378] sm:$0xff]  ;;  %v2869_v56 = vpack.c.bf16 %v233_v46, %v232_v45  ;;  %v307_v39 = vld [vmem:[%s5140_s1 + $0x8a8] sm:$0xff] }
  0x3c   :  { %v652_v63 = vcombine.high %v3792_v58, %v3792_v58  ;;  %v2765_v10 = vpack.c.bf16 %v133_v2, %v132_v1  ;;  %v197_v45 = vld [vmem:[%s5140_s1 + $0x538] sm:$0xff]  ;;  %v214_v46 = vld [vmem:[%s5140_s1 + $0x5c0] sm:$0xff] }
  0x3d   :  { %2714 = vmatpush3.bf16.msra.mxu1 %v2713_v7  ;;  %v227_v7 = vld [vmem:[%s5140_s1 + $0x628] sm:$0xff] }
  0x3e   :  { %2716 = vmatprep.subr.bf16.mxu1 %v2715_v8  ;;  %2806 = vmatpush3.bf16.msra.mxu0 %v2805_v12  ;;  %v244_v8 = vld [vmem:[%s5140_s1 + $0x6b0] sm:$0xff]  ;;  %v134_v12 = vld [vmem:[%s5140_s1 + $0x340] sm:$0xff]  ;;  %v2857_v14 = vpack.c.bf16 %v227_v7, %v226_v6  ;;  %v209_v6 = vld [vmem:[%s5140_s1 + $0x598] sm:$0xff] }
  0x3f   :  { %2808 = vmatprep.subr.bf16.mxu0 %v2807_v13  ;;  %v152_v13 = vld [vmem:[%s5140_s1 + $0x3d0] sm:$0xff]  ;;  %v2859_v16 = vpack.c.bf16 %v245_v9, %v244_v8  ;;  %v2769_v22 = vpack.c.bf16 %v135_v36, %v134_v12  ;;  %v237_v9 = vld [vmem:[%s5140_s1 + $0x678] sm:$0xff]  ;;  %v3955_v12 = vld [vmem:[%s5139_s0 + $0x20] sm:$0xff] }
  0x40   :  { %v2771_v23 = vpack.c.bf16 %v153_v15, %v152_v13  ;;  %v236_v8 = vld [vmem:[%s5140_s1 + $0x670] sm:$0xff] }
  0x41   :  { %2718 = vmatpush3.bf16.msra.mxu1 %v2717_v18  ;;  %v229_v18 = vld [vmem:[%s5140_s1 + $0x638] sm:$0xff]  ;;  %v192_v15 = vld [vmem:[%s5140_s1 + $0x510] sm:$0xff] }
  0x42   :  { %2752 = vmatprep.subr.bf16.mxu1 %v2751_v20  ;;  %2810 = vmatpush3.bf16.msra.mxu0 %v2809_v24  ;;  %v246_v20 = vld [vmem:[%s5140_s1 + $0x6c0] sm:$0xff]  ;;  %v136_v24 = vld [vmem:[%s5140_s1 + $0x350] sm:$0xff]  ;;  %v2861_v27 = vpack.c.bf16 %v229_v18, %v228_v17  ;;  %v2877_v18 = vpack.c.bf16 %v237_v9, %v236_v8  ;;  %v219_v9 = vld [vmem:[%s5140_s1 + $0x5e8] sm:$0xff] }
  0x43   :  { %2812 = vmatprep.subr.bf16.mxu0 %v2811_v26  ;;  %v154_v26 = vld [vmem:[%s5140_s1 + $0x3e0] sm:$0xff]  ;;  %v2863_v29 = vpack.c.bf16 %v247_v21, %v246_v20  ;;  %v2773_v34 = vpack.c.bf16 %v137_v25, %v136_v24  ;;  %v211_v20 = vld [vmem:[%s5140_s1 + $0x5a8] sm:$0xff]  ;;  %v3979_v24 = vrot.slane %v3955_v12, %v3407_v59  ;;  %v304_v25 = vld [vmem:[%s5140_s1 + $0x890] sm:$0xff] }
  0x44   :  { %901 = vmatmul.mubr.f32.vlgmr.msra.gmra.mrb[2].mxu1 %v3503_v41  ;;  %v131_v41 = vld [vmem:[%s5140_s1 + $0x328] sm:$0xff]  ;;  %v2775_v35 = vpack.c.bf16 %v155_v28, %v154_v26  ;;  %v210_v17 = vld [vmem:[%s5140_s1 + $0x5a0] sm:$0xff]  ;;  %v305_v26 = vld [vmem:[%s5140_s1 + $0x898] sm:$0xff] }
  0x45   :  { %2754 = vmatpush3.bf16.msra.mxu1 %v2753_v31  ;;  %1040 = vmatprep.mubr.f32.mxu1 %v619_v32  ;;  %v2761_v62 = vpack.c.bf16 %v131_v41, %v130_v48  ;;  %v231_v31 = vld [vmem:[%s5140_s1 + $0x648] sm:$0xff]  ;;  %v248_v32 = vld [vmem:[%s5140_s1 + $0x6d0] sm:$0xff]  ;;  %v620_v41 = vcombine.high %v3631_v43, %v3631_v43  ;;  %v2823_v28 = vpack.c.bf16 %v211_v20, %v210_v17  ;;  %v202_v17 = vld [vmem:[%s5140_s1 + $0x560] sm:$0xff] }
  0x46   :  { %2756 = vmatprep.subr.bf16.mxu1 %v2755_v33  ;;  %2814 = vmatpush3.bf16.msra.mxu0 %v2813_v38  ;;  %v249_v33 = vld [vmem:[%s5140_s1 + $0x6d8] sm:$0xff]  ;;  %v139_v38 = vld [vmem:[%s5140_s1 + $0x368] sm:$0xff]  ;;  %v220_v20 = vld [vmem:[%s5140_s1 + $0x5f0] sm:$0xff] }
  0x47   :  { %2848 = vmatprep.subr.bf16.mxu0 %v2847_v40  ;;  %v2865_v40 = vpack.c.bf16 %v231_v31, %v230_v30  ;;  %v2867_v44 = vpack.c.bf16 %v249_v33, %v248_v32  ;;  %v251_v48 = vld [vmem:[%s5140_s1 + $0x6e8] sm:$0xff]  ;;  %v3926_v1 = vrot.slane %v620_v41, %v3407_v59  ;;  %v212_v30 = vld [vmem:[%s5140_s1 + $0x5b0] sm:$0xff]  ;;  %v213_v32 = vld [vmem:[%s5140_s1 + $0x5b8] sm:$0xff]  ;;  %v2915_v33 = vpack.c.bf16 %v305_v26, %v304_v25 }
  0x48   :  { %v207_v43 = vld [vmem:[%s5140_s1 + $0x588] sm:$0xff]  ;;  %v2827_v42 = vpack.c.bf16 %v213_v32, %v212_v30  ;;  %v296_v25 = vld [vmem:[%s5140_s1 + $0x850] sm:$0xff]  ;;  %v297_v26 = vld [vmem:[%s5140_s1 + $0x858] sm:$0xff] }
  0x49   :  { %2758 = vmatpush3.bf16.msra.mxu1 %v2757_v47  ;;  %1111 = vmatmul.mubr.f32.vlgmr.msra.gmra.mrb[2].mxu0 %v3644_v49  ;;  %v151_v49 = vld [vmem:[%s5140_s1 + $0x3c8] sm:$0xff]  ;;  %v250_v47 = vld [vmem:[%s5140_s1 + $0x6e0] sm:$0xff]  ;;  %v636_v13 = vcombine.high %v3926_v1, %v3926_v1  ;;  %v205_v32 = vld [vmem:[%s5140_s1 + $0x578] sm:$0xff] }
  0x4a   :  { %2760 = vmatprep.subr.bf16.mxu1 %v2759_v50  ;;  %2850 = vmatpush3.bf16.msra.mxu0 %v2849_v52  ;;  %v2767_v11 = vpack.c.bf16 %v151_v49, %v150_v3  ;;  %v2777_v50 = vpack.c.bf16 %v139_v38, %v138_v37  ;;  %v140_v52 = vld [vmem:[%s5140_s1 + $0x370] sm:$0xff]  ;;  %v2871_v57 = vpack.c.bf16 %v251_v48, %v250_v47  ;;  %v190_v3 = vld [vmem:[%s5140_s1 + $0x500] sm:$0xff]  ;;  %v291_v41 = vld [vmem:[%s5140_s1 + $0x828] sm:$0xff] }
  0x4b   :  { %2852 = vmatprep.subr.bf16.mxu0 %v2851_v55  ;;  %1250 = vmatprep.mubr.f32.mxu0 %v652_v63  ;;  %v206_v55 = vld [vmem:[%s5140_s1 + $0x580] sm:$0xff]  ;;  %v253_v63 = vld [vmem:[%s5140_s1 + $0x6f8] sm:$0xff]  ;;  %v208_v49 = vld [vmem:[%s5140_s1 + $0x590] sm:$0xff]  ;;  %v669_v37 = vcombine.high %v3979_v24, %v3979_v24 }
  0x4c   :  { %v2815_v2 = vpack.c.bf16 %v207_v43, %v206_v55  ;;  %v306_v38 = vld [vmem:[%s5140_s1 + $0x8a0] sm:$0xff]  ;;  %v199_v43 = vld [vmem:[%s5140_s1 + $0x548] sm:$0xff] }
  0x4d   :  { %2762 = vmatpush3.bf16.msra.mxu1 %v2761_v62  ;;  %v252_v62 = vld [vmem:[%s5140_s1 + $0x6f0] sm:$0xff]  ;;  %v2919_v48 = vpack.c.bf16 %v307_v39, %v306_v38  ;;  %v299_v38 = vld [vmem:[%s5140_s1 + $0x868] sm:$0xff] }
  0x4e   :  { %2764 = vmatprep.subr.bf16.mxu1 %v2763_v0  ;;  %2854 = vmatpush3.bf16.msra.mxu0 %v2853_v4  ;;  %v2781_v0 = vpack.c.bf16 %v141_v54, %v140_v52  ;;  %v191_v4 = vld [vmem:[%s5140_s1 + $0x508] sm:$0xff]  ;;  %v2875_v7 = vpack.c.bf16 %v253_v63, %v252_v62  ;;  %v309_v52 = vld [vmem:[%s5140_s1 + $0x8b8] sm:$0xff]  ;;  %v292_v63 = vld [vmem:[%s5140_s1 + $0x830] sm:$0xff] }
  0x4f   :  { %2856 = vmatprep.subr.bf16.mxu0 %v2855_v5  ;;  %v2873_v5 = vpack.c.bf16 %v235_v61, %v234_v60  ;;  %v2817_v36 = vpack.c.bf16 %v191_v4, %v190_v3  ;;  %v217_v61 = vld [vmem:[%s5140_s1 + $0x5d8] sm:$0xff]  ;;  %v311_v3 = vld [vmem:[%s5140_s1 + $0x8c8] sm:$0xff]  ;;  %v316_v39 = vld [vmem:[%s5140_s1 + $0x8f0] sm:$0xff] }
  0x51   :  { %2766 = vmatpush3.bf16.msra.mxu1 %v2765_v10  ;;  %v302_v10 = vld [vmem:[%s5140_s1 + $0x880] sm:$0xff] }
  0x52   :  { %2768 = vmatprep.subr.bf16.mxu1 %v2767_v11  ;;  %2858 = vmatpush3.bf16.msra.mxu0 %v2857_v14  ;;  %v303_v11 = vld [vmem:[%s5140_s1 + $0x888] sm:$0xff]  ;;  %v2819_v14 = vpack.c.bf16 %v209_v6, %v208_v49  ;;  %v201_v6 = vld [vmem:[%s5140_s1 + $0x558] sm:$0xff] }
  0x53   :  { %2860 = vmatprep.subr.bf16.mxu0 %v2859_v16  ;;  %v193_v16 = vld [vmem:[%s5140_s1 + $0x518] sm:$0xff]  ;;  %v2911_v21 = vpack.c.bf16 %v303_v11, %v302_v10  ;;  %v294_v11 = vld [vmem:[%s5140_s1 + $0x840] sm:$0xff] }
  0x55   :  { %2770 = vmatpush3.bf16.msra.mxu1 %v2769_v22  ;;  %v286_v22 = vld [vmem:[%s5140_s1 + $0x800] sm:$0xff] }
  0x56   :  { %2772 = vmatprep.subr.bf16.mxu1 %v2771_v23  ;;  %2862 = vmatpush3.bf16.msra.mxu0 %v2861_v27  ;;  %v287_v23 = vld [vmem:[%s5140_s1 + $0x808] sm:$0xff]  ;;  %v2821_v27 = vpack.c.bf16 %v193_v16, %v192_v15 }
  0x57   :  { %2864 = vmatprep.subr.bf16.mxu0 %v2863_v29  ;;  %v194_v29 = vld [vmem:[%s5140_s1 + $0x520] sm:$0xff]  ;;  %v2913_v31 = vpack.c.bf16 %v287_v23, %v286_v22  ;;  %v221_v22 = vld [vmem:[%s5140_s1 + $0x5f8] sm:$0xff] }
  0x58   :  { %v2843_v30 = vpack.c.bf16 %v221_v22, %v220_v20  ;;  %v371_v20 = vld [vmem:[%s5140_s1 + $0xaa8] sm:$0xff] }
  0x59   :  { %2774 = vmatpush3.bf16.msra.mxu1 %v2773_v34  ;;  %v288_v34 = vld [vmem:[%s5140_s1 + $0x810] sm:$0xff] }
  0x5a   :  { %2776 = vmatprep.subr.bf16.mxu1 %v2775_v35  ;;  %2866 = vmatpush3.bf16.msra.mxu0 %v2865_v40  ;;  %v289_v35 = vld [vmem:[%s5140_s1 + $0x818] sm:$0xff] }
  0x5b   :  { %2868 = vmatprep.subr.bf16.mxu0 %v2867_v44  ;;  %v196_v44 = vld [vmem:[%s5140_s1 + $0x530] sm:$0xff]  ;;  %v2917_v47 = vpack.c.bf16 %v289_v35, %v288_v34  ;;  %v2933_v34 = vpack.c.bf16 %v297_v26, %v296_v25  ;;  %v261_v25 = vld [vmem:[%s5140_s1 + $0x738] sm:$0xff]  ;;  %v278_v26 = vld [vmem:[%s5140_s1 + $0x7c0] sm:$0xff] }
  0x5c   :  { %v2829_v54 = vpack.c.bf16 %v197_v45, %v196_v44 }
  0x5d   :  { %2778 = vmatpush3.bf16.msra.mxu1 %v2777_v50  ;;  %v290_v50 = vld [vmem:[%s5140_s1 + $0x820] sm:$0xff] }
  0x5e   :  { %2780 = vmatprep.subr.bf16.mxu1 %v2779_v51  ;;  %2870 = vmatpush3.bf16.msra.mxu0 %v2869_v56  ;;  %v308_v51 = vld [vmem:[%s5140_s1 + $0x8b0] sm:$0xff]  ;;  %v198_v56 = vld [vmem:[%s5140_s1 + $0x540] sm:$0xff]  ;;  %v2921_v60 = vpack.c.bf16 %v291_v41, %v290_v50  ;;  %v273_v50 = vld [vmem:[%s5140_s1 + $0x798] sm:$0xff] }
  0x5f   :  { %2872 = vmatprep.subr.bf16.mxu0 %v2871_v57  ;;  %v216_v57 = vld [vmem:[%s5140_s1 + $0x5d0] sm:$0xff]  ;;  %v2923_v62 = vpack.c.bf16 %v309_v52, %v308_v51  ;;  %v2833_v4 = vpack.c.bf16 %v199_v43, %v198_v56  ;;  %v301_v52 = vld [vmem:[%s5140_s1 + $0x878] sm:$0xff]  ;;  %v4167_v56 = vld [vmem:[%s5139_s0 + $0x28] sm:$0xff] }
  0x60   :  { %v2835_v49 = vpack.c.bf16 %v217_v61, %v216_v57  ;;  %v300_v51 = vld [vmem:[%s5140_s1 + $0x870] sm:$0xff] }
  0x61   :  { %2782 = vmatpush3.bf16.msra.mxu1 %v2781_v0  ;;  %v293_v0 = vld [vmem:[%s5140_s1 + $0x838] sm:$0xff]  ;;  %v256_v61 = vld [vmem:[%s5140_s1 + $0x710] sm:$0xff] }
  0x62   :  { %2816 = vmatprep.subr.bf16.mxu1 %v2815_v2  ;;  %2874 = vmatpush3.bf16.msra.mxu0 %v2873_v5  ;;  %v310_v2 = vld [vmem:[%s5140_s1 + $0x8c0] sm:$0xff]  ;;  %v200_v5 = vld [vmem:[%s5140_s1 + $0x550] sm:$0xff]  ;;  %v2925_v8 = vpack.c.bf16 %v293_v0, %v292_v63  ;;  %v2941_v0 = vpack.c.bf16 %v301_v52, %v300_v51  ;;  %v283_v52 = vld [vmem:[%s5140_s1 + $0x7e8] sm:$0xff] }
  0x63   :  { %2876 = vmatprep.subr.bf16.mxu0 %v2875_v7  ;;  %v218_v7 = vld [vmem:[%s5140_s1 + $0x5e0] sm:$0xff]  ;;  %v2927_v10 = vpack.c.bf16 %v311_v3, %v310_v2  ;;  %v2837_v15 = vpack.c.bf16 %v201_v6, %v200_v5  ;;  %v275_v2 = vld [vmem:[%s5140_s1 + $0x7a8] sm:$0xff]  ;;  %v4191_v5 = vrot.slane %v4167_v56, %v3407_v59  ;;  %v368_v6 = vld [vmem:[%s5140_s1 + $0xa90] sm:$0xff] }
  0x64   :  { %1041 = vmatmul.mubr.f32.vlgmr.msra.gmra.mrb[4].mxu1 %v3714_v19  ;;  %v195_v19 = vld [vmem:[%s5140_s1 + $0x528] sm:$0xff]  ;;  %v2839_v16 = vpack.c.bf16 %v219_v9, %v218_v7  ;;  %v274_v63 = vld [vmem:[%s5140_s1 + $0x7a0] sm:$0xff]  ;;  %v369_v7 = vld [vmem:[%s5140_s1 + $0xa98] sm:$0xff] }
  0x65   :  { %2818 = vmatpush3.bf16.msra.mxu1 %v2817_v36  ;;  %1180 = vmatprep.mubr.f32.mxu1 %v636_v13  ;;  %v2825_v40 = vpack.c.bf16 %v195_v19, %v194_v29  ;;  %v295_v36 = vld [vmem:[%s5140_s1 + $0x848] sm:$0xff]  ;;  %v312_v13 = vld [vmem:[%s5140_s1 + $0x8d0] sm:$0xff]  ;;  %v637_v19 = vcombine.high %v3779_v53, %v3779_v53  ;;  %v2887_v9 = vpack.c.bf16 %v275_v2, %v274_v63  ;;  %v266_v63 = vld [vmem:[%s5140_s1 + $0x760] sm:$0xff] }
  0x66   :  { %2820 = vmatprep.subr.bf16.mxu1 %v2819_v14  ;;  %2878 = vmatpush3.bf16.msra.mxu0 %v2877_v18  ;;  %v313_v14 = vld [vmem:[%s5140_s1 + $0x8d8] sm:$0xff]  ;;  %v203_v18 = vld [vmem:[%s5140_s1 + $0x568] sm:$0xff]  ;;  %v284_v2 = vld [vmem:[%s5140_s1 + $0x7f0] sm:$0xff] }
  0x67   :  { %2912 = vmatprep.subr.bf16.mxu0 %v2911_v21  ;;  %v2929_v21 = vpack.c.bf16 %v295_v36, %v294_v11  ;;  %v2931_v23 = vpack.c.bf16 %v313_v14, %v312_v13  ;;  %v2841_v29 = vpack.c.bf16 %v203_v18, %v202_v17  ;;  %v271_v53 = vld [vmem:[%s5140_s1 + $0x788] sm:$0xff]  ;;  %v4138_v44 = vrot.slane %v637_v19, %v3407_v59  ;;  %v276_v11 = vld [vmem:[%s5140_s1 + $0x7b0] sm:$0xff]  ;;  %v277_v13 = vld [vmem:[%s5140_s1 + $0x7b8] sm:$0xff] }
  0x68   :  { %v2979_v14 = vpack.c.bf16 %v369_v7, %v368_v6  ;;  %v686_v17 = vcombine.high %v4191_v5, %v4191_v5  ;;  %v370_v18 = vld [vmem:[%s5140_s1 + $0xaa0] sm:$0xff]  ;;  %v2891_v22 = vpack.c.bf16 %v277_v13, %v276_v11  ;;  %v355_v19 = vld [vmem:[%s5140_s1 + $0xa28] sm:$0xff]  ;;  %v360_v6 = vld [vmem:[%s5140_s1 + $0xa50] sm:$0xff] }
  0x69   :  { %2822 = vmatpush3.bf16.msra.mxu1 %v2821_v27  ;;  %1251 = vmatmul.mubr.f32.vlgmr.msra.gmra.mrb[4].mxu0 %v3792_v58  ;;  %v215_v58 = vld [vmem:[%s5140_s1 + $0x5c8] sm:$0xff]  ;;  %v314_v27 = vld [vmem:[%s5140_s1 + $0x8e0] sm:$0xff]  ;;  %v653_v57 = vcombine.high %v4138_v44, %v4138_v44  ;;  %v361_v7 = vld [vmem:[%s5140_s1 + $0xa58] sm:$0xff] }
  0x6a   :  { %2824 = vmatprep.subr.bf16.mxu1 %v2823_v28  ;;  %2914 = vmatpush3.bf16.msra.mxu0 %v2913_v31  ;;  %v2831_v55 = vpack.c.bf16 %v215_v58, %v214_v46  ;;  %v315_v28 = vld [vmem:[%s5140_s1 + $0x8e8] sm:$0xff]  ;;  %v204_v31 = vld [vmem:[%s5140_s1 + $0x570] sm:$0xff]  ;;  %v254_v46 = vld [vmem:[%s5140_s1 + $0x700] sm:$0xff] }
  0x6b   :  { %2916 = vmatprep.subr.bf16.mxu0 %v2915_v33  ;;  %1390 = vmatprep.mubr.f32.mxu0 %v669_v37  ;;  %v270_v33 = vld [vmem:[%s5140_s1 + $0x780] sm:$0xff]  ;;  %v2935_v35 = vpack.c.bf16 %v315_v28, %v314_v27  ;;  %v272_v58 = vld [vmem:[%s5140_s1 + $0x790] sm:$0xff]  ;;  %v2983_v28 = vpack.c.bf16 %v371_v20, %v370_v18  ;;  %v269_v13 = vld [vmem:[%s5140_s1 + $0x778] sm:$0xff] }
  0x6c   :  { %v298_v37 = vld [vmem:[%s5140_s1 + $0x860] sm:$0xff]  ;;  %v2879_v45 = vpack.c.bf16 %v271_v53, %v270_v33  ;;  %v263_v53 = vld [vmem:[%s5140_s1 + $0x748] sm:$0xff]  ;;  %v380_v20 = vld [vmem:[%s5140_s1 + $0xaf0] sm:$0xff] }
  0x6d   :  { %2826 = vmatpush3.bf16.msra.mxu1 %v2825_v40  ;;  %v317_v40 = vld [vmem:[%s5140_s1 + $0x8f8] sm:$0xff]  ;;  %v363_v18 = vld [vmem:[%s5140_s1 + $0xa68] sm:$0xff] }
  0x6e   :  { %2828 = vmatprep.subr.bf16.mxu1 %v2827_v42  ;;  %2918 = vmatpush3.bf16.msra.mxu0 %v2917_v47  ;;  %v2845_v42 = vpack.c.bf16 %v205_v32, %v204_v31  ;;  %v255_v47 = vld [vmem:[%s5140_s1 + $0x708] sm:$0xff]  ;;  %v2939_v41 = vpack.c.bf16 %v317_v40, %v316_v39  ;;  %v373_v31 = vld [vmem:[%s5140_s1 + $0xab8] sm:$0xff]  ;;  %v356_v40 = vld [vmem:[%s5140_s1 + $0xa30] sm:$0xff] }
  0x6f   :  { %2920 = vmatprep.subr.bf16.mxu0 %v2919_v48  ;;  %v2937_v48 = vpack.c.bf16 %v299_v38, %v298_v37  ;;  %v2881_v43 = vpack.c.bf16 %v255_v47, %v254_v46  ;;  %v281_v38 = vld [vmem:[%s5140_s1 + $0x7d8] sm:$0xff]  ;;  %v375_v46 = vld [vmem:[%s5140_s1 + $0xac8] sm:$0xff] }
  0x71   :  { %2830 = vmatpush3.bf16.msra.mxu1 %v2829_v54  ;;  %v366_v54 = vld [vmem:[%s5140_s1 + $0xa80] sm:$0xff] }
  0x72   :  { %2832 = vmatprep.subr.bf16.mxu1 %v2831_v55  ;;  %2922 = vmatpush3.bf16.msra.mxu0 %v2921_v60  ;;  %v367_v55 = vld [vmem:[%s5140_s1 + $0xa88] sm:$0xff]  ;;  %v2883_v60 = vpack.c.bf16 %v273_v50, %v272_v58  ;;  %v265_v50 = vld [vmem:[%s5140_s1 + $0x758] sm:$0xff] }
  0x73   :  { %2924 = vmatprep.subr.bf16.mxu0 %v2923_v62  ;;  %v257_v62 = vld [vmem:[%s5140_s1 + $0x718] sm:$0xff]  ;;  %v2975_v3 = vpack.c.bf16 %v367_v55, %v366_v54  ;;  %v358_v55 = vld [vmem:[%s5140_s1 + $0xa40] sm:$0xff] }
  0x75   :  { %2834 = vmatpush3.bf16.msra.mxu1 %v2833_v4  ;;  %v350_v4 = vld [vmem:[%s5140_s1 + $0xa00] sm:$0xff] }
  0x76   :  { %2836 = vmatprep.subr.bf16.mxu1 %v2835_v49  ;;  %2926 = vmatpush3.bf16.msra.mxu0 %v2925_v8  ;;  %v351_v49 = vld [vmem:[%s5140_s1 + $0xa08] sm:$0xff]  ;;  %v2885_v8 = vpack.c.bf16 %v257_v62, %v256_v61 }
  0x77   :  { %2928 = vmatprep.subr.bf16.mxu0 %v2927_v10  ;;  %v258_v10 = vld [vmem:[%s5140_s1 + $0x720] sm:$0xff]  ;;  %v2977_v36 = vpack.c.bf16 %v351_v49, %v350_v4  ;;  %v285_v4 = vld [vmem:[%s5140_s1 + $0x7f8] sm:$0xff] }
  0x78   :  { %v2907_v11 = vpack.c.bf16 %v285_v4, %v284_v2  ;;  %v435_v2 = vld [vmem:[%s5140_s1 + $0xca8] sm:$0xff] }
  0x79   :  { %2838 = vmatpush3.bf16.msra.mxu1 %v2837_v15  ;;  %v352_v15 = vld [vmem:[%s5140_s1 + $0xa10] sm:$0xff] }
  0x7a   :  { %2840 = vmatprep.subr.bf16.mxu1 %v2839_v16  ;;  %2930 = vmatpush3.bf16.msra.mxu0 %v2929_v21  ;;  %v353_v16 = vld [vmem:[%s5140_s1 + $0xa18] sm:$0xff] }
  0x7b   :  { %2932 = vmatprep.subr.bf16.mxu0 %v2931_v23  ;;  %v260_v23 = vld [vmem:[%s5140_s1 + $0x730] sm:$0xff]  ;;  %v2981_v27 = vpack.c.bf16 %v353_v16, %v352_v15  ;;  %v2997_v15 = vpack.c.bf16 %v361_v7, %v360_v6  ;;  %v325_v6 = vld [vmem:[%s5140_s1 + $0x938] sm:$0xff]  ;;  %v342_v7 = vld [vmem:[%s5140_s1 + $0x9c0] sm:$0xff] }
  0x7c   :  { %v2893_v32 = vpack.c.bf16 %v261_v25, %v260_v23 }
  0x7d   :  { %2842 = vmatpush3.bf16.msra.mxu1 %v2841_v29  ;;  %v354_v29 = vld [vmem:[%s5140_s1 + $0xa20] sm:$0xff] }
  0x7e   :  { %2844 = vmatprep.subr.bf16.mxu1 %v2843_v30  ;;  %2934 = vmatpush3.bf16.msra.mxu0 %v2933_v34  ;;  %v372_v30 = vld [vmem:[%s5140_s1 + $0xab0] sm:$0xff]  ;;  %v262_v34 = vld [vmem:[%s5140_s1 + $0x740] sm:$0xff]  ;;  %v2985_v37 = vpack.c.bf16 %v355_v19, %v354_v29  ;;  %v337_v29 = vld [vmem:[%s5140_s1 + $0x998] sm:$0xff] }
  0x7f   :  { %2936 = vmatprep.subr.bf16.mxu0 %v2935_v35  ;;  %v280_v35 = vld [vmem:[%s5140_s1 + $0x7d0] sm:$0xff]  ;;  %v2987_v39 = vpack.c.bf16 %v373_v31, %v372_v30  ;;  %v2897_v47 = vpack.c.bf16 %v263_v53, %v262_v34  ;;  %v365_v31 = vld [vmem:[%s5140_s1 + $0xa78] sm:$0xff] }
  0x80   :  { %v2899_v58 = vpack.c.bf16 %v281_v38, %v280_v35  ;;  %v364_v30 = vld [vmem:[%s5140_s1 + $0xa70] sm:$0xff] }
  0x81   :  { %2846 = vmatpush3.bf16.msra.mxu1 %v2845_v42  ;;  %v357_v42 = vld [vmem:[%s5140_s1 + $0xa38] sm:$0xff]  ;;  %v4379_v34 = vld [vmem:[%s5139_s0 + $0x30] sm:$0xff] }
  0x82   :  { %2880 = vmatprep.subr.bf16.mxu1 %v2879_v45  ;;  %2938 = vmatpush3.bf16.msra.mxu0 %v2937_v48  ;;  %v374_v45 = vld [vmem:[%s5140_s1 + $0xac0] sm:$0xff]  ;;  %v264_v48 = vld [vmem:[%s5140_s1 + $0x750] sm:$0xff]  ;;  %v2989_v51 = vpack.c.bf16 %v357_v42, %v356_v40  ;;  %v3005_v42 = vpack.c.bf16 %v365_v31, %v364_v30  ;;  %v347_v31 = vld [vmem:[%s5140_s1 + $0x9e8] sm:$0xff] }
  0x83   :  { %2940 = vmatprep.subr.bf16.mxu0 %v2939_v41  ;;  %v282_v41 = vld [vmem:[%s5140_s1 + $0x7e0] sm:$0xff]  ;;  %v2991_v54 = vpack.c.bf16 %v375_v46, %v374_v45  ;;  %v2901_v61 = vpack.c.bf16 %v265_v50, %v264_v48  ;;  %v320_v38 = vld [vmem:[%s5140_s1 + $0x910] sm:$0xff]  ;;  %v339_v45 = vld [vmem:[%s5140_s1 + $0x9a8] sm:$0xff]  ;;  %v4403_v48 = vrot.slane %v4379_v34, %v3407_v59 }
  0x84   :  { %1181 = vmatmul.mubr.f32.vlgmr.msra.gmra.mrb[6].mxu1 %v3926_v1  ;;  %v259_v1 = vld [vmem:[%s5140_s1 + $0x728] sm:$0xff]  ;;  %v2903_v62 = vpack.c.bf16 %v283_v52, %v282_v41  ;;  %v338_v40 = vld [vmem:[%s5140_s1 + $0x9a0] sm:$0xff]  ;;  %v432_v50 = vld [vmem:[%s5140_s1 + $0xc90] sm:$0xff] }
  0x85   :  { %2882 = vmatpush3.bf16.msra.mxu1 %v2881_v43  ;;  %1320 = vmatprep.mubr.f32.mxu1 %v653_v57  ;;  %v2889_v21 = vpack.c.bf16 %v259_v1, %v258_v10  ;;  %v359_v43 = vld [vmem:[%s5140_s1 + $0xa48] sm:$0xff]  ;;  %v376_v57 = vld [vmem:[%s5140_s1 + $0xad0] sm:$0xff]  ;;  %v654_v1 = vcombine.high %v3955_v12, %v3955_v12  ;;  %v433_v41 = vld [vmem:[%s5140_s1 + $0xc98] sm:$0xff]  ;;  %v2951_v52 = vpack.c.bf16 %v339_v45, %v338_v40 }
  0x86   :  { %2884 = vmatprep.subr.bf16.mxu1 %v2883_v60  ;;  %2942 = vmatpush3.bf16.msra.mxu0 %v2941_v0  ;;  %v377_v60 = vld [vmem:[%s5140_s1 + $0xad8] sm:$0xff]  ;;  %v267_v0 = vld [vmem:[%s5140_s1 + $0x768] sm:$0xff]  ;;  %v330_v40 = vld [vmem:[%s5140_s1 + $0x960] sm:$0xff] }
  0x87   :  { %2976 = vmatprep.subr.bf16.mxu0 %v2975_v3  ;;  %v2993_v3 = vpack.c.bf16 %v359_v43, %v358_v55  ;;  %v2995_v49 = vpack.c.bf16 %v377_v60, %v376_v57  ;;  %v2905_v10 = vpack.c.bf16 %v267_v0, %v266_v63  ;;  %v335_v12 = vld [vmem:[%s5140_s1 + $0x988] sm:$0xff]  ;;  %v4350_v23 = vrot.slane %v654_v1, %v3407_v59  ;;  %v340_v55 = vld [vmem:[%s5140_s1 + $0x9b0] sm:$0xff]  ;;  %v341_v57 = vld [vmem:[%s5140_s1 + $0x9b8] sm:$0xff] }
  0x88   :  { %v3043_v60 = vpack.c.bf16 %v433_v41, %v432_v50  ;;  %v703_v63 = vcombine.high %v4403_v48, %v4403_v48  ;;  %v434_v0 = vld [vmem:[%s5140_s1 + $0xca0] sm:$0xff]  ;;  %v2955_v4 = vpack.c.bf16 %v341_v57, %v340_v55  ;;  %v419_v1 = vld [vmem:[%s5140_s1 + $0xc28] sm:$0xff]  ;;  %v348_v45 = vld [vmem:[%s5140_s1 + $0x9f0] sm:$0xff] }
  0x89   :  { %2886 = vmatpush3.bf16.msra.mxu1 %v2885_v8  ;;  %1391 = vmatmul.mubr.f32.vlgmr.msra.gmra.mrb[6].mxu0 %v3979_v24  ;;  %v279_v24 = vld [vmem:[%s5140_s1 + $0x7c8] sm:$0xff]  ;;  %v378_v8 = vld [vmem:[%s5140_s1 + $0xae0] sm:$0xff]  ;;  %v670_v35 = vcombine.high %v4350_v23, %v4350_v23  ;;  %v424_v50 = vld [vmem:[%s5140_s1 + $0xc50] sm:$0xff] }
  0x8a   :  { %2888 = vmatprep.subr.bf16.mxu1 %v2887_v9  ;;  %2978 = vmatpush3.bf16.msra.mxu0 %v2977_v36  ;;  %v2895_v33 = vpack.c.bf16 %v279_v24, %v278_v26  ;;  %v379_v9 = vld [vmem:[%s5140_s1 + $0xae8] sm:$0xff]  ;;  %v268_v36 = vld [vmem:[%s5140_s1 + $0x770] sm:$0xff]  ;;  %v318_v26 = vld [vmem:[%s5140_s1 + $0x900] sm:$0xff] }
  0x8b   :  { %2980 = vmatprep.subr.bf16.mxu0 %v2979_v14  ;;  %1530 = vmatprep.mubr.f32.mxu0 %v686_v17  ;;  %v334_v14 = vld [vmem:[%s5140_s1 + $0x980] sm:$0xff]  ;;  %v2999_v16 = vpack.c.bf16 %v379_v9, %v378_v8  ;;  %v336_v24 = vld [vmem:[%s5140_s1 + $0x990] sm:$0xff]  ;;  %v3047_v9 = vpack.c.bf16 %v435_v2, %v434_v0  ;;  %v425_v41 = vld [vmem:[%s5140_s1 + $0xc58] sm:$0xff] }
  0x8c   :  { %v362_v17 = vld [vmem:[%s5140_s1 + $0xa60] sm:$0xff]  ;;  %v2943_v25 = vpack.c.bf16 %v335_v12, %v334_v14  ;;  %v327_v12 = vld [vmem:[%s5140_s1 + $0x948] sm:$0xff] }
  0x8d   :  { %2890 = vmatpush3.bf16.msra.mxu1 %v2889_v21  ;;  %v381_v21 = vld [vmem:[%s5140_s1 + $0xaf8] sm:$0xff] }
  0x8e   :  { %2892 = vmatprep.subr.bf16.mxu1 %v2891_v22  ;;  %2982 = vmatpush3.bf16.msra.mxu0 %v2981_v27  ;;  %v2909_v22 = vpack.c.bf16 %v269_v13, %v268_v36  ;;  %v319_v27 = vld [vmem:[%s5140_s1 + $0x908] sm:$0xff]  ;;  %v3003_v19 = vpack.c.bf16 %v381_v21, %v380_v20  ;;  %v437_v36 = vld [vmem:[%s5140_s1 + $0xcb8] sm:$0xff]  ;;  %v420_v21 = vld [vmem:[%s5140_s1 + $0xc30] sm:$0xff] }
  0x8f   :  { %2984 = vmatprep.subr.bf16.mxu0 %v2983_v28  ;;  %v3001_v28 = vpack.c.bf16 %v363_v18, %v362_v17  ;;  %v2945_v53 = vpack.c.bf16 %v319_v27, %v318_v26  ;;  %v345_v18 = vld [vmem:[%s5140_s1 + $0x9d8] sm:$0xff]  ;;  %v439_v26 = vld [vmem:[%s5140_s1 + $0xcc8] sm:$0xff] }
  0x91   :  { %2894 = vmatpush3.bf16.msra.mxu1 %v2893_v32  ;;  %v430_v32 = vld [vmem:[%s5140_s1 + $0xc80] sm:$0xff] }
  0x92   :  { %2896 = vmatprep.subr.bf16.mxu1 %v2895_v33  ;;  %2986 = vmatpush3.bf16.msra.mxu0 %v2985_v37  ;;  %v431_v33 = vld [vmem:[%s5140_s1 + $0xc88] sm:$0xff]  ;;  %v2947_v37 = vpack.c.bf16 %v337_v29, %v336_v24  ;;  %v329_v29 = vld [vmem:[%s5140_s1 + $0x958] sm:$0xff] }
  0x93   :  { %2988 = vmatprep.subr.bf16.mxu0 %v2987_v39  ;;  %v321_v39 = vld [vmem:[%s5140_s1 + $0x918] sm:$0xff]  ;;  %v3039_v46 = vpack.c.bf16 %v431_v33, %v430_v32  ;;  %v422_v33 = vld [vmem:[%s5140_s1 + $0xc40] sm:$0xff] }
  0x95   :  { %2898 = vmatpush3.bf16.msra.mxu1 %v2897_v47  ;;  %v414_v47 = vld [vmem:[%s5140_s1 + $0xc00] sm:$0xff] }
  0x96   :  { %2900 = vmatprep.subr.bf16.mxu1 %v2899_v58  ;;  %2990 = vmatpush3.bf16.msra.mxu0 %v2989_v51  ;;  %v415_v58 = vld [vmem:[%s5140_s1 + $0xc08] sm:$0xff]  ;;  %v2949_v51 = vpack.c.bf16 %v321_v39, %v320_v38 }
  0x97   :  { %2992 = vmatprep.subr.bf16.mxu0 %v2991_v54  ;;  %v322_v54 = vld [vmem:[%s5140_s1 + $0x920] sm:$0xff]  ;;  %v3041_v43 = vpack.c.bf16 %v415_v58, %v414_v47  ;;  %v349_v47 = vld [vmem:[%s5140_s1 + $0x9f8] sm:$0xff] }
  0x99   :  { %2902 = vmatpush3.bf16.msra.mxu1 %v2901_v61  ;;  %v416_v61 = vld [vmem:[%s5140_s1 + $0xc10] sm:$0xff] }
  0x9a   :  { %2904 = vmatprep.subr.bf16.mxu1 %v2903_v62  ;;  %2994 = vmatpush3.bf16.msra.mxu0 %v2993_v3  ;;  %v417_v62 = vld [vmem:[%s5140_s1 + $0xc18] sm:$0xff] }
  0x9b   :  { %2996 = vmatprep.subr.bf16.mxu0 %v2995_v49  ;;  %v324_v49 = vld [vmem:[%s5140_s1 + $0x930] sm:$0xff]  ;;  %v3045_v8 = vpack.c.bf16 %v417_v62, %v416_v61 }
  0x9c   :  { %v2957_v13 = vpack.c.bf16 %v325_v6, %v324_v49 }
  0x9d   :  { %2906 = vmatpush3.bf16.msra.mxu1 %v2905_v10  ;;  %v418_v10 = vld [vmem:[%s5140_s1 + $0xc20] sm:$0xff] }
  0x9e   :  { %2908 = vmatprep.subr.bf16.mxu1 %v2907_v11  ;;  %2998 = vmatpush3.bf16.msra.mxu0 %v2997_v15  ;;  %v436_v11 = vld [vmem:[%s5140_s1 + $0xcb0] sm:$0xff]  ;;  %v326_v15 = vld [vmem:[%s5140_s1 + $0x940] sm:$0xff]  ;;  %v3049_v17 = vpack.c.bf16 %v419_v1, %v418_v10 }
  0x9f   :  { %3000 = vmatprep.subr.bf16.mxu0 %v2999_v16  ;;  %v344_v16 = vld [vmem:[%s5140_s1 + $0x9d0] sm:$0xff]  ;;  %v3051_v20 = vpack.c.bf16 %v437_v36, %v436_v11  ;;  %v2961_v27 = vpack.c.bf16 %v327_v12, %v326_v15 }
  0xa0   :  { %v2963_v24 = vpack.c.bf16 %v345_v18, %v344_v16 }
  0xa1   :  { %2910 = vmatpush3.bf16.msra.mxu1 %v2909_v22  ;;  %v421_v22 = vld [vmem:[%s5140_s1 + $0xc38] sm:$0xff] }
  0xa2   :  { %2944 = vmatprep.subr.bf16.mxu1 %v2943_v25  ;;  %3002 = vmatpush3.bf16.msra.mxu0 %v3001_v28  ;;  %v438_v25 = vld [vmem:[%s5140_s1 + $0xcc0] sm:$0xff]  ;;  %v328_v28 = vld [vmem:[%s5140_s1 + $0x950] sm:$0xff]  ;;  %v3053_v30 = vpack.c.bf16 %v421_v22, %v420_v21 }
  0xa3   :  { %3004 = vmatprep.subr.bf16.mxu0 %v3003_v19  ;;  %v346_v19 = vld [vmem:[%s5140_s1 + $0x9e0] sm:$0xff]  ;;  %v3055_v32 = vpack.c.bf16 %v439_v26, %v438_v25  ;;  %v2965_v38 = vpack.c.bf16 %v329_v29, %v328_v28 }
  0xa4   :  { %1321 = vmatmul.mubr.f32.vlgmr.msra.gmra.mrb[8].mxu1 %v4138_v44  ;;  %v323_v44 = vld [vmem:[%s5140_s1 + $0x928] sm:$0xff]  ;;  %v2967_v39 = vpack.c.bf16 %v347_v31, %v346_v19 }
  0xa5   :  { %2946 = vmatpush3.bf16.msra.mxu1 %v2945_v53  ;;  %1460 = vmatprep.mubr.f32.mxu1 %v670_v35  ;;  %v2953_v3 = vpack.c.bf16 %v323_v44, %v322_v54  ;;  %v423_v53 = vld [vmem:[%s5140_s1 + $0xc48] sm:$0xff]  ;;  %v440_v35 = vld [vmem:[%s5140_s1 + $0xcd0] sm:$0xff] }
  0xa6   :  { %2948 = vmatprep.subr.bf16.mxu1 %v2947_v37  ;;  %3006 = vmatpush3.bf16.msra.mxu0 %v3005_v42  ;;  %v441_v37 = vld [vmem:[%s5140_s1 + $0xcd8] sm:$0xff]  ;;  %v331_v42 = vld [vmem:[%s5140_s1 + $0x968] sm:$0xff] }
  0xa7   :  { %3040 = vmatprep.subr.bf16.mxu0 %v3039_v46  ;;  %v3057_v46 = vpack.c.bf16 %v423_v53, %v422_v33  ;;  %v3059_v58 = vpack.c.bf16 %v441_v37, %v440_v35 }
  0xa9   :  { %2950 = vmatpush3.bf16.msra.mxu1 %v2949_v51  ;;  %1531 = vmatmul.mubr.f32.vlgmr.msra.gmra.mrb[8].mxu0 %v4191_v5  ;;  %v343_v5 = vld [vmem:[%s5140_s1 + $0x9c8] sm:$0xff]  ;;  %v442_v51 = vld [vmem:[%s5140_s1 + $0xce0] sm:$0xff] }
  0xaa   :  { %2952 = vmatprep.subr.bf16.mxu1 %v2951_v52  ;;  %3042 = vmatpush3.bf16.msra.mxu0 %v3041_v43  ;;  %v2959_v14 = vpack.c.bf16 %v343_v5, %v342_v7  ;;  %v443_v52 = vld [vmem:[%s5140_s1 + $0xce8] sm:$0xff] }
  0xab   :  { %3044 = vmatprep.subr.bf16.mxu0 %v3043_v60  ;;  %1670 = vmatprep.mubr.f32.mxu0 %v703_v63 }
  0xad   :  { %2954 = vmatpush3.bf16.msra.mxu1 %v2953_v3 }
  0xae   :  { %2956 = vmatprep.subr.bf16.mxu1 %v2955_v4  ;;  %3046 = vmatpush3.bf16.msra.mxu0 %v3045_v8 }
  0xaf   :  { %3048 = vmatprep.subr.bf16.mxu0 %v3047_v9 }
  0xb1   :  { %2958 = vmatpush3.bf16.msra.mxu1 %v2957_v13 }
  0xb2   :  { %2960 = vmatprep.subr.bf16.mxu1 %v2959_v14  ;;  %3050 = vmatpush3.bf16.msra.mxu0 %v3049_v17 }
  0xb3   :  { %3052 = vmatprep.subr.bf16.mxu0 %v3051_v20 }
  0xb5   :  { %2962 = vmatpush3.bf16.msra.mxu1 %v2961_v27 }
  0xb6   :  { %2964 = vmatprep.subr.bf16.mxu1 %v2963_v24  ;;  %3054 = vmatpush3.bf16.msra.mxu0 %v3053_v30 }
  0xb7   :  { %3056 = vmatprep.subr.bf16.mxu0 %v3055_v32 }
  0xb8   :  { %10 = vsyncpa [#allocation3], 0  ;;  %v2969_v54 = vpack.c.bf16 %v331_v42, %v330_v40  ;;  %v671_v44 = vcombine.high %v4167_v56, %v4167_v56  ;;  %v2971_v55 = vpack.c.bf16 %v349_v47, %v348_v45  ;;  %v332_v43 = vld [vmem:[%s5140_s1 + $0x970] sm:$0xff]  ;;  %v333_v57 = vld [vmem:[%s5140_s1 + $0x978] sm:$0xff]  ;;  %v3061_v61 = vpack.c.bf16 %v425_v41, %v424_v50  ;;  %s3262_s26 = smov [#allocation2]  }
  0xb9   :  { %2966 = vmatpush3.bf16.msra.mxu1 %v2965_v38  ;;  %v398_v60 = vld [vmem:[%s5140_s1 + $0xb80] sm:$0xff]  ;;  %v399_v56 = vld [vmem:[%s5140_s1 + $0xb88] sm:$0xff]  ;;  %v3063_v62 = vpack.c.bf16 %v443_v52, %v442_v51  ;;  %v444_v2 = vld [vmem:[%s5140_s1 + $0xcf0] sm:$0xff]  ;;  %v2973_v4 = vpack.c.bf16 %v333_v57, %v332_v43  ;;  %vm763_vm0 = vcmask 785408   ;;  %vm3260_vm1 = vmmov 0  }
  0xba   :  { %2968 = vmatprep.subr.bf16.mxu1 %v2967_v39  ;;  %3058 = vmatpush3.bf16.msra.mxu0 %v3057_v46  ;;  %v426_v63 = vld [vmem:[%s5140_s1 + $0xc60] sm:$0xff]  ;;  %v427_v0 = vld [vmem:[%s5140_s1 + $0xc68] sm:$0xff]  ;;  %v445_v3 = vld [vmem:[%s5140_s1 + $0xcf8] sm:$0xff]  ;;  %v4562_v49 = vrot.slane %v671_v44, %v3407_v59  ;;  %v3007_v6 = vpack.c.bf16 %v399_v56, %v398_v60  ;;  %vm1972_vm2 = vcmask 523264   ;;  %vm2046_vm3 = vcmask 9216  }
  0xbb   :  { %3060 = vmatprep.subr.bf16.mxu0 %v3059_v58  ;;  %v382_v7 = vld [vmem:[%s5140_s1 + $0xb00] sm:$0xff]  ;;  %v383_v8 = vld [vmem:[%s5140_s1 + $0xb08] sm:$0xff]  ;;  %v400_v5 = vld [vmem:[%s5140_s1 + $0xb90] sm:$0xff]  ;;  %v3065_v9 = vpack.c.bf16 %v427_v0, %v426_v63  ;;  %v3067_v1 = vpack.c.bf16 %v445_v3, %v444_v2 }
  0xbc   :  { %v401_v10 = vld [vmem:[%s5140_s1 + $0xb98] sm:$0xff]  ;;  %v428_v11 = vld [vmem:[%s5140_s1 + $0xc70] sm:$0xff]  ;;  %v494_v13 = vld [vmem:[%s5140_s1 + $0xe80] sm:$0xff]  ;;  %v3009_v12 = vpack.c.bf16 %v383_v8, %v382_v7  ;;  %v687_v16 = vcombine.high %v4562_v49, %v4562_v49 }
  0xbd   :  { %2970 = vmatpush3.bf16.msra.mxu1 %v2969_v54  ;;  %v429_v36 = vld [vmem:[%s5140_s1 + $0xc78] sm:$0xff]  ;;  %v495_v14 = vld [vmem:[%s5140_s1 + $0xe88] sm:$0xff]  ;;  %v3011_v17 = vpack.c.bf16 %v401_v10, %v400_v5  ;;  %v384_v18 = vld [vmem:[%s5140_s1 + $0xb10] sm:$0xff] }
  0xbe   :  { %2972 = vmatprep.subr.bf16.mxu1 %v2971_v55  ;;  %3062 = vmatpush3.bf16.msra.mxu0 %v3061_v61  ;;  %v4591_v15 = vld [vmem:[%s5139_s0 + $0x38] sm:$0xff]  ;;  %v402_v21 = vld [vmem:[%s5140_s1 + $0xba0] sm:$0xff]  ;;  %v3069_v22 = vpack.c.bf16 %v429_v36, %v428_v11  ;;  %v403_v25 = vld [vmem:[%s5140_s1 + $0xba8] sm:$0xff]  ;;  %v3103_v26 = vpack.c.bf16 %v495_v14, %v494_v13 }
  0xbf   :  { %3064 = vmatprep.subr.bf16.mxu0 %v3063_v62  ;;  %v385_v20 = vld [vmem:[%s5140_s1 + $0xb18] sm:$0xff]  ;;  %v478_v27 = vld [vmem:[%s5140_s1 + $0xe00] sm:$0xff]  ;;  %v479_v24 = vld [vmem:[%s5140_s1 + $0xe08] sm:$0xff]  ;;  %v4615_v28 = vrot.slane %v4591_v15, %v3407_v59  ;;  %v3015_v31 = vpack.c.bf16 %v403_v25, %v402_v21 }
  0xc0   :  { %v496_v29 = vld [vmem:[%s5140_s1 + $0xe90] sm:$0xff]  ;;  %v497_v19 = vld [vmem:[%s5140_s1 + $0xe98] sm:$0xff]  ;;  %v3013_v30 = vpack.c.bf16 %v385_v20, %v384_v18  ;;  %v386_v32 = vld [vmem:[%s5140_s1 + $0xb20] sm:$0xff]  ;;  %v3105_v53 = vpack.c.bf16 %v479_v24, %v478_v27 }
  0xc1   :  { %2974 = vmatpush3.bf16.msra.mxu1 %v2973_v4  ;;  %v404_v33 = vld [vmem:[%s5140_s1 + $0xbb0] sm:$0xff]  ;;  %v405_v35 = vld [vmem:[%s5140_s1 + $0xbb8] sm:$0xff]  ;;  %v3107_v37 = vpack.c.bf16 %v497_v19, %v496_v29  ;;  %v720_v40 = vcombine.high %v4615_v28, %v4615_v28  ;;  %v498_v42 = vld [vmem:[%s5140_s1 + $0xea0] sm:$0xff] }
  0xc2   :  { %3008 = vmatprep.subr.bf16.mxu1 %v3007_v6  ;;  %3066 = vmatpush3.bf16.msra.mxu0 %v3065_v9  ;;  %v480_v38 = vld [vmem:[%s5140_s1 + $0xe10] sm:$0xff]  ;;  %v481_v39 = vld [vmem:[%s5140_s1 + $0xe18] sm:$0xff]  ;;  %v499_v45 = vld [vmem:[%s5140_s1 + $0xea8] sm:$0xff]  ;;  %v3019_v47 = vpack.c.bf16 %v405_v35, %v404_v33 }
  0xc3   :  { %3068 = vmatprep.subr.bf16.mxu0 %v3067_v1  ;;  %v388_v58 = vld [vmem:[%s5140_s1 + $0xb30] sm:$0xff]  ;;  %v389_v50 = vld [vmem:[%s5140_s1 + $0xb38] sm:$0xff]  ;;  %v406_v41 = vld [vmem:[%s5140_s1 + $0xbc0] sm:$0xff]  ;;  %v3109_v51 = vpack.c.bf16 %v481_v39, %v480_v38  ;;  %v3111_v52 = vpack.c.bf16 %v499_v45, %v498_v42 }
  0xc4   :  { %1461 = vmatmul.mubr.f32.vlgmr.msra.gmra.mrb[10].mxu1 %v4350_v23  ;;  %v387_v23 = vld [vmem:[%s5140_s1 + $0xb28] sm:$0xff]  ;;  %v482_v54 = vld [vmem:[%s5140_s1 + $0xe20] sm:$0xff]  ;;  %v500_v55 = vld [vmem:[%s5140_s1 + $0xeb0] sm:$0xff]  ;;  %v3021_v57 = vpack.c.bf16 %v389_v50, %v388_v58 }
  0xc5   :  { %3010 = vmatpush3.bf16.msra.mxu1 %v3009_v12  ;;  %1600 = vmatprep.mubr.f32.mxu1 %v687_v16  ;;  %v3017_v46 = vpack.c.bf16 %v387_v23, %v386_v32  ;;  %v483_v44 = vld [vmem:[%s5140_s1 + $0xe28] sm:$0xff]  ;;  %v501_v43 = vld [vmem:[%s5140_s1 + $0xeb8] sm:$0xff]  ;;  %v390_v61 = vld [vmem:[%s5140_s1 + $0xb40] sm:$0xff]  ;;  %v688_v23 = vcombine.high %v4379_v34, %v4379_v34 }
  0xc6   :  { %3012 = vmatprep.subr.bf16.mxu1 %v3011_v17  ;;  %3070 = vmatpush3.bf16.msra.mxu0 %v3069_v22  ;;  %v391_v56 = vld [vmem:[%s5140_s1 + $0xb48] sm:$0xff]  ;;  %v408_v62 = vld [vmem:[%s5140_s1 + $0xbd0] sm:$0xff]  ;;  %v3113_v63 = vpack.c.bf16 %v483_v44, %v482_v54  ;;  %v409_v0 = vld [vmem:[%s5140_s1 + $0xbd8] sm:$0xff]  ;;  %v3115_v2 = vpack.c.bf16 %v501_v43, %v500_v55 }
  0xc7   :  { %3104 = vmatprep.subr.bf16.mxu0 %v3103_v26  ;;  %v484_v3 = vld [vmem:[%s5140_s1 + $0xe30] sm:$0xff]  ;;  %v485_v4 = vld [vmem:[%s5140_s1 + $0xe38] sm:$0xff]  ;;  %v502_v6 = vld [vmem:[%s5140_s1 + $0xec0] sm:$0xff]  ;;  %v3025_v8 = vpack.c.bf16 %v391_v56, %v390_v61  ;;  %v3027_v5 = vpack.c.bf16 %v409_v0, %v408_v62  ;;  %v4774_v58 = vrot.slane %v688_v23, %v3407_v59 }
  0xc8   :  { %v503_v7 = vld [vmem:[%s5140_s1 + $0xec8] sm:$0xff]  ;;  %v392_v9 = vld [vmem:[%s5140_s1 + $0xb50] sm:$0xff]  ;;  %v393_v10 = vld [vmem:[%s5140_s1 + $0xb58] sm:$0xff]  ;;  %v3117_v11 = vpack.c.bf16 %v485_v4, %v484_v3 }
  0xc9   :  { %3014 = vmatpush3.bf16.msra.mxu1 %v3013_v30  ;;  %1671 = vmatmul.mubr.f32.vlgmr.msra.gmra.mrb[10].mxu0 %v4403_v48  ;;  %v407_v48 = vld [vmem:[%s5140_s1 + $0xbc8] sm:$0xff]  ;;  %v410_v1 = vld [vmem:[%s5140_s1 + $0xbe0] sm:$0xff]  ;;  %v3119_v13 = vpack.c.bf16 %v503_v7, %v502_v6  ;;  %v504_v16 = vld [vmem:[%s5140_s1 + $0xed0] sm:$0xff]  ;;  %v3029_v18 = vpack.c.bf16 %v393_v10, %v392_v9 }
  0xca   :  { %3016 = vmatprep.subr.bf16.mxu1 %v3015_v31  ;;  %3106 = vmatpush3.bf16.msra.mxu0 %v3105_v53  ;;  %v3023_v60 = vpack.c.bf16 %v407_v48, %v406_v41  ;;  %v411_v36 = vld [vmem:[%s5140_s1 + $0xbe8] sm:$0xff]  ;;  %v486_v14 = vld [vmem:[%s5140_s1 + $0xe40] sm:$0xff]  ;;  %v505_v17 = vld [vmem:[%s5140_s1 + $0xed8] sm:$0xff] }
  0xcb   :  { %3108 = vmatprep.subr.bf16.mxu0 %v3107_v37  ;;  %1810 = vmatprep.mubr.f32.mxu0 %v720_v40  ;;  %v487_v12 = vld [vmem:[%s5140_s1 + $0xe48] sm:$0xff]  ;;  %v3031_v20 = vpack.c.bf16 %v411_v36, %v410_v1  ;;  %v394_v21 = vld [vmem:[%s5140_s1 + $0xb60] sm:$0xff]  ;;  %v412_v25 = vld [vmem:[%s5140_s1 + $0xbf0] sm:$0xff]  ;;  %v3123_v24 = vpack.c.bf16 %v505_v17, %v504_v16 }
  0xcc   :  { %v395_v22 = vld [vmem:[%s5140_s1 + $0xb68] sm:$0xff]  ;;  %v3121_v26 = vpack.c.bf16 %v487_v12, %v486_v14  ;;  %v413_v27 = vld [vmem:[%s5140_s1 + $0xbf8] sm:$0xff]  ;;  %v488_v29 = vld [vmem:[%s5140_s1 + $0xe50] sm:$0xff] }
  0xcd   :  { %3018 = vmatpush3.bf16.msra.mxu1 %v3017_v46  ;;  %v489_v19 = vld [vmem:[%s5140_s1 + $0xe58] sm:$0xff]  ;;  %v506_v30 = vld [vmem:[%s5140_s1 + $0xee0] sm:$0xff]  ;;  %v507_v31 = vld [vmem:[%s5140_s1 + $0xee8] sm:$0xff]  ;;  %v3033_v32 = vpack.c.bf16 %v395_v22, %v394_v21  ;;  %v3035_v33 = vpack.c.bf16 %v413_v27, %v412_v25 }
  0xce   :  { %3020 = vmatprep.subr.bf16.mxu1 %v3019_v47  ;;  %3110 = vmatpush3.bf16.msra.mxu0 %v3109_v51  ;;  %v396_v53 = vld [vmem:[%s5140_s1 + $0xb70] sm:$0xff]  ;;  %v397_v35 = vld [vmem:[%s5140_s1 + $0xb78] sm:$0xff]  ;;  %v462_v37 = vld [vmem:[%s5140_s1 + $0xd80] sm:$0xff]  ;;  %v3125_v38 = vpack.c.bf16 %v489_v19, %v488_v29  ;;  %v3127_v39 = vpack.c.bf16 %v507_v31, %v506_v30 }
  0xcf   :  { %3112 = vmatprep.subr.bf16.mxu0 %v3111_v52  ;;  %v463_v34 = vld [vmem:[%s5140_s1 + $0xd88] sm:$0xff]  ;;  %v490_v40 = vld [vmem:[%s5140_s1 + $0xe60] sm:$0xff]  ;;  %v508_v45 = vld [vmem:[%s5140_s1 + $0xef0] sm:$0xff]  ;;  %v3037_v47 = vpack.c.bf16 %v397_v35, %v396_v53 }
  0xd0   :  { %v491_v42 = vld [vmem:[%s5140_s1 + $0xe68] sm:$0xff]  ;;  %v509_v46 = vld [vmem:[%s5140_s1 + $0xef8] sm:$0xff]  ;;  %v3071_v50 = vpack.c.bf16 %v463_v34, %v462_v37  ;;  %v446_v41 = vld [vmem:[%s5140_s1 + $0xd00] sm:$0xff] }
  0xd1   :  { %3022 = vmatpush3.bf16.msra.mxu1 %v3021_v57  ;;  %v447_v51 = vld [vmem:[%s5140_s1 + $0xd08] sm:$0xff]  ;;  %v464_v48 = vld [vmem:[%s5140_s1 + $0xd90] sm:$0xff]  ;;  %v3129_v52 = vpack.c.bf16 %v491_v42, %v490_v40  ;;  %v465_v54 = vld [vmem:[%s5140_s1 + $0xd98] sm:$0xff]  ;;  %v3131_v44 = vpack.c.bf16 %v509_v46, %v508_v45 }
  0xd2   :  { %3024 = vmatprep.subr.bf16.mxu1 %v3023_v60  ;;  %3114 = vmatpush3.bf16.msra.mxu0 %v3113_v63  ;;  %v492_v55 = vld [vmem:[%s5140_s1 + $0xe70] sm:$0xff]  ;;  %v493_v43 = vld [vmem:[%s5140_s1 + $0xe78] sm:$0xff]  ;;  %v3073_v57 = vpack.c.bf16 %v447_v51, %v446_v41  ;;  %v704_v60 = vcombine.high %v4774_v58, %v4774_v58  ;;  %v3075_v61 = vpack.c.bf16 %v465_v54, %v464_v48  ;;  %v466_v63 = vld [vmem:[%s5140_s1 + $0xda0] sm:$0xff] }
  0xd3   :  { %3116 = vmatprep.subr.bf16.mxu0 %v3115_v2  ;;  %v448_v56 = vld [vmem:[%s5140_s1 + $0xd10] sm:$0xff]  ;;  %v449_v62 = vld [vmem:[%s5140_s1 + $0xd18] sm:$0xff]  ;;  %v3133_v0 = vpack.c.bf16 %v493_v43, %v492_v55  ;;  %v467_v2 = vld [vmem:[%s5140_s1 + $0xda8] sm:$0xff] }
  0xd4   :  { %v542_v3 = vld [vmem:[%s5140_s1 + $0x1000] sm:$0xff]  ;;  %v543_v4 = vld [vmem:[%s5140_s1 + $0x1008] sm:$0xff]  ;;  %v3077_v7 = vpack.c.bf16 %v449_v62, %v448_v56  ;;  %v469_v1 = vld [vmem:[%s5140_s1 + $0xdb8] sm:$0xff] }
  0xd5   :  { %3026 = vmatpush3.bf16.msra.mxu1 %v3025_v8  ;;  %v4818_v6 = vld.sshfl [vmem:[%s5139_s0 + $0x40] sm:$0x33 pattern:$0x76325410]  ;;  %v3079_v8 = vpack.c.bf16 %v467_v2, %v466_v63  ;;  %v451_v9 = vld [vmem:[%s5140_s1 + $0xd28] sm:$0xff]  ;;  %v3168_v10 = vpack.c.bf16 %v543_v4, %v542_v3  ;;  %v544_v36 = vld [vmem:[%s5140_s1 + $0x1010] sm:$0xff] }
  0xd6   :  { %3028 = vmatprep.subr.bf16.mxu1 %v3027_v5  ;;  %3118 = vmatpush3.bf16.msra.mxu0 %v3117_v11  ;;  %v450_v5 = vld [vmem:[%s5140_s1 + $0xd20] sm:$0xff]  ;;  %v3259_v11 = vmov 0.0|0.0   ;;  %v729_v14 = vcombine.high %v4818_v6, %v4818_v6  ;;  %v452_v17 = vld [vmem:[%s5140_s1 + $0xd30] sm:$0xff]  ;;  %v547_v25 = vld [vmem:[%s5140_s1 + $0x1028] sm:$0xff] }
  0xd7   :  { %3120 = vmatprep.subr.bf16.mxu0 %v3119_v13  ;;  %v545_v13 = vld [vmem:[%s5140_s1 + $0x1018] sm:$0xff]  ;;  %v3081_v12 = vpack.c.bf16 %v451_v9, %v450_v5  ;;  %v546_v22 = vld [vmem:[%s5140_s1 + $0x1020] sm:$0xff]  ;;  %v455_v29 = vld [vmem:[%s5140_s1 + $0xd48] sm:$0xff] }
  0xd8   :  { %v3171_v21 = vpack.c.bf16 %v545_v13, %v544_v36  ;;  %v472_v19 = vld [vmem:[%s5140_s1 + $0xdd0] sm:$0xff]  ;;  %v3174_v30 = vpack.c.bf16 %v547_v25, %v546_v22  ;;  %v473_v31 = vld [vmem:[%s5140_s1 + $0xdd8] sm:$0xff]  ;;  %v550_v40 = vld [vmem:[%s5140_s1 + $0x1040] sm:$0xff] }
  0xd9   :  { %3030 = vmatpush3.bf16.msra.mxu1 %v3029_v18  ;;  %v453_v18 = vld [vmem:[%s5140_s1 + $0xd38] sm:$0xff]  ;;  %v3091_v53 = vpack.c.bf16 %v473_v31, %v472_v19  ;;  %v456_v35 = vld [vmem:[%s5140_s1 + $0xd50] sm:$0xff]  ;;  %v551_v42 = vld [vmem:[%s5140_s1 + $0x1048] sm:$0xff] }
  0xda   :  { %3032 = vmatprep.subr.bf16.mxu1 %v3031_v20  ;;  %3122 = vmatpush3.bf16.msra.mxu0 %v3121_v26  ;;  %v470_v20 = vld [vmem:[%s5140_s1 + $0xdc0] sm:$0xff]  ;;  %v3085_v26 = vpack.c.bf16 %v453_v18, %v452_v17  ;;  %v549_v23 = vld [vmem:[%s5140_s1 + $0x1038] sm:$0xff]  ;;  %v476_v41 = vld [vmem:[%s5140_s1 + $0xdf0] sm:$0xff]  ;;  %v3180_v51 = vpack.c.bf16 %v551_v42, %v550_v40 }
  0xdb   :  { %3124 = vmatprep.subr.bf16.mxu0 %v3123_v24  ;;  %v454_v24 = vld [vmem:[%s5140_s1 + $0xd40] sm:$0xff]  ;;  %v457_v37 = vld [vmem:[%s5140_s1 + $0xd58] sm:$0xff]  ;;  %v552_v54 = vld [vmem:[%s5140_s1 + $0x1050] sm:$0xff] }
  0xdc   :  { %v3093_v45 = vpack.c.bf16 %v457_v37, %v456_v35  ;;  %v460_v56 = vld [vmem:[%s5140_s1 + $0xd70] sm:$0xff]  ;;  %v461_v62 = vld [vmem:[%s5140_s1 + $0xd78] sm:$0xff]  ;;  %v526_v63 = vld [vmem:[%s5140_s1 + $0xf80] sm:$0xff] }
  0xdd   :  { %3034 = vmatpush3.bf16.msra.mxu1 %v3033_v32  ;;  %v548_v32 = vld [vmem:[%s5140_s1 + $0x1030] sm:$0xff]  ;;  %v554_v2 = vld [vmem:[%s5140_s1 + $0x1060] sm:$0xff]  ;;  %v555_v3 = vld [vmem:[%s5140_s1 + $0x1068] sm:$0xff] }
  0xde   :  { %3036 = vmatprep.subr.bf16.mxu1 %v3035_v33  ;;  %3126 = vmatpush3.bf16.msra.mxu0 %v3125_v38  ;;  %v3089_v33 = vpack.c.bf16 %v455_v29, %v454_v24  ;;  %v474_v38 = vld [vmem:[%s5140_s1 + $0xde0] sm:$0xff]  ;;  %v3177_v34 = vpack.c.bf16 %v549_v23, %v548_v32  ;;  %v528_v36 = vld [vmem:[%s5140_s1 + $0xf90] sm:$0xff]  ;;  %v3186_v13 = vpack.c.bf16 %v555_v3, %v554_v2  ;;  %v531_v25 = vld [vmem:[%s5140_s1 + $0xfa8] sm:$0xff] }
  0xdf   :  { %3128 = vmatprep.subr.bf16.mxu0 %v3127_v39  ;;  %v475_v39 = vld [vmem:[%s5140_s1 + $0xde8] sm:$0xff]  ;;  %v514_v19 = vld [vmem:[%s5140_s1 + $0xf20] sm:$0xff]  ;;  %v532_v31 = vld [vmem:[%s5140_s1 + $0xfb0] sm:$0xff] }
  0xe0   :  { %v3095_v46 = vpack.c.bf16 %v475_v39, %v474_v38  ;;  %v560_v23 = vld [vmem:[%s5140_s1 + $0x1090] sm:$0xff]  ;;  %v517_v38 = vld [vmem:[%s5140_s1 + $0xf38] sm:$0xff]  ;;  %v535_v40 = vld [vmem:[%s5140_s1 + $0xfc8] sm:$0xff] }
  0xe1   :  { %3038 = vmatpush3.bf16.msra.mxu1 %v3037_v47  ;;  %v458_v47 = vld [vmem:[%s5140_s1 + $0xd60] sm:$0xff]  ;;  %v516_v37 = vld [vmem:[%s5140_s1 + $0xf30] sm:$0xff] }
  0xe2   :  { %3072 = vmatprep.subr.bf16.mxu1 %v3071_v50  ;;  %3130 = vmatpush3.bf16.msra.mxu0 %v3129_v52  ;;  %v459_v50 = vld [vmem:[%s5140_s1 + $0xd68] sm:$0xff]  ;;  %v477_v52 = vld [vmem:[%s5140_s1 + $0xdf8] sm:$0xff]  ;;  %v562_v42 = vld [vmem:[%s5140_s1 + $0x10a0] sm:$0xff] }
  0xe3   :  { %3132 = vmatprep.subr.bf16.mxu0 %v3131_v44  ;;  %v553_v44 = vld [vmem:[%s5140_s1 + $0x1058] sm:$0xff]  ;;  %v2062_v2 = vld [vmem:[%s5141_s2] ss:$0 sm:$0xff]  ;;  %s2054_s2 = sshll.u32 %s3262_s26, 4  ;;  %s2055_s2 = int_to_ptr.vmem [resolvable:$true] %s2054_s2 }
  0xe4   :  { %1601 = vmatmul.mubr.f32.vlgmr.msra.gmra.mrb[12].mxu1 %v4562_v49  ;;  %v468_v49 = vld [vmem:[%s5140_s1 + $0xdb0] sm:$0xff]  ;;  %s3234_s27 = scalar_lea.vmem %s2055_s2, 32  ;;  %p3239_p1 = scmp.lt.s32.totalorder %s2055_s2, %s2055_s2 }
  0xe5   :  { %3074 = vmatpush3.bf16.msra.mxu1 %v3073_v57  ;;  %1740 = vmatprep.mubr.f32.mxu1 %v704_v60  ;;  %v3083_v16 = vpack.c.bf16 %v469_v1, %v468_v49  ;;  %v3097_v57 = vpack.c.bf16 %v459_v50, %v458_v47  ;;  %v705_v60 = vcombine.high %v4591_v15, %v4591_v15  ;;  %v527_v15 = vld [vmem:[%s5140_s1 + $0xf88] sm:$0xff]  ;;  %v518_v50 = vld [vmem:[%s5140_s1 + $0xf40] sm:$0xff]  ;;  %p3235_p0 = scmp.ne.s32.totalorder %s2055_s2, %s3234_s27  ;;  %p3240_p2 = scmp.lt.s32.totalorder %s3234_s27, %s3234_s27 }
  0xe6   :  { %3076 = vmatprep.subr.bf16.mxu1 %v3075_v61  ;;  %3134 = vmatpush3.bf16.msra.mxu0 %v3133_v0  ;;  %v3099_v61 = vpack.c.bf16 %v477_v52, %v476_v41  ;;  %v3183_v0 = vpack.c.bf16 %v553_v44, %v552_v54  ;;  %v3135_v9 = vpack.c.bf16 %v527_v15, %v526_v63  ;;  %v511_v1 = vld [vmem:[%s5140_s1 + $0xf08] sm:$0xff]  ;;  %v537_v52 = vld [vmem:[%s5140_s1 + $0xfd8] sm:$0xff]  ;;  %v564_v54 = vld [vmem:[%s5140_s1 + $0x10b0] sm:$0xff] }
  0xe7   :  { %3167 = vmatprep.subr.bf16.mxu0 %v3259_v11  ;;  %v4942_v5 = vrot.slane %v705_v60, %v3407_v59  ;;  %v529_v59 = vld [vmem:[%s5140_s1 + $0xf98] sm:$0xff]  ;;  %v519_v41 = vld [vmem:[%s5140_s1 + $0xf48] sm:$0xff]  ;;  %v520_v60 = vld [vmem:[%s5140_s1 + $0xf50] sm:$0xff]  ;;  %p3241_p3 = por %p3240_p2, %p3239_p1 }
  0xe8   :  { %v3139_v18 = vpack.c.bf16 %v529_v59, %v528_v36  ;;  %v565_v44 = vld [vmem:[%s5140_s1 + $0x10b8] sm:$0xff]  ;;  %v539_v63 = vld [vmem:[%s5140_s1 + $0xfe8] sm:$0xff] }
  0xe9   :  { %3078 = vmatpush3.bf16.msra.mxu1 %v3077_v7  ;;  %1811 = vmatmul.mubr.f32.vlgmr.msra.gmra.mrb[12].mxu0 %v4615_v28  ;;  %v471_v28 = vld [vmem:[%s5140_s1 + $0xdc8] sm:$0xff]  ;;  %v3101_v7 = vpack.c.bf16 %v461_v62, %v460_v56  ;;  %v721_v17 = vcombine.high %v4942_v5, %v4942_v5  ;;  %v538_v56 = vld [vmem:[%s5140_s1 + $0xfe0] sm:$0xff]  ;;  %v3201_v62 = vpack.c.bf16 %v565_v44, %v564_v54  ;;  %v541_v36 = vld [vmem:[%s5140_s1 + $0xff8] sm:$0xff]  ;;  %p3242_p4 = pnand %p3241_p3, %p3235_p0 }
  0xea   :  { %3080 = vmatprep.subr.bf16.mxu1 %v3079_v8  ;;  %3169 = vmatpush1.bf16.msra.mxu0 %v3168_v10  ;;  %v3087_v27 = vpack.c.bf16 %v471_v28, %v470_v20  ;;  %v510_v10 = vld [vmem:[%s5140_s1 + $0xf00] sm:$0xff]  ;;  %v512_v20 = vld [vmem:[%s5140_s1 + $0xf10] sm:$0xff]  ;;  %v567_v15 = vld [vmem:[%s5140_s1 + $0x10c8] sm:$0xff] }
  0xeb   :  { %3170 = vmatprep.subr.bf16.mxu0 %v3259_v11  ;;  %2064 = vmatprep.mubr.msk.f32.mxu0 %vm763_vm0, %v729_v14  ;;  %v556_v14 = vld [vmem:[%s5140_s1 + $0x1070] sm:$0xff]  ;;  %v530_v28 = vld [vmem:[%s5140_s1 + $0xfa0] sm:$0xff]  ;;  %v569_v59 = vld [vmem:[%s5140_s1 + $0x10d8] sm:$0xff] }
  0xec   :  { %v3143_v29 = vpack.c.bf16 %v531_v25, %v530_v28 }
  0xed   :  { %3082 = vmatpush3.bf16.msra.mxu1 %v3081_v12  ;;  %v557_v12 = vld [vmem:[%s5140_s1 + $0x1078] sm:$0xff] }
  0xee   :  { %3084 = vmatprep.subr.bf16.mxu1 %v3083_v16  ;;  %3172 = vmatpush1.bf16.msra.mxu0 %v3171_v21  ;;  %v3137_v16 = vpack.c.bf16 %v511_v1, %v510_v10  ;;  %v513_v21 = vld [vmem:[%s5140_s1 + $0xf18] sm:$0xff]  ;;  %v3189_v22 = vpack.c.bf16 %v557_v12, %v556_v14 }
  0xef   :  { %3173 = vmatprep.subr.bf16.mxu0 %v3259_v11  ;;  %v3141_v24 = vpack.c.bf16 %v513_v21, %v512_v20  ;;  %v524_v20 = vld [vmem:[%s5140_s1 + $0xf70] sm:$0xff]  ;;  %v525_v21 = vld [vmem:[%s5140_s1 + $0xf78] sm:$0xff] }
  0xf1   :  { %3086 = vmatpush3.bf16.msra.mxu1 %v3085_v26  ;;  %v558_v26 = vld [vmem:[%s5140_s1 + $0x1080] sm:$0xff] }
  0xf2   :  { %3088 = vmatprep.subr.bf16.mxu1 %v3087_v27  ;;  %3175 = vmatpush1.bf16.msra.mxu0 %v3174_v30  ;;  %v559_v27 = vld [vmem:[%s5140_s1 + $0x1088] sm:$0xff] }
  0xf3   :  { %3176 = vmatprep.subr.bf16.mxu0 %v3259_v11  ;;  %v515_v30 = vld [vmem:[%s5140_s1 + $0xf28] sm:$0xff]  ;;  %v3192_v32 = vpack.c.bf16 %v559_v27, %v558_v26 }
  0xf5   :  { %3090 = vmatpush3.bf16.msra.mxu1 %v3089_v33  ;;  %v561_v33 = vld [vmem:[%s5140_s1 + $0x1098] sm:$0xff] }
  0xf6   :  { %3092 = vmatprep.subr.bf16.mxu1 %v3091_v53  ;;  %3178 = vmatpush1.bf16.msra.mxu0 %v3177_v34  ;;  %v3145_v53 = vpack.c.bf16 %v515_v30, %v514_v19  ;;  %v534_v34 = vld [vmem:[%s5140_s1 + $0xfc0] sm:$0xff]  ;;  %v3195_v39 = vpack.c.bf16 %v561_v33, %v560_v23 }
  0xf7   :  { %v2099_v48 = vpop.f32.mrb[0].mxu1  ;;  %3179 = vmatprep.subr.bf16.mxu0 %v3259_v11  ;;  %v3151_v47 = vpack.c.bf16 %v535_v40, %v534_v34  ;;  %v1960_v40 = vld [vmem:[%s5142_s3 + $0x18] sm:$0xff] }
  0xf8   :  { %v2100_v55 = vpop.f32.mrb[1].mxu1 }
  0xf9   :  { %v4918_v43 = vadd.f32 %v2100_v55, %v2099_v48  ;;  %3094 = vmatpush3.bf16.msra.mxu1 %v3093_v45  ;;  %v563_v45 = vld [vmem:[%s5140_s1 + $0x10a8] sm:$0xff]  ;;  %v3153_v55 = vpack.c.bf16 %v519_v41, %v518_v50  ;;  %v1961_v41 = vld [vmem:[%s5142_s3 + $0x20] sm:$0xff] }
  0xfa   :  { %3096 = vmatprep.subr.bf16.mxu1 %v3095_v46  ;;  %3181 = vmatpush1.bf16.msra.mxu0 %v3180_v51  ;;  %v3149_v46 = vpack.c.bf16 %v517_v38, %v516_v37  ;;  %v536_v51 = vld [vmem:[%s5140_s1 + $0xfd0] sm:$0xff]  ;;  %v3198_v48 = vpack.c.bf16 %v563_v45, %v562_v42  ;;  %v1957_v38 = vld [vmem:[%s5142_s3] sm:$0xff] }
  0xfb   :  { %3182 = vmatprep.subr.bf16.mxu0 %v3259_v11  ;;  %v833_v12 = vadd.f32 %v4918_v43, %v2062_v2  ;;  %v3165_v43 = vpack.c.bf16 %v525_v21, %v524_v20 }
  0xfc   :  { %v2169_v4 = vpop.f32.mrb[0].mxu0 }
  0xfd   :  { %3098 = vmatpush3.bf16.msra.mxu1 %v3097_v57  ;;  %v2170_v8 = vpop.f32.mrb[1].mxu0  ;;  %v3155_v57 = vpack.c.bf16 %v537_v52, %v536_v51  ;;  %v1962_v51 = vld [vmem:[%s5142_s3 + $0x28] sm:$0xff] }
  0xfe   :  { %3100 = vmatprep.subr.bf16.mxu1 %v3099_v61  ;;  %v4944_v49 = vadd.f32 %v2170_v8, %v2169_v4  ;;  %3184 = vmatpush1.bf16.msra.mxu0 %v3183_v0  ;;  %v521_v61 = vld [vmem:[%s5140_s1 + $0xf58] sm:$0xff]  ;;  %v566_v0 = vld [vmem:[%s5140_s1 + $0x10c0] sm:$0xff]  ;;  %v3159_v4 = vpack.c.bf16 %v539_v63, %v538_v56  ;;  %v523_v8 = vld [vmem:[%s5140_s1 + $0xf68] sm:$0xff]  ;;  %v3216_v52 = vpack.c.bf16 %v1962_v51, %v1961_v41 }
  0xff   :  { %3185 = vmatprep.subr.bf16.mxu0 %v3259_v11  ;;  %v3157_v3 = vpack.c.bf16 %v521_v61, %v520_v60  ;;  %v3204_v10 = vpack.c.bf16 %v567_v15, %v566_v0  ;;  %v3261_v0 = vmov 0.0  }
 0x101   :  { %3102 = vmatpush3.bf16.msra.mxu1 %v3101_v7  ;;  %v522_v7 = vld [vmem:[%s5140_s1 + $0xf60] sm:$0xff] }
 0x102   :  { %3136 = vmatprep.subr.bf16.mxu1 %v3135_v9  ;;  %3187 = vmatpush1.bf16.msra.mxu0 %v3186_v13  ;;  %v540_v9 = vld [vmem:[%s5140_s1 + $0xff0] sm:$0xff] }
 0x103   :  { %3188 = vmatprep.subr.bf16.mxu0 %v3259_v11  ;;  %v568_v13 = vld [vmem:[%s5140_s1 + $0x10d0] sm:$0xff] }
 0x104   :  { %1741 = vmatmul.mubr.f32.vlgmr.msra.gmra.mrb[14].mxu1 %v4774_v58  ;;  %v533_v58 = vld [vmem:[%s5140_s1 + $0xfb8] sm:$0xff]  ;;  %v3207_v28 = vpack.c.bf16 %v569_v59, %v568_v13 }
 0x105   :  { %3138 = vmatpush3.bf16.msra.mxu1 %v3137_v16  ;;  %1880 = vmatprep.mubr.f32.mxu1 %v721_v17  ;;  %v3147_v35 = vpack.c.bf16 %v533_v58, %v532_v31  ;;  %v3161_v17 = vpack.c.bf16 %v523_v8, %v522_v7 }
 0x106   :  { %3140 = vmatprep.subr.bf16.mxu1 %v3139_v18  ;;  %3190 = vmatpush1.bf16.msra.mxu0 %v3189_v22  ;;  %v3163_v18 = vpack.c.bf16 %v541_v36, %v540_v9 }
 0x107   :  { %3191 = vmatprep.subr.bf16.mxu0 %v3259_v11 }
 0x109   :  { %3142 = vmatpush3.bf16.msra.mxu1 %v3141_v24 }
 0x10a   :  { %3144 = vmatprep.subr.bf16.mxu1 %v3143_v29  ;;  %3193 = vmatpush1.bf16.msra.mxu0 %v3192_v32 }
 0x10b   :  { %3194 = vmatprep.subr.bf16.mxu0 %v3259_v11 }
 0x10d   :  { %3146 = vmatpush3.bf16.msra.mxu1 %v3145_v53 }
 0x10e   :  { %3148 = vmatprep.subr.bf16.mxu1 %v3147_v35  ;;  %3196 = vmatpush1.bf16.msra.mxu0 %v3195_v39 }
 0x10f   :  { %3197 = vmatprep.subr.bf16.mxu0 %v3259_v11 }
 0x111   :  { %3150 = vmatpush3.bf16.msra.mxu1 %v3149_v46 }
 0x112   :  { %3152 = vmatprep.subr.bf16.mxu1 %v3151_v47  ;;  %3199 = vmatpush1.bf16.msra.mxu0 %v3198_v48 }
 0x113   :  { %3200 = vmatprep.subr.bf16.mxu0 %v3259_v11 }
 0x115   :  { %3154 = vmatpush3.bf16.msra.mxu1 %v3153_v55  ;;  %v1963_v55 = vld [vmem:[%s5142_s3 + $0x30] sm:$0xff] }
 0x116   :  { %3156 = vmatprep.subr.bf16.mxu1 %v3155_v57  ;;  %3202 = vmatpush1.bf16.msra.mxu0 %v3201_v62  ;;  %v1964_v57 = vld [vmem:[%s5142_s3 + $0x38] sm:$0xff] }
 0x117   :  { %v2134_v1 = vpop.f32.mrb[2].mxu1  ;;  %3203 = vmatprep.subr.bf16.mxu0 %v3259_v11  ;;  %v3219_v61 = vpack.c.bf16 %v1964_v57, %v1963_v55 }
 0x118   :  { %v2135_v14 = vpop.f32.mrb[3].mxu1 }
 0x119   :  { %v2136_v16 = vadd.f32 %v2135_v14, %v2134_v1  ;;  %3158 = vmatpush3.bf16.msra.mxu1 %v3157_v3 }
 0x11a   :  { %3160 = vmatprep.subr.bf16.mxu1 %v3159_v4  ;;  %3205 = vmatpush1.bf16.msra.mxu0 %v3204_v10 }
 0x11b   :  { %v903_v22 = vadd.f32 %v2136_v16, %v833_v12  ;;  %3206 = vmatprep.subr.bf16.mxu0 %v3259_v11 }
 0x11c   :  { %v2239_v25 = vpop.f32.mrb[2].mxu0 }
 0x11d   :  { %3162 = vmatpush3.bf16.msra.mxu1 %v3161_v17  ;;  %v2240_v26 = vpop.f32.mrb[3].mxu0  ;;  %v973_v27 = vadd.f32 %v4944_v49, %v903_v22 }
 0x11e   :  { %3164 = vmatprep.subr.bf16.mxu1 %v3163_v18  ;;  %v2241_v24 = vadd.f32 %v2240_v26, %v2239_v25  ;;  %3208 = vmatpush1.bf16.msra.mxu0 %v3207_v28 }
 0x11f   :  { %3209 = vmatprep.subr.bf16.mxu0 %v3259_v11 }
 0x121   :  { %3166 = vmatpush3.bf16.msra.mxu1 %v3165_v43  ;;  %1951 = vmatmul.mubr.f32.vlgmr.msra.gmra.mrb[14].mxu0 %v4818_v6  ;;  %v1958_v6 = vld [vmem:[%s5142_s3 + $0x8] sm:$0xff] }
 0x122   :  { %v3210_v39 = vpack.c.bf16 %v1958_v6, %v1957_v38  ;;  %2652 = vmatprep.mubr.msk.f32.mxu0 %vm3260_vm1, %v3261_v0 }
 0x124   :  { %1881 = vmatmul.mubr.f32.vlgmr.msra.gmra.mrb[16].mxu1 %v4942_v5  ;;  %v1959_v5 = vld [vmem:[%s5142_s3 + $0x10] sm:$0xff]  ;;  %3211 = vmatpush3.bf16.msra.mxu0 %v3210_v39 }
 0x125   :  { %v3213_v47 = vpack.c.bf16 %v1960_v40, %v1959_v5  ;;  %3212 = vmatprep.subr.bf16.mxu0 %v3259_v11 }
 0x128   :  { %3214 = vmatpush3.bf16.msra.mxu0 %v3213_v47 }
 0x129   :  { %3215 = vmatprep.subr.bf16.mxu0 %v3259_v11 }
 0x12c   :  { %3217 = vmatpush3.bf16.msra.mxu0 %v3216_v52 }
 0x12d   :  { %3218 = vmatprep.subr.bf16.mxu0 %v3259_v11 }
 0x130   :  { %3220 = vmatpush3.bf16.msra.mxu0 %v3219_v61 }
 0x137   :  { %v2204_v29 = vpop.f32.mrb[4].mxu1 }
 0x138   :  { %v2205_v19 = vpop.f32.mrb[5].mxu1 }
 0x139   :  { %v2206_v30 = vadd.f32 %v2205_v19, %v2204_v29 }
 0x13b   :  { %v1043_v31 = vadd.f32 %v2206_v30, %v973_v27  ;;  %v2065_v30 = vld [vmem:[%s5143_s4] ss:$0 sm:$0xff] }
 0x13c   :  { %v2309_v32 = vpop.f32.mrb[4].mxu0 }
 0x13d   :  { %v2310_v58 = vpop.f32.mrb[5].mxu0  ;;  %v1113_v23 = vadd.f32 %v2241_v24, %v1043_v31 }
 0x13e   :  { %v2311_v33 = vadd.f32 %v2310_v58, %v2309_v32 }
 0x157   :  { %v2274_v53 = vpop.f32.mrb[6].mxu1 }
 0x158   :  { %v2275_v49 = vpop.f32.mrb[7].mxu1 }
 0x159   :  { %v2276_v35 = vadd.f32 %v2275_v49, %v2274_v53 }
 0x15b   :  { %v1183_v37 = vadd.f32 %v2276_v35, %v1113_v23 }
 0x15c   :  { %v2379_v34 = vpop.f32.mrb[6].mxu0 }
 0x15d   :  { %v2380_v42 = vpop.f32.mrb[7].mxu0  ;;  %v1253_v45 = vadd.f32 %v2311_v33, %v1183_v37 }
 0x15e   :  { %v2381_v46 = vadd.f32 %v2380_v42, %v2379_v34 }
 0x177   :  { %v2344_v50 = vpop.f32.mrb[8].mxu1 }
 0x178   :  { %v2345_v48 = vpop.f32.mrb[9].mxu1 }
 0x179   :  { %v2346_v54 = vadd.f32 %v2345_v48, %v2344_v50 }
 0x17b   :  { %v1323_v44 = vadd.f32 %v2346_v54, %v1253_v45 }
 0x17c   :  { %v2449_v60 = vpop.f32.mrb[8].mxu0 }
 0x17d   :  { %v2450_v56 = vpop.f32.mrb[9].mxu0  ;;  %v1393_v62 = vadd.f32 %v2381_v46, %v1323_v44 }
 0x17e   :  { %v2451_v63 = vadd.f32 %v2450_v56, %v2449_v60 }
 0x197   :  { %v2414_v15 = vpop.f32.mrb[10].mxu1 }
 0x198   :  { %v2415_v2 = vpop.f32.mrb[11].mxu1 }
 0x199   :  { %v2416_v11 = vadd.f32 %v2415_v2, %v2414_v15 }
 0x19b   :  { %v1463_v3 = vadd.f32 %v2416_v11, %v1393_v62 }
 0x19c   :  { %v2519_v4 = vpop.f32.mrb[10].mxu0 }
 0x19d   :  { %v2520_v7 = vpop.f32.mrb[11].mxu0  ;;  %v1533_v8 = vadd.f32 %v2451_v63, %v1463_v3 }
 0x19e   :  { %v2521_v9 = vadd.f32 %v2520_v7, %v2519_v4 }
 0x1b7   :  { %v2484_v10 = vpop.f32.mrb[12].mxu1 }
 0x1b8   :  { %v2485_v1 = vpop.f32.mrb[13].mxu1 }
 0x1b9   :  { %v2486_v36 = vadd.f32 %v2485_v1, %v2484_v10 }
 0x1bb   :  { %v1603_v13 = vadd.f32 %v2486_v36, %v1533_v8 }
 0x1bc   :  { %v2589_v59 = vpop.f32.mrb[12].mxu0 }
 0x1bd   :  { %v2590_v14 = vpop.f32.mrb[13].mxu0  ;;  %v1673_v12 = vadd.f32 %v2521_v9, %v1603_v13 }
 0x1be   :  { %v2591_v16 = vadd.f32 %v2590_v14, %v2589_v59 }
 0x1d7   :  { %v2554_v17 = vpop.f32.mrb[14].mxu1 }
 0x1d8   :  { %v2555_v18 = vpop.f32.mrb[15].mxu1 }
 0x1d9   :  { %v2556_v20 = vadd.f32 %v2555_v18, %v2554_v17 }
 0x1db   :  { %v1743_v21 = vadd.f32 %v2556_v20, %v1673_v12 }
 0x1dd   :  { %v1813_v28 = vadd.f32 %v2591_v16, %v1743_v21 }
 0x1f4   :  { %v1952_v22 = vpop.f32.mrb[14].mxu0 }
 0x1f5   :  { %v1954_v25 = vpop.f32.mrb[15].mxu0 }
 0x1f7   :  { %v2624_v43 = vpop.f32.mrb[16].mxu1 }
 0x1f8   :  { %v2625_v26 = vpop.f32.mrb[17].mxu1 }
 0x1f9   :  { %v2626_v27 = vadd.f32 %v2625_v26, %v2624_v43 }
 0x1fb   :  { %v1883_v24 = vadd.f32 %v2626_v27, %v1813_v28 }
 0x1fd   :  { %v1953_v29 = vadd.f32 %v1952_v22, %v1883_v24 }
 0x1ff   :  { %v1956_v19 = vmax.f32 %v1953_v29, 0.0 }
 0x201   :  { %2653 = vmatmul.mubr.msk.f32.vlgmr.msra.gmra.mrb[16].mxu0 %vm1972_vm2, %v1956_v19 }
 0x2d4   :  { %v2042_v31 = vpop.f32.mrb[16].mxu0 }
 0x2d5   :  { %v2043_v32 = vadd.f32 %v2065_v30, %v2042_v31  ;;  %v2654_v58 = vpop.f32.mrb[17].mxu0 }
 0x2d7   :  { %2047 = vst.msk [vmem:[#allocation2] sm:$0x3] %vm2046_vm3, %v2043_v32 }
 0x2d8   :  { %3245 = shalt.err (!%p3242_p4)
}
 0x2d9   :  { %s3246_s30 = scalar_lea.hbm %s5144_s5, 32 }
 0x2da   :  { %p3247_p5 = scmp.ne.s32.totalorder %s5144_s5, %s3246_s30  ;;  %p3250_p6 = scmp.lt.u32.totalorder %s3246_s30, %s5144_s5 }
 0x2dc   :  { %p3252_p7 = pnand %p3250_p6, %p3247_p5 }
 0x2de   :  { %3255 = shalt.err (!%p3252_p7)
}
 0x2df   :  { %2057 = dma.vmem_to_hbm [thread:$0]  %s2055_s2, 32, %s5144_s5, [#allocation3]  }
 0x2e0   :  { %3256 = dma.done.wait [#allocation3], 32  }
 0x2e1   :  { %3257 = vsyncadd [#allocation3], 4294967264 }
 0x2e2   :  { %2061 = vsyncpa [#allocation3], 1 }

// kernel: small_cnn_forward.2
= control target key start
LH: loop header
LB: loop body
LE: loop exit
PB: predicated region body
PF: predicated region fallthrough
CT: control target
= control target key end

     0   :  { %s17250_s21 = smov 0   ;;  %s22006_s0 = inlined_call_operand.vmem [shape: f32[2,4,576,27], index: 0, kind: input, shape index: {}]   ;;  %s22007_s1 = inlined_call_operand.vmem [shape: f32[576,1], index: 1, kind: input, shape index: {}]   ;;  %s22008_s2 = inlined_call_operand.vmem [shape: f32[27,16], index: 2, kind: input, shape index: {}]   ;;  %s22009_s3 = inlined_call_operand.vmem [shape: f32[1,16], index: 3, kind: input, shape index: {}]   ;;  %s22010_s4 = inlined_call_operand.vmem [shape: f32[9,16,32], index: 4, kind: input, shape index: {}]   ;;  %s22011_s5 = inlined_call_operand.vmem [shape: f32[1,32], index: 5, kind: input, shape index: {}]   ;;  %s22012_s6 = inlined_call_operand.vmem [shape: f32[2,135,32], index: 6, kind: output, shape index: {}]  }
   0x1 LB: > { %s11216_s22 = sadd.s32 4294967295, %s17208_s21   ;;  %p11220_p0 = scmp.ge.s32.totalorder %s17208_s21, 1  ;;  %s17208_s21 = sphi %s17250_s21, %s16_s21  }
   0x2   : > { %p212_p1 = scmp.lt.s32.totalorder %s17208_s21, 3 }
   0x4   : > { %p213_p2 = pnand %p11220_p0, %p212_p1 }
   0x6   : > { %216 = sbr.rel (%p213_p2) target bundleno = 1876 (0x754), region = 44 }
   0xd   : > { %v324_v0 = vld [vmem:[%s22008_s2] sm:$0xff]  ;;  %v325_v1 = vld [vmem:[%s22008_s2 + $0x8] sm:$0xff]  ;;  %v326_v2 = vld [vmem:[%s22008_s2 + $0x10] sm:$0xff]  ;;  %vm545_vm0 = vcmask 1042432   ;;  %p242_p3 = scmp.lt.s32.totalorder %s11216_s22, 1  ;;  %vm17210_vm1 = vmmov 1  }
   0xe   : > { %v15795_v3 = vpack.c.bf16 %v325_v1, %v324_v0  ;;  %v327_v4 = vld [vmem:[%s22008_s2 + $0x18] sm:$0x7]  ;;  %vm17270_vm2 = vmpackc.low %vm545_vm0, %vm17210_vm1  ;;  %vm328_vm3 = vcmask 220160   ;;  %v17211_v21 = vmov 0   ;;  %v3501_v54 = vld [vmem:[%s22007_s1 + $0x90] sm:$0xff]  ;;  %vm17213_vm4 = vmmov 0  }
   0xf   : > { %v15799_v5 = vpack.c.bf16 %v327_v4, %v326_v2  ;;  %s22538_s22 = smov (!%p242_p3, %s11216_s22), 1  ;;  %17046 = vset.pattern.permute.xlu0 %v17211_v21  ;;  %17047 = vset.pattern.permute.xlu1 %v17211_v21  ;;  %v3484_v57 = vld [vmem:[%s22007_s1 + $0x8] sm:$0xff]  ;;  %v3483_v60 = vld [vmem:[%s22007_s1] sm:$0xff]  ;;  %v3502_v61 = vld [vmem:[%s22007_s1 + $0x98] sm:$0xff]  ;;  %vm3987_vm5 = vcmask 130048   ;;  %vm11142_vm6 = vcmask 261120  }
  0x10   : > { %15796 = vmatprep.subr.bf16.mxu0 %v15795_v3  ;;  %15806 = vmatprep.subr.bf16.mxu1 %v15795_v3  ;;  %s17031_s7 = smul.u32 2304, %s22538_s22  ;;  %v3485_v2 = vld [vmem:[%s22007_s1 + $0x10] sm:$0xff]  ;;  %v3506_v21 = vld [vmem:[%s22007_s1 + $0xb8] sm:$0xff]  ;;  %vm11159_vm7 = vcmask 260096  }
  0x11   : > { %15798 = vmatpush3.bf16.msra.mxu0 %v15795_v3  ;;  %15808 = vmatpush3.bf16.msra.mxu1 %v15795_v3  ;;  %s17032_s27 = smul.u32 136, %s22538_s22 }
  0x12   : > { %15801 = vmatprep.subr.msk.bf16.mxu0 %vm17270_vm2, %v15799_v5  ;;  %15811 = vmatprep.subr.msk.bf16.mxu1 %vm17270_vm2, %v15799_v5  ;;  %s17284_s10 = scalar_lea.vmem %s22006_s0, %s17031_s7 }
  0x13   : > { %v252_v7 = vld [vmem:[%s17284_s10] sm:$0xff]  ;;  %v253_v9 = vld [vmem:[%s17284_s10 + $0x8] sm:$0xff]  ;;  %v254_v11 = vld [vmem:[%s17284_s10 + $0x10] sm:$0xff]  ;;  %3647 = vperm.xlu0 %17046, %v3501_v54   ;;  %3562 = vperm.xlu1 %17047, %v3484_v57   ;;  %s21883_s22 = scalar_lea.vmem %s22012_s6, %s17032_s27 }
  0x14   : > { %v11296_v8 = vld [vmem:[%s17284_s10 + $0x240] sm:$0xff]  ;;  %v11297_v10 = vld [vmem:[%s17284_s10 + $0x248] sm:$0xff]  ;;  %13359 = vmatprep.mubr.msk.f32.mxu0 %vm328_vm3, %v252_v7  ;;  %v11298_v12 = vld [vmem:[%s17284_s10 + $0x250] sm:$0xff] }
  0x15   : > { %15804 = vmatpush3.bf16.msk.msra.mxu0 %vm17270_vm2, %v15799_v5  ;;  %15814 = vmatpush3.bf16.msk.msra.mxu1 %vm17270_vm2, %v15799_v5  ;;  %v255_v13 = vld [vmem:[%s17284_s10 + $0x18] sm:$0xff]  ;;  %v256_v15 = vld [vmem:[%s17284_s10 + $0x20] sm:$0xff]  ;;  %v257_v17 = vld [vmem:[%s17284_s10 + $0x28] sm:$0xff] }
  0x16   : > { %13475 = vmatprep.mubr.msk.f32.mxu1 %vm328_vm3, %v11296_v8  ;;  %15816 = vmatprep.subr.bf16.mxu0 %v15795_v3  ;;  %v11299_v14 = vld [vmem:[%s17284_s10 + $0x258] sm:$0xff]  ;;  %v11300_v16 = vld [vmem:[%s17284_s10 + $0x260] sm:$0xff]  ;;  %v11301_v18 = vld [vmem:[%s17284_s10 + $0x268] sm:$0xff] }
  0x17   : > { %15826 = vmatprep.subr.bf16.mxu1 %v15795_v3  ;;  %v258_v19 = vld [vmem:[%s17284_s10 + $0x30] sm:$0xff]  ;;  %v259_v22 = vld [vmem:[%s17284_s10 + $0x38] sm:$0xff]  ;;  %v260_v24 = vld [vmem:[%s17284_s10 + $0x40] sm:$0xff]  ;;  %3557 = vperm.xlu0 %17046, %v3483_v60  }
  0x18   : > { %13360 = vmatmul.mubr.msk.f32.vlgmr.msra.gmra.mrb[0].mxu0 %vm328_vm3, %v253_v9  ;;  %13476 = vmatmul.mubr.msk.f32.vlgmr.msra.gmra.mrb[0].mxu1 %vm328_vm3, %v11297_v10  ;;  %v11302_v20 = vld [vmem:[%s17284_s10 + $0x270] sm:$0xff]  ;;  %v11303_v23 = vld [vmem:[%s17284_s10 + $0x278] sm:$0xff]  ;;  %v11304_v25 = vld [vmem:[%s17284_s10 + $0x280] sm:$0xff] }
  0x19   : > { %15818 = vmatpush3.bf16.msra.mxu0 %v15795_v3  ;;  %13362 = vmatprep.mubr.msk.f32.mxu0 %vm328_vm3, %v254_v11  ;;  %v261_v26 = vld [vmem:[%s17284_s10 + $0x48] sm:$0xff]  ;;  %v262_v28 = vld [vmem:[%s17284_s10 + $0x50] sm:$0xff]  ;;  %v263_v30 = vld [vmem:[%s17284_s10 + $0x58] sm:$0xff] }
  0x1a   : > { %13478 = vmatprep.mubr.msk.f32.mxu1 %vm328_vm3, %v11298_v12  ;;  %15828 = vmatpush3.bf16.msra.mxu1 %v15795_v3  ;;  %v11305_v27 = vld [vmem:[%s17284_s10 + $0x288] sm:$0xff]  ;;  %v11306_v29 = vld [vmem:[%s17284_s10 + $0x290] sm:$0xff]  ;;  %v11307_v31 = vld [vmem:[%s17284_s10 + $0x298] sm:$0xff] }
  0x1b   : > { %15821 = vmatprep.subr.msk.bf16.mxu0 %vm17270_vm2, %v15799_v5  ;;  %15831 = vmatprep.subr.msk.bf16.mxu1 %vm17270_vm2, %v15799_v5  ;;  %v264_v32 = vld [vmem:[%s17284_s10 + $0x60] sm:$0xff]  ;;  %v265_v34 = vld [vmem:[%s17284_s10 + $0x68] sm:$0xff]  ;;  %v266_v36 = vld [vmem:[%s17284_s10 + $0x70] sm:$0xff] }
  0x1c   : > { %13363 = vmatmul.mubr.msk.f32.gmra.mrb[2].mxu0 %vm328_vm3, %v255_v13  ;;  %13479 = vmatmul.mubr.msk.f32.gmra.mrb[2].mxu1 %vm328_vm3, %v11299_v14  ;;  %v11308_v33 = vld [vmem:[%s17284_s10 + $0x2a0] sm:$0xff]  ;;  %v11309_v35 = vld [vmem:[%s17284_s10 + $0x2a8] sm:$0xff]  ;;  %v11310_v37 = vld [vmem:[%s17284_s10 + $0x2b0] sm:$0xff] }
  0x1d   : > { %13365 = vmatprep.mubr.msk.f32.mxu0 %vm328_vm3, %v256_v15  ;;  %13481 = vmatprep.mubr.msk.f32.mxu1 %vm328_vm3, %v11300_v16  ;;  %v267_v38 = vld [vmem:[%s17284_s10 + $0x78] sm:$0xff]  ;;  %v268_v40 = vld [vmem:[%s17284_s10 + $0x80] sm:$0xff]  ;;  %v269_v42 = vld [vmem:[%s17284_s10 + $0x88] sm:$0xff] }
  0x1e   : > { %15824 = vmatpush3.bf16.msk.msra.mxu0 %vm17270_vm2, %v15799_v5  ;;  %15834 = vmatpush3.bf16.msk.msra.mxu1 %vm17270_vm2, %v15799_v5  ;;  %v11311_v39 = vld [vmem:[%s17284_s10 + $0x2b8] sm:$0xff]  ;;  %v11312_v41 = vld [vmem:[%s17284_s10 + $0x2c0] sm:$0xff]  ;;  %v11313_v43 = vld [vmem:[%s17284_s10 + $0x2c8] sm:$0xff] }
  0x1f   : > { %v270_v44 = vld [vmem:[%s17284_s10 + $0x90] sm:$0xff]  ;;  %v271_v46 = vld [vmem:[%s17284_s10 + $0x98] sm:$0xff]  ;;  %v272_v48 = vld [vmem:[%s17284_s10 + $0xa0] sm:$0xff]  ;;  %3652 = vperm.xlu1 %17047, %v3502_v61   ;;  %3567 = vperm.xlu0 %17046, %v3485_v2  }
  0x20   : > { %13366 = vmatmul.mubr.msk.f32.gmra.mrb[4].mxu0 %vm328_vm3, %v257_v17  ;;  %13482 = vmatmul.mubr.msk.f32.gmra.mrb[4].mxu1 %vm328_vm3, %v11301_v18  ;;  %v11314_v45 = vld [vmem:[%s17284_s10 + $0x2d0] sm:$0xff]  ;;  %v11315_v47 = vld [vmem:[%s17284_s10 + $0x2d8] sm:$0xff]  ;;  %v11316_v49 = vld [vmem:[%s17284_s10 + $0x2e0] sm:$0xff] }
  0x21   : > { %13368 = vmatprep.mubr.msk.f32.mxu0 %vm328_vm3, %v258_v19  ;;  %13484 = vmatprep.mubr.msk.f32.mxu1 %vm328_vm3, %v11302_v20  ;;  %v273_v50 = vld [vmem:[%s17284_s10 + $0xa8] sm:$0xff]  ;;  %v274_v52 = vld [vmem:[%s17284_s10 + $0xb0] sm:$0xff]  ;;  %v275_v55 = vld [vmem:[%s17284_s10 + $0xb8] sm:$0xff] }
  0x22   : > { %v11317_v51 = vld [vmem:[%s17284_s10 + $0x2e8] sm:$0xff]  ;;  %v11318_v53 = vld [vmem:[%s17284_s10 + $0x2f0] sm:$0xff]  ;;  %v11319_v56 = vld [vmem:[%s17284_s10 + $0x2f8] sm:$0xff] }
  0x23   : > { %v276_v58 = vld [vmem:[%s17284_s10 + $0xc0] sm:$0xff]  ;;  %v277_v62 = vld [vmem:[%s17284_s10 + $0xc8] sm:$0xff]  ;;  %v278_v0 = vld [vmem:[%s17284_s10 + $0xd0] sm:$0xff] }
  0x24   : > { %13369 = vmatmul.mubr.msk.f32.gmra.mrb[6].mxu0 %vm328_vm3, %v259_v22  ;;  %13485 = vmatmul.mubr.msk.f32.gmra.mrb[6].mxu1 %vm328_vm3, %v11303_v23  ;;  %v11320_v59 = vld [vmem:[%s17284_s10 + $0x300] sm:$0xff]  ;;  %v11321_v63 = vld [vmem:[%s17284_s10 + $0x308] sm:$0xff]  ;;  %v11322_v1 = vld [vmem:[%s17284_s10 + $0x310] sm:$0xff] }
  0x25   : > { %13371 = vmatprep.mubr.msk.f32.mxu0 %vm328_vm3, %v260_v24  ;;  %13487 = vmatprep.mubr.msk.f32.mxu1 %vm328_vm3, %v11304_v25  ;;  %v3503_v3 = vld [vmem:[%s22007_s1 + $0xa0] sm:$0xff]  ;;  %v279_v4 = vld [vmem:[%s17284_s10 + $0xd8] sm:$0xff]  ;;  %v3504_v9 = vld [vmem:[%s22007_s1 + $0xa8] sm:$0xff] }
  0x26   : > { %v11323_v5 = vld [vmem:[%s17284_s10 + $0x318] sm:$0xff]  ;;  %v280_v6 = vld [vmem:[%s17284_s10 + $0xe0] sm:$0xff]  ;;  %3657 = vperm.xlu1 %17047, %v3503_v3   ;;  %v281_v10 = vld [vmem:[%s17284_s10 + $0xe8] sm:$0xff] }
  0x27   : > { %v11324_v7 = vld [vmem:[%s17284_s10 + $0x320] sm:$0xff]  ;;  %v3486_v8 = vld [vmem:[%s22007_s1 + $0x18] sm:$0xff]  ;;  %v11325_v11 = vld [vmem:[%s17284_s10 + $0x328] sm:$0xff] }
  0x28   : > { %13372 = vmatmul.mubr.msk.f32.gmra.mrb[8].mxu0 %vm328_vm3, %v261_v26  ;;  %13488 = vmatmul.mubr.msk.f32.gmra.mrb[8].mxu1 %vm328_vm3, %v11305_v27  ;;  %v282_v12 = vld [vmem:[%s17284_s10 + $0xf0] sm:$0xff]  ;;  %v3487_v14 = vld [vmem:[%s22007_s1 + $0x20] sm:$0xff]  ;;  %v283_v16 = vld [vmem:[%s17284_s10 + $0xf8] sm:$0xff] }
  0x29   : > { %13374 = vmatprep.mubr.msk.f32.mxu0 %vm328_vm3, %v262_v28  ;;  %13490 = vmatprep.mubr.msk.f32.mxu1 %vm328_vm3, %v11306_v29  ;;  %v11326_v13 = vld [vmem:[%s17284_s10 + $0x330] sm:$0xff]  ;;  %v11327_v17 = vld [vmem:[%s17284_s10 + $0x338] sm:$0xff]  ;;  %v284_v18 = vld [vmem:[%s17284_s10 + $0x100] sm:$0xff] }
  0x2a   : > { %3572 = vperm.xlu0 %17046, %v3486_v8   ;;  %3662 = vperm.xlu1 %17047, %v3504_v9   ;;  %v3505_v15 = vld [vmem:[%s22007_s1 + $0xb0] sm:$0xff]  ;;  %v11328_v19 = vld [vmem:[%s17284_s10 + $0x340] sm:$0xff]  ;;  %v3488_v20 = vld [vmem:[%s22007_s1 + $0x28] sm:$0xff] }
  0x2b   : > { %v285_v22 = vld [vmem:[%s17284_s10 + $0x108] sm:$0xff]  ;;  %v286_v24 = vld [vmem:[%s17284_s10 + $0x110] sm:$0xff]  ;;  %v3507_v27 = vld [vmem:[%s22007_s1 + $0xc0] sm:$0xff] }
  0x2c   : > { %13375 = vmatmul.mubr.msk.f32.gmra.mrb[10].mxu0 %vm328_vm3, %v263_v30  ;;  %13491 = vmatmul.mubr.msk.f32.gmra.mrb[10].mxu1 %vm328_vm3, %v11307_v31  ;;  %v11329_v23 = vld [vmem:[%s17284_s10 + $0x348] sm:$0xff]  ;;  %v11330_v25 = vld [vmem:[%s17284_s10 + $0x350] sm:$0xff]  ;;  %v287_v28 = vld [vmem:[%s17284_s10 + $0x118] sm:$0xff] }
  0x2d   : > { %13377 = vmatprep.mubr.msk.f32.mxu0 %vm328_vm3, %v264_v32  ;;  %13493 = vmatprep.mubr.msk.f32.mxu1 %vm328_vm3, %v11308_v33  ;;  %v3489_v26 = vld [vmem:[%s22007_s1 + $0x30] sm:$0xff]  ;;  %v11331_v29 = vld [vmem:[%s17284_s10 + $0x358] sm:$0xff]  ;;  %v288_v30 = vld [vmem:[%s17284_s10 + $0x120] sm:$0xff] }
  0x2e   : > { %3577 = vperm.xlu0 %17046, %v3487_v14   ;;  %3667 = vperm.xlu1 %17047, %v3505_v15   ;;  %v11332_v31 = vld [vmem:[%s17284_s10 + $0x360] sm:$0xff]  ;;  %v3490_v32 = vld [vmem:[%s22007_s1 + $0x38] sm:$0xff]  ;;  %v3508_v33 = vld [vmem:[%s22007_s1 + $0xc8] sm:$0xff] }
  0x2f   : > { %v296_v54 = vld [vmem:[%s17284_s10 + $0x160] sm:$0xff]  ;;  %v3512_v57 = vld [vmem:[%s22007_s1 + $0xe8] sm:$0xff]  ;;  %v298_v60 = vld [vmem:[%s17284_s10 + $0x170] sm:$0xff] }
  0x30   : > { %13378 = vmatmul.mubr.msk.f32.gmra.mrb[12].mxu0 %vm328_vm3, %v265_v34  ;;  %13494 = vmatmul.mubr.msk.f32.gmra.mrb[12].mxu1 %vm328_vm3, %v11309_v35  ;;  %v289_v34 = vld [vmem:[%s17284_s10 + $0x128] sm:$0xff]  ;;  %v11342_v61 = vld [vmem:[%s17284_s10 + $0x3b0] sm:$0xff]  ;;  %v300_v2 = vld [vmem:[%s17284_s10 + $0x180] sm:$0xff] }
  0x31   : > { %13380 = vmatprep.mubr.msk.f32.mxu0 %vm328_vm3, %v266_v36  ;;  %13496 = vmatprep.mubr.msk.f32.mxu1 %vm328_vm3, %v11310_v37  ;;  %v11333_v35 = vld [vmem:[%s17284_s10 + $0x368] sm:$0xff]  ;;  %v290_v36 = vld [vmem:[%s17284_s10 + $0x130] sm:$0xff]  ;;  %v11344_v3 = vld [vmem:[%s17284_s10 + $0x3c0] sm:$0xff] }
  0x32   : > { %3582 = vperm.xlu0 %17046, %v3488_v20   ;;  %3672 = vperm.xlu1 %17047, %v3506_v21   ;;  %v11334_v37 = vld [vmem:[%s17284_s10 + $0x370] sm:$0xff]  ;;  %v304_v14 = vld [vmem:[%s17284_s10 + $0x1a0] sm:$0xff] }
  0x33   : > { %v302_v8 = vld [vmem:[%s17284_s10 + $0x190] sm:$0xff]  ;;  %v11348_v15 = vld [vmem:[%s17284_s10 + $0x3e0] sm:$0xff] }
  0x34   : > { %13381 = vmatmul.mubr.msk.f32.gmra.mrb[14].mxu0 %vm328_vm3, %v267_v38  ;;  %13497 = vmatmul.mubr.msk.f32.gmra.mrb[14].mxu1 %vm328_vm3, %v11311_v39  ;;  %v3491_v38 = vld [vmem:[%s22007_s1 + $0x40] sm:$0xff]  ;;  %v3509_v39 = vld [vmem:[%s22007_s1 + $0xd0] sm:$0xff] }
  0x35   : > { %13383 = vmatprep.mubr.msk.f32.mxu0 %vm328_vm3, %v268_v40  ;;  %13499 = vmatprep.mubr.msk.f32.mxu1 %vm328_vm3, %v11312_v41  ;;  %v291_v40 = vld [vmem:[%s17284_s10 + $0x138] sm:$0xff]  ;;  %v11346_v9 = vld [vmem:[%s17284_s10 + $0x3d0] sm:$0xff] }
  0x36   : > { %3587 = vperm.xlu0 %17046, %v3489_v26   ;;  %3677 = vperm.xlu1 %17047, %v3507_v27   ;;  %v11335_v41 = vld [vmem:[%s17284_s10 + $0x378] sm:$0xff]  ;;  %v306_v20 = vld [vmem:[%s17284_s10 + $0x1b0] sm:$0xff]  ;;  %v308_v26 = vld [vmem:[%s17284_s10 + $0x1c0] sm:$0xff] }
  0x37   : > { %v11350_v21 = vld [vmem:[%s17284_s10 + $0x3f0] sm:$0xff]  ;;  %v11352_v27 = vld [vmem:[%s17284_s10 + $0x400] sm:$0xff] }
  0x38   : > { %13384 = vmatmul.mubr.msk.f32.gmra.mrb[16].mxu0 %vm328_vm3, %v269_v42  ;;  %13500 = vmatmul.mubr.msk.f32.gmra.mrb[16].mxu1 %vm328_vm3, %v11313_v43  ;;  %v292_v42 = vld [vmem:[%s17284_s10 + $0x140] sm:$0xff] }
  0x39   : > { %13386 = vmatprep.mubr.msk.f32.mxu0 %vm328_vm3, %v270_v44  ;;  %13502 = vmatprep.mubr.msk.f32.mxu1 %vm328_vm3, %v11314_v45  ;;  %v11336_v43 = vld [vmem:[%s17284_s10 + $0x380] sm:$0xff]  ;;  %v3492_v44 = vld [vmem:[%s22007_s1 + $0x48] sm:$0xff]  ;;  %v3510_v45 = vld [vmem:[%s22007_s1 + $0xd8] sm:$0xff] }
  0x3a   : > { %3592 = vperm.xlu0 %17046, %v3490_v32   ;;  %3682 = vperm.xlu1 %17047, %v3508_v33   ;;  %v310_v32 = vld [vmem:[%s17284_s10 + $0x1d0] sm:$0xff] }
  0x3b   : > { %v11354_v33 = vld [vmem:[%s17284_s10 + $0x410] sm:$0xff] }
  0x3c   : > { %13387 = vmatmul.mubr.msk.f32.gmra.mrb[18].mxu0 %vm328_vm3, %v271_v46  ;;  %13503 = vmatmul.mubr.msk.f32.gmra.mrb[18].mxu1 %vm328_vm3, %v11315_v47  ;;  %v293_v46 = vld [vmem:[%s17284_s10 + $0x148] sm:$0xff] }
  0x3d   : > { %13389 = vmatprep.mubr.msk.f32.mxu0 %vm328_vm3, %v272_v48  ;;  %13505 = vmatprep.mubr.msk.f32.mxu1 %vm328_vm3, %v11316_v49  ;;  %v11337_v47 = vld [vmem:[%s17284_s10 + $0x388] sm:$0xff]  ;;  %v294_v48 = vld [vmem:[%s17284_s10 + $0x150] sm:$0xff] }
  0x3e   : > { %3597 = vperm.xlu0 %17046, %v3491_v38   ;;  %3687 = vperm.xlu1 %17047, %v3509_v39   ;;  %v11338_v49 = vld [vmem:[%s17284_s10 + $0x390] sm:$0xff]  ;;  %v312_v38 = vld [vmem:[%s17284_s10 + $0x1e0] sm:$0xff] }
  0x3f   : > { %v11356_v39 = vld [vmem:[%s17284_s10 + $0x420] sm:$0xff] }
  0x40   : > { %13390 = vmatmul.mubr.msk.f32.gmra.mrb[20].mxu0 %vm328_vm3, %v273_v50  ;;  %13506 = vmatmul.mubr.msk.f32.gmra.mrb[20].mxu1 %vm328_vm3, %v11317_v51  ;;  %v3493_v50 = vld [vmem:[%s22007_s1 + $0x50] sm:$0xff]  ;;  %v3511_v51 = vld [vmem:[%s22007_s1 + $0xe0] sm:$0xff] }
  0x41   : > { %13392 = vmatprep.mubr.msk.f32.mxu0 %vm328_vm3, %v274_v52  ;;  %13508 = vmatprep.mubr.msk.f32.mxu1 %vm328_vm3, %v11318_v53  ;;  %v295_v52 = vld [vmem:[%s17284_s10 + $0x158] sm:$0xff] }
  0x42   : > { %3602 = vperm.xlu0 %17046, %v3492_v44   ;;  %3692 = vperm.xlu1 %17047, %v3510_v45   ;;  %v11339_v53 = vld [vmem:[%s17284_s10 + $0x398] sm:$0xff]  ;;  %v314_v44 = vld [vmem:[%s17284_s10 + $0x1f0] sm:$0xff] }
  0x43   : > { %v11358_v45 = vld [vmem:[%s17284_s10 + $0x430] sm:$0xff] }
  0x44   : > { %13393 = vmatmul.mubr.msk.f32.gmra.mrb[22].mxu0 %vm328_vm3, %v275_v55  ;;  %13509 = vmatmul.mubr.msk.f32.gmra.mrb[22].mxu1 %vm328_vm3, %v11319_v56  ;;  %v11340_v55 = vld [vmem:[%s17284_s10 + $0x3a0] sm:$0xff]  ;;  %v3494_v56 = vld [vmem:[%s22007_s1 + $0x58] sm:$0xff] }
  0x45   : > { %13395 = vmatprep.mubr.msk.f32.mxu0 %vm328_vm3, %v276_v58  ;;  %13511 = vmatprep.mubr.msk.f32.mxu1 %vm328_vm3, %v11320_v59  ;;  %v297_v58 = vld [vmem:[%s17284_s10 + $0x168] sm:$0xff] }
  0x46   : > { %3607 = vperm.xlu0 %17046, %v3493_v50   ;;  %3697 = vperm.xlu1 %17047, %v3511_v51   ;;  %v11341_v59 = vld [vmem:[%s17284_s10 + $0x3a8] sm:$0xff]  ;;  %v316_v50 = vld [vmem:[%s17284_s10 + $0x200] sm:$0xff] }
  0x47   : > { %v11360_v51 = vld [vmem:[%s17284_s10 + $0x440] sm:$0xff] }
  0x48   : > { %13396 = vmatmul.mubr.msk.f32.gmra.mrb[24].mxu0 %vm328_vm3, %v277_v62  ;;  %13512 = vmatmul.mubr.msk.f32.gmra.mrb[24].mxu1 %vm328_vm3, %v11321_v63  ;;  %v3495_v62 = vld [vmem:[%s22007_s1 + $0x60] sm:$0xff]  ;;  %v3513_v63 = vld [vmem:[%s22007_s1 + $0xf0] sm:$0xff] }
  0x49   : > { %13398 = vmatprep.mubr.msk.f32.mxu0 %vm328_vm3, %v278_v0  ;;  %13514 = vmatprep.mubr.msk.f32.mxu1 %vm328_vm3, %v11322_v1  ;;  %v299_v0 = vld [vmem:[%s17284_s10 + $0x178] sm:$0xff] }
  0x4a   : > { %3612 = vperm.xlu0 %17046, %v3494_v56   ;;  %3702 = vperm.xlu1 %17047, %v3512_v57   ;;  %v11343_v1 = vld [vmem:[%s17284_s10 + $0x3b8] sm:$0xff]  ;;  %v318_v56 = vld [vmem:[%s17284_s10 + $0x210] sm:$0xff] }
  0x4b   : > { %v11362_v57 = vld [vmem:[%s17284_s10 + $0x450] sm:$0xff] }
  0x4c   : > { %13399 = vmatmul.mubr.msk.f32.gmra.mrb[26].mxu0 %vm328_vm3, %v279_v4  ;;  %13515 = vmatmul.mubr.msk.f32.gmra.mrb[26].mxu1 %vm328_vm3, %v11323_v5  ;;  %v3496_v4 = vld [vmem:[%s22007_s1 + $0x68] sm:$0xff]  ;;  %v3514_v5 = vld [vmem:[%s22007_s1 + $0xf8] sm:$0xff] }
  0x4d   : > { %13401 = vmatprep.mubr.msk.f32.mxu0 %vm328_vm3, %v280_v6  ;;  %13517 = vmatprep.mubr.msk.f32.mxu1 %vm328_vm3, %v11324_v7  ;;  %v301_v6 = vld [vmem:[%s17284_s10 + $0x188] sm:$0xff] }
  0x4e   : > { %3617 = vperm.xlu0 %17046, %v3495_v62   ;;  %3707 = vperm.xlu1 %17047, %v3513_v63   ;;  %v11345_v7 = vld [vmem:[%s17284_s10 + $0x3c8] sm:$0xff]  ;;  %v320_v62 = vld [vmem:[%s17284_s10 + $0x220] sm:$0xff] }
  0x4f   : > { %v11364_v63 = vld [vmem:[%s17284_s10 + $0x460] sm:$0xff] }
  0x50   : > { %13402 = vmatmul.mubr.msk.f32.gmra.mrb[28].mxu0 %vm328_vm3, %v281_v10  ;;  %13518 = vmatmul.mubr.msk.f32.gmra.mrb[28].mxu1 %vm328_vm3, %v11325_v11  ;;  %v3497_v10 = vld [vmem:[%s22007_s1 + $0x70] sm:$0xff]  ;;  %v3515_v11 = vld [vmem:[%s22007_s1 + $0x100] sm:$0xff] }
  0x51   : > { %13404 = vmatprep.mubr.msk.f32.mxu0 %vm328_vm3, %v282_v12  ;;  %13520 = vmatprep.mubr.msk.f32.mxu1 %vm328_vm3, %v11326_v13  ;;  %v303_v12 = vld [vmem:[%s17284_s10 + $0x198] sm:$0xff] }
  0x52   : > { %3622 = vperm.xlu0 %17046, %v3496_v4   ;;  %3712 = vperm.xlu1 %17047, %v3514_v5   ;;  %v11347_v13 = vld [vmem:[%s17284_s10 + $0x3d8] sm:$0xff]  ;;  %v322_v4 = vld [vmem:[%s17284_s10 + $0x230] sm:$0xff] }
  0x53   : > { %v11366_v5 = vld [vmem:[%s17284_s10 + $0x470] sm:$0xff] }
  0x54   : > { %13405 = vmatmul.mubr.msk.f32.gmra.mrb[30].mxu0 %vm328_vm3, %v283_v16  ;;  %13521 = vmatmul.mubr.msk.f32.gmra.mrb[30].mxu1 %vm328_vm3, %v11327_v17  ;;  %v3498_v16 = vld [vmem:[%s22007_s1 + $0x78] sm:$0xff]  ;;  %v3516_v17 = vld [vmem:[%s22007_s1 + $0x108] sm:$0xff] }
  0x55   : > { %13407 = vmatprep.mubr.msk.f32.mxu0 %vm328_vm3, %v284_v18  ;;  %13523 = vmatprep.mubr.msk.f32.mxu1 %vm328_vm3, %v11328_v19  ;;  %v305_v18 = vld [vmem:[%s17284_s10 + $0x1a8] sm:$0xff] }
  0x56   : > { %3627 = vperm.xlu0 %17046, %v3497_v10   ;;  %3717 = vperm.xlu1 %17047, %v3515_v11   ;;  %v11349_v19 = vld [vmem:[%s17284_s10 + $0x3e8] sm:$0xff]  ;;  %v11441_v10 = vld [vmem:[%s17284_s10 + $0x480] sm:$0xff] }
  0x57   : > { %v11586_v11 = vld [vmem:[%s17284_s10 + $0x6c0] sm:$0xff] }
  0x58   : > { %13408 = vmatmul.mubr.msk.f32.gmra.mrb[32].mxu0 %vm328_vm3, %v285_v22  ;;  %13524 = vmatmul.mubr.msk.f32.gmra.mrb[32].mxu1 %vm328_vm3, %v11329_v23  ;;  %v3499_v22 = vld [vmem:[%s22007_s1 + $0x80] sm:$0xff]  ;;  %v3517_v23 = vld [vmem:[%s22007_s1 + $0x110] sm:$0xff] }
  0x59   : > { %13410 = vmatprep.mubr.msk.f32.mxu0 %vm328_vm3, %v286_v24  ;;  %13526 = vmatprep.mubr.msk.f32.mxu1 %vm328_vm3, %v11330_v25  ;;  %v307_v24 = vld [vmem:[%s17284_s10 + $0x1b8] sm:$0xff] }
  0x5a   : > { %3632 = vperm.xlu0 %17046, %v3498_v16   ;;  %3722 = vperm.xlu1 %17047, %v3516_v17   ;;  %v11351_v25 = vld [vmem:[%s17284_s10 + $0x3f8] sm:$0xff]  ;;  %v11732_v16 = vld [vmem:[%s22010_s4 + $0x10] sm:$0xff] }
  0x5b   : > { %v11733_v17 = vld [vmem:[%s22010_s4 + $0x18] sm:$0xff] }
  0x5c   : > { %13411 = vmatmul.mubr.msk.f32.gmra.mrb[34].mxu0 %vm328_vm3, %v287_v28  ;;  %13527 = vmatmul.mubr.msk.f32.gmra.mrb[34].mxu1 %vm328_vm3, %v11331_v29  ;;  %v3519_v28 = vld [vmem:[%s22007_s1 + $0x120] sm:$0xff]  ;;  %v3537_v29 = vld [vmem:[%s22007_s1 + $0x1b0] sm:$0xff] }
  0x5d   : > { %13413 = vmatprep.mubr.msk.f32.mxu0 %vm328_vm3, %v288_v30  ;;  %13529 = vmatprep.mubr.msk.f32.mxu1 %vm328_vm3, %v11332_v31  ;;  %v309_v30 = vld [vmem:[%s17284_s10 + $0x1c8] sm:$0xff] }
  0x5e   : > { %3637 = vperm.xlu0 %17046, %v3499_v22   ;;  %3727 = vperm.xlu1 %17047, %v3517_v23   ;;  %v11353_v31 = vld [vmem:[%s17284_s10 + $0x408] sm:$0xff]  ;;  %v22013_v22 = vmov 0.0|0.0   ;;  %v17763_v23 = vpack.c.bf16 %v11733_v17, %v11732_v16 }
  0x5f   : > { %15835 = vmatprep.subr.bf16.mxu0 %v22013_v22  ;;  %15862 = vmatprep.subr.bf16.mxu1 %v22013_v22  ;;  %v3536_v17 = vld [vmem:[%s22007_s1 + $0x1a8] sm:$0xff] }
  0x60   : > { %13414 = vmatmul.mubr.msk.f32.gmra.mrb[36].mxu0 %vm328_vm3, %v289_v34  ;;  %13530 = vmatmul.mubr.msk.f32.gmra.mrb[36].mxu1 %vm328_vm3, %v11333_v35  ;;  %v3520_v34 = vld [vmem:[%s22007_s1 + $0x128] sm:$0xff]  ;;  %v3538_v35 = vld [vmem:[%s22007_s1 + $0x1b8] sm:$0xff]  ;;  %22134 = vst [vmem:[#allocation3_spill] sm:$0xff] %v17763_v23 }
  0x61   : > { %13416 = vmatprep.mubr.msk.f32.mxu0 %vm328_vm3, %v290_v36  ;;  %13532 = vmatprep.mubr.msk.f32.mxu1 %vm328_vm3, %v11334_v37  ;;  %v311_v36 = vld [vmem:[%s17284_s10 + $0x1d8] sm:$0xff] }
  0x62   : > { %3737 = vperm.xlu0 %17046, %v3519_v28   ;;  %3827 = vperm.xlu1 %17047, %v3537_v29   ;;  %v11355_v37 = vld [vmem:[%s17284_s10 + $0x418] sm:$0xff]  ;;  %v3529_v28 = vld [vmem:[%s22007_s1 + $0x170] sm:$0xff]  ;;  %v3547_v29 = vld [vmem:[%s22007_s1 + $0x200] sm:$0xff] }
  0x64   : > { %13417 = vmatmul.mubr.msk.f32.gmra.mrb[38].mxu0 %vm328_vm3, %v291_v40  ;;  %13533 = vmatmul.mubr.msk.f32.gmra.mrb[38].mxu1 %vm328_vm3, %v11335_v41  ;;  %v3521_v40 = vld [vmem:[%s22007_s1 + $0x130] sm:$0xff]  ;;  %v3539_v41 = vld [vmem:[%s22007_s1 + $0x1c0] sm:$0xff] }
  0x65   : > { %13419 = vmatprep.mubr.msk.f32.mxu0 %vm328_vm3, %v292_v42  ;;  %13535 = vmatprep.mubr.msk.f32.mxu1 %vm328_vm3, %v11336_v43  ;;  %v313_v42 = vld [vmem:[%s17284_s10 + $0x1e8] sm:$0xff] }
  0x66   : > { %3742 = vperm.xlu0 %17046, %v3520_v34   ;;  %3832 = vperm.xlu1 %17047, %v3538_v35   ;;  %v11357_v43 = vld [vmem:[%s17284_s10 + $0x428] sm:$0xff]  ;;  %v3530_v34 = vld [vmem:[%s22007_s1 + $0x178] sm:$0xff] }
  0x67   : > { %v3548_v35 = vld [vmem:[%s22007_s1 + $0x208] sm:$0xff] }
  0x68   : > { %13420 = vmatmul.mubr.msk.f32.gmra.mrb[40].mxu0 %vm328_vm3, %v293_v46  ;;  %13536 = vmatmul.mubr.msk.f32.gmra.mrb[40].mxu1 %vm328_vm3, %v11337_v47  ;;  %v3522_v46 = vld [vmem:[%s22007_s1 + $0x138] sm:$0xff]  ;;  %v3540_v47 = vld [vmem:[%s22007_s1 + $0x1c8] sm:$0xff] }
  0x69   : > { %13422 = vmatprep.mubr.msk.f32.mxu0 %vm328_vm3, %v294_v48  ;;  %13538 = vmatprep.mubr.msk.f32.mxu1 %vm328_vm3, %v11338_v49  ;;  %v315_v48 = vld [vmem:[%s17284_s10 + $0x1f8] sm:$0xff] }
  0x6a   : > { %3747 = vperm.xlu0 %17046, %v3521_v40   ;;  %3837 = vperm.xlu1 %17047, %v3539_v41   ;;  %v11359_v49 = vld [vmem:[%s17284_s10 + $0x438] sm:$0xff]  ;;  %v3531_v40 = vld [vmem:[%s22007_s1 + $0x180] sm:$0xff]  ;;  %v3549_v41 = vld [vmem:[%s22007_s1 + $0x210] sm:$0xff] }
  0x6c   : > { %13423 = vmatmul.mubr.msk.f32.gmra.mrb[42].mxu0 %vm328_vm3, %v295_v52  ;;  %13539 = vmatmul.mubr.msk.f32.gmra.mrb[42].mxu1 %vm328_vm3, %v11339_v53  ;;  %v3523_v52 = vld [vmem:[%s22007_s1 + $0x140] sm:$0xff]  ;;  %v3541_v53 = vld [vmem:[%s22007_s1 + $0x1d0] sm:$0xff] }
  0x6d   : > { %13425 = vmatprep.mubr.msk.f32.mxu0 %vm328_vm3, %v296_v54  ;;  %13541 = vmatprep.mubr.msk.f32.mxu1 %vm328_vm3, %v11340_v55  ;;  %v317_v54 = vld [vmem:[%s17284_s10 + $0x208] sm:$0xff] }
  0x6e   : > { %3752 = vperm.xlu0 %17046, %v3522_v46   ;;  %3842 = vperm.xlu1 %17047, %v3540_v47   ;;  %v11361_v55 = vld [vmem:[%s17284_s10 + $0x448] sm:$0xff]  ;;  %v3550_v47 = vld [vmem:[%s22007_s1 + $0x218] sm:$0xff] }
  0x6f   : > { %v3532_v46 = vld [vmem:[%s22007_s1 + $0x188] sm:$0xff] }
  0x70   : > { %13426 = vmatmul.mubr.msk.f32.gmra.mrb[44].mxu0 %vm328_vm3, %v297_v58  ;;  %13542 = vmatmul.mubr.msk.f32.gmra.mrb[44].mxu1 %vm328_vm3, %v11341_v59  ;;  %v3524_v58 = vld [vmem:[%s22007_s1 + $0x148] sm:$0xff]  ;;  %v3542_v59 = vld [vmem:[%s22007_s1 + $0x1d8] sm:$0xff] }
  0x71   : > { %13428 = vmatprep.mubr.msk.f32.mxu0 %vm328_vm3, %v298_v60  ;;  %13544 = vmatprep.mubr.msk.f32.mxu1 %vm328_vm3, %v11342_v61  ;;  %v319_v60 = vld [vmem:[%s17284_s10 + $0x218] sm:$0xff] }
  0x72   : > { %3757 = vperm.xlu0 %17046, %v3523_v52   ;;  %3847 = vperm.xlu1 %17047, %v3541_v53   ;;  %v11363_v61 = vld [vmem:[%s17284_s10 + $0x458] sm:$0xff]  ;;  %v3533_v52 = vld [vmem:[%s22007_s1 + $0x190] sm:$0xff]  ;;  %v3551_v53 = vld [vmem:[%s22007_s1 + $0x220] sm:$0xff] }
  0x74   : > { %13429 = vmatmul.mubr.msk.f32.gmra.mrb[46].mxu0 %vm328_vm3, %v299_v0  ;;  %13545 = vmatmul.mubr.msk.f32.gmra.mrb[46].mxu1 %vm328_vm3, %v11343_v1  ;;  %v3525_v0 = vld [vmem:[%s22007_s1 + $0x150] sm:$0xff]  ;;  %v3543_v1 = vld [vmem:[%s22007_s1 + $0x1e0] sm:$0xff] }
  0x75   : > { %13431 = vmatprep.mubr.msk.f32.mxu0 %vm328_vm3, %v300_v2  ;;  %13547 = vmatprep.mubr.msk.f32.mxu1 %vm328_vm3, %v11344_v3  ;;  %v321_v2 = vld [vmem:[%s17284_s10 + $0x228] sm:$0xff] }
  0x76   : > { %3762 = vperm.xlu0 %17046, %v3524_v58   ;;  %3852 = vperm.xlu1 %17047, %v3542_v59   ;;  %v11365_v3 = vld [vmem:[%s17284_s10 + $0x468] sm:$0xff]  ;;  %v3534_v58 = vld [vmem:[%s22007_s1 + $0x198] sm:$0xff] }
  0x77   : > { %v3552_v59 = vld [vmem:[%s22007_s1 + $0x228] sm:$0xff] }
  0x78   : > { %13432 = vmatmul.mubr.msk.f32.gmra.mrb[48].mxu0 %vm328_vm3, %v301_v6  ;;  %13548 = vmatmul.mubr.msk.f32.gmra.mrb[48].mxu1 %vm328_vm3, %v11345_v7  ;;  %v3526_v6 = vld [vmem:[%s22007_s1 + $0x158] sm:$0xff]  ;;  %v3544_v7 = vld [vmem:[%s22007_s1 + $0x1e8] sm:$0xff] }
  0x79   : > { %13434 = vmatprep.mubr.msk.f32.mxu0 %vm328_vm3, %v302_v8  ;;  %13550 = vmatprep.mubr.msk.f32.mxu1 %vm328_vm3, %v11346_v9  ;;  %v323_v8 = vld [vmem:[%s17284_s10 + $0x238] sm:$0xff] }
  0x7a   : > { %3767 = vperm.xlu0 %17046, %v3525_v0   ;;  %3857 = vperm.xlu1 %17047, %v3543_v1   ;;  %v11367_v9 = vld [vmem:[%s17284_s10 + $0x478] sm:$0xff]  ;;  %v11602_v0 = vld [vmem:[%s17284_s10 + $0x740] sm:$0xff] }
  0x7b   : > { %v3535_v1 = vld [vmem:[%s22007_s1 + $0x1a0] sm:$0xff] }
  0x7c   : > { %13435 = vmatmul.mubr.msk.f32.gmra.mrb[50].mxu0 %vm328_vm3, %v303_v12  ;;  %13551 = vmatmul.mubr.msk.f32.gmra.mrb[50].mxu1 %vm328_vm3, %v11347_v13  ;;  %v3527_v12 = vld [vmem:[%s22007_s1 + $0x160] sm:$0xff]  ;;  %v3545_v13 = vld [vmem:[%s22007_s1 + $0x1f0] sm:$0xff] }
  0x7d   : > { %13437 = vmatprep.mubr.msk.f32.mxu0 %vm328_vm3, %v304_v14  ;;  %13553 = vmatprep.mubr.msk.f32.mxu1 %vm328_vm3, %v11348_v15  ;;  %v11442_v14 = vld [vmem:[%s17284_s10 + $0x488] sm:$0xff] }
  0x7e   : > { %3772 = vperm.xlu0 %17046, %v3526_v6   ;;  %3862 = vperm.xlu1 %17047, %v3544_v7   ;;  %v11587_v15 = vld [vmem:[%s17284_s10 + $0x6c8] sm:$0xff]  ;;  %v11459_v7 = vld [vmem:[%s17284_s10 + $0x510] sm:$0xff] }
  0x80   : > { %13438 = vmatmul.mubr.msk.f32.gmra.mrb[52].mxu0 %vm328_vm3, %v305_v18  ;;  %13554 = vmatmul.mubr.msk.f32.gmra.mrb[52].mxu1 %vm328_vm3, %v11349_v19  ;;  %v11443_v18 = vld [vmem:[%s17284_s10 + $0x490] sm:$0xff] }
  0x81   : > { %13440 = vmatprep.mubr.msk.f32.mxu0 %vm328_vm3, %v306_v20  ;;  %13556 = vmatprep.mubr.msk.f32.mxu1 %vm328_vm3, %v11350_v21  ;;  %v11588_v19 = vld [vmem:[%s17284_s10 + $0x6d0] sm:$0xff]  ;;  %v3528_v20 = vld [vmem:[%s22007_s1 + $0x168] sm:$0xff]  ;;  %v3546_v21 = vld [vmem:[%s22007_s1 + $0x1f8] sm:$0xff] }
  0x82   : > { %3777 = vperm.xlu0 %17046, %v3527_v12   ;;  %3867 = vperm.xlu1 %17047, %v3545_v13   ;;  %v11605_v12 = vld [vmem:[%s17284_s10 + $0x758] sm:$0xff] }
  0x84   : > { %13441 = vmatmul.mubr.msk.f32.gmra.mrb[54].mxu0 %vm328_vm3, %v307_v24  ;;  %13557 = vmatmul.mubr.msk.f32.gmra.mrb[54].mxu1 %vm328_vm3, %v11351_v25  ;;  %v11444_v24 = vld [vmem:[%s17284_s10 + $0x498] sm:$0xff] }
  0x85   : > { %13443 = vmatprep.mubr.msk.f32.mxu0 %vm328_vm3, %v308_v26  ;;  %13559 = vmatprep.mubr.msk.f32.mxu1 %vm328_vm3, %v11352_v27  ;;  %v11589_v25 = vld [vmem:[%s17284_s10 + $0x6d8] sm:$0xff]  ;;  %v11445_v26 = vld [vmem:[%s17284_s10 + $0x4a0] sm:$0xff] }
  0x86   : > { %v11590_v27 = vld [vmem:[%s17284_s10 + $0x6e0] sm:$0xff]  ;;  %3782 = vperm.xlu0 %17046, %v3528_v20   ;;  %3872 = vperm.xlu1 %17047, %v3546_v21   ;;  %v11607_v20 = vld [vmem:[%s17284_s10 + $0x768] sm:$0xff] }
  0x88   : > { %13444 = vmatmul.mubr.msk.f32.gmra.mrb[56].mxu0 %vm328_vm3, %v309_v30  ;;  %13560 = vmatmul.mubr.msk.f32.gmra.mrb[56].mxu1 %vm328_vm3, %v11353_v31  ;;  %v11446_v30 = vld [vmem:[%s17284_s10 + $0x4a8] sm:$0xff] }
  0x89   : > { %13446 = vmatprep.mubr.msk.f32.mxu0 %vm328_vm3, %v310_v32  ;;  %13562 = vmatprep.mubr.msk.f32.mxu1 %vm328_vm3, %v11354_v33  ;;  %v11591_v31 = vld [vmem:[%s17284_s10 + $0x6e8] sm:$0xff]  ;;  %v11447_v32 = vld [vmem:[%s17284_s10 + $0x4b0] sm:$0xff] }
  0x8a   : > { %v11592_v33 = vld [vmem:[%s17284_s10 + $0x6f0] sm:$0xff]  ;;  %3787 = vperm.xlu0 %17046, %v3529_v28   ;;  %3877 = vperm.xlu1 %17047, %v3547_v29   ;;  %v11609_v28 = vld [vmem:[%s17284_s10 + $0x778] sm:$0xff] }
  0x8c   : > { %13447 = vmatmul.mubr.msk.f32.gmra.mrb[58].mxu0 %vm328_vm3, %v311_v36  ;;  %13563 = vmatmul.mubr.msk.f32.gmra.mrb[58].mxu1 %vm328_vm3, %v11355_v37  ;;  %v11448_v36 = vld [vmem:[%s17284_s10 + $0x4b8] sm:$0xff] }
  0x8d   : > { %13449 = vmatprep.mubr.msk.f32.mxu0 %vm328_vm3, %v312_v38  ;;  %13565 = vmatprep.mubr.msk.f32.mxu1 %vm328_vm3, %v11356_v39  ;;  %v11593_v37 = vld [vmem:[%s17284_s10 + $0x6f8] sm:$0xff]  ;;  %v11449_v38 = vld [vmem:[%s17284_s10 + $0x4c0] sm:$0xff] }
  0x8e   : > { %v11594_v39 = vld [vmem:[%s17284_s10 + $0x700] sm:$0xff]  ;;  %3792 = vperm.xlu0 %17046, %v3530_v34   ;;  %3882 = vperm.xlu1 %17047, %v3548_v35   ;;  %v11467_v35 = vld [vmem:[%s17284_s10 + $0x550] sm:$0xff] }
  0x90   : > { %13450 = vmatmul.mubr.msk.f32.gmra.mrb[60].mxu0 %vm328_vm3, %v313_v42  ;;  %13566 = vmatmul.mubr.msk.f32.gmra.mrb[60].mxu1 %vm328_vm3, %v11357_v43  ;;  %v11450_v42 = vld [vmem:[%s17284_s10 + $0x4c8] sm:$0xff] }
  0x91   : > { %13452 = vmatprep.mubr.msk.f32.mxu0 %vm328_vm3, %v314_v44  ;;  %13568 = vmatprep.mubr.msk.f32.mxu1 %vm328_vm3, %v11358_v45  ;;  %v11595_v43 = vld [vmem:[%s17284_s10 + $0x708] sm:$0xff]  ;;  %v11451_v44 = vld [vmem:[%s17284_s10 + $0x4d0] sm:$0xff] }
  0x92   : > { %v11596_v45 = vld [vmem:[%s17284_s10 + $0x710] sm:$0xff]  ;;  %3797 = vperm.xlu0 %17046, %v3531_v40   ;;  %3887 = vperm.xlu1 %17047, %v3549_v41   ;;  %v11469_v41 = vld [vmem:[%s17284_s10 + $0x560] sm:$0xff] }
  0x94   : > { %13453 = vmatmul.mubr.msk.f32.gmra.mrb[62].mxu0 %vm328_vm3, %v315_v48  ;;  %13569 = vmatmul.mubr.msk.f32.gmra.mrb[62].mxu1 %vm328_vm3, %v11359_v49  ;;  %v11452_v48 = vld [vmem:[%s17284_s10 + $0x4d8] sm:$0xff] }
  0x95   : > { %13455 = vmatprep.mubr.msk.f32.mxu0 %vm328_vm3, %v316_v50  ;;  %13571 = vmatprep.mubr.msk.f32.mxu1 %vm328_vm3, %v11360_v51  ;;  %v11597_v49 = vld [vmem:[%s17284_s10 + $0x718] sm:$0xff]  ;;  %v11453_v50 = vld [vmem:[%s17284_s10 + $0x4e0] sm:$0xff] }
  0x96   : > { %v11598_v51 = vld [vmem:[%s17284_s10 + $0x720] sm:$0xff]  ;;  %3802 = vperm.xlu0 %17046, %v3532_v46   ;;  %3892 = vperm.xlu1 %17047, %v3550_v47   ;;  %v11471_v47 = vld [vmem:[%s17284_s10 + $0x570] sm:$0xff] }
  0x98   : > { %13456 = vmatmul.mubr.msk.f32.gmra.mrb[64].mxu0 %vm328_vm3, %v317_v54  ;;  %13572 = vmatmul.mubr.msk.f32.gmra.mrb[64].mxu1 %vm328_vm3, %v11361_v55  ;;  %v11454_v54 = vld [vmem:[%s17284_s10 + $0x4e8] sm:$0xff] }
  0x99   : > { %13458 = vmatprep.mubr.msk.f32.mxu0 %vm328_vm3, %v318_v56  ;;  %13574 = vmatprep.mubr.msk.f32.mxu1 %vm328_vm3, %v11362_v57  ;;  %v11599_v55 = vld [vmem:[%s17284_s10 + $0x728] sm:$0xff]  ;;  %v11455_v56 = vld [vmem:[%s17284_s10 + $0x4f0] sm:$0xff] }
  0x9a   : > { %v11600_v57 = vld [vmem:[%s17284_s10 + $0x730] sm:$0xff]  ;;  %3807 = vperm.xlu0 %17046, %v3533_v52   ;;  %3897 = vperm.xlu1 %17047, %v3551_v53   ;;  %v11473_v52 = vld [vmem:[%s17284_s10 + $0x580] sm:$0xff] }
  0x9b   : > { %v11618_v53 = vld [vmem:[%s17284_s10 + $0x7c0] sm:$0xff] }
  0x9c   : > { %13459 = vmatmul.mubr.msk.f32.gmra.mrb[66].mxu0 %vm328_vm3, %v319_v60  ;;  %13575 = vmatmul.mubr.msk.f32.gmra.mrb[66].mxu1 %vm328_vm3, %v11363_v61  ;;  %v11456_v60 = vld [vmem:[%s17284_s10 + $0x4f8] sm:$0xff] }
  0x9d   : > { %13461 = vmatprep.mubr.msk.f32.mxu0 %vm328_vm3, %v320_v62  ;;  %13577 = vmatprep.mubr.msk.f32.mxu1 %vm328_vm3, %v11364_v63  ;;  %v11601_v61 = vld [vmem:[%s17284_s10 + $0x738] sm:$0xff]  ;;  %v17860_v62 = vpop.permute.xlu0 %3647  ;;  %v11457_v63 = vld [vmem:[%s17284_s10 + $0x500] sm:$0xff] }
  0x9e   : > { %22135 = vst [vmem:[#allocation4_spill] sm:$0xff] %v17860_v62  ;;  %3812 = vperm.xlu0 %17046, %v3534_v58   ;;  %3902 = vperm.xlu1 %17047, %v3552_v59   ;;  %v11475_v58 = vld [vmem:[%s17284_s10 + $0x590] sm:$0xff] }
  0x9f   : > { %v11620_v59 = vld [vmem:[%s17284_s10 + $0x7d0] sm:$0xff] }
  0xa0   : > { %13462 = vmatmul.mubr.msk.f32.gmra.mrb[68].mxu0 %vm328_vm3, %v321_v2  ;;  %13578 = vmatmul.mubr.msk.f32.gmra.mrb[68].mxu1 %vm328_vm3, %v11365_v3  ;;  %v3553_v2 = vld [vmem:[%s22007_s1 + $0x230] sm:$0xff]  ;;  %v17872_v3 = vpop.permute.xlu1 %3562 }
  0xa1   : > { %13464 = vmatprep.mubr.msk.f32.mxu0 %vm328_vm3, %v322_v4  ;;  %13580 = vmatprep.mubr.msk.f32.mxu1 %vm328_vm3, %v11366_v5  ;;  %v11458_v4 = vld [vmem:[%s17284_s10 + $0x508] sm:$0xff]  ;;  %v17878_v6 = vpop.permute.xlu0 %3557 }
  0xa2   : > { %v11603_v5 = vld [vmem:[%s17284_s10 + $0x748] sm:$0xff]  ;;  %3817 = vperm.xlu0 %17046, %v3535_v1   ;;  %3907 = vperm.xlu1 %17047, %v3553_v2   ;;  %v11477_v1 = vld [vmem:[%s17284_s10 + $0x5a0] sm:$0xff] }
  0xa3   : > { %v11622_v2 = vld [vmem:[%s17284_s10 + $0x7e0] sm:$0xff] }
  0xa4   : > { %13465 = vmatmul.mubr.msk.f32.gmra.mrb[70].mxu0 %vm328_vm3, %v323_v8  ;;  %13581 = vmatmul.mubr.msk.f32.gmra.mrb[70].mxu1 %vm328_vm3, %v11367_v9  ;;  %v11604_v8 = vld [vmem:[%s17284_s10 + $0x750] sm:$0xff]  ;;  %v3500_v9 = vld [vmem:[%s22007_s1 + $0x88] sm:$0xff]  ;;  %v17898_v16 = vpop.permute.xlu1 %3652 }
  0xa5   : > { %13591 = vmatprep.mubr.msk.f32.mxu0 %vm328_vm3, %v11441_v10  ;;  %13707 = vmatprep.mubr.msk.f32.mxu1 %vm328_vm3, %v11586_v11  ;;  %v3518_v10 = vld [vmem:[%s22007_s1 + $0x118] sm:$0xff]  ;;  %v17894_v13 = vpop.permute.xlu0 %3567  ;;  %22136 = vst [vmem:[#allocation5_spill] sm:$0xff] %v17898_v16 }
  0xa6   : > { %v11460_v11 = vld [vmem:[%s17284_s10 + $0x518] sm:$0xff]  ;;  %3642 = vperm.xlu0 %17046, %v3500_v9   ;;  %3732 = vperm.xlu1 %17047, %v3518_v10   ;;  %v11636_v10 = vld [vmem:[%s17284_s10 + $0x850] sm:$0xff] }
  0xa7   : > { %v11641_v16 = vld [vmem:[%s17284_s10 + $0x878] sm:$0xff] }
  0xa8   : > { %13592 = vmatmul.mubr.msk.f32.vlgmr.msra.gmra.mrb[72].mxu0 %vm328_vm3, %v11442_v14  ;;  %13708 = vmatmul.mubr.msk.f32.vlgmr.msra.gmra.mrb[72].mxu1 %vm328_vm3, %v11587_v15  ;;  %v11461_v14 = vld [vmem:[%s17284_s10 + $0x520] sm:$0xff] }
  0xa9   : > { %13594 = vmatprep.mubr.msk.f32.mxu0 %vm328_vm3, %v11443_v18  ;;  %13710 = vmatprep.mubr.msk.f32.mxu1 %vm328_vm3, %v11588_v19  ;;  %v11606_v15 = vld [vmem:[%s17284_s10 + $0x760] sm:$0xff]  ;;  %v3554_v18 = vld [vmem:[%s22007_s1 + $0x238] sm:$0xff]  ;;  %v11462_v19 = vld [vmem:[%s17284_s10 + $0x528] sm:$0xff]  ;;  %v17912_v21 = vpop.permute.xlu0 %3572 }
  0xaa   : > { %15837 = vmatpush3.bf16.msra.mxu0 %v17763_v23  ;;  %15864 = vmatpush3.bf16.msra.mxu1 %v17763_v23 }
  0xab   : > { %15838 = vmatprep.subr.bf16.mxu0 %v22013_v22  ;;  %15865 = vmatprep.subr.bf16.mxu1 %v22013_v22  ;;  %v11489_v22 = vld [vmem:[%s17284_s10 + $0x600] sm:$0xff] }
  0xac   : > { %13595 = vmatmul.mubr.msk.f32.gmra.mrb[74].mxu0 %vm328_vm3, %v11444_v24  ;;  %13711 = vmatmul.mubr.msk.f32.gmra.mrb[74].mxu1 %vm328_vm3, %v11589_v25  ;;  %v11463_v24 = vld [vmem:[%s17284_s10 + $0x530] sm:$0xff] }
  0xad   : > { %13597 = vmatprep.mubr.msk.f32.mxu0 %vm328_vm3, %v11445_v26  ;;  %13713 = vmatprep.mubr.msk.f32.mxu1 %vm328_vm3, %v11590_v27  ;;  %v11608_v25 = vld [vmem:[%s17284_s10 + $0x770] sm:$0xff]  ;;  %v17918_v26 = vpop.permute.xlu1 %3657  ;;  %v11464_v27 = vld [vmem:[%s17284_s10 + $0x538] sm:$0xff]  ;;  %v17924_v29 = vpop.permute.xlu0 %3577 }
  0xae   : > { %3822 = vperm.xlu0 %17046, %v3536_v17   ;;  %3912 = vperm.xlu1 %17047, %v3554_v18   ;;  %22137 = vst [vmem:[#allocation6_spill] sm:$0xff] %v17918_v26  ;;  %v11624_v17 = vld [vmem:[%s17284_s10 + $0x7f0] sm:$0xff] }
  0xaf   : > { %v11640_v26 = vld [vmem:[%s17284_s10 + $0x870] sm:$0xff] }
  0xb0   : > { %13598 = vmatmul.mubr.msk.f32.gmra.mrb[76].mxu0 %vm328_vm3, %v11446_v30  ;;  %13714 = vmatmul.mubr.msk.f32.gmra.mrb[76].mxu1 %vm328_vm3, %v11591_v31  ;;  %v11465_v30 = vld [vmem:[%s17284_s10 + $0x540] sm:$0xff] }
  0xb1   : > { %13600 = vmatprep.mubr.msk.f32.mxu0 %vm328_vm3, %v11447_v32  ;;  %13716 = vmatprep.mubr.msk.f32.mxu1 %vm328_vm3, %v11592_v33  ;;  %v11610_v31 = vld [vmem:[%s17284_s10 + $0x780] sm:$0xff]  ;;  %v11466_v32 = vld [vmem:[%s17284_s10 + $0x548] sm:$0xff]  ;;  %v17934_v34 = vpop.permute.xlu0 %3582 }
  0xb2   : > { %v11611_v33 = vld [vmem:[%s17284_s10 + $0x788] sm:$0xff] }
  0xb4   : > { %13601 = vmatmul.mubr.msk.f32.gmra.mrb[78].mxu0 %vm328_vm3, %v11448_v36  ;;  %13717 = vmatmul.mubr.msk.f32.gmra.mrb[78].mxu1 %vm328_vm3, %v11593_v37  ;;  %v11612_v36 = vld [vmem:[%s17284_s10 + $0x790] sm:$0xff]  ;;  %v17938_v37 = vpop.permute.xlu1 %3662 }
  0xb5   : > { %13603 = vmatprep.mubr.msk.f32.mxu0 %vm328_vm3, %v11449_v38  ;;  %13719 = vmatprep.mubr.msk.f32.mxu1 %vm328_vm3, %v11594_v39  ;;  %22138 = vst [vmem:[#allocation7_spill] sm:$0xff] %v17938_v37  ;;  %v11468_v38 = vld [vmem:[%s17284_s10 + $0x558] sm:$0xff]  ;;  %v17946_v40 = vpop.permute.xlu0 %3587 }
  0xb6   : > { %v11613_v39 = vld [vmem:[%s17284_s10 + $0x798] sm:$0xff] }
  0xb8   : > { %13604 = vmatmul.mubr.msk.f32.gmra.mrb[80].mxu0 %vm328_vm3, %v11450_v42  ;;  %13720 = vmatmul.mubr.msk.f32.gmra.mrb[80].mxu1 %vm328_vm3, %v11595_v43  ;;  %v11614_v42 = vld [vmem:[%s17284_s10 + $0x7a0] sm:$0xff]  ;;  %v17952_v43 = vpop.permute.xlu1 %3667 }
  0xb9   : > { %13606 = vmatprep.mubr.msk.f32.mxu0 %vm328_vm3, %v11451_v44  ;;  %13722 = vmatprep.mubr.msk.f32.mxu1 %vm328_vm3, %v11596_v45  ;;  %22139 = vst [vmem:[#allocation8_spill] sm:$0xff] %v17952_v43  ;;  %v11470_v44 = vld [vmem:[%s17284_s10 + $0x568] sm:$0xff]  ;;  %v17958_v46 = vpop.permute.xlu0 %3592 }
  0xba   : > { %v11615_v45 = vld [vmem:[%s17284_s10 + $0x7a8] sm:$0xff] }
  0xbb   : > { %v11494_v43 = vld [vmem:[%s17284_s10 + $0x628] sm:$0xff] }
  0xbc   : > { %13607 = vmatmul.mubr.msk.f32.gmra.mrb[82].mxu0 %vm328_vm3, %v11452_v48  ;;  %13723 = vmatmul.mubr.msk.f32.gmra.mrb[82].mxu1 %vm328_vm3, %v11597_v49  ;;  %v11616_v48 = vld [vmem:[%s17284_s10 + $0x7b0] sm:$0xff]  ;;  %v11472_v49 = vld [vmem:[%s17284_s10 + $0x578] sm:$0xff] }
  0xbd   : > { %13609 = vmatprep.mubr.msk.f32.mxu0 %vm328_vm3, %v11453_v50  ;;  %13725 = vmatprep.mubr.msk.f32.mxu1 %vm328_vm3, %v11598_v51  ;;  %v11617_v50 = vld [vmem:[%s17284_s10 + $0x7b8] sm:$0xff]  ;;  %v17968_v51 = vpop.permute.xlu0 %3597 }
  0xc0   : > { %13610 = vmatmul.mubr.msk.f32.gmra.mrb[84].mxu0 %vm328_vm3, %v11454_v54  ;;  %13726 = vmatmul.mubr.msk.f32.gmra.mrb[84].mxu1 %vm328_vm3, %v11599_v55  ;;  %v17972_v54 = vpop.permute.xlu1 %3672  ;;  %v11474_v55 = vld [vmem:[%s17284_s10 + $0x588] sm:$0xff] }
  0xc1   : > { %13612 = vmatprep.mubr.msk.f32.mxu0 %vm328_vm3, %v11455_v56  ;;  %13728 = vmatprep.mubr.msk.f32.mxu1 %vm328_vm3, %v11600_v57  ;;  %22140 = vst [vmem:[#allocation9_spill] sm:$0xff] %v17972_v54  ;;  %v11619_v56 = vld [vmem:[%s17284_s10 + $0x7c8] sm:$0xff]  ;;  %v17980_v57 = vpop.permute.xlu0 %3602 }
  0xc2   : > { %v11639_v54 = vld [vmem:[%s17284_s10 + $0x868] sm:$0xff] }
  0xc4   : > { %13613 = vmatmul.mubr.msk.f32.gmra.mrb[86].mxu0 %vm328_vm3, %v11456_v60  ;;  %13729 = vmatmul.mubr.msk.f32.gmra.mrb[86].mxu1 %vm328_vm3, %v11601_v61  ;;  %v17986_v60 = vpop.permute.xlu1 %3677  ;;  %v11476_v61 = vld [vmem:[%s17284_s10 + $0x598] sm:$0xff] }
  0xc5   : > { %13615 = vmatprep.mubr.msk.f32.mxu0 %vm328_vm3, %v11457_v63  ;;  %13731 = vmatprep.mubr.msk.f32.mxu1 %vm328_vm3, %v11602_v0  ;;  %22141 = vst [vmem:[#allocation10_spill] sm:$0xff] %v17986_v60  ;;  %v11621_v63 = vld [vmem:[%s17284_s10 + $0x7d8] sm:$0xff]  ;;  %v17992_v0 = vpop.permute.xlu0 %3607 }
  0xc8   : > { %13616 = vmatmul.mubr.msk.f32.gmra.mrb[88].mxu0 %vm328_vm3, %v11458_v4  ;;  %13732 = vmatmul.mubr.msk.f32.gmra.mrb[88].mxu1 %vm328_vm3, %v11603_v5  ;;  %v18018_v18 = vpop.permute.xlu1 %3682 }
  0xc9   : > { %13618 = vmatprep.mubr.msk.f32.mxu0 %vm328_vm3, %v11459_v7  ;;  %13734 = vmatprep.mubr.msk.f32.mxu1 %vm328_vm3, %v11604_v8  ;;  %22142 = vst [vmem:[#allocation11_spill] sm:$0xff] %v18018_v18 }
  0xcc   : > { %13619 = vmatmul.mubr.msk.f32.gmra.mrb[90].mxu0 %vm328_vm3, %v11460_v11  ;;  %13735 = vmatmul.mubr.msk.f32.gmra.mrb[90].mxu1 %vm328_vm3, %v11605_v12  ;;  %v11478_v11 = vld [vmem:[%s17284_s10 + $0x5a8] sm:$0xff] }
  0xcd   : > { %13621 = vmatprep.mubr.msk.f32.mxu0 %vm328_vm3, %v11461_v14  ;;  %13737 = vmatprep.mubr.msk.f32.mxu1 %vm328_vm3, %v11606_v15  ;;  %v11623_v12 = vld [vmem:[%s17284_s10 + $0x7e8] sm:$0xff]  ;;  %v18014_v14 = vpop.permute.xlu0 %3612  ;;  %v11479_v15 = vld [vmem:[%s17284_s10 + $0x5b0] sm:$0xff] }
  0xd0   : > { %13622 = vmatmul.mubr.msk.f32.gmra.mrb[92].mxu0 %vm328_vm3, %v11462_v19  ;;  %13738 = vmatmul.mubr.msk.f32.gmra.mrb[92].mxu1 %vm328_vm3, %v11607_v20 }
  0xd1   : > { %13624 = vmatprep.mubr.msk.f32.mxu0 %vm328_vm3, %v11463_v24  ;;  %13740 = vmatprep.mubr.msk.f32.mxu1 %vm328_vm3, %v11608_v25  ;;  %v11635_v24 = vld [vmem:[%s17284_s10 + $0x848] sm:$0xff] }
  0xd4   : > { %13625 = vmatmul.mubr.msk.f32.gmra.mrb[94].mxu0 %vm328_vm3, %v11464_v27  ;;  %13741 = vmatmul.mubr.msk.f32.gmra.mrb[94].mxu1 %vm328_vm3, %v11609_v28  ;;  %v11490_v28 = vld [vmem:[%s17284_s10 + $0x608] sm:$0xff] }
  0xd5   : > { %13627 = vmatprep.mubr.msk.f32.mxu0 %vm328_vm3, %v11465_v30  ;;  %13743 = vmatprep.mubr.msk.f32.mxu1 %vm328_vm3, %v11610_v31  ;;  %v11480_v30 = vld [vmem:[%s17284_s10 + $0x5b8] sm:$0xff] }
  0xd6   : > { %v11625_v31 = vld [vmem:[%s17284_s10 + $0x7f8] sm:$0xff] }
  0xd8   : > { %13628 = vmatmul.mubr.msk.f32.gmra.mrb[96].mxu0 %vm328_vm3, %v11466_v32  ;;  %13744 = vmatmul.mubr.msk.f32.gmra.mrb[96].mxu1 %vm328_vm3, %v11611_v33  ;;  %v11481_v32 = vld [vmem:[%s17284_s10 + $0x5c0] sm:$0xff] }
  0xd9   : > { %13630 = vmatprep.mubr.msk.f32.mxu0 %vm328_vm3, %v11467_v35  ;;  %13746 = vmatprep.mubr.msk.f32.mxu1 %vm328_vm3, %v11612_v36  ;;  %v11626_v33 = vld [vmem:[%s17284_s10 + $0x800] sm:$0xff]  ;;  %v18040_v35 = vpop.permute.xlu0 %3617 }
  0xdc   : > { %13631 = vmatmul.mubr.msk.f32.gmra.mrb[98].mxu0 %vm328_vm3, %v11468_v38  ;;  %13747 = vmatmul.mubr.msk.f32.gmra.mrb[98].mxu1 %vm328_vm3, %v11613_v39 }
  0xdd   : > { %13633 = vmatprep.mubr.msk.f32.mxu0 %vm328_vm3, %v11469_v41  ;;  %13749 = vmatprep.mubr.msk.f32.mxu1 %vm328_vm3, %v11614_v42 }
  0xe0   : > { %13634 = vmatmul.mubr.msk.f32.gmra.mrb[100].mxu0 %vm328_vm3, %v11470_v44  ;;  %13750 = vmatmul.mubr.msk.f32.gmra.mrb[100].mxu1 %vm328_vm3, %v11615_v45  ;;  %v11482_v45 = vld [vmem:[%s17284_s10 + $0x5c8] sm:$0xff] }
  0xe1   : > { %13636 = vmatprep.mubr.msk.f32.mxu0 %vm328_vm3, %v11471_v47  ;;  %13752 = vmatprep.mubr.msk.f32.mxu1 %vm328_vm3, %v11616_v48  ;;  %v11627_v47 = vld [vmem:[%s17284_s10 + $0x808] sm:$0xff]  ;;  %v11483_v48 = vld [vmem:[%s17284_s10 + $0x5d0] sm:$0xff] }
  0xe4   : > { %13637 = vmatmul.mubr.msk.f32.gmra.mrb[102].mxu0 %vm328_vm3, %v11472_v49  ;;  %13753 = vmatmul.mubr.msk.f32.gmra.mrb[102].mxu1 %vm328_vm3, %v11617_v50  ;;  %v11628_v49 = vld [vmem:[%s17284_s10 + $0x810] sm:$0xff]  ;;  %v18062_v50 = vpop.permute.xlu1 %3687 }
  0xe5   : > { %13639 = vmatprep.mubr.msk.f32.mxu0 %vm328_vm3, %v11473_v52  ;;  %13755 = vmatprep.mubr.msk.f32.mxu1 %vm328_vm3, %v11618_v53  ;;  %22143 = vst [vmem:[#allocation12_spill] sm:$0xff] %v18062_v50  ;;  %v11637_v50 = vld [vmem:[%s17284_s10 + $0x858] sm:$0xff] }
  0xe8   : > { %13640 = vmatmul.mubr.msk.f32.gmra.mrb[104].mxu0 %vm328_vm3, %v11474_v55  ;;  %13756 = vmatmul.mubr.msk.f32.gmra.mrb[104].mxu1 %vm328_vm3, %v11619_v56  ;;  %v11634_v55 = vld [vmem:[%s17284_s10 + $0x840] sm:$0xff] }
  0xe9   : > { %13642 = vmatprep.mubr.msk.f32.mxu0 %vm328_vm3, %v11475_v58  ;;  %13758 = vmatprep.mubr.msk.f32.mxu1 %vm328_vm3, %v11620_v59  ;;  %v11633_v59 = vld [vmem:[%s17284_s10 + $0x838] sm:$0xff] }
  0xeb   : > { %v17996_v4 = vpop.f32.mrb[0].mxu0  ;;  %v17998_v5 = vpop.f32.mrb[0].mxu1 }
  0xec   : > { %v18002_v8 = vpop.f32.mrb[1].mxu0  ;;  %v18004_v9 = vpop.f32.mrb[1].mxu1  ;;  %13643 = vmatmul.mubr.msk.f32.gmra.mrb[106].mxu0 %vm328_vm3, %v11476_v61  ;;  %13759 = vmatmul.mubr.msk.f32.gmra.mrb[106].mxu1 %vm328_vm3, %v11621_v63  ;;  %v11484_v61 = vld [vmem:[%s17284_s10 + $0x5d8] sm:$0xff] }
  0xed   : > { %13645 = vmatprep.mubr.msk.f32.mxu0 %vm328_vm3, %v11477_v1  ;;  %13761 = vmatprep.mubr.msk.f32.mxu1 %vm328_vm3, %v11622_v2  ;;  %v11629_v63 = vld [vmem:[%s17284_s10 + $0x818] sm:$0xff]  ;;  %v11485_v1 = vld [vmem:[%s17284_s10 + $0x5e0] sm:$0xff] }
  0xee   : > { %v11630_v2 = vld [vmem:[%s17284_s10 + $0x820] sm:$0xff] }
  0xef   : > { %v18020_v19 = vpop.f32.mrb[2].mxu0  ;;  %v18022_v20 = vpop.f32.mrb[2].mxu1 }
  0xf0   : > { %v18026_v25 = vpop.f32.mrb[3].mxu0  ;;  %v18028_v27 = vpop.f32.mrb[3].mxu1  ;;  %13646 = vmatmul.mubr.msk.f32.gmra.mrb[108].mxu0 %vm328_vm3, %v11478_v11  ;;  %13762 = vmatmul.mubr.msk.f32.gmra.mrb[108].mxu1 %vm328_vm3, %v11623_v12 }
  0xf1   : > { %13648 = vmatprep.mubr.msk.f32.mxu0 %vm328_vm3, %v11479_v15  ;;  %13764 = vmatprep.mubr.msk.f32.mxu1 %vm328_vm3, %v11624_v17  ;;  %v18084_v11 = vpop.permute.xlu0 %3622  ;;  %v11488_v17 = vld [vmem:[%s17284_s10 + $0x5f8] sm:$0xff] }
  0xf3   : > { %v18042_v36 = vpop.f32.mrb[4].mxu0  ;;  %v18044_v38 = vpop.f32.mrb[4].mxu1 }
  0xf4   : > { %v18048_v41 = vpop.f32.mrb[5].mxu0  ;;  %v18050_v42 = vpop.f32.mrb[5].mxu1  ;;  %13649 = vmatmul.mubr.msk.f32.gmra.mrb[110].mxu0 %vm328_vm3, %v11480_v30  ;;  %13765 = vmatmul.mubr.msk.f32.gmra.mrb[110].mxu1 %vm328_vm3, %v11625_v31 }
  0xf5   : > { %13651 = vmatprep.mubr.msk.f32.mxu0 %vm328_vm3, %v11481_v32  ;;  %13767 = vmatprep.mubr.msk.f32.mxu1 %vm328_vm3, %v11626_v33  ;;  %v11486_v33 = vld [vmem:[%s17284_s10 + $0x5e8] sm:$0xff]  ;;  %v18128_v44 = vpop.permute.xlu0 %3627 }
  0xf6   : > { %22145 = vst [vmem:[#allocation14_spill] sm:$0xff] %v18128_v44  ;;  %v11642_v44 = vld [vmem:[%s17284_s10 + $0x880] sm:$0xff] }
  0xf7   : > { %v18064_v52 = vpop.f32.mrb[6].mxu0  ;;  %v18066_v53 = vpop.f32.mrb[6].mxu1 }
  0xf8   : > { %v18070_v56 = vpop.f32.mrb[7].mxu0  ;;  %v18072_v58 = vpop.f32.mrb[7].mxu1  ;;  %13652 = vmatmul.mubr.msk.f32.gmra.mrb[112].mxu0 %vm328_vm3, %v11482_v45  ;;  %13768 = vmatmul.mubr.msk.f32.gmra.mrb[112].mxu1 %vm328_vm3, %v11627_v47  ;;  %v11631_v45 = vld [vmem:[%s17284_s10 + $0x828] sm:$0xff]  ;;  %v11487_v47 = vld [vmem:[%s17284_s10 + $0x5f0] sm:$0xff] }
  0xf9   : > { %13654 = vmatprep.mubr.msk.f32.mxu0 %vm328_vm3, %v11483_v48  ;;  %13770 = vmatprep.mubr.msk.f32.mxu1 %vm328_vm3, %v11628_v49  ;;  %v11632_v48 = vld [vmem:[%s17284_s10 + $0x830] sm:$0xff]  ;;  %v18106_v49 = vpop.permute.xlu1 %3692  ;;  %v18172_v60 = vpop.permute.xlu0 %3632 }
  0xfa   : > { %22144 = vst [vmem:[#allocation13_spill] sm:$0xff] %v18106_v49  ;;  %v11638_v49 = vld [vmem:[%s17284_s10 + $0x860] sm:$0xff]  ;;  %22147 = vst [vmem:[#allocation16_spill] sm:$0xff] %v18172_v60 }
  0xfb   : > { %v18086_v12 = vpop.f32.mrb[8].mxu0  ;;  %v18088_v15 = vpop.f32.mrb[8].mxu1 }
  0xfc   : > { %v18092_v30 = vpop.f32.mrb[9].mxu0  ;;  %v18094_v31 = vpop.f32.mrb[9].mxu1  ;;  %13655 = vmatmul.mubr.msk.f32.gmra.mrb[114].mxu0 %vm328_vm3, %v11484_v61  ;;  %13771 = vmatmul.mubr.msk.f32.gmra.mrb[114].mxu1 %vm328_vm3, %v11629_v63 }
  0xfd   : > { %13657 = vmatprep.mubr.msk.f32.mxu0 %vm328_vm3, %v11485_v1  ;;  %13773 = vmatprep.mubr.msk.f32.mxu1 %vm328_vm3, %v11630_v2  ;;  %v11491_v2 = vld [vmem:[%s17284_s10 + $0x610] sm:$0xff]  ;;  %v18150_v7 = vpop.permute.xlu1 %3697 }
  0xfe   : > { %22146 = vst [vmem:[#allocation15_spill] sm:$0xff] %v18150_v7  ;;  %v11492_v7 = vld [vmem:[%s17284_s10 + $0x618] sm:$0xff] }
  0xff   : > { %v18108_v61 = vpop.f32.mrb[10].mxu0  ;;  %v18110_v63 = vpop.f32.mrb[10].mxu1 }
 0x100   : > { %v18114_v1 = vpop.f32.mrb[11].mxu0  ;;  %v18116_v32 = vpop.f32.mrb[11].mxu1  ;;  %13658 = vmatmul.mubr.msk.f32.gmra.mrb[116].mxu0 %vm328_vm3, %v11486_v33  ;;  %13774 = vmatmul.mubr.msk.f32.gmra.mrb[116].mxu1 %vm328_vm3, %v11631_v45 }
 0x101   : > { %13660 = vmatprep.mubr.msk.f32.mxu0 %vm328_vm3, %v11487_v47  ;;  %13776 = vmatprep.mubr.msk.f32.mxu1 %vm328_vm3, %v11632_v48  ;;  %v11493_v48 = vld [vmem:[%s17284_s10 + $0x620] sm:$0xff]  ;;  %v18194_v37 = vpop.permute.xlu1 %3702 }
 0x102   : > { %22149 = vst [vmem:[#allocation18_spill] sm:$0xff] %v18194_v37  ;;  %v11496_v37 = vld [vmem:[%s17284_s10 + $0x638] sm:$0xff] }
 0x103   : > { %v18130_v33 = vpop.f32.mrb[12].mxu0  ;;  %v18132_v45 = vpop.f32.mrb[12].mxu1 }
 0x104   : > { %v18136_v47 = vpop.f32.mrb[13].mxu0  ;;  %v18138_v39 = vpop.f32.mrb[13].mxu1  ;;  %13661 = vmatmul.mubr.msk.f32.gmra.mrb[118].mxu0 %vm328_vm3, %v11488_v17  ;;  %13777 = vmatmul.mubr.msk.f32.gmra.mrb[118].mxu1 %vm328_vm3, %v11633_v59 }
 0x105   : > { %13663 = vmatprep.mubr.msk.f32.mxu0 %vm328_vm3, %v11489_v22  ;;  %13779 = vmatprep.mubr.msk.f32.mxu1 %vm328_vm3, %v11634_v55  ;;  %v11495_v55 = vld [vmem:[%s17284_s10 + $0x630] sm:$0xff] }
 0x107   : > { %v18152_v17 = vpop.f32.mrb[14].mxu0  ;;  %v18154_v59 = vpop.f32.mrb[14].mxu1 }
 0x108   : > { %v18158_v22 = vpop.f32.mrb[15].mxu0  ;;  %v18160_v23 = vpop.f32.mrb[15].mxu1  ;;  %13664 = vmatmul.mubr.msk.f32.gmra.mrb[120].mxu0 %vm328_vm3, %v11490_v28  ;;  %13780 = vmatmul.mubr.msk.f32.gmra.mrb[120].mxu1 %vm328_vm3, %v11635_v24 }
 0x109   : > { %13666 = vmatprep.mubr.msk.f32.mxu0 %vm328_vm3, %v11491_v2  ;;  %13782 = vmatprep.mubr.msk.f32.mxu1 %vm328_vm3, %v11636_v10  ;;  %v11497_v10 = vld [vmem:[%s17284_s10 + $0x640] sm:$0xff] }
 0x10b   : > { %v18174_v28 = vpop.f32.mrb[16].mxu0  ;;  %v18176_v24 = vpop.f32.mrb[16].mxu1 }
 0x10c   : > { %v18180_v2 = vpop.f32.mrb[17].mxu0  ;;  %v18182_v18 = vpop.f32.mrb[17].mxu1  ;;  %13667 = vmatmul.mubr.msk.f32.gmra.mrb[122].mxu0 %vm328_vm3, %v11492_v7  ;;  %13783 = vmatmul.mubr.msk.f32.gmra.mrb[122].mxu1 %vm328_vm3, %v11637_v50 }
 0x10d   : > { %22148 = vst [vmem:[#allocation17_spill] sm:$0xff] %v18182_v18  ;;  %13669 = vmatprep.mubr.msk.f32.mxu0 %vm328_vm3, %v11493_v48  ;;  %13785 = vmatprep.mubr.msk.f32.mxu1 %vm328_vm3, %v11638_v49  ;;  %v11499_v49 = vld [vmem:[%s17284_s10 + $0x650] sm:$0xff] }
 0x10f   : > { %v18196_v7 = vpop.f32.mrb[18].mxu0  ;;  %v18198_v50 = vpop.f32.mrb[18].mxu1 }
 0x110   : > { %22150 = vst [vmem:[#allocation19_spill] sm:$0xff] %v18196_v7  ;;  %22151 = vst [vmem:[#allocation20_spill] sm:$0xff] %v18198_v50  ;;  %v18202_v48 = vpop.f32.mrb[19].mxu0  ;;  %v18204_v62 = vpop.f32.mrb[19].mxu1  ;;  %13670 = vmatmul.mubr.msk.f32.gmra.mrb[124].mxu0 %vm328_vm3, %v11494_v43  ;;  %13786 = vmatmul.mubr.msk.f32.gmra.mrb[124].mxu1 %vm328_vm3, %v11639_v54 }
 0x111   : > { %22152 = vst [vmem:[#allocation21_spill] sm:$0xff] %v18202_v48  ;;  %22153 = vst [vmem:[#allocation22_spill] sm:$0xff] %v18204_v62  ;;  %13672 = vmatprep.mubr.msk.f32.mxu0 %vm328_vm3, %v11495_v55  ;;  %13788 = vmatprep.mubr.msk.f32.mxu1 %vm328_vm3, %v11640_v26  ;;  %v18216_v50 = vpop.permute.xlu0 %3637  ;;  %v11643_v48 = vld [vmem:[%s17284_s10 + $0x888] sm:$0xff]  ;;  %v11501_v26 = vld [vmem:[%s17284_s10 + $0x660] sm:$0xff] }
 0x112   : > { %22154 = vst [vmem:[#allocation23_spill] sm:$0xff] %v18216_v50  ;;  %v11498_v50 = vld [vmem:[%s17284_s10 + $0x648] sm:$0xff] }
 0x113   : > { %v18218_v43 = vpop.f32.mrb[20].mxu0  ;;  %v18220_v54 = vpop.f32.mrb[20].mxu1 }
 0x114   : > { %22155 = vst [vmem:[#allocation24_spill] sm:$0xff] %v18218_v43  ;;  %22156 = vst [vmem:[#allocation25_spill] sm:$0xff] %v18220_v54  ;;  %v18224_v55 = vpop.f32.mrb[21].mxu0  ;;  %v18226_v62 = vpop.f32.mrb[21].mxu1  ;;  %13673 = vmatmul.mubr.msk.f32.gmra.mrb[126].mxu0 %vm328_vm3, %v11496_v37  ;;  %13789 = vmatmul.mubr.msk.f32.gmra.mrb[126].mxu1 %vm328_vm3, %v11641_v16  ;;  %v11644_v54 = vld [vmem:[%s17284_s10 + $0x890] sm:$0xff] }
 0x115   : > { %22157 = vst [vmem:[#allocation26_spill] sm:$0xff] %v18224_v55  ;;  %22158 = vst [vmem:[#allocation27_spill] sm:$0xff] %v18226_v62  ;;  %13675 = vmatprep.mubr.msk.f32.mxu0 %vm328_vm3, %v11497_v10  ;;  %13791 = vmatprep.mubr.msk.f32.mxu1 %vm328_vm3, %v11642_v44  ;;  %v18238_v43 = vpop.permute.xlu1 %3707  ;;  %v11645_v55 = vld [vmem:[%s17284_s10 + $0x898] sm:$0xff]  ;;  %v11503_v44 = vld [vmem:[%s17284_s10 + $0x670] sm:$0xff] }
 0x116   : > { %22159 = vst [vmem:[#allocation28_spill] sm:$0xff] %v18238_v43  ;;  %v11500_v43 = vld [vmem:[%s17284_s10 + $0x658] sm:$0xff] }
 0x117   : > { %v18240_v37 = vpop.f32.mrb[22].mxu0  ;;  %v18242_v16 = vpop.f32.mrb[22].mxu1 }
 0x118   : > { %22160 = vst [vmem:[#allocation29_spill] sm:$0xff] %v18240_v37  ;;  %22161 = vst [vmem:[#allocation30_spill] sm:$0xff] %v18242_v16  ;;  %v18246_v10 = vpop.f32.mrb[23].mxu0  ;;  %v18248_v62 = vpop.f32.mrb[23].mxu1  ;;  %13676 = vmatmul.mubr.msk.f32.gmra.mrb[128].mxu0 %vm328_vm3, %v11498_v50  ;;  %13792 = vmatmul.mubr.msk.f32.gmra.mrb[128].mxu1 %vm328_vm3, %v11643_v48  ;;  %v11646_v16 = vld [vmem:[%s17284_s10 + $0x8a0] sm:$0xff] }
 0x119   : > { %22162 = vst [vmem:[#allocation31_spill] sm:$0xff] %v18246_v10  ;;  %22163 = vst [vmem:[#allocation32_spill] sm:$0xff] %v18248_v62  ;;  %13678 = vmatprep.mubr.msk.f32.mxu0 %vm328_vm3, %v11499_v49  ;;  %13794 = vmatprep.mubr.msk.f32.mxu1 %vm328_vm3, %v11644_v54  ;;  %v18260_v37 = vpop.permute.xlu0 %3737  ;;  %v11647_v10 = vld [vmem:[%s17284_s10 + $0x8a8] sm:$0xff]  ;;  %v11505_v54 = vld [vmem:[%s17284_s10 + $0x680] sm:$0xff] }
 0x11a   : > { %22164 = vst [vmem:[#allocation33_spill] sm:$0xff] %v18260_v37  ;;  %v11502_v37 = vld [vmem:[%s17284_s10 + $0x668] sm:$0xff] }
 0x11b   : > { %v18262_v50 = vpop.f32.mrb[24].mxu0  ;;  %v18264_v48 = vpop.f32.mrb[24].mxu1 }
 0x11c   : > { %22165 = vst [vmem:[#allocation34_spill] sm:$0xff] %v18262_v50  ;;  %22166 = vst [vmem:[#allocation35_spill] sm:$0xff] %v18264_v48  ;;  %v18268_v49 = vpop.f32.mrb[25].mxu0  ;;  %v18270_v62 = vpop.f32.mrb[25].mxu1  ;;  %13679 = vmatmul.mubr.msk.f32.gmra.mrb[130].mxu0 %vm328_vm3, %v11500_v43  ;;  %13795 = vmatmul.mubr.msk.f32.gmra.mrb[130].mxu1 %vm328_vm3, %v11645_v55  ;;  %v11648_v48 = vld [vmem:[%s17284_s10 + $0x8b0] sm:$0xff] }
 0x11d   : > { %22167 = vst [vmem:[#allocation36_spill] sm:$0xff] %v18268_v49  ;;  %22168 = vst [vmem:[#allocation37_spill] sm:$0xff] %v18270_v62  ;;  %13681 = vmatprep.mubr.msk.f32.mxu0 %vm328_vm3, %v11501_v26  ;;  %13797 = vmatprep.mubr.msk.f32.mxu1 %vm328_vm3, %v11646_v16  ;;  %v18282_v50 = vpop.permute.xlu1 %3712  ;;  %v11649_v49 = vld [vmem:[%s17284_s10 + $0x8b8] sm:$0xff]  ;;  %v11507_v16 = vld [vmem:[%s17284_s10 + $0x690] sm:$0xff] }
 0x11e   : > { %22169 = vst [vmem:[#allocation38_spill] sm:$0xff] %v18282_v50  ;;  %v11504_v50 = vld [vmem:[%s17284_s10 + $0x678] sm:$0xff] }
 0x11f   : > { %v18284_v43 = vpop.f32.mrb[26].mxu0  ;;  %v18286_v55 = vpop.f32.mrb[26].mxu1 }
 0x120   : > { %22170 = vst [vmem:[#allocation39_spill] sm:$0xff] %v18284_v43  ;;  %22171 = vst [vmem:[#allocation40_spill] sm:$0xff] %v18286_v55  ;;  %v18290_v26 = vpop.f32.mrb[27].mxu0  ;;  %v18292_v62 = vpop.f32.mrb[27].mxu1  ;;  %13682 = vmatmul.mubr.msk.f32.gmra.mrb[132].mxu0 %vm328_vm3, %v11502_v37  ;;  %13798 = vmatmul.mubr.msk.f32.gmra.mrb[132].mxu1 %vm328_vm3, %v11647_v10  ;;  %v11650_v55 = vld [vmem:[%s17284_s10 + $0x8c0] sm:$0xff] }
 0x121   : > { %22172 = vst [vmem:[#allocation41_spill] sm:$0xff] %v18290_v26  ;;  %22173 = vst [vmem:[#allocation42_spill] sm:$0xff] %v18292_v62  ;;  %13684 = vmatprep.mubr.msk.f32.mxu0 %vm328_vm3, %v11503_v44  ;;  %13800 = vmatprep.mubr.msk.f32.mxu1 %vm328_vm3, %v11648_v48  ;;  %v18304_v43 = vpop.permute.xlu0 %3742  ;;  %v11651_v26 = vld [vmem:[%s17284_s10 + $0x8c8] sm:$0xff]  ;;  %v11509_v48 = vld [vmem:[%s17284_s10 + $0x6a0] sm:$0xff] }
 0x122   : > { %22174 = vst [vmem:[#allocation43_spill] sm:$0xff] %v18304_v43  ;;  %v11506_v43 = vld [vmem:[%s17284_s10 + $0x688] sm:$0xff] }
 0x123   : > { %v18306_v37 = vpop.f32.mrb[28].mxu0  ;;  %v18308_v10 = vpop.f32.mrb[28].mxu1 }
 0x124   : > { %22175 = vst [vmem:[#allocation44_spill] sm:$0xff] %v18306_v37  ;;  %22176 = vst [vmem:[#allocation45_spill] sm:$0xff] %v18308_v10  ;;  %v18312_v44 = vpop.f32.mrb[29].mxu0  ;;  %v18314_v62 = vpop.f32.mrb[29].mxu1  ;;  %13685 = vmatmul.mubr.msk.f32.gmra.mrb[134].mxu0 %vm328_vm3, %v11504_v50  ;;  %13801 = vmatmul.mubr.msk.f32.gmra.mrb[134].mxu1 %vm328_vm3, %v11649_v49  ;;  %v11652_v10 = vld [vmem:[%s17284_s10 + $0x8d0] sm:$0xff] }
 0x125   : > { %22177 = vst [vmem:[#allocation46_spill] sm:$0xff] %v18312_v44  ;;  %22178 = vst [vmem:[#allocation47_spill] sm:$0xff] %v18314_v62  ;;  %13687 = vmatprep.mubr.msk.f32.mxu0 %vm328_vm3, %v11505_v54  ;;  %13803 = vmatprep.mubr.msk.f32.mxu1 %vm328_vm3, %v11650_v55  ;;  %v18326_v37 = vpop.permute.xlu1 %3717  ;;  %v11653_v44 = vld [vmem:[%s17284_s10 + $0x8d8] sm:$0xff]  ;;  %v11511_v55 = vld [vmem:[%s17284_s10 + $0x6b0] sm:$0xff] }
 0x126   : > { %22179 = vst [vmem:[#allocation48_spill] sm:$0xff] %v18326_v37  ;;  %v11508_v37 = vld [vmem:[%s17284_s10 + $0x698] sm:$0xff] }
 0x127   : > { %v18328_v50 = vpop.f32.mrb[30].mxu0  ;;  %v18330_v49 = vpop.f32.mrb[30].mxu1 }
 0x128   : > { %22180 = vst [vmem:[#allocation49_spill] sm:$0xff] %v18328_v50  ;;  %22181 = vst [vmem:[#allocation50_spill] sm:$0xff] %v18330_v49  ;;  %v18334_v54 = vpop.f32.mrb[31].mxu0  ;;  %v18336_v62 = vpop.f32.mrb[31].mxu1  ;;  %13688 = vmatmul.mubr.msk.f32.gmra.mrb[136].mxu0 %vm328_vm3, %v11506_v43  ;;  %13804 = vmatmul.mubr.msk.f32.gmra.mrb[136].mxu1 %vm328_vm3, %v11651_v26  ;;  %v11654_v49 = vld [vmem:[%s17284_s10 + $0x8e0] sm:$0xff] }
 0x129   : > { %22182 = vst [vmem:[#allocation51_spill] sm:$0xff] %v18334_v54  ;;  %22183 = vst [vmem:[#allocation52_spill] sm:$0xff] %v18336_v62  ;;  %13690 = vmatprep.mubr.msk.f32.mxu0 %vm328_vm3, %v11507_v16  ;;  %13806 = vmatprep.mubr.msk.f32.mxu1 %vm328_vm3, %v11652_v10  ;;  %v18348_v50 = vpop.permute.xlu0 %3747  ;;  %v11655_v54 = vld [vmem:[%s17284_s10 + $0x8e8] sm:$0xff] }
 0x12a   : > { %22184 = vst [vmem:[#allocation53_spill] sm:$0xff] %v18348_v50  ;;  %v11510_v50 = vld [vmem:[%s17284_s10 + $0x6a8] sm:$0xff] }
 0x12b   : > { %v18350_v43 = vpop.f32.mrb[32].mxu0  ;;  %v18352_v26 = vpop.f32.mrb[32].mxu1 }
 0x12c   : > { %22185 = vst [vmem:[#allocation54_spill] sm:$0xff] %v18350_v43  ;;  %22186 = vst [vmem:[#allocation55_spill] sm:$0xff] %v18352_v26  ;;  %v18356_v16 = vpop.f32.mrb[33].mxu0  ;;  %v18358_v62 = vpop.f32.mrb[33].mxu1  ;;  %13691 = vmatmul.mubr.msk.f32.gmra.mrb[138].mxu0 %vm328_vm3, %v11508_v37  ;;  %13807 = vmatmul.mubr.msk.f32.gmra.mrb[138].mxu1 %vm328_vm3, %v11653_v44  ;;  %v11656_v26 = vld [vmem:[%s17284_s10 + $0x8f0] sm:$0xff] }
 0x12d   : > { %22187 = vst [vmem:[#allocation56_spill] sm:$0xff] %v18356_v16  ;;  %22188 = vst [vmem:[#allocation57_spill] sm:$0xff] %v18358_v62  ;;  %13693 = vmatprep.mubr.msk.f32.mxu0 %vm328_vm3, %v11509_v48  ;;  %13809 = vmatprep.mubr.msk.f32.mxu1 %vm328_vm3, %v11654_v49  ;;  %v18370_v43 = vpop.permute.xlu1 %3722  ;;  %v11657_v62 = vld [vmem:[%s17284_s10 + $0x8f8] sm:$0xff]  ;;  %v18390_v16 = vpop.permute.xlu0 %3752 }
 0x12e   : > { %22189 = vst [vmem:[#allocation58_spill] sm:$0xff] %v18370_v43  ;;  %v11512_v43 = vld [vmem:[%s17284_s10 + $0x6b8] sm:$0xff]  ;;  %22194 = vst [vmem:[#allocation63_spill] sm:$0xff] %v18390_v16 }
 0x12f   : > { %v18372_v7 = vpop.f32.mrb[34].mxu0  ;;  %v18374_v37 = vpop.f32.mrb[34].mxu1 }
 0x130   : > { %22190 = vst [vmem:[#allocation59_spill] sm:$0xff] %v18372_v7  ;;  %22191 = vst [vmem:[#allocation60_spill] sm:$0xff] %v18374_v37  ;;  %v18378_v10 = vpop.f32.mrb[35].mxu0  ;;  %v18380_v48 = vpop.f32.mrb[35].mxu1  ;;  %13694 = vmatmul.mubr.msk.f32.gmra.mrb[140].mxu0 %vm328_vm3, %v11510_v50  ;;  %13810 = vmatmul.mubr.msk.f32.gmra.mrb[140].mxu1 %vm328_vm3, %v11655_v54 }
 0x131   : > { %22192 = vst [vmem:[#allocation61_spill] sm:$0xff] %v18378_v10  ;;  %22193 = vst [vmem:[#allocation62_spill] sm:$0xff] %v18380_v48  ;;  %13696 = vmatprep.mubr.msk.f32.mxu0 %vm328_vm3, %v11511_v55  ;;  %13812 = vmatprep.mubr.msk.f32.mxu1 %vm328_vm3, %v11656_v26  ;;  %v22054_v26 = vmov 0.0   ;;  %v18410_v50 = vpop.permute.xlu1 %3727 }
 0x132   : > { %22199 = vst [vmem:[#allocation68_spill] sm:$0xff] %v18410_v50 }
 0x133   : > { %v18392_v44 = vpop.f32.mrb[36].mxu0  ;;  %v18394_v37 = vpop.f32.mrb[36].mxu1 }
 0x134   : > { %22195 = vst [vmem:[#allocation64_spill] sm:$0xff] %v18392_v44  ;;  %22196 = vst [vmem:[#allocation65_spill] sm:$0xff] %v18394_v37  ;;  %v18398_v7 = vpop.f32.mrb[37].mxu0  ;;  %v18400_v54 = vpop.f32.mrb[37].mxu1  ;;  %13697 = vmatmul.mubr.msk.f32.gmra.mrb[142].mxu0 %vm328_vm3, %v11512_v43  ;;  %13813 = vmatmul.mubr.msk.f32.gmra.mrb[142].mxu1 %vm328_vm3, %v11657_v62 }
 0x135   : > { %22197 = vst [vmem:[#allocation66_spill] sm:$0xff] %v18398_v7  ;;  %22198 = vst [vmem:[#allocation67_spill] sm:$0xff] %v18400_v54  ;;  %14314 = vmatprep.mubr.msk.f32.mxu1 %vm17213_vm4, %v22054_v26  ;;  %13819 = vmatprep.mubr.msk.f32.mxu0 %vm17213_vm4, %v22054_v26  ;;  %v18424_v7 = vpop.permute.xlu0 %3757 }
 0x136   : > { %22204 = vst [vmem:[#allocation73_spill] sm:$0xff] %v18424_v7 }
 0x137   : > { %v18412_v49 = vpop.f32.mrb[38].mxu0  ;;  %v18414_v16 = vpop.f32.mrb[38].mxu1 }
 0x138   : > { %22200 = vst [vmem:[#allocation69_spill] sm:$0xff] %v18412_v49  ;;  %22201 = vst [vmem:[#allocation70_spill] sm:$0xff] %v18414_v16  ;;  %v18418_v43 = vpop.f32.mrb[39].mxu0  ;;  %v18420_v55 = vpop.f32.mrb[39].mxu1 }
 0x139   : > { %22202 = vst [vmem:[#allocation71_spill] sm:$0xff] %v18418_v43  ;;  %22203 = vst [vmem:[#allocation72_spill] sm:$0xff] %v18420_v55  ;;  %v18438_v16 = vpop.permute.xlu1 %3827 }
 0x13a   : > { %22209 = vst [vmem:[#allocation78_spill] sm:$0xff] %v18438_v16 }
 0x13b   : > { %v18426_v37 = vpop.f32.mrb[40].mxu0  ;;  %v18428_v26 = vpop.f32.mrb[40].mxu1 }
 0x13c   : > { %22205 = vst [vmem:[#allocation74_spill] sm:$0xff] %v18426_v37  ;;  %22206 = vst [vmem:[#allocation75_spill] sm:$0xff] %v18428_v26  ;;  %v18432_v44 = vpop.f32.mrb[41].mxu0  ;;  %v18434_v48 = vpop.f32.mrb[41].mxu1 }
 0x13d   : > { %22207 = vst [vmem:[#allocation76_spill] sm:$0xff] %v18432_v44  ;;  %22208 = vst [vmem:[#allocation77_spill] sm:$0xff] %v18434_v48  ;;  %v18452_v26 = vpop.permute.xlu0 %3762 }
 0x13e   : > { %22214 = vst [vmem:[#allocation83_spill] sm:$0xff] %v18452_v26 }
 0x13f   : > { %v18440_v49 = vpop.f32.mrb[42].mxu0  ;;  %v18442_v54 = vpop.f32.mrb[42].mxu1 }
 0x140   : > { %22210 = vst [vmem:[#allocation79_spill] sm:$0xff] %v18440_v49  ;;  %22211 = vst [vmem:[#allocation80_spill] sm:$0xff] %v18442_v54  ;;  %v18446_v55 = vpop.f32.mrb[43].mxu0  ;;  %v18448_v43 = vpop.f32.mrb[43].mxu1 }
 0x141   : > { %22212 = vst [vmem:[#allocation81_spill] sm:$0xff] %v18446_v55  ;;  %22213 = vst [vmem:[#allocation82_spill] sm:$0xff] %v18448_v43  ;;  %v18466_v54 = vpop.permute.xlu1 %3832 }
 0x142   : > { %22219 = vst [vmem:[#allocation88_spill] sm:$0xff] %v18466_v54 }
 0x143   : > { %v18454_v37 = vpop.f32.mrb[44].mxu0  ;;  %v18456_v62 = vpop.f32.mrb[44].mxu1 }
 0x144   : > { %22215 = vst [vmem:[#allocation84_spill] sm:$0xff] %v18454_v37  ;;  %22216 = vst [vmem:[#allocation85_spill] sm:$0xff] %v18456_v62  ;;  %v18460_v48 = vpop.f32.mrb[45].mxu0  ;;  %v18462_v44 = vpop.f32.mrb[45].mxu1 }
 0x145   : > { %22217 = vst [vmem:[#allocation86_spill] sm:$0xff] %v18460_v48  ;;  %22218 = vst [vmem:[#allocation87_spill] sm:$0xff] %v18462_v44  ;;  %v18480_v62 = vpop.permute.xlu0 %3767 }
 0x146   : > { %22224 = vst [vmem:[#allocation93_spill] sm:$0xff] %v18480_v62 }
 0x147   : > { %v18468_v49 = vpop.f32.mrb[46].mxu0  ;;  %v18470_v50 = vpop.f32.mrb[46].mxu1 }
 0x148   : > { %22220 = vst [vmem:[#allocation89_spill] sm:$0xff] %v18468_v49  ;;  %22221 = vst [vmem:[#allocation90_spill] sm:$0xff] %v18470_v50  ;;  %v18474_v43 = vpop.f32.mrb[47].mxu0  ;;  %v18476_v55 = vpop.f32.mrb[47].mxu1 }
 0x149   : > { %22222 = vst [vmem:[#allocation91_spill] sm:$0xff] %v18474_v43  ;;  %22223 = vst [vmem:[#allocation92_spill] sm:$0xff] %v18476_v55  ;;  %v18494_v50 = vpop.permute.xlu1 %3837 }
 0x14a   : > { %22229 = vst [vmem:[#allocation98_spill] sm:$0xff] %v18494_v50 }
 0x14b   : > { %v18482_v37 = vpop.f32.mrb[48].mxu0  ;;  %v18484_v7 = vpop.f32.mrb[48].mxu1 }
 0x14c   : > { %22225 = vst [vmem:[#allocation94_spill] sm:$0xff] %v18482_v37  ;;  %22226 = vst [vmem:[#allocation95_spill] sm:$0xff] %v18484_v7  ;;  %v18488_v44 = vpop.f32.mrb[49].mxu0  ;;  %v18490_v48 = vpop.f32.mrb[49].mxu1 }
 0x14d   : > { %22227 = vst [vmem:[#allocation96_spill] sm:$0xff] %v18488_v44  ;;  %22228 = vst [vmem:[#allocation97_spill] sm:$0xff] %v18490_v48  ;;  %v18508_v7 = vpop.permute.xlu0 %3772 }
 0x14e   : > { %22234 = vst [vmem:[#allocation103_spill] sm:$0xff] %v18508_v7 }
 0x14f   : > { %v18496_v49 = vpop.f32.mrb[50].mxu0  ;;  %v18498_v16 = vpop.f32.mrb[50].mxu1 }
 0x150   : > { %22230 = vst [vmem:[#allocation99_spill] sm:$0xff] %v18496_v49  ;;  %22231 = vst [vmem:[#allocation100_spill] sm:$0xff] %v18498_v16  ;;  %v18502_v43 = vpop.f32.mrb[51].mxu0  ;;  %v18504_v62 = vpop.f32.mrb[51].mxu1 }
 0x151   : > { %22232 = vst [vmem:[#allocation101_spill] sm:$0xff] %v18502_v43  ;;  %22233 = vst [vmem:[#allocation102_spill] sm:$0xff] %v18504_v62  ;;  %v18522_v16 = vpop.permute.xlu1 %3842 }
 0x152   : > { %22239 = vst [vmem:[#allocation108_spill] sm:$0xff] %v18522_v16 }
 0x153   : > { %v18510_v37 = vpop.f32.mrb[52].mxu0  ;;  %v18512_v26 = vpop.f32.mrb[52].mxu1 }
 0x154   : > { %22235 = vst [vmem:[#allocation104_spill] sm:$0xff] %v18510_v37  ;;  %22236 = vst [vmem:[#allocation105_spill] sm:$0xff] %v18512_v26  ;;  %v18516_v48 = vpop.f32.mrb[53].mxu0  ;;  %v18518_v44 = vpop.f32.mrb[53].mxu1 }
 0x155   : > { %22237 = vst [vmem:[#allocation106_spill] sm:$0xff] %v18516_v48  ;;  %22238 = vst [vmem:[#allocation107_spill] sm:$0xff] %v18518_v44  ;;  %v18536_v26 = vpop.permute.xlu0 %3777 }
 0x156   : > { %22244 = vst [vmem:[#allocation113_spill] sm:$0xff] %v18536_v26 }
 0x157   : > { %v18524_v49 = vpop.f32.mrb[54].mxu0  ;;  %v18526_v54 = vpop.f32.mrb[54].mxu1 }
 0x158   : > { %22240 = vst [vmem:[#allocation109_spill] sm:$0xff] %v18524_v49  ;;  %22241 = vst [vmem:[#allocation110_spill] sm:$0xff] %v18526_v54  ;;  %v18530_v43 = vpop.f32.mrb[55].mxu0  ;;  %v18532_v7 = vpop.f32.mrb[55].mxu1 }
 0x159   : > { %22242 = vst [vmem:[#allocation111_spill] sm:$0xff] %v18530_v43  ;;  %22243 = vst [vmem:[#allocation112_spill] sm:$0xff] %v18532_v7  ;;  %v18550_v54 = vpop.permute.xlu1 %3847 }
 0x15a   : > { %22249 = vst [vmem:[#allocation118_spill] sm:$0xff] %v18550_v54 }
 0x15b   : > { %v18538_v37 = vpop.f32.mrb[56].mxu0  ;;  %v18540_v55 = vpop.f32.mrb[56].mxu1 }
 0x15c   : > { %22245 = vst [vmem:[#allocation114_spill] sm:$0xff] %v18538_v37  ;;  %22246 = vst [vmem:[#allocation115_spill] sm:$0xff] %v18540_v55  ;;  %v18544_v44 = vpop.f32.mrb[57].mxu0  ;;  %v18546_v48 = vpop.f32.mrb[57].mxu1 }
 0x15d   : > { %22247 = vst [vmem:[#allocation116_spill] sm:$0xff] %v18544_v44  ;;  %22248 = vst [vmem:[#allocation117_spill] sm:$0xff] %v18546_v48  ;;  %v18564_v55 = vpop.permute.xlu0 %3782 }
 0x15e   : > { %22254 = vst [vmem:[#allocation123_spill] sm:$0xff] %v18564_v55 }
 0x15f   : > { %v18552_v49 = vpop.f32.mrb[58].mxu0  ;;  %v18554_v50 = vpop.f32.mrb[58].mxu1 }
 0x160   : > { %22250 = vst [vmem:[#allocation119_spill] sm:$0xff] %v18552_v49  ;;  %22251 = vst [vmem:[#allocation120_spill] sm:$0xff] %v18554_v50  ;;  %v18558_v43 = vpop.f32.mrb[59].mxu0  ;;  %v18560_v26 = vpop.f32.mrb[59].mxu1 }
 0x161   : > { %22252 = vst [vmem:[#allocation121_spill] sm:$0xff] %v18558_v43  ;;  %22253 = vst [vmem:[#allocation122_spill] sm:$0xff] %v18560_v26  ;;  %v18578_v50 = vpop.permute.xlu1 %3852 }
 0x162   : > { %22259 = vst [vmem:[#allocation128_spill] sm:$0xff] %v18578_v50 }
 0x163   : > { %v18566_v37 = vpop.f32.mrb[60].mxu0  ;;  %v18568_v62 = vpop.f32.mrb[60].mxu1 }
 0x164   : > { %22255 = vst [vmem:[#allocation124_spill] sm:$0xff] %v18566_v37  ;;  %22256 = vst [vmem:[#allocation125_spill] sm:$0xff] %v18568_v62  ;;  %v18572_v48 = vpop.f32.mrb[61].mxu0  ;;  %v18574_v44 = vpop.f32.mrb[61].mxu1 }
 0x165   : > { %22257 = vst [vmem:[#allocation126_spill] sm:$0xff] %v18572_v48  ;;  %22258 = vst [vmem:[#allocation127_spill] sm:$0xff] %v18574_v44  ;;  %v18592_v62 = vpop.permute.xlu0 %3787 }
 0x166   : > { %22264 = vst [vmem:[#allocation133_spill] sm:$0xff] %v18592_v62 }
 0x167   : > { %v18580_v49 = vpop.f32.mrb[62].mxu0  ;;  %v18582_v16 = vpop.f32.mrb[62].mxu1 }
 0x168   : > { %22260 = vst [vmem:[#allocation129_spill] sm:$0xff] %v18580_v49  ;;  %22261 = vst [vmem:[#allocation130_spill] sm:$0xff] %v18582_v16  ;;  %v18586_v43 = vpop.f32.mrb[63].mxu0  ;;  %v18588_v55 = vpop.f32.mrb[63].mxu1 }
 0x169   : > { %22262 = vst [vmem:[#allocation131_spill] sm:$0xff] %v18586_v43  ;;  %22263 = vst [vmem:[#allocation132_spill] sm:$0xff] %v18588_v55  ;;  %v18606_v16 = vpop.permute.xlu1 %3857 }
 0x16a   : > { %22269 = vst [vmem:[#allocation138_spill] sm:$0xff] %v18606_v16 }
 0x16b   : > { %v18594_v37 = vpop.f32.mrb[64].mxu0  ;;  %v18596_v7 = vpop.f32.mrb[64].mxu1 }
 0x16c   : > { %22265 = vst [vmem:[#allocation134_spill] sm:$0xff] %v18594_v37  ;;  %22266 = vst [vmem:[#allocation135_spill] sm:$0xff] %v18596_v7  ;;  %v18600_v44 = vpop.f32.mrb[65].mxu0  ;;  %v18602_v48 = vpop.f32.mrb[65].mxu1 }
 0x16d   : > { %22267 = vst [vmem:[#allocation136_spill] sm:$0xff] %v18600_v44  ;;  %22268 = vst [vmem:[#allocation137_spill] sm:$0xff] %v18602_v48  ;;  %v18620_v7 = vpop.permute.xlu0 %3792 }
 0x16e   : > { %22274 = vst [vmem:[#allocation143_spill] sm:$0xff] %v18620_v7 }
 0x16f   : > { %v18608_v49 = vpop.f32.mrb[66].mxu0  ;;  %v18610_v54 = vpop.f32.mrb[66].mxu1 }
 0x170   : > { %22270 = vst [vmem:[#allocation139_spill] sm:$0xff] %v18608_v49  ;;  %22271 = vst [vmem:[#allocation140_spill] sm:$0xff] %v18610_v54  ;;  %v18614_v43 = vpop.f32.mrb[67].mxu0  ;;  %v18616_v62 = vpop.f32.mrb[67].mxu1 }
 0x171   : > { %22272 = vst [vmem:[#allocation141_spill] sm:$0xff] %v18614_v43  ;;  %22273 = vst [vmem:[#allocation142_spill] sm:$0xff] %v18616_v62  ;;  %v18634_v54 = vpop.permute.xlu1 %3862  ;;  %v22286_v62 = vmax.f32 %v18002_v8, %v18004_v9 }
 0x172   : > { %22279 = vst [vmem:[#allocation148_spill] sm:$0xff] %v18634_v54 }
 0x173   : > { %v18622_v37 = vpop.f32.mrb[68].mxu0  ;;  %v18624_v26 = vpop.f32.mrb[68].mxu1 }
 0x174   : > { %22275 = vst [vmem:[#allocation144_spill] sm:$0xff] %v18622_v37  ;;  %22276 = vst [vmem:[#allocation145_spill] sm:$0xff] %v18624_v26  ;;  %v18628_v44 = vpop.f32.mrb[69].mxu0  ;;  %v18630_v16 = vpop.f32.mrb[69].mxu1 }
 0x175   : > { %22277 = vst [vmem:[#allocation146_spill] sm:$0xff] %v18628_v44  ;;  %22278 = vst [vmem:[#allocation147_spill] sm:$0xff] %v18630_v16  ;;  %v18648_v26 = vpop.permute.xlu0 %3797  ;;  %v22285_v16 = vmax.f32 %v17996_v4, %v17998_v5  ;;  %v22288_v5 = vmax.f32 %v18020_v19, %v18022_v20 }
 0x176   : > { %22284 = vst [vmem:[#allocation153_spill] sm:$0xff] %v18648_v26 }
 0x177   : > { %v18636_v49 = vpop.f32.mrb[70].mxu0  ;;  %v18638_v50 = vpop.f32.mrb[70].mxu1 }
 0x178   : > { %22280 = vst [vmem:[#allocation149_spill] sm:$0xff] %v18636_v49  ;;  %22281 = vst [vmem:[#allocation150_spill] sm:$0xff] %v18638_v50  ;;  %v18642_v43 = vpop.f32.mrb[71].mxu0  ;;  %v18644_v7 = vpop.f32.mrb[71].mxu1  ;;  %v18659_v49 = vld [vmem:[%s22009_s3] ss:$0 sm:$0xff] }
 0x179   : > { %22282 = vst [vmem:[#allocation151_spill] sm:$0xff] %v18642_v43  ;;  %22283 = vst [vmem:[#allocation152_spill] sm:$0xff] %v18644_v7  ;;  %v18661_v7 = vpop.permute.xlu1 %3867 }
 0x17a   : > { %22287 = vst [vmem:[#allocation154_spill] sm:$0xff] %v18661_v7  ;;  %v18671_v7 = vpop.permute.xlu0 %3802 }
 0x17b   : > { %v13593_v37 = vpop.f32.mrb[72].mxu0  ;;  %v13709_v55 = vpop.f32.mrb[72].mxu1 }
 0x17c   : > { %v2475_v44 = vmax.f32 %v22285_v16, %v13593_v37  ;;  %v2115_v54 = vpop.f32.mrb[73].mxu0  ;;  %v2901_v10 = vpop.f32.mrb[73].mxu1 }
 0x17d   : > { %v2474_v50 = vmax.f32 %v22286_v62, %v2115_v54  ;;  %v22289_v54 = vmax.f32 %v18026_v25, %v18028_v27 }
 0x17e   : > { %v3261_v48 = vmax.f32 %v2475_v44, %v13709_v55 }
 0x17f   : > { %v3260_v43 = vmax.f32 %v2474_v50, %v2901_v10  ;;  %v13596_v26 = vpop.f32.mrb[74].mxu0  ;;  %v13712_v60 = vpop.f32.mrb[74].mxu1 }
 0x180   : > { %v3340_v4 = vadd.f32 %v18659_v49, %v3261_v48  ;;  %v2477_v16 = vmax.f32 %v22288_v5, %v13596_v26  ;;  %v2125_v37 = vpop.f32.mrb[75].mxu0  ;;  %v2911_v8 = vpop.f32.mrb[75].mxu1  ;;  %v22290_v26 = vmax.f32 %v18042_v36, %v18044_v38 }
 0x181   : > { %v3339_v9 = vadd.f32 %v18659_v49, %v3260_v43  ;;  %v2476_v62 = vmax.f32 %v22289_v54, %v2125_v37 }
 0x182   : > { %v3412_v44 = vmax.f32 %v3340_v4, 0.0  ;;  %v3263_v55 = vmax.f32 %v2477_v16, %v13712_v60  ;;  %v22291_v4 = vmax.f32 %v18048_v41, %v18050_v42  ;;  %v22292_v41 = vmax.f32 %v18064_v52, %v18066_v53 }
 0x183   : > { %v3411_v10 = vmax.f32 %v3339_v9, 0.0  ;;  %v3262_v50 = vmax.f32 %v2476_v62, %v2911_v8  ;;  %v13599_v48 = vpop.f32.mrb[76].mxu0  ;;  %v13715_v18 = vpop.f32.mrb[76].mxu1 }
 0x184   : > { %v3916_v19 = vmul.f32 %v17872_v3, %v3412_v44  ;;  %v3342_v20 = vadd.f32 %v18659_v49, %v3263_v55  ;;  %v2479_v43 = vmax.f32 %v22290_v26, %v13599_v48  ;;  %v2135_v5 = vpop.f32.mrb[77].mxu0  ;;  %v2921_v25 = vpop.f32.mrb[77].mxu1 }
 0x185   : > { %v3915_v27 = vmul.f32 %v17878_v6, %v3411_v10  ;;  %v3341_v60 = vadd.f32 %v18659_v49, %v3262_v50  ;;  %v2478_v16 = vmax.f32 %v22291_v4, %v2135_v5  ;;  %v18684_v3 = vpop.permute.xlu1 %3872  ;;  %v22293_v50 = vmax.f32 %v18070_v56, %v18072_v58 }
 0x186   : > { %3989 = vst.msk [vmem:[#allocation2 + $0x8] sm:$0xff] %vm3987_vm5, %v3916_v19  ;;  %v3414_v37 = vmax.f32 %v3342_v20, 0.0  ;;  %v3265_v8 = vmax.f32 %v2479_v43, %v13715_v18  ;;  %v4078_v19 = vld [vmem:[%s22010_s4 + $0x8] sm:$0xff]  ;;  %v18704_v20 = vpop.permute.xlu0 %3807 }
 0x187   : > { %3988 = vst.msk [vmem:[#allocation2] sm:$0xff] %vm3987_vm5, %v3915_v27  ;;  %v3413_v36 = vmax.f32 %v3341_v60, 0.0  ;;  %v3264_v38 = vmax.f32 %v2478_v16, %v2921_v25  ;;  %v13602_v9 = vpop.f32.mrb[78].mxu0  ;;  %v13718_v54 = vpop.f32.mrb[78].mxu1  ;;  %v22294_v25 = vmax.f32 %v18086_v12, %v18088_v15 }
 0x188   : > { %v3918_v6 = vmul.f32 %v17912_v21, %v3414_v37  ;;  %v3344_v62 = vadd.f32 %v18659_v49, %v3265_v8  ;;  %v2481_v42 = vmax.f32 %v22292_v41, %v13602_v9  ;;  %v2145_v44 = vpop.f32.mrb[79].mxu0  ;;  %v2931_v55 = vpop.f32.mrb[79].mxu1  ;;  %v4077_v21 = vld [vmem:[%s22010_s4] sm:$0xff] }
 0x189   : > { %v3917_v10 = vmul.f32 %v17894_v13, %v3413_v36  ;;  %v3343_v18 = vadd.f32 %v18659_v49, %v3264_v38  ;;  %v2480_v48 = vmax.f32 %v22293_v50, %v2145_v44  ;;  %v18712_v16 = vpack.c.bf16 %v4078_v19, %v4077_v21 }
 0x18a   : > { %3991 = vst.msk [vmem:[#allocation2 + $0x18] sm:$0xff] %vm3987_vm5, %v3918_v6  ;;  %v3416_v52 = vmax.f32 %v3344_v62, 0.0  ;;  %v3267_v53 = vmax.f32 %v2481_v42, %v13718_v54  ;;  %v22295_v36 = vmax.f32 %v18092_v30, %v18094_v31  ;;  %v22296_v31 = vmax.f32 %v18108_v61, %v18110_v63 }
 0x18b   : > { %3990 = vst.msk [vmem:[#allocation2 + $0x10] sm:$0xff] %vm3987_vm5, %v3917_v10  ;;  %v3415_v13 = vmax.f32 %v3343_v18, 0.0  ;;  %v3266_v26 = vmax.f32 %v2480_v48, %v2931_v55  ;;  %v13605_v56 = vpop.f32.mrb[80].mxu0  ;;  %v13721_v58 = vpop.f32.mrb[80].mxu1  ;;  %v22297_v10 = vmov 0.0   ;;  %v22299_v21 = vmov 0.0|0.0  }
 0x18c   : > { %v3920_v43 = vmul.f32 %v17934_v34, %v3416_v52  ;;  %v3346_v5 = vadd.f32 %v18659_v49, %v3267_v53  ;;  %v2483_v27 = vmax.f32 %v22294_v25, %v13605_v56  ;;  %v2155_v60 = vpop.f32.mrb[81].mxu0  ;;  %v2941_v4 = vpop.f32.mrb[81].mxu1  ;;  %v22300_v56 = vmax.f32 %v18130_v33, %v18132_v45 }
 0x18d   : > { %v3919_v37 = vmul.f32 %v17924_v29, %v3415_v13  ;;  %v3345_v8 = vadd.f32 %v18659_v49, %v3266_v26  ;;  %v2482_v38 = vmax.f32 %v22295_v36, %v2155_v60  ;;  %v18720_v34 = vpop.permute.xlu1 %3877  ;;  %v18739_v52 = vpop.permute.xlu0 %3812  ;;  %v22301_v60 = vmax.f32 %v18136_v47, %v18138_v39 }
 0x18e   : > { %3993 = vst.msk [vmem:[#allocation2 + $0x28] sm:$0xff] %vm3987_vm5, %v3920_v43  ;;  %v3418_v9 = vmax.f32 %v3346_v5, 0.0  ;;  %v3269_v54 = vmax.f32 %v2483_v27, %v13721_v58  ;;  %v4501_v12 = vld [vmem:[#allocation2 + $0x1] sm:$0xff]  ;;  %v22302_v47 = vmax.f32 %v18152_v17, %v18154_v59 }
 0x18f   : > { %3992 = vst.msk [vmem:[#allocation2 + $0x20] sm:$0xff] %vm3987_vm5, %v3919_v37  ;;  %v3417_v15 = vmax.f32 %v3345_v8, 0.0  ;;  %v3268_v6 = vmax.f32 %v2482_v38, %v2941_v4  ;;  %v13608_v62 = vpop.f32.mrb[82].mxu0  ;;  %14315 = vmatmul.mubr.msk.f32.vlgmr.msra.gmra.mrb[144].mxu1 %vm3987_vm5, %v4501_v12  ;;  %v13724_v29 = vpop.f32.mrb[82].mxu1 }
 0x190   : > { %v3922_v41 = vmul.f32 %v17958_v46, %v3418_v9  ;;  %v3348_v30 = vadd.f32 %v18659_v49, %v3269_v54  ;;  %v2485_v42 = vmax.f32 %v22296_v31, %v13608_v62  ;;  %v2165_v44 = vpop.f32.mrb[83].mxu0  ;;  %v2951_v55 = vpop.f32.mrb[83].mxu1  ;;  %14317 = vmatprep.mubr.msk.f32.mxu1 %vm17213_vm4, %v22297_v10  ;;  %15867 = vmatpush3.bf16.msra.mxu1 %v18712_v16 }
 0x191   : > { %v3921_v18 = vmul.f32 %v17946_v40, %v3417_v15  ;;  %v3347_v50 = vadd.f32 %v18659_v49, %v3268_v6  ;;  %v22298_v46 = vmax.f32 %v18114_v1, %v18116_v32  ;;  %15868 = vmatprep.subr.bf16.mxu1 %v22299_v21  ;;  %v18773_v17 = vpop.permute.xlu0 %3817 }
 0x192   : > { %3995 = vst.msk [vmem:[#allocation2 + $0x38] sm:$0xff] %vm3987_vm5, %v3922_v41  ;;  %v3420_v61 = vmax.f32 %v3348_v30, 0.0  ;;  %v3271_v63 = vmax.f32 %v2485_v42, %v13724_v29  ;;  %v4502_v19 = vld [vmem:[#allocation2 + $0x9] sm:$0xff]  ;;  %v4503_v45 = vld [vmem:[#allocation2 + $0x11] sm:$0xff]  ;;  %v22303_v29 = vmax.f32 %v18158_v22, %v18160_v23  ;;  %v22304_v22 = vmax.f32 %v18174_v28, %v18176_v24 }
 0x193   : > { %v2484_v48 = vmax.f32 %v22298_v46, %v2165_v44  ;;  %3994 = vst.msk [vmem:[#allocation2 + $0x30] sm:$0xff] %vm3987_vm5, %v3921_v18  ;;  %v3419_v53 = vmax.f32 %v3347_v50, 0.0  ;;  %v13611_v40 = vpop.f32.mrb[84].mxu0  ;;  %14318 = vmatmul.mubr.msk.f32.gmra.mrb[146].mxu1 %vm3987_vm5, %v4502_v19  ;;  %v13727_v26 = vpop.f32.mrb[84].mxu1 }
 0x194   : > { %v3924_v32 = vmul.f32 %v17980_v57, %v3420_v61  ;;  %v3350_v1 = vadd.f32 %v18659_v49, %v3271_v63  ;;  %v2487_v58 = vmax.f32 %v22300_v56, %v13611_v40  ;;  %v2175_v43 = vpop.f32.mrb[85].mxu0  ;;  %v2961_v5 = vpop.f32.mrb[85].mxu1  ;;  %14320 = vmatprep.mubr.msk.f32.mxu1 %vm17213_vm4, %v22297_v10  ;;  %v22305_v63 = vld [vmem:[#allocation17_spill] sm:$0xff] }
 0x195   : > { %v3270_v13 = vmax.f32 %v2484_v48, %v2951_v55  ;;  %v3923_v25 = vmul.f32 %v17968_v51, %v3419_v53  ;;  %v2486_v4 = vmax.f32 %v22301_v60, %v2175_v43  ;;  %v18755_v57 = vpop.permute.xlu1 %3882  ;;  %v22306_v19 = vmax.f32 %v18180_v2, %v22305_v63  ;;  %v22309_v43 = vld [vmem:[#allocation20_spill] sm:$0xff] }
 0x196   : > { %3997 = vst.msk [vmem:[#allocation2 + $0x48] sm:$0xff] %vm3987_vm5, %v3924_v32  ;;  %v3422_v37 = vmax.f32 %v3350_v1, 0.0  ;;  %v3273_v33 = vmax.f32 %v2487_v58, %v13727_v26  ;;  %v4504_v31 = vld [vmem:[#allocation2 + $0x19] sm:$0xff]  ;;  %v4505_v24 = vld [vmem:[#allocation2 + $0x21] sm:$0xff] }
 0x197   : > { %v3349_v27 = vadd.f32 %v18659_v49, %v3270_v13  ;;  %3996 = vst.msk [vmem:[#allocation2 + $0x40] sm:$0xff] %vm3987_vm5, %v3923_v25  ;;  %v3272_v36 = vmax.f32 %v2486_v4, %v2961_v5  ;;  %v13614_v38 = vpop.f32.mrb[86].mxu0  ;;  %14321 = vmatmul.mubr.msk.f32.gmra.mrb[148].mxu1 %vm3987_vm5, %v4503_v45  ;;  %v13730_v51 = vpop.f32.mrb[86].mxu1  ;;  %v22307_v1 = vld [vmem:[#allocation16_spill] sm:$0xff]  ;;  %v22308_v58 = vld [vmem:[#allocation19_spill] sm:$0xff]  ;;  %v22311_v4 = vld [vmem:[#allocation14_spill] sm:$0xff] }
 0x198   : > { %v3926_v9 = vmul.f32 %v18014_v14, %v3422_v37  ;;  %v3352_v39 = vadd.f32 %v18659_v49, %v3273_v33  ;;  %v2489_v54 = vmax.f32 %v22302_v47, %v13614_v38  ;;  %v2185_v12 = vpop.f32.mrb[87].mxu0  ;;  %v2971_v15 = vpop.f32.mrb[87].mxu1  ;;  %14323 = vmatprep.mubr.msk.f32.mxu1 %vm17213_vm4, %v22297_v10  ;;  %v22310_v5 = vmax.f32 %v22308_v58, %v22309_v43  ;;  %v22312_v45 = vld [vmem:[#allocation21_spill] sm:$0xff]  ;;  %v22326_v43 = vld [vmem:[#allocation4_spill] sm:$0xff] }
 0x199   : > { %v3421_v8 = vmax.f32 %v3349_v27, 0.0  ;;  %v3351_v62 = vadd.f32 %v18659_v49, %v3272_v36  ;;  %v2488_v41 = vmax.f32 %v22303_v29, %v2185_v12 }
 0x19a   : > { %3999 = vst.msk [vmem:[#allocation2 + $0x58] sm:$0xff] %vm3987_vm5, %v3926_v9  ;;  %v3424_v14 = vmax.f32 %v3352_v39, 0.0  ;;  %v3275_v30 = vmax.f32 %v2489_v54, %v13730_v51  ;;  %v3643_v51 = vpop.permute.xlu0 %3642  ;;  %v4506_v47 = vld [vmem:[#allocation2 + $0x29] sm:$0xff]  ;;  %v4507_v63 = vld [vmem:[#allocation2 + $0x31] sm:$0xff] }
 0x19b   : > { %v3925_v6 = vmul.f32 %v17992_v0, %v3421_v8  ;;  %v3423_v59 = vmax.f32 %v3351_v62, 0.0  ;;  %v3274_v42 = vmax.f32 %v2488_v41, %v2971_v15  ;;  %v13617_v44 = vpop.f32.mrb[88].mxu0  ;;  %14324 = vmatmul.mubr.msk.f32.gmra.mrb[150].mxu1 %vm3987_vm5, %v4504_v31  ;;  %v13733_v0 = vpop.f32.mrb[88].mxu1  ;;  %v22313_v8 = vld [vmem:[#allocation22_spill] sm:$0xff]  ;;  %v22315_v41 = vld [vmem:[#allocation24_spill] sm:$0xff] }
 0x19c   : > { %v3928_v55 = vmul.f32 %v18084_v11, %v3424_v14  ;;  %v3354_v23 = vadd.f32 %v18659_v49, %v3275_v30  ;;  %v2491_v18 = vmax.f32 %v22304_v22, %v13617_v44  ;;  %v2195_v50 = vpop.f32.mrb[89].mxu0  ;;  %v2981_v46 = vpop.f32.mrb[89].mxu1  ;;  %14326 = vmatprep.mubr.msk.f32.mxu1 %vm17213_vm4, %v22297_v10  ;;  %v22314_v36 = vmax.f32 %v22312_v45, %v22313_v8  ;;  %v22316_v14 = vld [vmem:[#allocation25_spill] sm:$0xff]  ;;  %v22318_v44 = vld [vmem:[#allocation23_spill] sm:$0xff] }
 0x19d   : > { %3998 = vst.msk [vmem:[#allocation2 + $0x50] sm:$0xff] %vm3987_vm5, %v3925_v6  ;;  %v3927_v48 = vmul.f32 %v18040_v35, %v3423_v59  ;;  %v3353_v61 = vadd.f32 %v18659_v49, %v3274_v42  ;;  %v2490_v53 = vmax.f32 %v22306_v19, %v2195_v50  ;;  %v18789_v11 = vpop.permute.xlu1 %3887  ;;  %v22317_v30 = vmax.f32 %v22315_v41, %v22316_v14  ;;  %v22320_v22 = vld [vmem:[#allocation27_spill] sm:$0xff]  ;;  %v22334_v14 = vld [vmem:[#allocation6_spill] sm:$0xff] }
 0x19e   : > { %4001 = vst.msk [vmem:[#allocation2 + $0x68] sm:$0xff] %vm3987_vm5, %v3928_v55  ;;  %v3426_v13 = vmax.f32 %v3354_v23, 0.0  ;;  %v3277_v28 = vmax.f32 %v2491_v18, %v13733_v0  ;;  %v22319_v23 = vld [vmem:[#allocation26_spill] sm:$0xff] }
 0x19f   : > { %4000 = vst.msk [vmem:[#allocation2 + $0x60] sm:$0xff] %vm3987_vm5, %v3927_v48  ;;  %v3425_v40 = vmax.f32 %v3353_v61, 0.0  ;;  %v3276_v26 = vmax.f32 %v2490_v53, %v2981_v46  ;;  %v13620_v32 = vpop.f32.mrb[90].mxu0  ;;  %14327 = vmatmul.mubr.msk.f32.gmra.mrb[152].mxu1 %vm3987_vm5, %v4505_v24  ;;  %v13736_v35 = vpop.f32.mrb[90].mxu1  ;;  %v22321_v18 = vmax.f32 %v22319_v23, %v22320_v22  ;;  %v22322_v24 = vld [vmem:[#allocation5_spill] sm:$0xff]  ;;  %v4508_v8 = vld [vmem:[#allocation2 + $0x39] sm:$0xff] }
 0x1a0   : > { %v3930_v56 = vmul.f32 %v22307_v1, %v3426_v13  ;;  %v3356_v2 = vadd.f32 %v18659_v49, %v3277_v28  ;;  %v2493_v25 = vmax.f32 %v22310_v5, %v13620_v32  ;;  %v2205_v27 = vpop.f32.mrb[91].mxu0  ;;  %v2991_v60 = vpop.f32.mrb[91].mxu1  ;;  %14329 = vmatprep.mubr.msk.f32.mxu1 %vm17213_vm4, %v22297_v10  ;;  %v22323_v32 = vld [vmem:[#allocation29_spill] sm:$0xff] }
 0x1a1   : > { %v3929_v37 = vmul.f32 %v22311_v4, %v3425_v40  ;;  %v3355_v33 = vadd.f32 %v18659_v49, %v3276_v26  ;;  %v2492_v38 = vmax.f32 %v22314_v36, %v2205_v27  ;;  %v18820_v46 = vpop.permute.xlu1 %3892  ;;  %v22327_v27 = vld [vmem:[#allocation31_spill] sm:$0xff] }
 0x1a2   : > { %4003 = vst.msk [vmem:[#allocation2 + $0x78] sm:$0xff] %vm3987_vm5, %v3930_v56  ;;  %v3279_v9 = vmax.f32 %v2493_v25, %v13736_v35  ;;  %v3428_v39 = vmax.f32 %v3356_v2, 0.0  ;;  %v22324_v35 = vld [vmem:[#allocation30_spill] sm:$0xff] }
 0x1a3   : > { %4002 = vst.msk [vmem:[#allocation2 + $0x70] sm:$0xff] %vm3987_vm5, %v3929_v37  ;;  %v3427_v54 = vmax.f32 %v3355_v33, 0.0  ;;  %v3278_v12 = vmax.f32 %v2492_v38, %v2991_v60  ;;  %v13623_v15 = vpop.f32.mrb[92].mxu0  ;;  %14330 = vmatmul.mubr.msk.f32.gmra.mrb[154].mxu1 %vm3987_vm5, %v4506_v47  ;;  %v13739_v6 = vpop.f32.mrb[92].mxu1  ;;  %v22325_v1 = vmax.f32 %v22323_v32, %v22324_v35  ;;  %v22328_v60 = vld [vmem:[#allocation32_spill] sm:$0xff] }
 0x1a4   : > { %v3358_v62 = vadd.f32 %v18659_v49, %v3279_v9  ;;  %v3932_v29 = vmul.f32 %v3643_v51, %v3428_v39  ;;  %v2495_v31 = vmax.f32 %v22317_v30, %v13623_v15  ;;  %v2215_v59 = vpop.f32.mrb[93].mxu0  ;;  %v3001_v42 = vpop.f32.mrb[93].mxu1  ;;  %14332 = vmatprep.mubr.msk.f32.mxu1 %vm17213_vm4, %v22297_v10  ;;  %v22329_v4 = vmax.f32 %v22327_v27, %v22328_v60  ;;  %v22330_v39 = vld [vmem:[#allocation7_spill] sm:$0xff] }
 0x1a5   : > { %v3931_v0 = vmul.f32 %v22318_v44, %v3427_v54  ;;  %v3357_v55 = vadd.f32 %v18659_v49, %v3278_v12  ;;  %v2494_v50 = vmax.f32 %v22321_v18, %v2215_v59  ;;  %v22331_v12 = vld [vmem:[#allocation34_spill] sm:$0xff]  ;;  %v22332_v15 = vld [vmem:[#allocation35_spill] sm:$0xff]  ;;  %v22335_v59 = vld [vmem:[#allocation36_spill] sm:$0xff] }
 0x1a6   : > { %v3430_v48 = vmax.f32 %v3358_v62, 0.0  ;;  %4005 = vst.msk [vmem:[#allocation2 + $0x88] sm:$0xff] %vm3987_vm5, %v3932_v29  ;;  %v3281_v61 = vmax.f32 %v2495_v31, %v13739_v6  ;;  %v22333_v6 = vmax.f32 %v22331_v12, %v22332_v15  ;;  %v4509_v18 = vld [vmem:[#allocation2 + $0x41] sm:$0xff] }
 0x1a7   : > { %4004 = vst.msk [vmem:[#allocation2 + $0x80] sm:$0xff] %vm3987_vm5, %v3931_v0  ;;  %v3429_v19 = vmax.f32 %v3357_v55, 0.0  ;;  %v3280_v53 = vmax.f32 %v2494_v50, %v3001_v42  ;;  %v13626_v13 = vpop.f32.mrb[94].mxu0  ;;  %14333 = vmatmul.mubr.msk.f32.gmra.mrb[156].mxu1 %vm3987_vm5, %v4507_v63  ;;  %v13742_v28 = vpop.f32.mrb[94].mxu1  ;;  %v22336_v42 = vld [vmem:[#allocation37_spill] sm:$0xff] }
 0x1a8   : > { %v3934_v40 = vmul.f32 %v22322_v24, %v3430_v48  ;;  %v3360_v26 = vadd.f32 %v18659_v49, %v3281_v61  ;;  %v2497_v56 = vmax.f32 %v22325_v1, %v13626_v13  ;;  %v2225_v2 = vpop.f32.mrb[95].mxu0  ;;  %v3011_v58 = vpop.f32.mrb[95].mxu1  ;;  %14335 = vmatprep.mubr.msk.f32.mxu1 %vm17213_vm4, %v22297_v10  ;;  %v22337_v44 = vmax.f32 %v22335_v59, %v22336_v42  ;;  %v22340_v24 = vld [vmem:[#allocation40_spill] sm:$0xff] }
 0x1a9   : > { %v3933_v5 = vmul.f32 %v22326_v43, %v3429_v19  ;;  %v3359_v25 = vadd.f32 %v18659_v49, %v3280_v53  ;;  %v2496_v37 = vmax.f32 %v22329_v4, %v2225_v2  ;;  %v18852_v55 = vpop.permute.xlu1 %3897  ;;  %v22338_v19 = vld [vmem:[#allocation9_spill] sm:$0xff]  ;;  %v22342_v1 = vld [vmem:[#allocation8_spill] sm:$0xff]  ;;  %v22344_v43 = vld [vmem:[#allocation42_spill] sm:$0xff] }
 0x1aa   : > { %4007 = vst.msk [vmem:[#allocation2 + $0x98] sm:$0xff] %vm3987_vm5, %v3934_v40  ;;  %v3432_v33 = vmax.f32 %v3360_v26, 0.0  ;;  %v3283_v45 = vmax.f32 %v2497_v56, %v13742_v28  ;;  %v22339_v28 = vld [vmem:[#allocation39_spill] sm:$0xff] }
 0x1ab   : > { %4006 = vst.msk [vmem:[#allocation2 + $0x90] sm:$0xff] %vm3987_vm5, %v3933_v5  ;;  %v3431_v36 = vmax.f32 %v3359_v25, 0.0  ;;  %v3282_v38 = vmax.f32 %v2496_v37, %v3011_v58  ;;  %v13629_v51 = vpop.f32.mrb[96].mxu0  ;;  %14336 = vmatmul.mubr.msk.f32.gmra.mrb[158].mxu1 %vm3987_vm5, %v4508_v8  ;;  %v13745_v9 = vpop.f32.mrb[96].mxu1  ;;  %v22341_v40 = vmax.f32 %v22339_v28, %v22340_v24  ;;  %v22343_v58 = vld [vmem:[#allocation41_spill] sm:$0xff]  ;;  %v22356_v28 = vld [vmem:[#allocation50_spill] sm:$0xff] }
 0x1ac   : > { %v3936_v47 = vmul.f32 %v22330_v39, %v3432_v33  ;;  %v3362_v54 = vadd.f32 %v18659_v49, %v3283_v45  ;;  %v2499_v62 = vmax.f32 %v22333_v6, %v13629_v51  ;;  %v2235_v29 = vpop.f32.mrb[97].mxu0  ;;  %v3021_v41 = vpop.f32.mrb[97].mxu1  ;;  %14338 = vmatprep.mubr.msk.f32.mxu1 %vm17213_vm4, %v22297_v10  ;;  %v22345_v5 = vmax.f32 %v22343_v58, %v22344_v43  ;;  %v4510_v37 = vld [vmem:[#allocation2 + $0x49] sm:$0xff] }
 0x1ad   : > { %v3935_v30 = vmul.f32 %v22334_v14, %v3431_v36  ;;  %v3361_v31 = vadd.f32 %v18659_v49, %v3282_v38  ;;  %v2498_v0 = vmax.f32 %v22337_v44, %v2235_v29  ;;  %v22346_v38 = vld [vmem:[#allocation11_spill] sm:$0xff]  ;;  %v22347_v39 = vld [vmem:[#allocation44_spill] sm:$0xff]  ;;  %v22351_v14 = vld [vmem:[#allocation46_spill] sm:$0xff]  ;;  %v18892_v42 = vpop.permute.xlu1 %3902 }
 0x1ae   : > { %4009 = vst.msk [vmem:[#allocation2 + $0xa8] sm:$0xff] %vm3987_vm5, %v3936_v47  ;;  %v3434_v23 = vmax.f32 %v3362_v54, 0.0  ;;  %v3285_v22 = vmax.f32 %v2499_v62, %v13745_v9  ;;  %v22348_v47 = vld [vmem:[#allocation45_spill] sm:$0xff]  ;;  %v22350_v62 = vld [vmem:[#allocation10_spill] sm:$0xff]  ;;  %v22360_v58 = vld [vmem:[#allocation52_spill] sm:$0xff] }
 0x1af   : > { %4008 = vst.msk [vmem:[#allocation2 + $0xa0] sm:$0xff] %vm3987_vm5, %v3935_v30  ;;  %v3433_v50 = vmax.f32 %v3361_v31, 0.0  ;;  %v3284_v48 = vmax.f32 %v2498_v0, %v3021_v41  ;;  %v13632_v61 = vpop.f32.mrb[98].mxu0  ;;  %14339 = vmatmul.mubr.msk.f32.gmra.mrb[160].mxu1 %vm3987_vm5, %v4509_v18  ;;  %v13748_v63 = vpop.f32.mrb[98].mxu1  ;;  %v22349_v54 = vmax.f32 %v22347_v39, %v22348_v47  ;;  %v22352_v30 = vld [vmem:[#allocation47_spill] sm:$0xff]  ;;  %v22363_v39 = vld [vmem:[#allocation54_spill] sm:$0xff] }
 0x1b0   : > { %v3938_v53 = vmul.f32 %v22338_v19, %v3434_v23  ;;  %v3364_v13 = vadd.f32 %v18659_v49, %v3285_v22  ;;  %v2501_v26 = vmax.f32 %v22341_v40, %v13632_v61  ;;  %v2245_v32 = vpop.f32.mrb[99].mxu0  ;;  %v3031_v35 = vpop.f32.mrb[99].mxu1  ;;  %14341 = vmatprep.mubr.msk.f32.mxu1 %vm17213_vm4, %v22297_v10  ;;  %v22353_v31 = vmax.f32 %v22351_v14, %v22352_v30  ;;  %v4511_v22 = vld [vmem:[#allocation2 + $0x51] sm:$0xff]  ;;  %v22364_v47 = vld [vmem:[#allocation55_spill] sm:$0xff]  ;;  %v22367_v14 = vld [vmem:[#allocation56_spill] sm:$0xff] }
 0x1b1   : > { %v3937_v56 = vmul.f32 %v22342_v1, %v3433_v50  ;;  %v3363_v2 = vadd.f32 %v18659_v49, %v3284_v48  ;;  %v2500_v25 = vmax.f32 %v22345_v5, %v2245_v32  ;;  %v18895_v23 = vld [vmem:[#allocation2 + $0x98] sm:$0xff]  ;;  %v22368_v30 = vld [vmem:[#allocation57_spill] sm:$0xff] }
 0x1b2   : > { %4011 = vst.msk [vmem:[#allocation2 + $0xb8] sm:$0xff] %vm3987_vm5, %v3938_v53  ;;  %v3436_v27 = vmax.f32 %v3364_v13, 0.0  ;;  %v3287_v60 = vmax.f32 %v2501_v26, %v13748_v63  ;;  %v18870_v4 = vld [vmem:[#allocation2 + $0x90] sm:$0xff] }
 0x1b3   : > { %4010 = vst.msk [vmem:[#allocation2 + $0xb0] sm:$0xff] %vm3987_vm5, %v3937_v56  ;;  %v3435_v33 = vmax.f32 %v3363_v2, 0.0  ;;  %v3286_v45 = vmax.f32 %v2500_v25, %v3031_v35  ;;  %v13635_v8 = vpop.f32.mrb[100].mxu0  ;;  %13820 = vmatmul.mubr.msk.f32.vlgmr.msra.gmra.mrb[144].mxu0 %vm3987_vm5, %v18870_v4  ;;  %14342 = vmatmul.mubr.msk.f32.gmra.mrb[162].mxu1 %vm3987_vm5, %v4510_v37  ;;  %v13751_v36 = vpop.f32.mrb[100].mxu1  ;;  %v22354_v63 = vld [vmem:[#allocation13_spill] sm:$0xff]  ;;  %v22358_v35 = vld [vmem:[#allocation12_spill] sm:$0xff] }
 0x1b4   : > { %v3940_v51 = vmul.f32 %v22346_v38, %v3436_v27  ;;  %v3366_v9 = vadd.f32 %v18659_v49, %v3287_v60  ;;  %v2503_v12 = vmax.f32 %v22349_v54, %v13635_v8  ;;  %v2255_v15 = vpop.f32.mrb[101].mxu0  ;;  %15840 = vmatpush3.bf16.msra.mxu0 %v18712_v16  ;;  %v3041_v6 = vpop.f32.mrb[101].mxu1  ;;  %13822 = vmatprep.mubr.msk.f32.mxu0 %vm17213_vm4, %v22297_v10  ;;  %v22355_v13 = vld [vmem:[#allocation49_spill] sm:$0xff]  ;;  %v22359_v2 = vld [vmem:[#allocation51_spill] sm:$0xff]  ;;  %v22362_v38 = vld [vmem:[#allocation18_spill] sm:$0xff] }
 0x1b5   : > { %v3939_v29 = vmul.f32 %v22350_v62, %v3435_v33  ;;  %v3365_v41 = vadd.f32 %v18659_v49, %v3286_v45  ;;  %v2502_v59 = vmax.f32 %v22353_v31, %v2255_v15  ;;  %14344 = vmatprep.mubr.msk.f32.mxu1 %vm17213_vm4, %v22297_v10  ;;  %15841 = vmatprep.subr.bf16.mxu0 %v22299_v21  ;;  %v4512_v37 = vld [vmem:[#allocation2 + $0x59] sm:$0xff] }
 0x1b6   : > { %4013 = vst.msk [vmem:[#allocation2 + $0xc8] sm:$0xff] %vm3987_vm5, %v3940_v51  ;;  %v3438_v44 = vmax.f32 %v3366_v9, 0.0  ;;  %v3289_v0 = vmax.f32 %v2503_v12, %v13751_v36  ;;  %v22357_v24 = vmax.f32 %v22355_v13, %v22356_v28  ;;  %v22361_v43 = vmax.f32 %v22359_v2, %v22360_v58  ;;  %v18916_v60 = vld [vmem:[#allocation2 + $0xa0] sm:$0xff] }
 0x1b7   : > { %4012 = vst.msk [vmem:[#allocation2 + $0xc0] sm:$0xff] %vm3987_vm5, %v3939_v29  ;;  %v3437_v18 = vmax.f32 %v3365_v41, 0.0  ;;  %v3288_v50 = vmax.f32 %v2502_v59, %v3041_v6  ;;  %v13638_v48 = vpop.f32.mrb[102].mxu0  ;;  %13823 = vmatmul.mubr.msk.f32.gmra.mrb[146].mxu0 %vm3987_vm5, %v18895_v23  ;;  %14345 = vmatmul.mubr.msk.f32.gmra.mrb[164].mxu1 %vm3987_vm5, %v4511_v22  ;;  %v13754_v61 = vpop.f32.mrb[102].mxu1  ;;  %v22365_v54 = vmax.f32 %v22363_v39, %v22364_v47  ;;  %v22366_v62 = vld [vmem:[#allocation15_spill] sm:$0xff]  ;;  %v22378_v39 = vld [vmem:[#allocation58_spill] sm:$0xff] }
 0x1b8   : > { %v3942_v19 = vmul.f32 %v22354_v63, %v3438_v44  ;;  %v3368_v53 = vadd.f32 %v18659_v49, %v3289_v0  ;;  %v2505_v40 = vmax.f32 %v22357_v24, %v13638_v48  ;;  %v2265_v26 = vpop.f32.mrb[103].mxu0  ;;  %v3051_v32 = vpop.f32.mrb[103].mxu1  ;;  %13825 = vmatprep.mubr.msk.f32.mxu0 %vm17213_vm4, %v22297_v10  ;;  %14347 = vmatprep.mubr.msk.f32.mxu1 %vm17213_vm4, %v22297_v10  ;;  %v22371_v24 = vld [vmem:[#allocation59_spill] sm:$0xff] }
 0x1b9   : > { %v3941_v1 = vmul.f32 %v22358_v35, %v3437_v18  ;;  %v3367_v56 = vadd.f32 %v18659_v49, %v3288_v50  ;;  %v2504_v5 = vmax.f32 %v22361_v43, %v2265_v26  ;;  %v22369_v31 = vmax.f32 %v22367_v14, %v22368_v30  ;;  %v18936_v44 = vpop.permute.xlu1 %3907  ;;  %v18939_v18 = vld [vmem:[#allocation2 + $0xa8] sm:$0xff]  ;;  %v22375_v43 = vld [vmem:[#allocation61_spill] sm:$0xff] }
 0x1ba   : > { %4015 = vst.msk [vmem:[#allocation2 + $0xd8] sm:$0xff] %vm3987_vm5, %v3942_v19  ;;  %v3440_v25 = vmax.f32 %v3368_v53, 0.0  ;;  %v3291_v27 = vmax.f32 %v2505_v40, %v13754_v61  ;;  %v4513_v50 = vld [vmem:[#allocation2 + $0x61] sm:$0xff]  ;;  %v22370_v53 = vld [vmem:[#allocation38_spill] sm:$0xff] }
 0x1bb   : > { %4014 = vst.msk [vmem:[#allocation2 + $0xd0] sm:$0xff] %vm3987_vm5, %v3941_v1  ;;  %v3439_v33 = vmax.f32 %v3367_v56, 0.0  ;;  %v3290_v45 = vmax.f32 %v2504_v5, %v3051_v32  ;;  %v13641_v8 = vpop.f32.mrb[104].mxu0  ;;  %13826 = vmatmul.mubr.msk.f32.gmra.mrb[148].mxu0 %vm3987_vm5, %v18916_v60  ;;  %14348 = vmatmul.mubr.msk.f32.gmra.mrb[166].mxu1 %vm3987_vm5, %v4512_v37  ;;  %v13757_v36 = vpop.f32.mrb[104].mxu1  ;;  %v22372_v40 = vld [vmem:[#allocation60_spill] sm:$0xff]  ;;  %v22376_v5 = vld [vmem:[#allocation62_spill] sm:$0xff] }
 0x1bc   : > { %v3944_v51 = vmul.f32 %v22362_v38, %v3440_v25  ;;  %v3370_v9 = vadd.f32 %v18659_v49, %v3291_v27  ;;  %v2507_v12 = vmax.f32 %v22365_v54, %v13641_v8  ;;  %v2275_v15 = vpop.f32.mrb[105].mxu0  ;;  %v3061_v6 = vpop.f32.mrb[105].mxu1  ;;  %13828 = vmatprep.mubr.msk.f32.mxu0 %vm17213_vm4, %v22297_v10  ;;  %14350 = vmatprep.mubr.msk.f32.mxu1 %vm17213_vm4, %v22297_v10  ;;  %v22374_v56 = vld [vmem:[#allocation28_spill] sm:$0xff] }
 0x1bd   : > { %v3943_v29 = vmul.f32 %v22366_v62, %v3439_v33  ;;  %v3369_v41 = vadd.f32 %v18659_v49, %v3290_v45  ;;  %v2506_v59 = vmax.f32 %v22369_v31, %v2275_v15  ;;  %v22373_v26 = vmax.f32 %v22371_v24, %v22372_v40  ;;  %v18960_v45 = vld [vmem:[#allocation2 + $0xb0] sm:$0xff]  ;;  %v22382_v14 = vld [vmem:[#allocation48_spill] sm:$0xff] }
 0x1be   : > { %4017 = vst.msk [vmem:[#allocation2 + $0xe8] sm:$0xff] %vm3987_vm5, %v3944_v51  ;;  %v3442_v0 = vmax.f32 %v3370_v9, 0.0  ;;  %v3293_v22 = vmax.f32 %v2507_v12, %v13757_v36  ;;  %v22377_v25 = vmax.f32 %v22375_v43, %v22376_v5  ;;  %v4514_v8 = vld [vmem:[#allocation2 + $0x69] sm:$0xff] }
 0x1bf   : > { %4016 = vst.msk [vmem:[#allocation2 + $0xe0] sm:$0xff] %vm3987_vm5, %v3943_v29  ;;  %v3441_v48 = vmax.f32 %v3369_v41, 0.0  ;;  %v3292_v61 = vmax.f32 %v2506_v59, %v3061_v6  ;;  %v13644_v63 = vpop.f32.mrb[106].mxu0  ;;  %13829 = vmatmul.mubr.msk.f32.gmra.mrb[150].mxu0 %vm3987_vm5, %v18939_v18  ;;  %14351 = vmatmul.mubr.msk.f32.gmra.mrb[168].mxu1 %vm3987_vm5, %v4513_v50  ;;  %v13760_v19 = vpop.f32.mrb[106].mxu1  ;;  %v22379_v12 = vld [vmem:[#allocation64_spill] sm:$0xff]  ;;  %v22380_v15 = vld [vmem:[#allocation65_spill] sm:$0xff] }
 0x1c0   : > { %v3946_v13 = vmul.f32 %v22370_v53, %v3442_v0  ;;  %v3372_v28 = vadd.f32 %v18659_v49, %v3293_v22  ;;  %v2509_v32 = vmax.f32 %v22373_v26, %v13644_v63  ;;  %v2285_v35 = vpop.f32.mrb[107].mxu0  ;;  %v3071_v1 = vpop.f32.mrb[107].mxu1  ;;  %13831 = vmatprep.mubr.msk.f32.mxu0 %vm17213_vm4, %v22297_v10  ;;  %14353 = vmatprep.mubr.msk.f32.mxu1 %vm17213_vm4, %v22297_v10  ;;  %v22383_v59 = vld [vmem:[#allocation66_spill] sm:$0xff]  ;;  %v22384_v0 = vld [vmem:[#allocation67_spill] sm:$0xff]  ;;  %v22389_v5 = vld [vmem:[#allocation68_spill] sm:$0xff] }
 0x1c1   : > { %v3945_v2 = vmul.f32 %v22374_v56, %v3441_v48  ;;  %v3371_v58 = vadd.f32 %v18659_v49, %v3292_v61  ;;  %v2508_v27 = vmax.f32 %v22377_v25, %v2285_v35  ;;  %v22381_v6 = vmax.f32 %v22379_v12, %v22380_v15  ;;  %v3733_v48 = vpop.permute.xlu1 %3732  ;;  %v4515_v53 = vld [vmem:[#allocation2 + $0x71] sm:$0xff] }
 0x1c2   : > { %4019 = vst.msk [vmem:[#allocation2 + $0xf8] sm:$0xff] %vm3987_vm5, %v3946_v13  ;;  %v3444_v37 = vmax.f32 %v3372_v28, 0.0  ;;  %v3295_v33 = vmax.f32 %v2509_v32, %v13760_v19  ;;  %v22385_v22 = vmax.f32 %v22383_v59, %v22384_v0  ;;  %v18981_v19 = vld [vmem:[#allocation2 + $0xb8] sm:$0xff]  ;;  %v22386_v35 = vld [vmem:[#allocation69_spill] sm:$0xff] }
 0x1c3   : > { %4018 = vst.msk [vmem:[#allocation2 + $0xf0] sm:$0xff] %vm3987_vm5, %v3945_v2  ;;  %v3443_v36 = vmax.f32 %v3371_v58, 0.0  ;;  %v3294_v38 = vmax.f32 %v2508_v27, %v3071_v1  ;;  %v13647_v51 = vpop.f32.mrb[108].mxu0  ;;  %13832 = vmatmul.mubr.msk.f32.gmra.mrb[152].mxu0 %vm3987_vm5, %v18960_v45  ;;  %14354 = vmatmul.mubr.msk.f32.gmra.mrb[170].mxu1 %vm3987_vm5, %v4514_v8  ;;  %v13763_v9 = vpop.f32.mrb[108].mxu1  ;;  %v22387_v1 = vld [vmem:[#allocation70_spill] sm:$0xff] }
 0x1c4   : > { %v3948_v47 = vmul.f32 %v22378_v39, %v3444_v37  ;;  %v3374_v54 = vadd.f32 %v18659_v49, %v3295_v33  ;;  %v2511_v62 = vmax.f32 %v22381_v6, %v13647_v51  ;;  %v2295_v29 = vpop.f32.mrb[109].mxu0  ;;  %v3081_v41 = vpop.f32.mrb[109].mxu1  ;;  %13834 = vmatprep.mubr.msk.f32.mxu0 %vm17213_vm4, %v22297_v10  ;;  %14356 = vmatprep.mubr.msk.f32.mxu1 %vm17213_vm4, %v22297_v10  ;;  %v22390_v37 = vld [vmem:[#allocation71_spill] sm:$0xff]  ;;  %v22391_v33 = vld [vmem:[#allocation72_spill] sm:$0xff] }
 0x1c5   : > { %v3947_v30 = vmul.f32 %v22382_v14, %v3443_v36  ;;  %v3373_v31 = vadd.f32 %v18659_v49, %v3294_v38  ;;  %v2510_v50 = vmax.f32 %v22385_v22, %v2295_v29  ;;  %v22388_v56 = vmax.f32 %v22386_v35, %v22387_v1  ;;  %v4516_v39 = vld [vmem:[#allocation2 + $0x79] sm:$0xff]  ;;  %v22397_v22 = vld [vmem:[#allocation33_spill] sm:$0xff]  ;;  %v11769_v35 = vld [vmem:[%s22010_s4 + $0x28] sm:$0xff] }
 0x1c6   : > { %4021 = vst.msk [vmem:[#allocation2 + $0x108] sm:$0xff] %vm3987_vm5, %v3948_v47  ;;  %v3446_v61 = vmax.f32 %v3374_v54, 0.0  ;;  %v3297_v63 = vmax.f32 %v2511_v62, %v13763_v9  ;;  %v22392_v8 = vmax.f32 %v22390_v37, %v22391_v33  ;;  %v19001_v9 = vld [vmem:[#allocation2 + $0xc0] sm:$0xff]  ;;  %v22403_v37 = vld [vmem:[#allocation80_spill] sm:$0xff] }
 0x1c7   : > { %4020 = vst.msk [vmem:[#allocation2 + $0x100] sm:$0xff] %vm3987_vm5, %v3947_v30  ;;  %v3445_v13 = vmax.f32 %v3373_v31, 0.0  ;;  %v3296_v28 = vmax.f32 %v2510_v50, %v3081_v41  ;;  %v13650_v24 = vpop.f32.mrb[110].mxu0  ;;  %13835 = vmatmul.mubr.msk.f32.gmra.mrb[154].mxu0 %vm3987_vm5, %v18981_v19  ;;  %14357 = vmatmul.mubr.msk.f32.gmra.mrb[172].mxu1 %vm3987_vm5, %v4515_v53  ;;  %v13766_v40 = vpop.f32.mrb[110].mxu1  ;;  %v22393_v6 = vld [vmem:[#allocation43_spill] sm:$0xff]  ;;  %v22394_v41 = vld [vmem:[#allocation74_spill] sm:$0xff] }
 0x1c8   : > { %v3950_v26 = vmul.f32 %v3733_v48, %v3446_v61  ;;  %v3376_v32 = vadd.f32 %v18659_v49, %v3297_v63  ;;  %v2513_v2 = vmax.f32 %v22388_v56, %v13650_v24  ;;  %v2305_v58 = vpop.f32.mrb[111].mxu0  ;;  %v3091_v43 = vpop.f32.mrb[111].mxu1  ;;  %13837 = vmatprep.mubr.msk.f32.mxu0 %vm17213_vm4, %v22297_v10  ;;  %14359 = vmatprep.mubr.msk.f32.mxu1 %vm17213_vm4, %v22297_v10  ;;  %v22395_v14 = vld [vmem:[#allocation75_spill] sm:$0xff]  ;;  %v22398_v61 = vld [vmem:[#allocation76_spill] sm:$0xff]  ;;  %v22399_v63 = vld [vmem:[#allocation77_spill] sm:$0xff] }
 0x1c9   : > { %v3949_v25 = vmul.f32 %v22389_v5, %v3445_v13  ;;  %v3375_v27 = vadd.f32 %v18659_v49, %v3296_v28  ;;  %v2512_v36 = vmax.f32 %v22392_v8, %v2305_v58  ;;  %v22396_v30 = vmax.f32 %v22394_v41, %v22395_v14  ;;  %v11768_v28 = vld [vmem:[%s22010_s4 + $0x20] sm:$0xff]  ;;  %v19054_v14 = vld [vmem:[#allocation2 + $0xd0] sm:$0xff] }
 0x1ca   : > { %4023 = vst.msk [vmem:[#allocation2 + $0x118] sm:$0xff] %vm3987_vm5, %v3950_v26  ;;  %v3448_v38 = vmax.f32 %v3376_v32, 0.0  ;;  %v3299_v51 = vmax.f32 %v2513_v2, %v13766_v40  ;;  %v22400_v53 = vmax.f32 %v22398_v61, %v22399_v63  ;;  %v19025_v26 = vld [vmem:[#allocation2 + $0xc8] sm:$0xff]  ;;  %v19027_v32 = vld [vmem:[#allocation2 + $0x81] sm:$0x7f]  ;;  %v22411_v63 = vld [vmem:[#allocation85_spill] sm:$0xff] }
 0x1cb   : > { %4022 = vst.msk [vmem:[#allocation2 + $0x110] sm:$0xff] %vm3987_vm5, %v3949_v25  ;;  %v3447_v47 = vmax.f32 %v3375_v27, 0.0  ;;  %v3298_v54 = vmax.f32 %v2512_v36, %v3091_v43  ;;  %v13653_v12 = vpop.f32.mrb[112].mxu0  ;;  %13838 = vmatmul.mubr.msk.f32.gmra.mrb[156].mxu0 %vm3987_vm5, %v19001_v9  ;;  %14360 = vmatmul.mubr.msk.f32.gmra.mrb[174].mxu1 %vm3987_vm5, %v4516_v39  ;;  %v13769_v15 = vpop.f32.mrb[112].mxu1  ;;  %v22401_v43 = vld [vmem:[#allocation63_spill] sm:$0xff]  ;;  %v22410_v61 = vld [vmem:[#allocation84_spill] sm:$0xff] }
 0x1cc   : > { %v3952_v62 = vmul.f32 %v22393_v6, %v3448_v38  ;;  %v3378_v29 = vadd.f32 %v18659_v49, %v3299_v51  ;;  %v2515_v31 = vmax.f32 %v22396_v30, %v13653_v12  ;;  %v2315_v59 = vpop.f32.mrb[113].mxu0  ;;  %v3101_v0 = vpop.f32.mrb[113].mxu1  ;;  %13840 = vmatprep.mubr.msk.f32.mxu0 %vm17213_vm4, %v22297_v10  ;;  %14362 = vmatprep.mubr.msk.f32.mxu1 %vm17213_vm4, %v22297_v10  ;;  %v22402_v27 = vld [vmem:[#allocation79_spill] sm:$0xff]  ;;  %v22405_v51 = vld [vmem:[#allocation53_spill] sm:$0xff]  ;;  %v22407_v12 = vld [vmem:[#allocation82_spill] sm:$0xff] }
 0x1cd   : > { %v3951_v50 = vmul.f32 %v22397_v22, %v3447_v47  ;;  %v3377_v48 = vadd.f32 %v18659_v49, %v3298_v54  ;;  %v2514_v13 = vmax.f32 %v22400_v53, %v2315_v59  ;;  %v22404_v33 = vmax.f32 %v22402_v27, %v22403_v37  ;;  %v22406_v54 = vld [vmem:[#allocation81_spill] sm:$0xff]  ;;  %v22409_v22 = vld [vmem:[#allocation83_spill] sm:$0xff] }
 0x1ce   : > { %4025 = vst.msk [vmem:[#allocation2 + $0x128] sm:$0xff] %vm3987_vm5, %v3952_v62  ;;  %v3450_v24 = vmax.f32 %v3378_v29, 0.0  ;;  %v3301_v40 = vmax.f32 %v2515_v31, %v13769_v15  ;;  %v22408_v15 = vmax.f32 %v22406_v54, %v22407_v12  ;;  %v19051_v62 = vpack.c.bf16 %v11769_v35, %v11768_v28 }
 0x1cf   : > { %4024 = vst.msk [vmem:[#allocation2 + $0x120] sm:$0xff] %vm3987_vm5, %v3951_v50  ;;  %v3449_v1 = vmax.f32 %v3377_v48, 0.0  ;;  %v3300_v56 = vmax.f32 %v2514_v13, %v3101_v0  ;;  %v13656_v2 = vpop.f32.mrb[114].mxu0  ;;  %13841 = vmatmul.mubr.msk.f32.gmra.mrb[158].mxu0 %vm3987_vm5, %v19025_v26  ;;  %14363 = vmatmul.mubr.msk.f32.gmra.mrb[176].mxu1 %vm3987_vm5, %v19027_v32  ;;  %v13772_v58 = vpop.f32.mrb[114].mxu1  ;;  %v22412_v53 = vmax.f32 %v22410_v61, %v22411_v63 }
 0x1d0   : > { %v3954_v5 = vmul.f32 %v22401_v43, %v3450_v24  ;;  %v3380_v25 = vadd.f32 %v18659_v49, %v3301_v40  ;;  %v2517_v8 = vmax.f32 %v22404_v33, %v13656_v2  ;;  %v2325_v36 = vpop.f32.mrb[115].mxu0  ;;  %v3111_v38 = vpop.f32.mrb[115].mxu1  ;;  %13843 = vmatprep.mubr.msk.f32.mxu0 %vm17213_vm4, %v22297_v10  ;;  %14369 = vmatprep.mubr.msk.f32.mxu1 %vm17213_vm4, %v22297_v10  ;;  %v22413_v40 = vld [vmem:[#allocation73_spill] sm:$0xff] }
 0x1d1   : > { %v3953_v39 = vmul.f32 %v22405_v51, %v3449_v1  ;;  %v3379_v47 = vadd.f32 %v18659_v49, %v3300_v56  ;;  %v2516_v6 = vmax.f32 %v22408_v15, %v2325_v36  ;;  %v22414_v1 = vld [vmem:[#allocation86_spill] sm:$0xff]  ;;  %v22415_v56 = vld [vmem:[#allocation87_spill] sm:$0xff] }
 0x1d2   : > { %4027 = vst.msk [vmem:[#allocation2 + $0x138] sm:$0xff] %vm3987_vm5, %v3954_v5  ;;  %v3452_v29 = vmax.f32 %v3380_v25, 0.0  ;;  %v3303_v41 = vmax.f32 %v2517_v8, %v13772_v58  ;;  %v22416_v2 = vmax.f32 %v22414_v1, %v22415_v56  ;;  %v19077_v25 = vld [vmem:[#allocation2 + $0xd8] sm:$0xff]  ;;  %v22417_v36 = vld [vmem:[#allocation103_spill] sm:$0xff] }
 0x1d3   : > { %4026 = vst.msk [vmem:[#allocation2 + $0x130] sm:$0xff] %vm3987_vm5, %v3953_v39  ;;  %v3451_v30 = vmax.f32 %v3379_v47, 0.0  ;;  %v3302_v31 = vmax.f32 %v2516_v6, %v3111_v38  ;;  %v13659_v59 = vpop.f32.mrb[116].mxu0  ;;  %13844 = vmatmul.mubr.msk.f32.gmra.mrb[160].mxu0 %vm3987_vm5, %v19054_v14  ;;  %14370 = vmatmul.mubr.msk.f32.vlgmr.msra.gmra.mrb[144].mxu1 %vm3987_vm5, %v18870_v4  ;;  %v13775_v0 = vpop.f32.mrb[116].mxu1  ;;  %v22418_v39 = vld [vmem:[#allocation89_spill] sm:$0xff]  ;;  %v22419_v47 = vld [vmem:[#allocation90_spill] sm:$0xff] }
 0x1d4   : > { %v3956_v50 = vmul.f32 %v22409_v22, %v3452_v29  ;;  %v3382_v48 = vadd.f32 %v18659_v49, %v3303_v41  ;;  %v2519_v13 = vmax.f32 %v22412_v53, %v13659_v59  ;;  %v2335_v28 = vpop.f32.mrb[117].mxu0  ;;  %v3121_v24 = vpop.f32.mrb[117].mxu1  ;;  %13846 = vmatprep.mubr.msk.f32.mxu0 %vm17213_vm4, %v22297_v10  ;;  %14372 = vmatprep.mubr.msk.f32.mxu1 %vm17213_vm4, %v22297_v10  ;;  %v22421_v29 = vld [vmem:[#allocation93_spill] sm:$0xff] }
 0x1d5   : > { %v3955_v35 = vmul.f32 %v22413_v40, %v3451_v30  ;;  %v3381_v4 = vadd.f32 %v18659_v49, %v3302_v31  ;;  %v2518_v58 = vmax.f32 %v22416_v2, %v2335_v28  ;;  %15870 = vmatpush3.bf16.msra.mxu1 %v19051_v62  ;;  %v22420_v54 = vmax.f32 %v22418_v39, %v22419_v47  ;;  %v22422_v30 = vld [vmem:[#allocation91_spill] sm:$0xff]  ;;  %v22423_v31 = vld [vmem:[#allocation92_spill] sm:$0xff] }
 0x1d6   : > { %4029 = vst.msk [vmem:[#allocation2 + $0x148] sm:$0xff] %vm3987_vm5, %v3956_v50  ;;  %v3454_v43 = vmax.f32 %v3382_v48, 0.0  ;;  %v3305_v5 = vmax.f32 %v2519_v13, %v13775_v0  ;;  %15871 = vmatprep.subr.bf16.mxu1 %v22299_v21  ;;  %v22424_v59 = vmax.f32 %v22422_v30, %v22423_v31  ;;  %v19100_v48 = vld [vmem:[#allocation2 + $0xe0] sm:$0xff] }
 0x1d7   : > { %4028 = vst.msk [vmem:[#allocation2 + $0x140] sm:$0xff] %vm3987_vm5, %v3955_v35  ;;  %v3453_v27 = vmax.f32 %v3381_v4, 0.0  ;;  %v3304_v37 = vmax.f32 %v2518_v58, %v3121_v24  ;;  %v13662_v33 = vpop.f32.mrb[118].mxu0  ;;  %13847 = vmatmul.mubr.msk.f32.gmra.mrb[162].mxu0 %vm3987_vm5, %v19077_v25  ;;  %14373 = vmatmul.mubr.msk.f32.gmra.mrb[146].mxu1 %vm3987_vm5, %v18895_v23  ;;  %v13778_v8 = vpop.f32.mrb[118].mxu1  ;;  %v22425_v28 = vld [vmem:[#allocation123_spill] sm:$0xff]  ;;  %v22426_v35 = vld [vmem:[#allocation94_spill] sm:$0xff] }
 0x1d8   : > { %v3958_v38 = vmul.f32 %v22417_v36, %v3454_v43  ;;  %v3384_v51 = vadd.f32 %v18659_v49, %v3305_v5  ;;  %v2521_v12 = vmax.f32 %v22420_v54, %v13662_v33  ;;  %v2345_v15 = vpop.f32.mrb[119].mxu0  ;;  %v3131_v6 = vpop.f32.mrb[119].mxu1  ;;  %13849 = vmatprep.mubr.msk.f32.mxu0 %vm17213_vm4, %v22297_v10  ;;  %14375 = vmatprep.mubr.msk.f32.mxu1 %vm17213_vm4, %v22297_v10  ;;  %v22427_v4 = vld [vmem:[#allocation95_spill] sm:$0xff]  ;;  %v22429_v43 = vld [vmem:[#allocation113_spill] sm:$0xff] }
 0x1d9   : > { %v3957_v41 = vmul.f32 %v22421_v29, %v3453_v27  ;;  %v3383_v23 = vadd.f32 %v18659_v49, %v3304_v37  ;;  %v2520_v0 = vmax.f32 %v22424_v59, %v2345_v15  ;;  %v22428_v1 = vmax.f32 %v22426_v35, %v22427_v4  ;;  %v22430_v27 = vld [vmem:[#allocation96_spill] sm:$0xff]  ;;  %v22431_v37 = vld [vmem:[#allocation97_spill] sm:$0xff]  ;;  %v22433_v15 = vld [vmem:[#allocation143_spill] sm:$0xff] }
 0x1da   : > { %4031 = vst.msk [vmem:[#allocation2 + $0x158] sm:$0xff] %vm3987_vm5, %v3958_v38  ;;  %v3456_v22 = vmax.f32 %v3384_v51, 0.0  ;;  %v3307_v50 = vmax.f32 %v2521_v12, %v13778_v8  ;;  %v22432_v33 = vmax.f32 %v22430_v27, %v22431_v37  ;;  %v19122_v51 = vld [vmem:[#allocation2 + $0xe8] sm:$0xff] }
 0x1db   : > { %4030 = vst.msk [vmem:[#allocation2 + $0x150] sm:$0xff] %vm3987_vm5, %v3957_v41  ;;  %v3455_v61 = vmax.f32 %v3383_v23, 0.0  ;;  %v3306_v63 = vmax.f32 %v2520_v0, %v3131_v6  ;;  %v13665_v53 = vpop.f32.mrb[120].mxu0  ;;  %13850 = vmatmul.mubr.msk.f32.gmra.mrb[164].mxu0 %vm3987_vm5, %v19100_v48  ;;  %14376 = vmatmul.mubr.msk.f32.gmra.mrb[148].mxu1 %vm3987_vm5, %v18916_v60  ;;  %v13781_v13 = vpop.f32.mrb[120].mxu1  ;;  %v22434_v41 = vld [vmem:[#allocation99_spill] sm:$0xff]  ;;  %v22435_v23 = vld [vmem:[#allocation100_spill] sm:$0xff] }
 0x1dc   : > { %v3960_v24 = vmul.f32 %v22425_v28, %v3456_v22  ;;  %v3386_v40 = vadd.f32 %v18659_v49, %v3307_v50  ;;  %v2523_v56 = vmax.f32 %v22428_v1, %v13665_v53  ;;  %v2355_v2 = vpop.f32.mrb[121].mxu0  ;;  %v3141_v58 = vpop.f32.mrb[121].mxu1  ;;  %13852 = vmatprep.mubr.msk.f32.mxu0 %vm17213_vm4, %v22297_v10  ;;  %14378 = vmatprep.mubr.msk.f32.mxu1 %vm17213_vm4, %v22297_v10  ;;  %v22437_v22 = vld [vmem:[#allocation133_spill] sm:$0xff] }
 0x1dd   : > { %v3959_v5 = vmul.f32 %v22429_v43, %v3455_v61  ;;  %v3385_v60 = vadd.f32 %v18659_v49, %v3306_v63  ;;  %v2522_v8 = vmax.f32 %v22432_v33, %v2355_v2  ;;  %v22436_v30 = vmax.f32 %v22434_v41, %v22435_v23  ;;  %v22438_v61 = vld [vmem:[#allocation101_spill] sm:$0xff]  ;;  %v22439_v63 = vld [vmem:[#allocation102_spill] sm:$0xff]  ;;  %v22441_v43 = vld [vmem:[#allocation104_spill] sm:$0xff] }
 0x1de   : > { %4033 = vst.msk [vmem:[#allocation2 + $0x168] sm:$0xff] %vm3987_vm5, %v3960_v24  ;;  %v3458_v36 = vmax.f32 %v3386_v40, 0.0  ;;  %v3309_v38 = vmax.f32 %v2523_v56, %v13781_v13  ;;  %v22440_v53 = vmax.f32 %v22438_v61, %v22439_v63  ;;  %v19149_v40 = vld [vmem:[#allocation2 + $0xf0] sm:$0xff] }
 0x1df   : > { %4032 = vst.msk [vmem:[#allocation2 + $0x160] sm:$0xff] %vm3987_vm5, %v3959_v5  ;;  %v3457_v39 = vmax.f32 %v3385_v60, 0.0  ;;  %v3308_v47 = vmax.f32 %v2522_v8, %v3141_v58  ;;  %v13668_v54 = vpop.f32.mrb[122].mxu0  ;;  %13853 = vmatmul.mubr.msk.f32.gmra.mrb[166].mxu0 %vm3987_vm5, %v19122_v51  ;;  %14379 = vmatmul.mubr.msk.f32.gmra.mrb[150].mxu1 %vm3987_vm5, %v18939_v18  ;;  %v13784_v12 = vpop.f32.mrb[122].mxu1  ;;  %v19142_v18 = vld [vmem:[%s22009_s3] ss:$0 sm:$0xff] }
 0x1e0   : > { %v3962_v6 = vmul.f32 %v22433_v15, %v3458_v36  ;;  %v3388_v29 = vadd.f32 %v18659_v49, %v3309_v38  ;;  %v2525_v31 = vmax.f32 %v22436_v30, %v13668_v54  ;;  %v2365_v59 = vpop.f32.mrb[123].mxu0  ;;  %v3151_v0 = vpop.f32.mrb[123].mxu1  ;;  %13855 = vmatprep.mubr.msk.f32.mxu0 %vm17213_vm4, %v22297_v10  ;;  %14381 = vmatprep.mubr.msk.f32.mxu1 %vm17213_vm4, %v22297_v10  ;;  %v22442_v5 = vld [vmem:[#allocation105_spill] sm:$0xff]  ;;  %v22445_v38 = vld [vmem:[#allocation106_spill] sm:$0xff] }
 0x1e1   : > { %v3961_v50 = vmul.f32 %v22437_v22, %v3457_v39  ;;  %v3387_v49 = vadd.f32 %v19142_v18, %v3308_v47  ;;  %v2524_v13 = vmax.f32 %v22440_v53, %v2365_v59  ;;  %v22443_v60 = vmax.f32 %v22441_v43, %v22442_v5  ;;  %v22444_v8 = vld [vmem:[#allocation153_spill] sm:$0xff]  ;;  %v19171_v15 = vld [vmem:[#allocation2 + $0xf8] sm:$0xff]  ;;  %v22451_v53 = vld [vmem:[#allocation111_spill] sm:$0xff] }
 0x1e2   : > { %4035 = vst.msk [vmem:[#allocation2 + $0x178] sm:$0xff] %vm3987_vm5, %v3962_v6  ;;  %v3460_v28 = vmax.f32 %v3388_v29, 0.0  ;;  %v3311_v24 = vmax.f32 %v2525_v31, %v13784_v12  ;;  %v22448_v59 = vld [vmem:[#allocation109_spill] sm:$0xff] }
 0x1e3   : > { %4034 = vst.msk [vmem:[#allocation2 + $0x170] sm:$0xff] %vm3987_vm5, %v3961_v50  ;;  %v3459_v35 = vmax.f32 %v3387_v49, 0.0  ;;  %v3310_v4 = vmax.f32 %v2524_v13, %v3151_v0  ;;  %v13671_v1 = vpop.f32.mrb[124].mxu0  ;;  %13856 = vmatmul.mubr.msk.f32.gmra.mrb[168].mxu0 %vm3987_vm5, %v19149_v40  ;;  %14382 = vmatmul.mubr.msk.f32.gmra.mrb[152].mxu1 %vm3987_vm5, %v18960_v45  ;;  %v13787_v56 = vpop.f32.mrb[124].mxu1  ;;  %v22449_v0 = vld [vmem:[#allocation110_spill] sm:$0xff] }
 0x1e4   : > { %v3964_v2 = vmul.f32 %v18671_v7, %v3460_v28  ;;  %v3390_v58 = vadd.f32 %v19142_v18, %v3311_v24  ;;  %v2527_v27 = vmax.f32 %v22443_v60, %v13671_v1  ;;  %v2375_v37 = vpop.f32.mrb[125].mxu0  ;;  %v3161_v33 = vpop.f32.mrb[125].mxu1  ;;  %13858 = vmatprep.mubr.msk.f32.mxu0 %vm17213_vm4, %v22297_v10  ;;  %14384 = vmatprep.mubr.msk.f32.mxu1 %vm17213_vm4, %v22297_v10  ;;  %v22446_v7 = vld [vmem:[#allocation107_spill] sm:$0xff]  ;;  %v22454_v60 = vld [vmem:[#allocation114_spill] sm:$0xff] }
 0x1e5   : > { %v3963_v36 = vmul.f32 %v22444_v8, %v3459_v35  ;;  %v3389_v45 = vadd.f32 %v19142_v18, %v3310_v4  ;;  %v22447_v39 = vmax.f32 %v22445_v38, %v22446_v7  ;;  %v22450_v22 = vmax.f32 %v22448_v59, %v22449_v0  ;;  %v3823_v24 = vpop.permute.xlu0 %3822  ;;  %v19193_v1 = vld [vmem:[#allocation2 + $0x100] sm:$0xff]  ;;  %v22457_v38 = vld [vmem:[#allocation116_spill] sm:$0xff]  ;;  %v22458_v7 = vld [vmem:[#allocation117_spill] sm:$0xff] }
 0x1e6   : > { %4037 = vst.msk [vmem:[#allocation2 + $0x188] sm:$0xff] %vm3987_vm5, %v3964_v2  ;;  %v3462_v54 = vmax.f32 %v3390_v58, 0.0  ;;  %v3313_v12 = vmax.f32 %v2527_v27, %v13787_v56  ;;  %v22455_v27 = vld [vmem:[#allocation115_spill] sm:$0xff] }
 0x1e7   : > { %v2526_v47 = vmax.f32 %v22447_v39, %v2375_v37  ;;  %4036 = vst.msk [vmem:[#allocation2 + $0x180] sm:$0xff] %vm3987_vm5, %v3963_v36  ;;  %v3461_v6 = vmax.f32 %v3389_v45, 0.0  ;;  %v13674_v41 = vpop.f32.mrb[126].mxu0  ;;  %13859 = vmatmul.mubr.msk.f32.gmra.mrb[170].mxu0 %vm3987_vm5, %v19171_v15  ;;  %14385 = vmatmul.mubr.msk.f32.gmra.mrb[154].mxu1 %vm3987_vm5, %v18981_v19  ;;  %v13790_v23 = vpop.f32.mrb[126].mxu1  ;;  %v22456_v37 = vmax.f32 %v22454_v60, %v22455_v27  ;;  %v22461_v0 = vld [vmem:[#allocation119_spill] sm:$0xff] }
 0x1e8   : > { %v3966_v30 = vmul.f32 %v18739_v52, %v3462_v54  ;;  %v3392_v31 = vadd.f32 %v19142_v18, %v3313_v12  ;;  %v2529_v50 = vmax.f32 %v22450_v22, %v13674_v41  ;;  %v2385_v49 = vpop.f32.mrb[127].mxu0  ;;  %v3171_v61 = vpop.f32.mrb[127].mxu1  ;;  %13861 = vmatprep.mubr.msk.f32.mxu0 %vm17213_vm4, %v22297_v10  ;;  %14387 = vmatprep.mubr.msk.f32.mxu1 %vm17213_vm4, %v22297_v10  ;;  %v22452_v52 = vld [vmem:[#allocation112_spill] sm:$0xff] }
 0x1e9   : > { %v3312_v29 = vmax.f32 %v2526_v47, %v3161_v33  ;;  %v3965_v63 = vmul.f32 %v18704_v20, %v3461_v6  ;;  %v22453_v13 = vmax.f32 %v22451_v53, %v22452_v52  ;;  %v22459_v39 = vmax.f32 %v22457_v38, %v22458_v7  ;;  %v19214_v6 = vld [vmem:[#allocation2 + $0x108] sm:$0xff]  ;;  %v22465_v52 = vld [vmem:[#allocation121_spill] sm:$0xff]  ;;  %v22472_v38 = vld [vmem:[#allocation98_spill] sm:$0xff] }
 0x1ea   : > { %4039 = vst.msk [vmem:[#allocation2 + $0x198] sm:$0xff] %vm3987_vm5, %v3966_v30  ;;  %v3464_v35 = vmax.f32 %v3392_v31, 0.0  ;;  %v3315_v4 = vmax.f32 %v2529_v50, %v13790_v23  ;;  %v22460_v30 = vld [vmem:[#allocation88_spill] sm:$0xff] }
 0x1eb   : > { %v3391_v19 = vadd.f32 %v19142_v18, %v3312_v29  ;;  %v2528_v28 = vmax.f32 %v22453_v13, %v2385_v49  ;;  %4038 = vst.msk [vmem:[#allocation2 + $0x190] sm:$0xff] %vm3987_vm5, %v3965_v63  ;;  %v13677_v58 = vpop.f32.mrb[128].mxu0  ;;  %13862 = vmatmul.mubr.msk.f32.gmra.mrb[172].mxu0 %vm3987_vm5, %v19193_v1  ;;  %14388 = vmatmul.mubr.msk.f32.gmra.mrb[156].mxu1 %vm3987_vm5, %v19001_v9  ;;  %v13793_v20 = vpop.f32.mrb[128].mxu1  ;;  %v22462_v22 = vld [vmem:[#allocation120_spill] sm:$0xff]  ;;  %v22466_v13 = vld [vmem:[#allocation122_spill] sm:$0xff] }
 0x1ec   : > { %v3968_v43 = vmul.f32 %v3823_v24, %v3464_v35  ;;  %v3394_v5 = vadd.f32 %v19142_v18, %v3315_v4  ;;  %v2531_v33 = vmax.f32 %v22456_v37, %v13677_v58  ;;  %v2395_v8 = vpop.f32.mrb[129].mxu0  ;;  %v3181_v36 = vpop.f32.mrb[129].mxu1  ;;  %13864 = vmatprep.mubr.msk.f32.mxu0 %vm17213_vm4, %v22297_v10  ;;  %14390 = vmatprep.mubr.msk.f32.mxu1 %vm17213_vm4, %v22297_v10  ;;  %v22469_v37 = vld [vmem:[#allocation124_spill] sm:$0xff] }
 0x1ed   : > { %v3463_v56 = vmax.f32 %v3391_v19, 0.0  ;;  %v3314_v2 = vmax.f32 %v2528_v28, %v3171_v61  ;;  %v2530_v47 = vmax.f32 %v22459_v39, %v2395_v8  ;;  %v22463_v50 = vmax.f32 %v22461_v0, %v22462_v22  ;;  %v22464_v19 = vld [vmem:[#allocation78_spill] sm:$0xff]  ;;  %v22476_v0 = vld [vmem:[#allocation128_spill] sm:$0xff] }
 0x1ee   : > { %4041 = vst.msk [vmem:[#allocation2 + $0x1a8] sm:$0xff] %vm3987_vm5, %v3968_v43  ;;  %v3466_v54 = vmax.f32 %v3394_v5, 0.0  ;;  %v3317_v12 = vmax.f32 %v2531_v33, %v13793_v20  ;;  %v22467_v28 = vmax.f32 %v22465_v52, %v22466_v13  ;;  %v22468_v5 = vld [vmem:[#allocation108_spill] sm:$0xff]  ;;  %v22470_v33 = vld [vmem:[#allocation125_spill] sm:$0xff]  ;;  %v22473_v39 = vld [vmem:[#allocation126_spill] sm:$0xff] }
 0x1ef   : > { %v3967_v45 = vmul.f32 %v18773_v17, %v3463_v56  ;;  %v3393_v9 = vadd.f32 %v19142_v18, %v3314_v2  ;;  %v3316_v41 = vmax.f32 %v2530_v47, %v3181_v36  ;;  %v13680_v23 = vpop.f32.mrb[130].mxu0  ;;  %13865 = vmatmul.mubr.msk.f32.gmra.mrb[174].mxu0 %vm3987_vm5, %v19214_v6  ;;  %14391 = vmatmul.mubr.msk.f32.gmra.mrb[158].mxu1 %vm3987_vm5, %v19025_v26  ;;  %v13796_v17 = vpop.f32.mrb[130].mxu1  ;;  %v19236_v56 = vld [vmem:[#allocation2 + $0x110] sm:$0x7f]  ;;  %v22474_v47 = vld [vmem:[#allocation127_spill] sm:$0xff]  ;;  %v22480_v52 = vld [vmem:[#allocation118_spill] sm:$0xff] }
 0x1f0   : > { %v3970_v31 = vmul.f32 %v22460_v30, %v3466_v54  ;;  %v3396_v59 = vadd.f32 %v19142_v18, %v3317_v12  ;;  %v2533_v49 = vmax.f32 %v22463_v50, %v13680_v23  ;;  %v2405_v61 = vpop.f32.mrb[131].mxu0  ;;  %v3191_v63 = vpop.f32.mrb[131].mxu1  ;;  %13867 = vmatprep.mubr.msk.f32.mxu0 %vm17213_vm4, %v22297_v10  ;;  %14393 = vmatprep.mubr.msk.f32.mxu1 %vm17213_vm4, %v22297_v10  ;;  %v4060_v23 = vld [vmem:[#allocation2] sm:$0xff] }
 0x1f1   : > { %4040 = vst.msk [vmem:[#allocation2 + $0x1a0] sm:$0xff] %vm3987_vm5, %v3967_v45  ;;  %v3465_v29 = vmax.f32 %v3393_v9, 0.0  ;;  %v3395_v26 = vadd.f32 %v19142_v18, %v3316_v41  ;;  %v2532_v24 = vmax.f32 %v22467_v28, %v2405_v61  ;;  %v22471_v8 = vmax.f32 %v22469_v37, %v22470_v33  ;;  %v22478_v61 = vld [vmem:[#allocation130_spill] sm:$0xff]  ;;  %v22481_v28 = vld [vmem:[#allocation131_spill] sm:$0xff]  ;;  %v22484_v37 = vld [vmem:[#allocation148_spill] sm:$0xff] }
 0x1f2   : > { %4043 = vst.msk [vmem:[#allocation2 + $0x1b8] sm:$0xff] %vm3987_vm5, %v3970_v31  ;;  %v3468_v35 = vmax.f32 %v3396_v59, 0.0  ;;  %v3319_v4 = vmax.f32 %v2533_v49, %v13796_v17  ;;  %v22475_v54 = vmax.f32 %v22473_v39, %v22474_v47  ;;  %v22477_v49 = vld [vmem:[#allocation129_spill] sm:$0xff]  ;;  %v22488_v39 = vld [vmem:[#allocation138_spill] sm:$0xff] }
 0x1f3   : > { %v3969_v53 = vmul.f32 %v22464_v19, %v3465_v29  ;;  %v3467_v2 = vmax.f32 %v3395_v26, 0.0  ;;  %v3318_v58 = vmax.f32 %v2532_v24, %v3191_v63  ;;  %v13683_v20 = vpop.f32.mrb[132].mxu0  ;;  %13868 = vmatmul.mubr.msk.f32.gmra.mrb[176].mxu0 %vm3987_vm5, %v19236_v56  ;;  %14394 = vmatmul.mubr.msk.f32.gmra.mrb[160].mxu1 %vm3987_vm5, %v19054_v14  ;;  %v13799_v43 = vpop.f32.mrb[132].mxu1  ;;  %v22479_v63 = vmax.f32 %v22477_v49, %v22478_v61  ;;  %v22482_v24 = vld [vmem:[#allocation132_spill] sm:$0xff]  ;;  %v22492_v61 = vld [vmem:[#allocation139_spill] sm:$0xff] }
 0x1f4   : > { %v3972_v60 = vmul.f32 %v22468_v5, %v3468_v35  ;;  %v3398_v27 = vadd.f32 %v19142_v18, %v3319_v4  ;;  %v2535_v36 = vmax.f32 %v22471_v8, %v13683_v20  ;;  %v2415_v45 = vpop.f32.mrb[133].mxu0  ;;  %v3201_v9 = vpop.f32.mrb[133].mxu1  ;;  %13874 = vmatprep.mubr.msk.f32.mxu0 %vm17213_vm4, %v22297_v10  ;;  %14396 = vmatprep.mubr.msk.f32.mxu1 %vm17213_vm4, %v22297_v10  ;;  %v4061_v20 = vld [vmem:[#allocation2 + $0x8] sm:$0xff] }
 0x1f5   : > { %4042 = vst.msk [vmem:[#allocation2 + $0x1b0] sm:$0xff] %vm3987_vm5, %v3969_v53  ;;  %v3971_v7 = vmul.f32 %v22472_v38, %v3467_v2  ;;  %v3397_v14 = vadd.f32 %v19142_v18, %v3318_v58  ;;  %v2534_v12 = vmax.f32 %v22475_v54, %v2415_v45  ;;  %v22483_v35 = vmax.f32 %v22481_v28, %v22482_v24  ;;  %v22486_v45 = vld [vmem:[#allocation135_spill] sm:$0xff]  ;;  %v22489_v54 = vld [vmem:[#allocation136_spill] sm:$0xff]  ;;  %v22496_v28 = vld [vmem:[#allocation141_spill] sm:$0xff] }
 0x1f6   : > { %4045 = vst.msk [vmem:[#allocation2 + $0x1c8] sm:$0xff] %vm3987_vm5, %v3972_v60  ;;  %v3470_v29 = vmax.f32 %v3398_v27, 0.0  ;;  %v3321_v41 = vmax.f32 %v2535_v36, %v13799_v43  ;;  %v22485_v36 = vld [vmem:[#allocation134_spill] sm:$0xff] }
 0x1f7   : > { %4044 = vst.msk [vmem:[#allocation2 + $0x1c0] sm:$0xff] %vm3987_vm5, %v3971_v7  ;;  %v3469_v17 = vmax.f32 %v3397_v14, 0.0  ;;  %v3320_v30 = vmax.f32 %v2534_v12, %v3201_v9  ;;  %v13686_v31 = vpop.f32.mrb[134].mxu0  ;;  %13875 = vmatmul.mubr.msk.f32.vlgmr.msra.gmra.mrb[144].mxu0 %vm3987_vm5, %v4060_v23  ;;  %14397 = vmatmul.mubr.msk.f32.gmra.mrb[162].mxu1 %vm3987_vm5, %v19077_v25  ;;  %v13802_v59 = vpop.f32.mrb[134].mxu1  ;;  %v22487_v9 = vmax.f32 %v22485_v36, %v22486_v45  ;;  %v22490_v12 = vld [vmem:[#allocation137_spill] sm:$0xff] }
 0x1f8   : > { %v3974_v22 = vmul.f32 %v22476_v0, %v3470_v29  ;;  %v3400_v50 = vadd.f32 %v19142_v18, %v3321_v41  ;;  %v2537_v19 = vmax.f32 %v22479_v63, %v13686_v31  ;;  %v2425_v53 = vpop.f32.mrb[135].mxu0  ;;  %15843 = vmatpush3.bf16.msra.mxu0 %v19051_v62  ;;  %v3211_v26 = vpop.f32.mrb[135].mxu1  ;;  %13877 = vmatprep.mubr.msk.f32.mxu0 %vm17213_vm4, %v22297_v10  ;;  %v22493_v63 = vld [vmem:[#allocation140_spill] sm:$0xff] }
 0x1f9   : > { %v3973_v13 = vmul.f32 %v22480_v52, %v3469_v17  ;;  %v3399_v25 = vadd.f32 %v19142_v18, %v3320_v30  ;;  %v2536_v4 = vmax.f32 %v22483_v35, %v2425_v53  ;;  %14399 = vmatprep.mubr.msk.f32.mxu1 %vm17213_vm4, %v22297_v10  ;;  %15844 = vmatprep.subr.bf16.mxu0 %v22299_v21  ;;  %v4062_v30 = vld [vmem:[#allocation2 + $0x10] sm:$0xff] }
 0x1fa   : > { %4047 = vst.msk [vmem:[#allocation2 + $0x1d8] sm:$0xff] %vm3987_vm5, %v3974_v22  ;;  %v3472_v2 = vmax.f32 %v3400_v50, 0.0  ;;  %v3323_v58 = vmax.f32 %v2537_v19, %v13802_v59  ;;  %v22491_v29 = vmax.f32 %v22489_v54, %v22490_v12  ;;  %v22494_v19 = vmax.f32 %v22492_v61, %v22493_v63  ;;  %v4064_v12 = vld [vmem:[#allocation2 + $0x20] sm:$0xff] }
 0x1fb   : > { %4046 = vst.msk [vmem:[#allocation2 + $0x1d0] sm:$0xff] %vm3987_vm5, %v3973_v13  ;;  %v3471_v43 = vmax.f32 %v3399_v25, 0.0  ;;  %v3322_v5 = vmax.f32 %v2536_v4, %v3211_v26  ;;  %v13689_v60 = vpop.f32.mrb[136].mxu0  ;;  %13878 = vmatmul.mubr.msk.f32.gmra.mrb[146].mxu0 %vm3987_vm5, %v4061_v20  ;;  %14400 = vmatmul.mubr.msk.f32.gmra.mrb[164].mxu1 %vm3987_vm5, %v19100_v48  ;;  %v13805_v27 = vpop.f32.mrb[136].mxu1  ;;  %v22495_v13 = vld [vmem:[#allocation154_spill] sm:$0xff]  ;;  %v22508_v63 = vld [vmem:[#allocation151_spill] sm:$0xff] }
 0x1fc   : > { %v3976_v33 = vmul.f32 %v22484_v37, %v3472_v2  ;;  %v3402_v8 = vadd.f32 %v19142_v18, %v3323_v58  ;;  %v2539_v38 = vmax.f32 %v22487_v9, %v13689_v60  ;;  %v2435_v7 = vpop.f32.mrb[137].mxu0  ;;  %v3221_v14 = vpop.f32.mrb[137].mxu1  ;;  %13880 = vmatprep.mubr.msk.f32.mxu0 %vm17213_vm4, %v22297_v10  ;;  %14402 = vmatprep.mubr.msk.f32.mxu1 %vm17213_vm4, %v22297_v10  ;;  %v4063_v58 = vld [vmem:[#allocation2 + $0x18] sm:$0xff] }
 0x1fd   : > { %v3975_v47 = vmul.f32 %v22488_v39, %v3471_v43  ;;  %v3401_v48 = vadd.f32 %v19142_v18, %v3322_v5  ;;  %v2538_v41 = vmax.f32 %v22491_v29, %v2435_v7 }
 0x1fe   : > { %4049 = vst.msk [vmem:[#allocation2 + $0x1e8] sm:$0xff] %vm3987_vm5, %v3976_v33  ;;  %v3474_v23 = vmax.f32 %v3402_v8, 0.0  ;;  %v3325_v17 = vmax.f32 %v2539_v38, %v13805_v27  ;;  %v22499_v33 = vld [vmem:[#allocation144_spill] sm:$0xff]  ;;  %v22500_v8 = vld [vmem:[#allocation145_spill] sm:$0xff] }
 0x1ff   : > { %4048 = vst.msk [vmem:[#allocation2 + $0x1e0] sm:$0xff] %vm3987_vm5, %v3975_v47  ;;  %v3473_v31 = vmax.f32 %v3401_v48, 0.0  ;;  %v3324_v59 = vmax.f32 %v2538_v41, %v3221_v14  ;;  %v13692_v0 = vpop.f32.mrb[138].mxu0  ;;  %13881 = vmatmul.mubr.msk.f32.gmra.mrb[148].mxu0 %vm3987_vm5, %v4062_v30  ;;  %14403 = vmatmul.mubr.msk.f32.gmra.mrb[166].mxu1 %vm3987_vm5, %v19122_v51  ;;  %v13808_v22 = vpop.f32.mrb[138].mxu1  ;;  %v22501_v36 = vmax.f32 %v22499_v33, %v22500_v8  ;;  %v22502_v14 = vld [vmem:[#allocation146_spill] sm:$0xff]  ;;  %v6470_v33 = vld [vmem:[#allocation2 + $0xa9] sm:$0xff] }
 0x200   : > { %v3978_v50 = vmul.f32 %v18684_v3, %v3474_v23  ;;  %v3404_v49 = vadd.f32 %v19142_v18, %v3325_v17  ;;  %v2541_v53 = vmax.f32 %v22494_v19, %v13692_v0  ;;  %v2445_v26 = vpop.f32.mrb[139].mxu0  ;;  %v3231_v52 = vpop.f32.mrb[139].mxu1  ;;  %13883 = vmatprep.mubr.msk.f32.mxu0 %vm17213_vm4, %v22297_v10  ;;  %14405 = vmatprep.mubr.msk.f32.mxu1 %vm17213_vm4, %v22297_v10  ;;  %v22497_v3 = vld [vmem:[#allocation142_spill] sm:$0xff]  ;;  %v19441_v8 = vld [vmem:[#allocation2 + $0x60] sm:$0xff] }
 0x201   : > { %v3977_v25 = vmul.f32 %v22495_v13, %v3473_v31  ;;  %v3403_v51 = vadd.f32 %v19142_v18, %v3324_v59  ;;  %v22498_v24 = vmax.f32 %v22496_v28, %v22497_v3  ;;  %v22505_v31 = vld [vmem:[#allocation149_spill] sm:$0xff]  ;;  %v22506_v59 = vld [vmem:[#allocation150_spill] sm:$0xff]  ;;  %v19355_v13 = vld [vmem:[#allocation2 + $0x28] sm:$0xff] }
 0x202   : > { %4051 = vst.msk [vmem:[#allocation2 + $0x1f8] sm:$0xff] %vm3987_vm5, %v3978_v50  ;;  %v3476_v4 = vmax.f32 %v3404_v49, 0.0  ;;  %v3327_v2 = vmax.f32 %v2541_v53, %v13808_v22  ;;  %v22507_v0 = vmax.f32 %v22505_v31, %v22506_v59  ;;  %v6481_v31 = vld [vmem:[#allocation2 + $0x101] sm:$0xff]  ;;  %v17054_v59 = vld [vmem:[#allocation2 + $0x29] sm:$0xff] }
 0x203   : > { %v2540_v35 = vmax.f32 %v22498_v24, %v2445_v26  ;;  %4050 = vst.msk [vmem:[#allocation2 + $0x1f0] sm:$0xff] %vm3987_vm5, %v3977_v25  ;;  %v3475_v20 = vmax.f32 %v3403_v51, 0.0  ;;  %v13695_v5 = vpop.f32.mrb[140].mxu0  ;;  %13884 = vmatmul.mubr.msk.f32.gmra.mrb[150].mxu0 %vm3987_vm5, %v4063_v58  ;;  %14406 = vmatmul.mubr.msk.f32.gmra.mrb[168].mxu1 %vm3987_vm5, %v19149_v40  ;;  %v13811_v60 = vpop.f32.mrb[140].mxu1  ;;  %v11787_v58 = vld [vmem:[%s22010_s4 + $0x30] sm:$0xff] }
 0x204   : > { %v3980_v27 = vmul.f32 %v18755_v57, %v3476_v4  ;;  %v3406_v37 = vadd.f32 %v19142_v18, %v3327_v2  ;;  %v2543_v45 = vmax.f32 %v22501_v36, %v13695_v5  ;;  %v2455_v9 = vpop.f32.mrb[141].mxu0  ;;  %v3241_v38 = vpop.f32.mrb[141].mxu1  ;;  %13886 = vmatprep.mubr.msk.f32.mxu0 %vm17213_vm4, %v22297_v10  ;;  %14408 = vmatprep.mubr.msk.f32.mxu1 %vm17213_vm4, %v22297_v10  ;;  %v22503_v57 = vld [vmem:[#allocation147_spill] sm:$0xff]  ;;  %v19371_v4 = vld [vmem:[#allocation2 + $0x30] sm:$0xff] }
 0x205   : > { %v3326_v43 = vmax.f32 %v2540_v35, %v3231_v52  ;;  %v3979_v7 = vmul.f32 %v18720_v34, %v3475_v20  ;;  %v22504_v39 = vmax.f32 %v22502_v14, %v22503_v57  ;;  %v19403_v20 = vld [vmem:[#allocation2 + $0x40] sm:$0xff]  ;;  %v6471_v36 = vld [vmem:[#allocation2 + $0xb1] sm:$0xff]  ;;  %v6474_v14 = vld [vmem:[#allocation2 + $0xc9] sm:$0xff] }
 0x206   : > { %4053 = vst.msk [vmem:[#allocation2 + $0x208] sm:$0xff] %vm3987_vm5, %v3980_v27  ;;  %v3478_v48 = vmax.f32 %v3406_v37, 0.0  ;;  %v3329_v54 = vmax.f32 %v2543_v45, %v13811_v60  ;;  %v6468_v5 = vld [vmem:[#allocation2 + $0x99] sm:$0xff]  ;;  %v19423_v60 = vld [vmem:[#allocation2 + $0x50] sm:$0xff]  ;;  %v6469_v27 = vld [vmem:[#allocation2 + $0xa1] sm:$0xff] }
 0x207   : > { %v3405_v40 = vadd.f32 %v19142_v18, %v3326_v43  ;;  %v2542_v47 = vmax.f32 %v22504_v39, %v2455_v9  ;;  %4052 = vst.msk [vmem:[#allocation2 + $0x200] sm:$0xff] %vm3987_vm5, %v3979_v7  ;;  %v13698_v23 = vpop.f32.mrb[142].mxu0  ;;  %13887 = vmatmul.mubr.msk.f32.gmra.mrb[152].mxu0 %vm3987_vm5, %v4064_v12  ;;  %14409 = vmatmul.mubr.msk.f32.gmra.mrb[170].mxu1 %vm3987_vm5, %v19171_v15  ;;  %v13814_v34 = vpop.f32.mrb[142].mxu1  ;;  %v6467_v43 = vld [vmem:[#allocation2 + $0x91] sm:$0xff]  ;;  %v19450_v45 = vld [vmem:[#allocation2 + $0x68] sm:$0xff]  ;;  %v6472_v9 = vld [vmem:[#allocation2 + $0xb9] sm:$0xff] }
 0x208   : > { %v3982_v17 = vmul.f32 %v18820_v46, %v3478_v48  ;;  %v3408_v30 = vadd.f32 %v19142_v18, %v3329_v54  ;;  %v2545_v22 = vmax.f32 %v22507_v0, %v13698_v23  ;;  %v2465_v50 = vpop.f32.mrb[143].mxu0  ;;  %v3251_v49 = vpop.f32.mrb[143].mxu1  ;;  %13889 = vmatprep.mubr.msk.f32.mxu0 %vm17213_vm4, %v22297_v10  ;;  %14411 = vmatprep.mubr.msk.f32.mxu1 %vm17213_vm4, %v22297_v10  ;;  %v22509_v46 = vld [vmem:[#allocation152_spill] sm:$0xff]  ;;  %v19432_v37 = vld [vmem:[#allocation2 + $0x58] sm:$0xff]  ;;  %v4076_v57 = vld [vmem:[#allocation2 + $0x80] sm:$0x7f] }
 0x209   : > { %v3477_v29 = vmax.f32 %v3405_v40, 0.0  ;;  %v3328_v41 = vmax.f32 %v2542_v47, %v3241_v38  ;;  %v22510_v19 = vmax.f32 %v22508_v63, %v22509_v46  ;;  %v19459_v38 = vld [vmem:[#allocation2 + $0x70] sm:$0xff]  ;;  %v6473_v7 = vld [vmem:[#allocation2 + $0xc1] sm:$0xff]  ;;  %v19468_v40 = vld [vmem:[#allocation2 + $0x78] sm:$0xff] }
 0x20a   : > { %4055 = vst.msk [vmem:[#allocation2 + $0x218] sm:$0xff] %vm3987_vm5, %v3982_v17  ;;  %v3480_v26 = vmax.f32 %v3408_v30, 0.0  ;;  %v3331_v52 = vmax.f32 %v2545_v22, %v13814_v34  ;;  %v6475_v39 = vld [vmem:[#allocation2 + $0xd1] sm:$0xff]  ;;  %v6476_v47 = vld [vmem:[#allocation2 + $0xd9] sm:$0xff]  ;;  %v17049_v48 = vld [vmem:[#allocation2 + $0x1] sm:$0xff] }
 0x20b   : > { %v3981_v61 = vmul.f32 %v18789_v11, %v3477_v29  ;;  %v3407_v15 = vadd.f32 %v19142_v18, %v3328_v41  ;;  %v2544_v53 = vmax.f32 %v22510_v19, %v2465_v50  ;;  %13890 = vmatmul.mubr.msk.f32.gmra.mrb[154].mxu0 %vm3987_vm5, %v19355_v13  ;;  %14412 = vmatmul.mubr.msk.f32.gmra.mrb[172].mxu1 %vm3987_vm5, %v19193_v1  ;;  %v3913_v1 = vpop.permute.xlu1 %3912  ;;  %v6477_v54 = vld [vmem:[#allocation2 + $0xe1] sm:$0xff]  ;;  %v17050_v12 = vld [vmem:[#allocation2 + $0x9] sm:$0xff]  ;;  %v17051_v41 = vld [vmem:[#allocation2 + $0x11] sm:$0xff] }
 0x20c   : > { %v3984_v11 = vmul.f32 %v18892_v42, %v3480_v26  ;;  %v3410_v28 = vadd.f32 %v19142_v18, %v3331_v52  ;;  %13892 = vmatprep.mubr.msk.f32.mxu0 %vm17213_vm4, %v22297_v10  ;;  %14414 = vmatprep.mubr.msk.f32.mxu1 %vm17213_vm4, %v22297_v10  ;;  %v6478_v29 = vld [vmem:[#allocation2 + $0xe9] sm:$0xff]  ;;  %v6479_v23 = vld [vmem:[#allocation2 + $0xf1] sm:$0xff]  ;;  %v17052_v34 = vld [vmem:[#allocation2 + $0x19] sm:$0xff] }
 0x20d   : > { %4054 = vst.msk [vmem:[#allocation2 + $0x210] sm:$0xff] %vm3987_vm5, %v3981_v61  ;;  %v3479_v25 = vmax.f32 %v3407_v15, 0.0  ;;  %v3330_v51 = vmax.f32 %v2544_v53, %v3251_v49  ;;  %v6480_v17 = vld [vmem:[#allocation2 + $0xf9] sm:$0xff]  ;;  %v17053_v30 = vld [vmem:[#allocation2 + $0x21] sm:$0xff]  ;;  %v6482_v0 = vld [vmem:[#allocation2 + $0x109] sm:$0xff] }
 0x20e   : > { %4057 = vst.msk [vmem:[#allocation2 + $0x228] sm:$0xff] %vm3987_vm5, %v3984_v11  ;;  %v3482_v35 = vmax.f32 %v3410_v28, 0.0  ;;  %v17055_v22 = vld [vmem:[#allocation2 + $0x31] sm:$0xff]  ;;  %v11806_v49 = vld [vmem:[%s22010_s4 + $0x40] sm:$0xff]  ;;  %v11807_v61 = vld [vmem:[%s22010_s4 + $0x48] sm:$0xff] }
 0x20f   : > { %v3983_v3 = vmul.f32 %v18852_v55, %v3479_v25  ;;  %v3409_v24 = vadd.f32 %v19142_v18, %v3330_v51  ;;  %13893 = vmatmul.mubr.msk.f32.gmra.mrb[156].mxu0 %vm3987_vm5, %v19371_v4  ;;  %14415 = vmatmul.mubr.msk.f32.gmra.mrb[174].mxu1 %vm3987_vm5, %v19214_v6  ;;  %v19384_v18 = vld [vmem:[#allocation2 + $0x38] sm:$0xff]  ;;  %v6483_v50 = vld [vmem:[#allocation2 + $0x111] sm:$0x7f]  ;;  %v19539_v63 = vpack.c.bf16 %v11807_v61, %v11806_v49  ;;  %v17057_v19 = vld [vmem:[#allocation2 + $0x41] sm:$0xff] }
 0x210   : > { %v3986_v2 = vmul.f32 %v3913_v1, %v3482_v35  ;;  %13895 = vmatprep.mubr.msk.f32.mxu0 %vm17213_vm4, %v22297_v10  ;;  %14417 = vmatprep.mubr.msk.f32.mxu1 %vm17213_vm4, %v22297_v10  ;;  %v11788_v6 = vld [vmem:[%s22010_s4 + $0x38] sm:$0xff]  ;;  %v19541_v46 = vld [vmem:[#allocation2 + $0x1b0] sm:$0xff]  ;;  %v19561_v52 = vld [vmem:[#allocation2 + $0x1c0] sm:$0xff] }
 0x211   : > { %4056 = vst.msk [vmem:[#allocation2 + $0x220] sm:$0xff] %vm3987_vm5, %v3983_v3  ;;  %v3481_v42 = vmax.f32 %v3409_v24, 0.0  ;;  %v17056_v15 = vld [vmem:[#allocation2 + $0x39] sm:$0xff]  ;;  %v17058_v26 = vld [vmem:[#allocation2 + $0x49] sm:$0xff]  ;;  %v17059_v25 = vld [vmem:[#allocation2 + $0x51] sm:$0xff] }
 0x212   : > { %4059 = vst.msk [vmem:[#allocation2 + $0x238] sm:$0xff] %vm3987_vm5, %v3986_v2  ;;  %v19551_v53 = vld [vmem:[#allocation2 + $0x1b8] sm:$0xff]  ;;  %v19570_v51 = vld [vmem:[#allocation2 + $0x1c8] sm:$0xff]  ;;  %v19579_v28 = vld [vmem:[#allocation2 + $0x1d0] sm:$0xff] }
 0x213   : > { %v3985_v55 = vmul.f32 %v18936_v44, %v3481_v42  ;;  %13896 = vmatmul.mubr.msk.f32.gmra.mrb[158].mxu0 %vm3987_vm5, %v19384_v18  ;;  %14418 = vmatmul.mubr.msk.f32.gmra.mrb[176].mxu1 %vm3987_vm5, %v19236_v56  ;;  %v19401_v44 = vpack.c.bf16 %v11788_v6, %v11787_v58  ;;  %v19413_v56 = vld [vmem:[#allocation2 + $0x48] sm:$0xff]  ;;  %v17060_v11 = vld [vmem:[#allocation2 + $0x59] sm:$0xff]  ;;  %v17063_v42 = vld [vmem:[#allocation2 + $0x71] sm:$0xff] }
 0x214   : > { %13898 = vmatprep.mubr.msk.f32.mxu0 %vm17213_vm4, %v22297_v10  ;;  %14424 = vmatprep.mubr.msk.f32.mxu1 %vm17213_vm4, %v22297_v10  ;;  %v17061_v3 = vld [vmem:[#allocation2 + $0x61] sm:$0xff]  ;;  %v19588_v24 = vld [vmem:[#allocation2 + $0x1d8] sm:$0xff]  ;;  %v17062_v35 = vld [vmem:[#allocation2 + $0x69] sm:$0xff] }
 0x215   : > { %4058 = vst.msk [vmem:[#allocation2 + $0x230] sm:$0xff] %vm3987_vm5, %v3985_v55  ;;  %v19597_v1 = vld [vmem:[#allocation2 + $0x1e0] sm:$0xff]  ;;  %v19606_v2 = vld [vmem:[#allocation2 + $0x1e8] sm:$0xff]  ;;  %v19615_v58 = vld [vmem:[#allocation2 + $0x1f0] sm:$0xff] }
 0x216   : > { %v17064_v55 = vld [vmem:[#allocation2 + $0x79] sm:$0xff]  ;;  %v19745_v61 = vld [vmem:[#allocation2 + $0x141] sm:$0xff] }
 0x217   : > { %13899 = vmatmul.mubr.msk.f32.gmra.mrb[160].mxu0 %vm3987_vm5, %v19403_v20  ;;  %14425 = vmatmul.mubr.msk.f32.vlgmr.msra.gmra.mrb[144].mxu1 %vm3987_vm5, %v6467_v43  ;;  %v4739_v6 = vld [vmem:[#allocation2 + $0x120] sm:$0xff]  ;;  %v19625_v43 = vld [vmem:[#allocation2 + $0x1f8] sm:$0xff] }
 0x218   : > { %13901 = vmatprep.mubr.msk.f32.mxu0 %vm17213_vm4, %v22297_v10  ;;  %14427 = vmatprep.mubr.msk.f32.mxu1 %vm17213_vm4, %v22297_v10  ;;  %v4751_v49 = vld [vmem:[#allocation2 + $0x180] sm:$0xff] }
 0x219   : > { %15873 = vmatpush3.bf16.msra.mxu1 %v19401_v44 }
 0x21a   : > { %15874 = vmatprep.subr.bf16.mxu1 %v22299_v21 }
 0x21b   : > { %13902 = vmatmul.mubr.msk.f32.gmra.mrb[162].mxu0 %vm3987_vm5, %v19413_v56  ;;  %14428 = vmatmul.mubr.msk.f32.gmra.mrb[146].mxu1 %vm3987_vm5, %v6468_v5  ;;  %v19636_v5 = vld [vmem:[#allocation2 + $0x200] sm:$0xff] }
 0x21c   : > { %13904 = vmatprep.mubr.msk.f32.mxu0 %vm17213_vm4, %v22297_v10  ;;  %14430 = vmatprep.mubr.msk.f32.mxu1 %vm17213_vm4, %v22297_v10 }
 0x21f   : > { %13905 = vmatmul.mubr.msk.f32.gmra.mrb[164].mxu0 %vm3987_vm5, %v19423_v60  ;;  %14431 = vmatmul.mubr.msk.f32.gmra.mrb[148].mxu1 %vm3987_vm5, %v6469_v27  ;;  %v4741_v27 = vld [vmem:[#allocation2 + $0x130] sm:$0xff] }
 0x220   : > { %13907 = vmatprep.mubr.msk.f32.mxu0 %vm17213_vm4, %v22297_v10  ;;  %14433 = vmatprep.mubr.msk.f32.mxu1 %vm17213_vm4, %v22297_v10 }
 0x223   : > { %13908 = vmatmul.mubr.msk.f32.gmra.mrb[166].mxu0 %vm3987_vm5, %v19432_v37  ;;  %14434 = vmatmul.mubr.msk.f32.gmra.mrb[150].mxu1 %vm3987_vm5, %v6470_v33  ;;  %v19645_v33 = vld [vmem:[#allocation2 + $0x208] sm:$0xff] }
 0x224   : > { %13910 = vmatprep.mubr.msk.f32.mxu0 %vm17213_vm4, %v22297_v10  ;;  %14436 = vmatprep.mubr.msk.f32.mxu1 %vm17213_vm4, %v22297_v10 }
 0x227   : > { %13911 = vmatmul.mubr.msk.f32.gmra.mrb[168].mxu0 %vm3987_vm5, %v19441_v8  ;;  %14437 = vmatmul.mubr.msk.f32.gmra.mrb[152].mxu1 %vm3987_vm5, %v6471_v36  ;;  %v4742_v36 = vld [vmem:[#allocation2 + $0x138] sm:$0xff] }
 0x228   : > { %13913 = vmatprep.mubr.msk.f32.mxu0 %vm17213_vm4, %v22297_v10  ;;  %14439 = vmatprep.mubr.msk.f32.mxu1 %vm17213_vm4, %v22297_v10 }
 0x22b   : > { %13914 = vmatmul.mubr.msk.f32.gmra.mrb[170].mxu0 %vm3987_vm5, %v19450_v45  ;;  %14440 = vmatmul.mubr.msk.f32.gmra.mrb[154].mxu1 %vm3987_vm5, %v6472_v9  ;;  %v19654_v9 = vld [vmem:[#allocation2 + $0x210] sm:$0xff] }
 0x22c   : > { %13916 = vmatprep.mubr.msk.f32.mxu0 %vm17213_vm4, %v22297_v10  ;;  %14442 = vmatprep.mubr.msk.f32.mxu1 %vm17213_vm4, %v22297_v10 }
 0x22f   : > { %13917 = vmatmul.mubr.msk.f32.gmra.mrb[172].mxu0 %vm3987_vm5, %v19459_v38  ;;  %14443 = vmatmul.mubr.msk.f32.gmra.mrb[156].mxu1 %vm3987_vm5, %v6473_v7  ;;  %v4743_v7 = vld [vmem:[#allocation2 + $0x140] sm:$0xff] }
 0x230   : > { %13919 = vmatprep.mubr.msk.f32.mxu0 %vm17213_vm4, %v22297_v10  ;;  %14445 = vmatprep.mubr.msk.f32.mxu1 %vm17213_vm4, %v22297_v10 }
 0x233   : > { %13920 = vmatmul.mubr.msk.f32.gmra.mrb[174].mxu0 %vm3987_vm5, %v19468_v40  ;;  %14446 = vmatmul.mubr.msk.f32.gmra.mrb[158].mxu1 %vm3987_vm5, %v6474_v14  ;;  %v19663_v14 = vld [vmem:[#allocation2 + $0x218] sm:$0xff] }
 0x234   : > { %13922 = vmatprep.mubr.msk.f32.mxu0 %vm17213_vm4, %v22297_v10  ;;  %14448 = vmatprep.mubr.msk.f32.mxu1 %vm17213_vm4, %v22297_v10 }
 0x237   : > { %13923 = vmatmul.mubr.msk.f32.gmra.mrb[176].mxu0 %vm3987_vm5, %v4076_v57  ;;  %14449 = vmatmul.mubr.msk.f32.gmra.mrb[160].mxu1 %vm3987_vm5, %v6475_v39  ;;  %v4744_v57 = vld [vmem:[#allocation2 + $0x148] sm:$0xff]  ;;  %v19672_v39 = vld [vmem:[#allocation2 + $0x220] sm:$0xff] }
 0x238   : > { %13929 = vmatprep.mubr.msk.f32.mxu0 %vm17213_vm4, %v22297_v10  ;;  %14451 = vmatprep.mubr.msk.f32.mxu1 %vm17213_vm4, %v22297_v10 }
 0x23b   : > { %13930 = vmatmul.mubr.msk.f32.vlgmr.msra.gmra.mrb[144].mxu0 %vm3987_vm5, %v17049_v48  ;;  %14452 = vmatmul.mubr.msk.f32.gmra.mrb[162].mxu1 %vm3987_vm5, %v6476_v47  ;;  %v4745_v47 = vld [vmem:[#allocation2 + $0x150] sm:$0xff]  ;;  %v19681_v48 = vld [vmem:[#allocation2 + $0x228] sm:$0xff] }
 0x23c   : > { %15846 = vmatpush3.bf16.msra.mxu0 %v19401_v44  ;;  %13932 = vmatprep.mubr.msk.f32.mxu0 %vm17213_vm4, %v22297_v10 }
 0x23d   : > { %14454 = vmatprep.mubr.msk.f32.mxu1 %vm17213_vm4, %v22297_v10  ;;  %15847 = vmatprep.subr.bf16.mxu0 %v22299_v21 }
 0x23f   : > { %13933 = vmatmul.mubr.msk.f32.gmra.mrb[146].mxu0 %vm3987_vm5, %v17050_v12  ;;  %14455 = vmatmul.mubr.msk.f32.gmra.mrb[164].mxu1 %vm3987_vm5, %v6477_v54  ;;  %v4746_v54 = vld [vmem:[#allocation2 + $0x158] sm:$0xff]  ;;  %v19690_v12 = vld [vmem:[#allocation2 + $0x230] sm:$0x7f] }
 0x240   : > { %13935 = vmatprep.mubr.msk.f32.mxu0 %vm17213_vm4, %v22297_v10  ;;  %14457 = vmatprep.mubr.msk.f32.mxu1 %vm17213_vm4, %v22297_v10 }
 0x243   : > { %13936 = vmatmul.mubr.msk.f32.gmra.mrb[148].mxu0 %vm3987_vm5, %v17051_v41  ;;  %14458 = vmatmul.mubr.msk.f32.gmra.mrb[166].mxu1 %vm3987_vm5, %v6478_v29  ;;  %v11825_v29 = vld [vmem:[%s22010_s4 + $0x50] sm:$0xff]  ;;  %v11826_v41 = vld [vmem:[%s22010_s4 + $0x58] sm:$0xff] }
 0x244   : > { %13938 = vmatprep.mubr.msk.f32.mxu0 %vm17213_vm4, %v22297_v10  ;;  %14460 = vmatprep.mubr.msk.f32.mxu1 %vm17213_vm4, %v22297_v10 }
 0x247   : > { %13939 = vmatmul.mubr.msk.f32.gmra.mrb[150].mxu0 %vm3987_vm5, %v17052_v34  ;;  %14461 = vmatmul.mubr.msk.f32.gmra.mrb[168].mxu1 %vm3987_vm5, %v6479_v23  ;;  %v19705_v23 = vpack.c.bf16 %v11826_v41, %v11825_v29  ;;  %v4747_v34 = vld [vmem:[#allocation2 + $0x160] sm:$0xff]  ;;  %v7051_v29 = vld [vmem:[#allocation2 + $0x229] sm:$0xff]  ;;  %v7052_v41 = vld [vmem:[#allocation2 + $0x231] sm:$0x7f] }
 0x248   : > { %13941 = vmatprep.mubr.msk.f32.mxu0 %vm17213_vm4, %v22297_v10  ;;  %14463 = vmatprep.mubr.msk.f32.mxu1 %vm17213_vm4, %v22297_v10 }
 0x24b   : > { %13942 = vmatmul.mubr.msk.f32.gmra.mrb[152].mxu0 %vm3987_vm5, %v17053_v30  ;;  %14464 = vmatmul.mubr.msk.f32.gmra.mrb[170].mxu1 %vm3987_vm5, %v6480_v17  ;;  %v19707_v17 = vld [vmem:[#allocation2 + $0x121] sm:$0xff] }
 0x24c   : > { %13944 = vmatprep.mubr.msk.f32.mxu0 %vm17213_vm4, %v22297_v10  ;;  %14466 = vmatprep.mubr.msk.f32.mxu1 %vm17213_vm4, %v22297_v10  ;;  %v4748_v30 = vld [vmem:[#allocation2 + $0x168] sm:$0xff] }
 0x24f   : > { %13945 = vmatmul.mubr.msk.f32.gmra.mrb[154].mxu0 %vm3987_vm5, %v17054_v59  ;;  %14467 = vmatmul.mubr.msk.f32.gmra.mrb[172].mxu1 %vm3987_vm5, %v6481_v31  ;;  %v19717_v31 = vld [vmem:[#allocation2 + $0x129] sm:$0xff] }
 0x250   : > { %13947 = vmatprep.mubr.msk.f32.mxu0 %vm17213_vm4, %v22297_v10  ;;  %14469 = vmatprep.mubr.msk.f32.mxu1 %vm17213_vm4, %v22297_v10  ;;  %v4749_v59 = vld [vmem:[#allocation2 + $0x170] sm:$0xff] }
 0x253   : > { %13948 = vmatmul.mubr.msk.f32.gmra.mrb[156].mxu0 %vm3987_vm5, %v17055_v22  ;;  %14470 = vmatmul.mubr.msk.f32.gmra.mrb[174].mxu1 %vm3987_vm5, %v6482_v0  ;;  %v19727_v0 = vld [vmem:[#allocation2 + $0x131] sm:$0xff] }
 0x254   : > { %13950 = vmatprep.mubr.msk.f32.mxu0 %vm17213_vm4, %v22297_v10  ;;  %14472 = vmatprep.mubr.msk.f32.mxu1 %vm17213_vm4, %v22297_v10  ;;  %v4750_v22 = vld [vmem:[#allocation2 + $0x178] sm:$0xff] }
 0x257   : > { %13951 = vmatmul.mubr.msk.f32.gmra.mrb[158].mxu0 %vm3987_vm5, %v17056_v15  ;;  %14473 = vmatmul.mubr.msk.f32.gmra.mrb[176].mxu1 %vm3987_vm5, %v6483_v50  ;;  %v19736_v50 = vld [vmem:[#allocation2 + $0x139] sm:$0xff]  ;;  %v4752_v15 = vld [vmem:[#allocation2 + $0x188] sm:$0xff] }
 0x258   : > { %13953 = vmatprep.mubr.msk.f32.mxu0 %vm17213_vm4, %v22297_v10  ;;  %14479 = vmatprep.mubr.msk.f32.mxu1 %vm17213_vm4, %v22297_v10 }
 0x25b   : > { %13954 = vmatmul.mubr.msk.f32.gmra.mrb[160].mxu0 %vm3987_vm5, %v17057_v19  ;;  %14480 = vmatmul.mubr.msk.f32.vlgmr.msra.gmra.mrb[144].mxu1 %vm3987_vm5, %v19541_v46  ;;  %v19754_v19 = vld [vmem:[#allocation2 + $0x149] sm:$0xff] }
 0x25c   : > { %13956 = vmatprep.mubr.msk.f32.mxu0 %vm17213_vm4, %v22297_v10  ;;  %14482 = vmatprep.mubr.msk.f32.mxu1 %vm17213_vm4, %v22297_v10 }
 0x25d   : > { %15876 = vmatpush3.bf16.msra.mxu1 %v19539_v63 }
 0x25e   : > { %15877 = vmatprep.subr.bf16.mxu1 %v22299_v21 }
 0x25f   : > { %13957 = vmatmul.mubr.msk.f32.gmra.mrb[162].mxu0 %vm3987_vm5, %v17058_v26  ;;  %14483 = vmatmul.mubr.msk.f32.gmra.mrb[146].mxu1 %vm3987_vm5, %v19551_v53  ;;  %v4753_v26 = vld [vmem:[#allocation2 + $0x190] sm:$0xff] }
 0x260   : > { %13959 = vmatprep.mubr.msk.f32.mxu0 %vm17213_vm4, %v22297_v10  ;;  %14485 = vmatprep.mubr.msk.f32.mxu1 %vm17213_vm4, %v22297_v10 }
 0x263   : > { %13960 = vmatmul.mubr.msk.f32.gmra.mrb[164].mxu0 %vm3987_vm5, %v17059_v25  ;;  %14486 = vmatmul.mubr.msk.f32.gmra.mrb[148].mxu1 %vm3987_vm5, %v19561_v52  ;;  %v19763_v25 = vld [vmem:[#allocation2 + $0x151] sm:$0xff] }
 0x264   : > { %13962 = vmatprep.mubr.msk.f32.mxu0 %vm17213_vm4, %v22297_v10  ;;  %14488 = vmatprep.mubr.msk.f32.mxu1 %vm17213_vm4, %v22297_v10 }
 0x267   : > { %13963 = vmatmul.mubr.msk.f32.gmra.mrb[166].mxu0 %vm3987_vm5, %v17060_v11  ;;  %14489 = vmatmul.mubr.msk.f32.gmra.mrb[150].mxu1 %vm3987_vm5, %v19570_v51  ;;  %v4754_v11 = vld [vmem:[#allocation2 + $0x198] sm:$0xff] }
 0x268   : > { %13965 = vmatprep.mubr.msk.f32.mxu0 %vm17213_vm4, %v22297_v10  ;;  %14491 = vmatprep.mubr.msk.f32.mxu1 %vm17213_vm4, %v22297_v10 }
 0x26b   : > { %13966 = vmatmul.mubr.msk.f32.gmra.mrb[168].mxu0 %vm3987_vm5, %v17061_v3  ;;  %14492 = vmatmul.mubr.msk.f32.gmra.mrb[152].mxu1 %vm3987_vm5, %v19579_v28  ;;  %v19772_v3 = vld [vmem:[#allocation2 + $0x159] sm:$0xff] }
 0x26c   : > { %13968 = vmatprep.mubr.msk.f32.mxu0 %vm17213_vm4, %v22297_v10  ;;  %14494 = vmatprep.mubr.msk.f32.mxu1 %vm17213_vm4, %v22297_v10 }
 0x26f   : > { %13969 = vmatmul.mubr.msk.f32.gmra.mrb[170].mxu0 %vm3987_vm5, %v17062_v35  ;;  %14495 = vmatmul.mubr.msk.f32.gmra.mrb[154].mxu1 %vm3987_vm5, %v19588_v24  ;;  %v4755_v35 = vld [vmem:[#allocation2 + $0x1a0] sm:$0x7f] }
 0x270   : > { %13971 = vmatprep.mubr.msk.f32.mxu0 %vm17213_vm4, %v22297_v10  ;;  %14497 = vmatprep.mubr.msk.f32.mxu1 %vm17213_vm4, %v22297_v10 }
 0x273   : > { %13972 = vmatmul.mubr.msk.f32.gmra.mrb[172].mxu0 %vm3987_vm5, %v17063_v42  ;;  %14498 = vmatmul.mubr.msk.f32.gmra.mrb[156].mxu1 %vm3987_vm5, %v19597_v1  ;;  %v19781_v42 = vld [vmem:[#allocation2 + $0x161] sm:$0xff] }
 0x274   : > { %13974 = vmatprep.mubr.msk.f32.mxu0 %vm17213_vm4, %v22297_v10  ;;  %14500 = vmatprep.mubr.msk.f32.mxu1 %vm17213_vm4, %v22297_v10 }
 0x277   : > { %13975 = vmatmul.mubr.msk.f32.gmra.mrb[174].mxu0 %vm3987_vm5, %v17064_v55  ;;  %14501 = vmatmul.mubr.msk.f32.gmra.mrb[158].mxu1 %vm3987_vm5, %v19606_v2  ;;  %v19790_v55 = vld [vmem:[#allocation2 + $0x169] sm:$0xff] }
 0x278   : > { %13977 = vmatprep.mubr.msk.f32.mxu0 %vm17213_vm4, %v22297_v10  ;;  %14503 = vmatprep.mubr.msk.f32.mxu1 %vm17213_vm4, %v22297_v10 }
 0x27b   : > { %13978 = vmatmul.mubr.msk.f32.gmra.mrb[176].mxu0 %vm3987_vm5, %v19027_v32  ;;  %14504 = vmatmul.mubr.msk.f32.gmra.mrb[160].mxu1 %vm3987_vm5, %v19615_v58  ;;  %v4740_v32 = vld [vmem:[#allocation2 + $0x128] sm:$0xff] }
 0x27c   : > { %13984 = vmatprep.mubr.msk.f32.mxu0 %vm17213_vm4, %v22297_v10  ;;  %14506 = vmatprep.mubr.msk.f32.mxu1 %vm17213_vm4, %v22297_v10 }
 0x27f   : > { %13985 = vmatmul.mubr.msk.f32.vlgmr.msra.gmra.mrb[144].mxu0 %vm3987_vm5, %v4739_v6  ;;  %14507 = vmatmul.mubr.msk.f32.gmra.mrb[162].mxu1 %vm3987_vm5, %v19625_v43  ;;  %v19802_v6 = vld [vmem:[#allocation2 + $0x171] sm:$0xff] }
 0x280   : > { %15849 = vmatpush3.bf16.msra.mxu0 %v19539_v63  ;;  %13987 = vmatprep.mubr.msk.f32.mxu0 %vm17213_vm4, %v22297_v10 }
 0x281   : > { %14509 = vmatprep.mubr.msk.f32.mxu1 %vm17213_vm4, %v22297_v10  ;;  %15850 = vmatprep.subr.bf16.mxu0 %v22299_v21 }
 0x283   : > { %13988 = vmatmul.mubr.msk.f32.gmra.mrb[146].mxu0 %vm3987_vm5, %v4740_v32  ;;  %14510 = vmatmul.mubr.msk.f32.gmra.mrb[164].mxu1 %vm3987_vm5, %v19636_v5  ;;  %v11844_v32 = vld [vmem:[%s22010_s4 + $0x60] sm:$0xff] }
 0x284   : > { %13990 = vmatprep.mubr.msk.f32.mxu0 %vm17213_vm4, %v22297_v10  ;;  %14512 = vmatprep.mubr.msk.f32.mxu1 %vm17213_vm4, %v22297_v10 }
 0x287   : > { %13991 = vmatmul.mubr.msk.f32.gmra.mrb[148].mxu0 %vm3987_vm5, %v4741_v27  ;;  %14513 = vmatmul.mubr.msk.f32.gmra.mrb[166].mxu1 %vm3987_vm5, %v19645_v33  ;;  %v11845_v27 = vld [vmem:[%s22010_s4 + $0x68] sm:$0xff] }
 0x288   : > { %13993 = vmatprep.mubr.msk.f32.mxu0 %vm17213_vm4, %v22297_v10  ;;  %14515 = vmatprep.mubr.msk.f32.mxu1 %vm17213_vm4, %v22297_v10 }
 0x28b   : > { %13994 = vmatmul.mubr.msk.f32.gmra.mrb[150].mxu0 %vm3987_vm5, %v4742_v36  ;;  %14516 = vmatmul.mubr.msk.f32.gmra.mrb[168].mxu1 %vm3987_vm5, %v19654_v9  ;;  %v7036_v36 = vld [vmem:[#allocation2 + $0x1b1] sm:$0xff] }
 0x28c   : > { %13996 = vmatprep.mubr.msk.f32.mxu0 %vm17213_vm4, %v22297_v10  ;;  %14518 = vmatprep.mubr.msk.f32.mxu1 %vm17213_vm4, %v22297_v10 }
 0x28f   : > { %13997 = vmatmul.mubr.msk.f32.gmra.mrb[152].mxu0 %vm3987_vm5, %v4743_v7  ;;  %14519 = vmatmul.mubr.msk.f32.gmra.mrb[170].mxu1 %vm3987_vm5, %v19663_v14  ;;  %v7043_v7 = vld [vmem:[#allocation2 + $0x1e9] sm:$0xff] }
 0x290   : > { %13999 = vmatprep.mubr.msk.f32.mxu0 %vm17213_vm4, %v22297_v10  ;;  %14521 = vmatprep.mubr.msk.f32.mxu1 %vm17213_vm4, %v22297_v10 }
 0x293   : > { %14000 = vmatmul.mubr.msk.f32.gmra.mrb[154].mxu0 %vm3987_vm5, %v4744_v57  ;;  %14522 = vmatmul.mubr.msk.f32.gmra.mrb[172].mxu1 %vm3987_vm5, %v19672_v39  ;;  %v7045_v57 = vld [vmem:[#allocation2 + $0x1f9] sm:$0xff] }
 0x294   : > { %14002 = vmatprep.mubr.msk.f32.mxu0 %vm17213_vm4, %v22297_v10  ;;  %14524 = vmatprep.mubr.msk.f32.mxu1 %vm17213_vm4, %v22297_v10 }
 0x297   : > { %14003 = vmatmul.mubr.msk.f32.gmra.mrb[156].mxu0 %vm3987_vm5, %v4745_v47  ;;  %14525 = vmatmul.mubr.msk.f32.gmra.mrb[174].mxu1 %vm3987_vm5, %v19681_v48  ;;  %v7047_v47 = vld [vmem:[#allocation2 + $0x209] sm:$0xff] }
 0x298   : > { %14005 = vmatprep.mubr.msk.f32.mxu0 %vm17213_vm4, %v22297_v10  ;;  %14527 = vmatprep.mubr.msk.f32.mxu1 %vm17213_vm4, %v22297_v10 }
 0x29b   : > { %14006 = vmatmul.mubr.msk.f32.gmra.mrb[158].mxu0 %vm3987_vm5, %v4746_v54  ;;  %14528 = vmatmul.mubr.msk.f32.gmra.mrb[176].mxu1 %vm3987_vm5, %v19690_v12  ;;  %v7049_v54 = vld [vmem:[#allocation2 + $0x219] sm:$0xff] }
 0x29c   : > { %14008 = vmatprep.mubr.msk.f32.mxu0 %vm17213_vm4, %v22297_v10  ;;  %14534 = vmatprep.mubr.msk.f32.mxu1 %vm17213_vm4, %v22297_v10 }
 0x29f   : > { %14009 = vmatmul.mubr.msk.f32.gmra.mrb[160].mxu0 %vm3987_vm5, %v4747_v34  ;;  %14535 = vmatmul.mubr.msk.f32.vlgmr.msra.gmra.mrb[144].mxu1 %vm3987_vm5, %v19707_v17  ;;  %v11863_v34 = vld [vmem:[%s22010_s4 + $0x70] sm:$0xff] }
 0x2a0   : > { %14011 = vmatprep.mubr.msk.f32.mxu0 %vm17213_vm4, %v22297_v10  ;;  %14537 = vmatprep.mubr.msk.f32.mxu1 %vm17213_vm4, %v22297_v10 }
 0x2a1   : > { %15879 = vmatpush3.bf16.msra.mxu1 %v19705_v23 }
 0x2a2   : > { %15880 = vmatprep.subr.bf16.mxu1 %v22299_v21 }
 0x2a3   : > { %14012 = vmatmul.mubr.msk.f32.gmra.mrb[162].mxu0 %vm3987_vm5, %v4748_v30  ;;  %14538 = vmatmul.mubr.msk.f32.gmra.mrb[146].mxu1 %vm3987_vm5, %v19717_v31  ;;  %v11864_v30 = vld [vmem:[%s22010_s4 + $0x78] sm:$0xff] }
 0x2a4   : > { %14014 = vmatprep.mubr.msk.f32.mxu0 %vm17213_vm4, %v22297_v10  ;;  %14540 = vmatprep.mubr.msk.f32.mxu1 %vm17213_vm4, %v22297_v10 }
 0x2a7   : > { %14015 = vmatmul.mubr.msk.f32.gmra.mrb[164].mxu0 %vm3987_vm5, %v4749_v59  ;;  %14541 = vmatmul.mubr.msk.f32.gmra.mrb[148].mxu1 %vm3987_vm5, %v19727_v0  ;;  %v20009_v59 = vpack.c.bf16 %v11864_v30, %v11863_v34  ;;  %v20291_v34 = vld [vmem:[#allocation2 + $0x59] sm:$0xff]  ;;  %v20301_v30 = vld [vmem:[#allocation2 + $0x61] sm:$0xff] }
 0x2a8   : > { %14017 = vmatprep.mubr.msk.f32.mxu0 %vm17213_vm4, %v22297_v10  ;;  %14543 = vmatprep.mubr.msk.f32.mxu1 %vm17213_vm4, %v22297_v10 }
 0x2ab   : > { %14018 = vmatmul.mubr.msk.f32.gmra.mrb[166].mxu0 %vm3987_vm5, %v4750_v22  ;;  %14544 = vmatmul.mubr.msk.f32.gmra.mrb[150].mxu1 %vm3987_vm5, %v19736_v50  ;;  %v20011_v22 = vld [vmem:[#allocation2 + $0x98] sm:$0xff] }
 0x2ac   : > { %14020 = vmatprep.mubr.msk.f32.mxu0 %vm17213_vm4, %v22297_v10  ;;  %14546 = vmatprep.mubr.msk.f32.mxu1 %vm17213_vm4, %v22297_v10 }
 0x2af   : > { %14021 = vmatmul.mubr.msk.f32.gmra.mrb[168].mxu0 %vm3987_vm5, %v4751_v49  ;;  %14547 = vmatmul.mubr.msk.f32.gmra.mrb[152].mxu1 %vm3987_vm5, %v19745_v61  ;;  %v20022_v49 = vld [vmem:[#allocation2 + $0xa0] sm:$0xff] }
 0x2b0   : > { %14023 = vmatprep.mubr.msk.f32.mxu0 %vm17213_vm4, %v22297_v10  ;;  %14549 = vmatprep.mubr.msk.f32.mxu1 %vm17213_vm4, %v22297_v10 }
 0x2b3   : > { %14024 = vmatmul.mubr.msk.f32.gmra.mrb[170].mxu0 %vm3987_vm5, %v4752_v15  ;;  %14550 = vmatmul.mubr.msk.f32.gmra.mrb[154].mxu1 %vm3987_vm5, %v19754_v19  ;;  %v20033_v15 = vld [vmem:[#allocation2 + $0xa8] sm:$0xff] }
 0x2b4   : > { %14026 = vmatprep.mubr.msk.f32.mxu0 %vm17213_vm4, %v22297_v10  ;;  %14552 = vmatprep.mubr.msk.f32.mxu1 %vm17213_vm4, %v22297_v10 }
 0x2b7   : > { %14027 = vmatmul.mubr.msk.f32.gmra.mrb[172].mxu0 %vm3987_vm5, %v4753_v26  ;;  %14553 = vmatmul.mubr.msk.f32.gmra.mrb[156].mxu1 %vm3987_vm5, %v19763_v25  ;;  %v20043_v26 = vld [vmem:[#allocation2 + $0xb0] sm:$0xff] }
 0x2b8   : > { %14029 = vmatprep.mubr.msk.f32.mxu0 %vm17213_vm4, %v22297_v10  ;;  %14555 = vmatprep.mubr.msk.f32.mxu1 %vm17213_vm4, %v22297_v10 }
 0x2bb   : > { %14030 = vmatmul.mubr.msk.f32.gmra.mrb[174].mxu0 %vm3987_vm5, %v4754_v11  ;;  %14556 = vmatmul.mubr.msk.f32.gmra.mrb[158].mxu1 %vm3987_vm5, %v19772_v3  ;;  %v20053_v11 = vld [vmem:[#allocation2 + $0xb8] sm:$0xff] }
 0x2bc   : > { %14032 = vmatprep.mubr.msk.f32.mxu0 %vm17213_vm4, %v22297_v10  ;;  %14558 = vmatprep.mubr.msk.f32.mxu1 %vm17213_vm4, %v22297_v10 }
 0x2bf   : > { %14033 = vmatmul.mubr.msk.f32.gmra.mrb[176].mxu0 %vm3987_vm5, %v4755_v35  ;;  %14559 = vmatmul.mubr.msk.f32.gmra.mrb[160].mxu1 %vm3987_vm5, %v19781_v42  ;;  %v20063_v35 = vld [vmem:[#allocation2 + $0xc0] sm:$0xff] }
 0x2c0   : > { %14039 = vmatprep.mubr.msk.f32.mxu0 %vm17213_vm4, %v22297_v10  ;;  %14561 = vmatprep.mubr.msk.f32.mxu1 %vm17213_vm4, %v22297_v10 }
 0x2c3   : > { %14040 = vmatmul.mubr.msk.f32.vlgmr.msra.gmra.mrb[144].mxu0 %vm3987_vm5, %v19541_v46  ;;  %14562 = vmatmul.mubr.msk.f32.gmra.mrb[162].mxu1 %vm3987_vm5, %v19790_v55  ;;  %v19812_v46 = vld [vmem:[#allocation2 + $0x179] sm:$0xff] }
 0x2c4   : > { %15852 = vmatpush3.bf16.msra.mxu0 %v19705_v23  ;;  %14042 = vmatprep.mubr.msk.f32.mxu0 %vm17213_vm4, %v22297_v10 }
 0x2c5   : > { %14564 = vmatprep.mubr.msk.f32.mxu1 %vm17213_vm4, %v22297_v10  ;;  %15853 = vmatprep.subr.bf16.mxu0 %v22299_v21 }
 0x2c7   : > { %14043 = vmatmul.mubr.msk.f32.gmra.mrb[146].mxu0 %vm3987_vm5, %v19551_v53  ;;  %14565 = vmatmul.mubr.msk.f32.gmra.mrb[164].mxu1 %vm3987_vm5, %v19802_v6  ;;  %v19822_v53 = vld [vmem:[#allocation2 + $0x181] sm:$0xff] }
 0x2c8   : > { %14045 = vmatprep.mubr.msk.f32.mxu0 %vm17213_vm4, %v22297_v10  ;;  %14567 = vmatprep.mubr.msk.f32.mxu1 %vm17213_vm4, %v22297_v10 }
 0x2cb   : > { %14046 = vmatmul.mubr.msk.f32.gmra.mrb[148].mxu0 %vm3987_vm5, %v19561_v52  ;;  %14568 = vmatmul.mubr.msk.f32.gmra.mrb[166].mxu1 %vm3987_vm5, %v19812_v46  ;;  %v19832_v52 = vld [vmem:[#allocation2 + $0x189] sm:$0xff] }
 0x2cc   : > { %14048 = vmatprep.mubr.msk.f32.mxu0 %vm17213_vm4, %v22297_v10  ;;  %14570 = vmatprep.mubr.msk.f32.mxu1 %vm17213_vm4, %v22297_v10 }
 0x2cf   : > { %14049 = vmatmul.mubr.msk.f32.gmra.mrb[150].mxu0 %vm3987_vm5, %v19570_v51  ;;  %14571 = vmatmul.mubr.msk.f32.gmra.mrb[168].mxu1 %vm3987_vm5, %v19822_v53  ;;  %v19842_v51 = vld [vmem:[#allocation2 + $0x191] sm:$0xff] }
 0x2d0   : > { %14051 = vmatprep.mubr.msk.f32.mxu0 %vm17213_vm4, %v22297_v10  ;;  %14573 = vmatprep.mubr.msk.f32.mxu1 %vm17213_vm4, %v22297_v10 }
 0x2d3   : > { %14052 = vmatmul.mubr.msk.f32.gmra.mrb[152].mxu0 %vm3987_vm5, %v19579_v28  ;;  %14574 = vmatmul.mubr.msk.f32.gmra.mrb[170].mxu1 %vm3987_vm5, %v19832_v52  ;;  %v19852_v28 = vld [vmem:[#allocation2 + $0x199] sm:$0xff] }
 0x2d4   : > { %14054 = vmatprep.mubr.msk.f32.mxu0 %vm17213_vm4, %v22297_v10  ;;  %14576 = vmatprep.mubr.msk.f32.mxu1 %vm17213_vm4, %v22297_v10 }
 0x2d7   : > { %14055 = vmatmul.mubr.msk.f32.gmra.mrb[154].mxu0 %vm3987_vm5, %v19588_v24  ;;  %14577 = vmatmul.mubr.msk.f32.gmra.mrb[172].mxu1 %vm3987_vm5, %v19842_v51  ;;  %v19862_v24 = vld [vmem:[#allocation2 + $0x1a1] sm:$0x7f] }
 0x2d8   : > { %14057 = vmatprep.mubr.msk.f32.mxu0 %vm17213_vm4, %v22297_v10  ;;  %14579 = vmatprep.mubr.msk.f32.mxu1 %vm17213_vm4, %v22297_v10 }
 0x2db   : > { %14058 = vmatmul.mubr.msk.f32.gmra.mrb[156].mxu0 %vm3987_vm5, %v19597_v1  ;;  %14580 = vmatmul.mubr.msk.f32.gmra.mrb[174].mxu1 %vm3987_vm5, %v19852_v28  ;;  %v19878_v1 = vpack.c.bf16 %v11845_v27, %v11844_v32  ;;  %v20073_v32 = vld [vmem:[#allocation2 + $0xc8] sm:$0xff]  ;;  %v20083_v27 = vld [vmem:[#allocation2 + $0xd0] sm:$0xff] }
 0x2dc   : > { %14060 = vmatprep.mubr.msk.f32.mxu0 %vm17213_vm4, %v22297_v10  ;;  %14582 = vmatprep.mubr.msk.f32.mxu1 %vm17213_vm4, %v22297_v10 }
 0x2df   : > { %14061 = vmatmul.mubr.msk.f32.gmra.mrb[158].mxu0 %vm3987_vm5, %v19606_v2  ;;  %14583 = vmatmul.mubr.msk.f32.gmra.mrb[176].mxu1 %vm3987_vm5, %v19862_v24  ;;  %v7037_v2 = vld [vmem:[#allocation2 + $0x1b9] sm:$0xff] }
 0x2e0   : > { %14063 = vmatprep.mubr.msk.f32.mxu0 %vm17213_vm4, %v22297_v10  ;;  %14589 = vmatprep.mubr.msk.f32.mxu1 %vm17213_vm4, %v22297_v10 }
 0x2e3   : > { %14064 = vmatmul.mubr.msk.f32.gmra.mrb[160].mxu0 %vm3987_vm5, %v19615_v58  ;;  %14590 = vmatmul.mubr.msk.f32.vlgmr.msra.gmra.mrb[144].mxu1 %vm3987_vm5, %v7036_v36  ;;  %v7038_v58 = vld [vmem:[#allocation2 + $0x1c1] sm:$0xff]  ;;  %v20093_v36 = vld [vmem:[#allocation2 + $0xd8] sm:$0xff] }
 0x2e4   : > { %14066 = vmatprep.mubr.msk.f32.mxu0 %vm17213_vm4, %v22297_v10  ;;  %14592 = vmatprep.mubr.msk.f32.mxu1 %vm17213_vm4, %v22297_v10 }
 0x2e5   : > { %15882 = vmatpush3.bf16.msra.mxu1 %v19878_v1 }
 0x2e6   : > { %15883 = vmatprep.subr.bf16.mxu1 %v22299_v21 }
 0x2e7   : > { %14067 = vmatmul.mubr.msk.f32.gmra.mrb[162].mxu0 %vm3987_vm5, %v19625_v43  ;;  %14593 = vmatmul.mubr.msk.f32.gmra.mrb[146].mxu1 %vm3987_vm5, %v7037_v2  ;;  %v7039_v43 = vld [vmem:[#allocation2 + $0x1c9] sm:$0xff] }
 0x2e8   : > { %14069 = vmatprep.mubr.msk.f32.mxu0 %vm17213_vm4, %v22297_v10  ;;  %14595 = vmatprep.mubr.msk.f32.mxu1 %vm17213_vm4, %v22297_v10  ;;  %v5453_v2 = vld [vmem:[#allocation2 + $0x8] sm:$0xff] }
 0x2eb   : > { %14070 = vmatmul.mubr.msk.f32.gmra.mrb[164].mxu0 %vm3987_vm5, %v19636_v5  ;;  %14596 = vmatmul.mubr.msk.f32.gmra.mrb[148].mxu1 %vm3987_vm5, %v7038_v58  ;;  %v7040_v5 = vld [vmem:[#allocation2 + $0x1d1] sm:$0xff]  ;;  %v20103_v58 = vld [vmem:[#allocation2 + $0xe0] sm:$0xff] }
 0x2ec   : > { %14072 = vmatprep.mubr.msk.f32.mxu0 %vm17213_vm4, %v22297_v10  ;;  %14598 = vmatprep.mubr.msk.f32.mxu1 %vm17213_vm4, %v22297_v10 }
 0x2ef   : > { %14073 = vmatmul.mubr.msk.f32.gmra.mrb[166].mxu0 %vm3987_vm5, %v19645_v33  ;;  %14599 = vmatmul.mubr.msk.f32.gmra.mrb[150].mxu1 %vm3987_vm5, %v7039_v43  ;;  %v7041_v33 = vld [vmem:[#allocation2 + $0x1d9] sm:$0xff]  ;;  %v5454_v43 = vld [vmem:[#allocation2 + $0x10] sm:$0xff] }
 0x2f0   : > { %14075 = vmatprep.mubr.msk.f32.mxu0 %vm17213_vm4, %v22297_v10  ;;  %14601 = vmatprep.mubr.msk.f32.mxu1 %vm17213_vm4, %v22297_v10 }
 0x2f3   : > { %14076 = vmatmul.mubr.msk.f32.gmra.mrb[168].mxu0 %vm3987_vm5, %v19654_v9  ;;  %14602 = vmatmul.mubr.msk.f32.gmra.mrb[152].mxu1 %vm3987_vm5, %v7040_v5  ;;  %v7042_v9 = vld [vmem:[#allocation2 + $0x1e1] sm:$0xff] }
 0x2f4   : > { %14078 = vmatprep.mubr.msk.f32.mxu0 %vm17213_vm4, %v22297_v10  ;;  %14604 = vmatprep.mubr.msk.f32.mxu1 %vm17213_vm4, %v22297_v10  ;;  %v20114_v5 = vld [vmem:[#allocation2 + $0xe8] sm:$0xff] }
 0x2f7   : > { %14079 = vmatmul.mubr.msk.f32.gmra.mrb[170].mxu0 %vm3987_vm5, %v19663_v14  ;;  %14605 = vmatmul.mubr.msk.f32.gmra.mrb[154].mxu1 %vm3987_vm5, %v7041_v33  ;;  %v7044_v14 = vld [vmem:[#allocation2 + $0x1f1] sm:$0xff] }
 0x2f8   : > { %14081 = vmatprep.mubr.msk.f32.mxu0 %vm17213_vm4, %v22297_v10  ;;  %14607 = vmatprep.mubr.msk.f32.mxu1 %vm17213_vm4, %v22297_v10  ;;  %v5455_v33 = vld [vmem:[#allocation2 + $0x18] sm:$0xff] }
 0x2fb   : > { %14082 = vmatmul.mubr.msk.f32.gmra.mrb[172].mxu0 %vm3987_vm5, %v19672_v39  ;;  %14608 = vmatmul.mubr.msk.f32.gmra.mrb[156].mxu1 %vm3987_vm5, %v7042_v9  ;;  %v7046_v39 = vld [vmem:[#allocation2 + $0x201] sm:$0xff]  ;;  %v20123_v9 = vld [vmem:[#allocation2 + $0xf0] sm:$0xff] }
 0x2fc   : > { %14084 = vmatprep.mubr.msk.f32.mxu0 %vm17213_vm4, %v22297_v10  ;;  %14610 = vmatprep.mubr.msk.f32.mxu1 %vm17213_vm4, %v22297_v10 }
 0x2ff   : > { %14085 = vmatmul.mubr.msk.f32.gmra.mrb[174].mxu0 %vm3987_vm5, %v19681_v48  ;;  %14611 = vmatmul.mubr.msk.f32.gmra.mrb[158].mxu1 %vm3987_vm5, %v7043_v7  ;;  %v7048_v48 = vld [vmem:[#allocation2 + $0x211] sm:$0xff] }
 0x300   : > { %14087 = vmatprep.mubr.msk.f32.mxu0 %vm17213_vm4, %v22297_v10  ;;  %14613 = vmatprep.mubr.msk.f32.mxu1 %vm17213_vm4, %v22297_v10  ;;  %v20132_v7 = vld [vmem:[#allocation2 + $0xf8] sm:$0xff] }
 0x303   : > { %14088 = vmatmul.mubr.msk.f32.gmra.mrb[176].mxu0 %vm3987_vm5, %v19690_v12  ;;  %14614 = vmatmul.mubr.msk.f32.gmra.mrb[160].mxu1 %vm3987_vm5, %v7044_v14  ;;  %v7050_v12 = vld [vmem:[#allocation2 + $0x221] sm:$0xff] }
 0x304   : > { %14094 = vmatprep.mubr.msk.f32.mxu0 %vm17213_vm4, %v22297_v10  ;;  %14616 = vmatprep.mubr.msk.f32.mxu1 %vm17213_vm4, %v22297_v10  ;;  %v17065_v14 = vld [vmem:[#allocation2 + $0x20] sm:$0xff] }
 0x307   : > { %14095 = vmatmul.mubr.msk.f32.vlgmr.msra.gmra.mrb[144].mxu0 %vm3987_vm5, %v19707_v17  ;;  %14617 = vmatmul.mubr.msk.f32.gmra.mrb[162].mxu1 %vm3987_vm5, %v7045_v57  ;;  %v20141_v57 = vld [vmem:[#allocation2 + $0x100] sm:$0xff] }
 0x308   : > { %15855 = vmatpush3.bf16.msra.mxu0 %v19878_v1  ;;  %14097 = vmatprep.mubr.msk.f32.mxu0 %vm17213_vm4, %v22297_v10 }
 0x309   : > { %14619 = vmatprep.mubr.msk.f32.mxu1 %vm17213_vm4, %v22297_v10  ;;  %15856 = vmatprep.subr.bf16.mxu0 %v22299_v21 }
 0x30b   : > { %14098 = vmatmul.mubr.msk.f32.gmra.mrb[146].mxu0 %vm3987_vm5, %v19717_v31  ;;  %14620 = vmatmul.mubr.msk.f32.gmra.mrb[164].mxu1 %vm3987_vm5, %v7046_v39  ;;  %v20151_v39 = vld [vmem:[#allocation2 + $0x108] sm:$0xff] }
 0x30c   : > { %14100 = vmatprep.mubr.msk.f32.mxu0 %vm17213_vm4, %v22297_v10  ;;  %14622 = vmatprep.mubr.msk.f32.mxu1 %vm17213_vm4, %v22297_v10 }
 0x30f   : > { %14101 = vmatmul.mubr.msk.f32.gmra.mrb[148].mxu0 %vm3987_vm5, %v19727_v0  ;;  %14623 = vmatmul.mubr.msk.f32.gmra.mrb[166].mxu1 %vm3987_vm5, %v7047_v47  ;;  %v11882_v47 = vld [vmem:[%s22010_s4 + $0x80] sm:$0xff] }
 0x310   : > { %14103 = vmatprep.mubr.msk.f32.mxu0 %vm17213_vm4, %v22297_v10  ;;  %14625 = vmatprep.mubr.msk.f32.mxu1 %vm17213_vm4, %v22297_v10 }
 0x313   : > { %14104 = vmatmul.mubr.msk.f32.gmra.mrb[150].mxu0 %vm3987_vm5, %v19736_v50  ;;  %14626 = vmatmul.mubr.msk.f32.gmra.mrb[168].mxu1 %vm3987_vm5, %v7048_v48  ;;  %v11883_v48 = vld [vmem:[%s22010_s4 + $0x88] sm:$0xff] }
 0x314   : > { %14106 = vmatprep.mubr.msk.f32.mxu0 %vm17213_vm4, %v22297_v10  ;;  %14628 = vmatprep.mubr.msk.f32.mxu1 %vm17213_vm4, %v22297_v10 }
 0x317   : > { %14107 = vmatmul.mubr.msk.f32.gmra.mrb[152].mxu0 %vm3987_vm5, %v19745_v61  ;;  %14629 = vmatmul.mubr.msk.f32.gmra.mrb[170].mxu1 %vm3987_vm5, %v7049_v54  ;;  %v20189_v54 = vld [vmem:[#allocation2 + $0x9] sm:$0xff] }
 0x318   : > { %14109 = vmatprep.mubr.msk.f32.mxu0 %vm17213_vm4, %v22297_v10  ;;  %14631 = vmatprep.mubr.msk.f32.mxu1 %vm17213_vm4, %v22297_v10 }
 0x31b   : > { %14110 = vmatmul.mubr.msk.f32.gmra.mrb[154].mxu0 %vm3987_vm5, %v19754_v19  ;;  %14632 = vmatmul.mubr.msk.f32.gmra.mrb[172].mxu1 %vm3987_vm5, %v7050_v12  ;;  %v20261_v12 = vld [vmem:[#allocation2 + $0x41] sm:$0xff] }
 0x31c   : > { %14112 = vmatprep.mubr.msk.f32.mxu0 %vm17213_vm4, %v22297_v10  ;;  %14634 = vmatprep.mubr.msk.f32.mxu1 %vm17213_vm4, %v22297_v10 }
 0x31f   : > { %14113 = vmatmul.mubr.msk.f32.gmra.mrb[156].mxu0 %vm3987_vm5, %v19763_v25  ;;  %14635 = vmatmul.mubr.msk.f32.gmra.mrb[174].mxu1 %vm3987_vm5, %v7051_v29  ;;  %v20270_v29 = vld [vmem:[#allocation2 + $0x49] sm:$0xff] }
 0x320   : > { %14115 = vmatprep.mubr.msk.f32.mxu0 %vm17213_vm4, %v22297_v10  ;;  %14637 = vmatprep.mubr.msk.f32.mxu1 %vm17213_vm4, %v22297_v10 }
 0x323   : > { %14116 = vmatmul.mubr.msk.f32.gmra.mrb[158].mxu0 %vm3987_vm5, %v19772_v3  ;;  %14638 = vmatmul.mubr.msk.f32.gmra.mrb[176].mxu1 %vm3987_vm5, %v7052_v41  ;;  %v20279_v41 = vld [vmem:[#allocation2 + $0x51] sm:$0xff] }
 0x324   : > { %14118 = vmatprep.mubr.msk.f32.mxu0 %vm17213_vm4, %v22297_v10  ;;  %14644 = vmatprep.mubr.msk.f32.mxu1 %vm17213_vm4, %v22297_v10 }
 0x327   : > { %14119 = vmatmul.mubr.msk.f32.gmra.mrb[160].mxu0 %vm3987_vm5, %v19781_v42  ;;  %14645 = vmatmul.mubr.msk.f32.vlgmr.msra.gmra.mrb[144].mxu1 %vm3987_vm5, %v20011_v22 }
 0x328   : > { %14121 = vmatprep.mubr.msk.f32.mxu0 %vm17213_vm4, %v22297_v10  ;;  %14647 = vmatprep.mubr.msk.f32.mxu1 %vm17213_vm4, %v22297_v10 }
 0x329   : > { %15885 = vmatpush3.bf16.msra.mxu1 %v20009_v59 }
 0x32a   : > { %15886 = vmatprep.subr.bf16.mxu1 %v22299_v21 }
 0x32b   : > { %14122 = vmatmul.mubr.msk.f32.gmra.mrb[162].mxu0 %vm3987_vm5, %v19790_v55  ;;  %14648 = vmatmul.mubr.msk.f32.gmra.mrb[146].mxu1 %vm3987_vm5, %v20022_v49 }
 0x32c   : > { %14124 = vmatprep.mubr.msk.f32.mxu0 %vm17213_vm4, %v22297_v10  ;;  %14650 = vmatprep.mubr.msk.f32.mxu1 %vm17213_vm4, %v22297_v10 }
 0x32f   : > { %14125 = vmatmul.mubr.msk.f32.gmra.mrb[164].mxu0 %vm3987_vm5, %v19802_v6  ;;  %14651 = vmatmul.mubr.msk.f32.gmra.mrb[148].mxu1 %vm3987_vm5, %v20033_v15 }
 0x330   : > { %14127 = vmatprep.mubr.msk.f32.mxu0 %vm17213_vm4, %v22297_v10  ;;  %14653 = vmatprep.mubr.msk.f32.mxu1 %vm17213_vm4, %v22297_v10 }
 0x333   : > { %14128 = vmatmul.mubr.msk.f32.gmra.mrb[166].mxu0 %vm3987_vm5, %v19812_v46  ;;  %14654 = vmatmul.mubr.msk.f32.gmra.mrb[150].mxu1 %vm3987_vm5, %v20043_v26 }
 0x334   : > { %14130 = vmatprep.mubr.msk.f32.mxu0 %vm17213_vm4, %v22297_v10  ;;  %14656 = vmatprep.mubr.msk.f32.mxu1 %vm17213_vm4, %v22297_v10 }
 0x337   : > { %14131 = vmatmul.mubr.msk.f32.gmra.mrb[168].mxu0 %vm3987_vm5, %v19822_v53  ;;  %14657 = vmatmul.mubr.msk.f32.gmra.mrb[152].mxu1 %vm3987_vm5, %v20053_v11 }
 0x338   : > { %14133 = vmatprep.mubr.msk.f32.mxu0 %vm17213_vm4, %v22297_v10  ;;  %14659 = vmatprep.mubr.msk.f32.mxu1 %vm17213_vm4, %v22297_v10 }
 0x33b   : > { %14134 = vmatmul.mubr.msk.f32.gmra.mrb[170].mxu0 %vm3987_vm5, %v19832_v52  ;;  %14660 = vmatmul.mubr.msk.f32.gmra.mrb[154].mxu1 %vm3987_vm5, %v20063_v35 }
 0x33c   : > { %14136 = vmatprep.mubr.msk.f32.mxu0 %vm17213_vm4, %v22297_v10  ;;  %14662 = vmatprep.mubr.msk.f32.mxu1 %vm17213_vm4, %v22297_v10 }
 0x33f   : > { %14137 = vmatmul.mubr.msk.f32.gmra.mrb[172].mxu0 %vm3987_vm5, %v19842_v51  ;;  %14663 = vmatmul.mubr.msk.f32.gmra.mrb[156].mxu1 %vm3987_vm5, %v20073_v32 }
 0x340   : > { %14139 = vmatprep.mubr.msk.f32.mxu0 %vm17213_vm4, %v22297_v10  ;;  %14665 = vmatprep.mubr.msk.f32.mxu1 %vm17213_vm4, %v22297_v10 }
 0x343   : > { %14140 = vmatmul.mubr.msk.f32.gmra.mrb[174].mxu0 %vm3987_vm5, %v19852_v28  ;;  %14666 = vmatmul.mubr.msk.f32.gmra.mrb[158].mxu1 %vm3987_vm5, %v20083_v27 }
 0x344   : > { %14142 = vmatprep.mubr.msk.f32.mxu0 %vm17213_vm4, %v22297_v10  ;;  %14668 = vmatprep.mubr.msk.f32.mxu1 %vm17213_vm4, %v22297_v10 }
 0x347   : > { %14143 = vmatmul.mubr.msk.f32.gmra.mrb[176].mxu0 %vm3987_vm5, %v19862_v24  ;;  %14669 = vmatmul.mubr.msk.f32.gmra.mrb[160].mxu1 %vm3987_vm5, %v20093_v36 }
 0x348   : > { %14149 = vmatprep.mubr.msk.f32.mxu0 %vm17213_vm4, %v22297_v10  ;;  %14671 = vmatprep.mubr.msk.f32.mxu1 %vm17213_vm4, %v22297_v10 }
 0x34b   : > { %14150 = vmatmul.mubr.msk.f32.vlgmr.msra.gmra.mrb[144].mxu0 %vm3987_vm5, %v5453_v2  ;;  %14672 = vmatmul.mubr.msk.f32.gmra.mrb[162].mxu1 %vm3987_vm5, %v20103_v58  ;;  %v7608_v2 = vld [vmem:[#allocation2 + $0xb1] sm:$0xff] }
 0x34c   : > { %15858 = vmatpush3.bf16.msra.mxu0 %v20009_v59  ;;  %14152 = vmatprep.mubr.msk.f32.mxu0 %vm17213_vm4, %v22297_v10 }
 0x34d   : > { %14674 = vmatprep.mubr.msk.f32.mxu1 %vm17213_vm4, %v22297_v10  ;;  %15859 = vmatprep.subr.bf16.mxu0 %v22299_v21 }
 0x34f   : > { %14153 = vmatmul.mubr.msk.f32.gmra.mrb[146].mxu0 %vm3987_vm5, %v5454_v43  ;;  %14675 = vmatmul.mubr.msk.f32.gmra.mrb[164].mxu1 %vm3987_vm5, %v20114_v5  ;;  %v7610_v43 = vld [vmem:[#allocation2 + $0xc1] sm:$0xff] }
 0x350   : > { %14155 = vmatprep.mubr.msk.f32.mxu0 %vm17213_vm4, %v22297_v10  ;;  %14677 = vmatprep.mubr.msk.f32.mxu1 %vm17213_vm4, %v22297_v10 }
 0x353   : > { %14156 = vmatmul.mubr.msk.f32.gmra.mrb[148].mxu0 %vm3987_vm5, %v5455_v33  ;;  %14678 = vmatmul.mubr.msk.f32.gmra.mrb[166].mxu1 %vm3987_vm5, %v20123_v9  ;;  %v7612_v33 = vld [vmem:[#allocation2 + $0xd1] sm:$0xff] }
 0x354   : > { %14158 = vmatprep.mubr.msk.f32.mxu0 %vm17213_vm4, %v22297_v10  ;;  %14680 = vmatprep.mubr.msk.f32.mxu1 %vm17213_vm4, %v22297_v10 }
 0x357   : > { %14159 = vmatmul.mubr.msk.f32.gmra.mrb[150].mxu0 %vm3987_vm5, %v17065_v14  ;;  %14681 = vmatmul.mubr.msk.f32.gmra.mrb[168].mxu1 %vm3987_vm5, %v20132_v7  ;;  %v7615_v14 = vld [vmem:[#allocation2 + $0xe9] sm:$0xff] }
 0x358   : > { %14161 = vmatprep.mubr.msk.f32.mxu0 %vm17213_vm4, %v22297_v10  ;;  %14683 = vmatprep.mubr.msk.f32.mxu1 %vm17213_vm4, %v22297_v10 }
 0x35b   : > { %14162 = vmatmul.mubr.msk.f32.gmra.mrb[152].mxu0 %vm3987_vm5, %v19355_v13  ;;  %14684 = vmatmul.mubr.msk.f32.gmra.mrb[170].mxu1 %vm3987_vm5, %v20141_v57  ;;  %v20161_v13 = vld [vmem:[#allocation2 + $0x110] sm:$0xff] }
 0x35c   : > { %14164 = vmatprep.mubr.msk.f32.mxu0 %vm17213_vm4, %v22297_v10  ;;  %14686 = vmatprep.mubr.msk.f32.mxu1 %vm17213_vm4, %v22297_v10 }
 0x35f   : > { %14165 = vmatmul.mubr.msk.f32.gmra.mrb[154].mxu0 %vm3987_vm5, %v19371_v4  ;;  %14687 = vmatmul.mubr.msk.f32.gmra.mrb[172].mxu1 %vm3987_vm5, %v20151_v39  ;;  %v20171_v4 = vld [vmem:[#allocation2 + $0x118] sm:$0x7f] }
 0x360   : > { %14167 = vmatprep.mubr.msk.f32.mxu0 %vm17213_vm4, %v22297_v10  ;;  %14689 = vmatprep.mubr.msk.f32.mxu1 %vm17213_vm4, %v22297_v10 }
 0x363   : > { %14168 = vmatmul.mubr.msk.f32.gmra.mrb[156].mxu0 %vm3987_vm5, %v19384_v18  ;;  %14690 = vmatmul.mubr.msk.f32.gmra.mrb[174].mxu1 %vm3987_vm5, %v20161_v13  ;;  %v20187_v18 = vpack.c.bf16 %v11883_v48, %v11882_v47  ;;  %v7620_v47 = vld [vmem:[#allocation2 + $0x111] sm:$0xff]  ;;  %v7621_v48 = vld [vmem:[#allocation2 + $0x119] sm:$0x7f] }
 0x364   : > { %14170 = vmatprep.mubr.msk.f32.mxu0 %vm17213_vm4, %v22297_v10  ;;  %14692 = vmatprep.mubr.msk.f32.mxu1 %vm17213_vm4, %v22297_v10 }
 0x367   : > { %14171 = vmatmul.mubr.msk.f32.gmra.mrb[158].mxu0 %vm3987_vm5, %v19403_v20  ;;  %14693 = vmatmul.mubr.msk.f32.gmra.mrb[176].mxu1 %vm3987_vm5, %v20171_v4  ;;  %v20200_v20 = vld [vmem:[#allocation2 + $0x11] sm:$0xff] }
 0x368   : > { %14173 = vmatprep.mubr.msk.f32.mxu0 %vm17213_vm4, %v22297_v10  ;;  %14699 = vmatprep.mubr.msk.f32.mxu1 %vm17213_vm4, %v22297_v10 }
 0x36b   : > { %14174 = vmatmul.mubr.msk.f32.gmra.mrb[160].mxu0 %vm3987_vm5, %v19413_v56  ;;  %14700 = vmatmul.mubr.msk.f32.vlgmr.msra.gmra.mrb[144].mxu1 %vm3987_vm5, %v20189_v54  ;;  %v20211_v56 = vld [vmem:[#allocation2 + $0x19] sm:$0xff] }
 0x36c   : > { %14176 = vmatprep.mubr.msk.f32.mxu0 %vm17213_vm4, %v22297_v10  ;;  %14702 = vmatprep.mubr.msk.f32.mxu1 %vm17213_vm4, %v22297_v10 }
 0x36d   : > { %15888 = vmatpush3.bf16.msra.mxu1 %v20187_v18 }
 0x36e   : > { %15916 = vmatprep.subr.bf16.mxu1 %v22299_v21 }
 0x36f   : > { %14177 = vmatmul.mubr.msk.f32.gmra.mrb[162].mxu0 %vm3987_vm5, %v19423_v60  ;;  %14703 = vmatmul.mubr.msk.f32.gmra.mrb[146].mxu1 %vm3987_vm5, %v20200_v20  ;;  %v20221_v60 = vld [vmem:[#allocation2 + $0x21] sm:$0xff] }
 0x370   : > { %14179 = vmatprep.mubr.msk.f32.mxu0 %vm17213_vm4, %v22297_v10  ;;  %14705 = vmatprep.mubr.msk.f32.mxu1 %vm17213_vm4, %v22297_v10 }
 0x373   : > { %14180 = vmatmul.mubr.msk.f32.gmra.mrb[164].mxu0 %vm3987_vm5, %v19432_v37  ;;  %14706 = vmatmul.mubr.msk.f32.gmra.mrb[148].mxu1 %vm3987_vm5, %v20211_v56  ;;  %v20231_v37 = vld [vmem:[#allocation2 + $0x29] sm:$0xff] }
 0x374   : > { %14182 = vmatprep.mubr.msk.f32.mxu0 %vm17213_vm4, %v22297_v10  ;;  %14708 = vmatprep.mubr.msk.f32.mxu1 %vm17213_vm4, %v22297_v10 }
 0x377   : > { %14183 = vmatmul.mubr.msk.f32.gmra.mrb[166].mxu0 %vm3987_vm5, %v19441_v8  ;;  %14709 = vmatmul.mubr.msk.f32.gmra.mrb[150].mxu1 %vm3987_vm5, %v20221_v60  ;;  %v20241_v8 = vld [vmem:[#allocation2 + $0x31] sm:$0xff] }
 0x378   : > { %14185 = vmatprep.mubr.msk.f32.mxu0 %vm17213_vm4, %v22297_v10  ;;  %14711 = vmatprep.mubr.msk.f32.mxu1 %vm17213_vm4, %v22297_v10 }
 0x37b   : > { %14186 = vmatmul.mubr.msk.f32.gmra.mrb[168].mxu0 %vm3987_vm5, %v19450_v45  ;;  %14712 = vmatmul.mubr.msk.f32.gmra.mrb[152].mxu1 %vm3987_vm5, %v20231_v37  ;;  %v20251_v45 = vld [vmem:[#allocation2 + $0x39] sm:$0xff] }
 0x37c   : > { %14188 = vmatprep.mubr.msk.f32.mxu0 %vm17213_vm4, %v22297_v10  ;;  %14714 = vmatprep.mubr.msk.f32.mxu1 %vm17213_vm4, %v22297_v10 }
 0x37f   : > { %14189 = vmatmul.mubr.msk.f32.gmra.mrb[170].mxu0 %vm3987_vm5, %v19459_v38  ;;  %14715 = vmatmul.mubr.msk.f32.gmra.mrb[154].mxu1 %vm3987_vm5, %v20241_v8  ;;  %v5468_v38 = vld [vmem:[#allocation2 + $0x80] sm:$0xff] }
 0x380   : > { %14191 = vmatprep.mubr.msk.f32.mxu0 %vm17213_vm4, %v22297_v10  ;;  %14717 = vmatprep.mubr.msk.f32.mxu1 %vm17213_vm4, %v22297_v10 }
 0x383   : > { %14192 = vmatmul.mubr.msk.f32.gmra.mrb[172].mxu0 %vm3987_vm5, %v19468_v40  ;;  %14718 = vmatmul.mubr.msk.f32.gmra.mrb[156].mxu1 %vm3987_vm5, %v20251_v45  ;;  %v5469_v40 = vld [vmem:[#allocation2 + $0x88] sm:$0x7f] }
 0x384   : > { %14194 = vmatprep.mubr.msk.f32.mxu0 %vm17213_vm4, %v22297_v10  ;;  %14720 = vmatprep.mubr.msk.f32.mxu1 %vm17213_vm4, %v22297_v10 }
 0x387   : > { %14195 = vmatmul.mubr.msk.f32.gmra.mrb[174].mxu0 %vm3987_vm5, %v5468_v38  ;;  %14721 = vmatmul.mubr.msk.f32.gmra.mrb[158].mxu1 %vm3987_vm5, %v20261_v12  ;;  %v17092_v38 = vld [vmem:[#allocation2 + $0x1b1] sm:$0xff] }
 0x388   : > { %14197 = vmatprep.mubr.msk.f32.mxu0 %vm17213_vm4, %v22297_v10  ;;  %14723 = vmatprep.mubr.msk.f32.mxu1 %vm17213_vm4, %v22297_v10 }
 0x38b   : > { %14198 = vmatmul.mubr.msk.f32.gmra.mrb[176].mxu0 %vm3987_vm5, %v5469_v40  ;;  %14724 = vmatmul.mubr.msk.f32.gmra.mrb[160].mxu1 %vm3987_vm5, %v20270_v29  ;;  %v17094_v40 = vld [vmem:[#allocation2 + $0x1b9] sm:$0xff] }
 0x38c   : > { %14204 = vmatprep.mubr.msk.f32.mxu0 %vm17213_vm4, %v22297_v10  ;;  %14726 = vmatprep.mubr.msk.f32.mxu1 %vm17213_vm4, %v22297_v10 }
 0x38f   : > { %14205 = vmatmul.mubr.msk.f32.vlgmr.msra.gmra.mrb[144].mxu0 %vm3987_vm5, %v20011_v22  ;;  %14727 = vmatmul.mubr.msk.f32.gmra.mrb[162].mxu1 %vm3987_vm5, %v20279_v41  ;;  %v20311_v22 = vld [vmem:[#allocation2 + $0x69] sm:$0xff] }
 0x390   : > { %15861 = vmatpush3.bf16.msra.mxu0 %v20187_v18  ;;  %14207 = vmatprep.mubr.msk.f32.mxu0 %vm17213_vm4, %v22297_v10 }
 0x391   : > { %14729 = vmatprep.mubr.msk.f32.mxu1 %vm17213_vm4, %v22297_v10  ;;  %15889 = vmatprep.subr.bf16.mxu0 %v22299_v21 }
 0x393   : > { %14208 = vmatmul.mubr.msk.f32.gmra.mrb[146].mxu0 %vm3987_vm5, %v20022_v49  ;;  %14730 = vmatmul.mubr.msk.f32.gmra.mrb[164].mxu1 %vm3987_vm5, %v20291_v34  ;;  %v20321_v49 = vld [vmem:[#allocation2 + $0x71] sm:$0xff] }
 0x394   : > { %14210 = vmatprep.mubr.msk.f32.mxu0 %vm17213_vm4, %v22297_v10  ;;  %14732 = vmatprep.mubr.msk.f32.mxu1 %vm17213_vm4, %v22297_v10 }
 0x397   : > { %14211 = vmatmul.mubr.msk.f32.gmra.mrb[148].mxu0 %vm3987_vm5, %v20033_v15  ;;  %14733 = vmatmul.mubr.msk.f32.gmra.mrb[166].mxu1 %vm3987_vm5, %v20301_v30  ;;  %v20331_v15 = vld [vmem:[#allocation2 + $0x79] sm:$0xff] }
 0x398   : > { %14213 = vmatprep.mubr.msk.f32.mxu0 %vm17213_vm4, %v22297_v10  ;;  %14735 = vmatprep.mubr.msk.f32.mxu1 %vm17213_vm4, %v22297_v10 }
 0x39b   : > { %14214 = vmatmul.mubr.msk.f32.gmra.mrb[150].mxu0 %vm3987_vm5, %v20043_v26  ;;  %14736 = vmatmul.mubr.msk.f32.gmra.mrb[168].mxu1 %vm3987_vm5, %v20311_v22  ;;  %v20341_v26 = vld [vmem:[#allocation2 + $0x81] sm:$0xff] }
 0x39c   : > { %14216 = vmatprep.mubr.msk.f32.mxu0 %vm17213_vm4, %v22297_v10  ;;  %14738 = vmatprep.mubr.msk.f32.mxu1 %vm17213_vm4, %v22297_v10 }
 0x39f   : > { %14217 = vmatmul.mubr.msk.f32.gmra.mrb[152].mxu0 %vm3987_vm5, %v20053_v11  ;;  %14739 = vmatmul.mubr.msk.f32.gmra.mrb[170].mxu1 %vm3987_vm5, %v20321_v49  ;;  %v20351_v11 = vld [vmem:[#allocation2 + $0x89] sm:$0x7f] }
 0x3a0   : > { %14219 = vmatprep.mubr.msk.f32.mxu0 %vm17213_vm4, %v22297_v10  ;;  %14741 = vmatprep.mubr.msk.f32.mxu1 %vm17213_vm4, %v22297_v10 }
 0x3a3   : > { %14220 = vmatmul.mubr.msk.f32.gmra.mrb[154].mxu0 %vm3987_vm5, %v20063_v35  ;;  %14742 = vmatmul.mubr.msk.f32.gmra.mrb[172].mxu1 %vm3987_vm5, %v20331_v15  ;;  %v7605_v35 = vld [vmem:[#allocation2 + $0x99] sm:$0xff] }
 0x3a4   : > { %14222 = vmatprep.mubr.msk.f32.mxu0 %vm17213_vm4, %v22297_v10  ;;  %14744 = vmatprep.mubr.msk.f32.mxu1 %vm17213_vm4, %v22297_v10 }
 0x3a7   : > { %14223 = vmatmul.mubr.msk.f32.gmra.mrb[156].mxu0 %vm3987_vm5, %v20073_v32  ;;  %14745 = vmatmul.mubr.msk.f32.gmra.mrb[174].mxu1 %vm3987_vm5, %v20341_v26  ;;  %v22511_v32 = vld [vmem:[#allocation3_spill] sm:$0xff] }
 0x3a8   : > { %14225 = vmatprep.mubr.msk.f32.mxu0 %vm17213_vm4, %v22297_v10  ;;  %14747 = vmatprep.mubr.msk.f32.mxu1 %vm17213_vm4, %v22297_v10 }
 0x3ab   : > { %14226 = vmatmul.mubr.msk.f32.gmra.mrb[158].mxu0 %vm3987_vm5, %v20083_v27  ;;  %14748 = vmatmul.mubr.msk.f32.gmra.mrb[176].mxu1 %vm3987_vm5, %v20351_v11  ;;  %v7606_v27 = vld [vmem:[#allocation2 + $0xa1] sm:$0xff] }
 0x3ac   : > { %14228 = vmatprep.mubr.msk.f32.mxu0 %vm17213_vm4, %v22297_v10  ;;  %14754 = vmatprep.mubr.msk.f32.mxu1 %vm17213_vm4, %v22297_v10 }
 0x3af   : > { %14229 = vmatmul.mubr.msk.f32.gmra.mrb[160].mxu0 %vm3987_vm5, %v20093_v36  ;;  %14755 = vmatmul.mubr.msk.f32.vlgmr.msra.gmra.mrb[144].mxu1 %vm3987_vm5, %v7605_v35  ;;  %v7607_v36 = vld [vmem:[#allocation2 + $0xa9] sm:$0xff] }
 0x3b0   : > { %14231 = vmatprep.mubr.msk.f32.mxu0 %vm17213_vm4, %v22297_v10  ;;  %14757 = vmatprep.mubr.msk.f32.mxu1 %vm17213_vm4, %v22297_v10 }
 0x3b1   : > { %15918 = vmatpush3.bf16.msra.mxu1 %v22511_v32 }
 0x3b2   : > { %15919 = vmatprep.subr.bf16.mxu1 %v22299_v21 }
 0x3b3   : > { %14232 = vmatmul.mubr.msk.f32.gmra.mrb[162].mxu0 %vm3987_vm5, %v20103_v58  ;;  %14758 = vmatmul.mubr.msk.f32.gmra.mrb[146].mxu1 %vm3987_vm5, %v7606_v27  ;;  %v7609_v58 = vld [vmem:[#allocation2 + $0xb9] sm:$0xff]  ;;  %v17100_v27 = vld [vmem:[#allocation2 + $0x1d1] sm:$0xff] }
 0x3b4   : > { %14234 = vmatprep.mubr.msk.f32.mxu0 %vm17213_vm4, %v22297_v10  ;;  %14760 = vmatprep.mubr.msk.f32.mxu1 %vm17213_vm4, %v22297_v10 }
 0x3b7   : > { %14235 = vmatmul.mubr.msk.f32.gmra.mrb[164].mxu0 %vm3987_vm5, %v20114_v5  ;;  %14761 = vmatmul.mubr.msk.f32.gmra.mrb[148].mxu1 %vm3987_vm5, %v7607_v36  ;;  %v7611_v5 = vld [vmem:[#allocation2 + $0xc9] sm:$0xff] }
 0x3b8   : > { %14237 = vmatprep.mubr.msk.f32.mxu0 %vm17213_vm4, %v22297_v10  ;;  %14763 = vmatprep.mubr.msk.f32.mxu1 %vm17213_vm4, %v22297_v10 }
 0x3bb   : > { %14238 = vmatmul.mubr.msk.f32.gmra.mrb[166].mxu0 %vm3987_vm5, %v20123_v9  ;;  %14764 = vmatmul.mubr.msk.f32.gmra.mrb[150].mxu1 %vm3987_vm5, %v7608_v2  ;;  %v7613_v9 = vld [vmem:[#allocation2 + $0xd9] sm:$0xff] }
 0x3bc   : > { %14240 = vmatprep.mubr.msk.f32.mxu0 %vm17213_vm4, %v22297_v10  ;;  %14766 = vmatprep.mubr.msk.f32.mxu1 %vm17213_vm4, %v22297_v10 }
 0x3bf   : > { %14241 = vmatmul.mubr.msk.f32.gmra.mrb[168].mxu0 %vm3987_vm5, %v20132_v7  ;;  %14767 = vmatmul.mubr.msk.f32.gmra.mrb[152].mxu1 %vm3987_vm5, %v7609_v58  ;;  %v7614_v7 = vld [vmem:[#allocation2 + $0xe1] sm:$0xff] }
 0x3c0   : > { %14243 = vmatprep.mubr.msk.f32.mxu0 %vm17213_vm4, %v22297_v10  ;;  %14769 = vmatprep.mubr.msk.f32.mxu1 %vm17213_vm4, %v22297_v10  ;;  %v17101_v58 = vld [vmem:[#allocation2 + $0x188] sm:$0xff] }
 0x3c3   : > { %14244 = vmatmul.mubr.msk.f32.gmra.mrb[170].mxu0 %vm3987_vm5, %v20141_v57  ;;  %14770 = vmatmul.mubr.msk.f32.gmra.mrb[154].mxu1 %vm3987_vm5, %v7610_v43  ;;  %v7616_v57 = vld [vmem:[#allocation2 + $0xf1] sm:$0xff]  ;;  %v17102_v43 = vld [vmem:[#allocation2 + $0x1d9] sm:$0xff] }
 0x3c4   : > { %14246 = vmatprep.mubr.msk.f32.mxu0 %vm17213_vm4, %v22297_v10  ;;  %14772 = vmatprep.mubr.msk.f32.mxu1 %vm17213_vm4, %v22297_v10 }
 0x3c7   : > { %14247 = vmatmul.mubr.msk.f32.gmra.mrb[172].mxu0 %vm3987_vm5, %v20151_v39  ;;  %14773 = vmatmul.mubr.msk.f32.gmra.mrb[156].mxu1 %vm3987_vm5, %v7611_v5  ;;  %v7617_v39 = vld [vmem:[#allocation2 + $0xf9] sm:$0xff] }
 0x3c8   : > { %14249 = vmatprep.mubr.msk.f32.mxu0 %vm17213_vm4, %v22297_v10  ;;  %14775 = vmatprep.mubr.msk.f32.mxu1 %vm17213_vm4, %v22297_v10 }
 0x3cb   : > { %14250 = vmatmul.mubr.msk.f32.gmra.mrb[174].mxu0 %vm3987_vm5, %v20161_v13  ;;  %14776 = vmatmul.mubr.msk.f32.gmra.mrb[158].mxu1 %vm3987_vm5, %v7612_v33  ;;  %v7618_v13 = vld [vmem:[#allocation2 + $0x101] sm:$0xff] }
 0x3cc   : > { %14252 = vmatprep.mubr.msk.f32.mxu0 %vm17213_vm4, %v22297_v10  ;;  %14778 = vmatprep.mubr.msk.f32.mxu1 %vm17213_vm4, %v22297_v10 }
 0x3cf   : > { %14253 = vmatmul.mubr.msk.f32.gmra.mrb[176].mxu0 %vm3987_vm5, %v20171_v4  ;;  %14779 = vmatmul.mubr.msk.f32.gmra.mrb[160].mxu1 %vm3987_vm5, %v7613_v9  ;;  %v7619_v4 = vld [vmem:[#allocation2 + $0x109] sm:$0xff] }
 0x3d0   : > { %14259 = vmatprep.mubr.msk.f32.mxu0 %vm17213_vm4, %v22297_v10  ;;  %14781 = vmatprep.mubr.msk.f32.mxu1 %vm17213_vm4, %v22297_v10  ;;  %v17103_v9 = vld [vmem:[#allocation2 + $0x190] sm:$0xff] }
 0x3d3   : > { %14260 = vmatmul.mubr.msk.f32.vlgmr.msra.gmra.mrb[144].mxu0 %vm3987_vm5, %v20189_v54  ;;  %14782 = vmatmul.mubr.msk.f32.gmra.mrb[162].mxu1 %vm3987_vm5, %v7614_v7  ;;  %v17084_v54 = vld [vmem:[#allocation2 + $0x128] sm:$0xff] }
 0x3d4   : > { %15891 = vmatpush3.bf16.msra.mxu0 %v22511_v32  ;;  %14262 = vmatprep.mubr.msk.f32.mxu0 %vm17213_vm4, %v22297_v10  ;;  %v17099_v32 = vld [vmem:[#allocation2 + $0x180] sm:$0xff] }
 0x3d5   : > { %14784 = vmatprep.mubr.msk.f32.mxu1 %vm17213_vm4, %v22297_v10  ;;  %15892 = vmatprep.subr.bf16.mxu0 %v22299_v21  ;;  %v17104_v7 = vld [vmem:[#allocation2 + $0x1e1] sm:$0xff] }
 0x3d7   : > { %14263 = vmatmul.mubr.msk.f32.gmra.mrb[146].mxu0 %vm3987_vm5, %v20200_v20  ;;  %14785 = vmatmul.mubr.msk.f32.gmra.mrb[164].mxu1 %vm3987_vm5, %v7615_v14  ;;  %v17086_v20 = vld [vmem:[#allocation2 + $0x138] sm:$0xff] }
 0x3d8   : > { %14265 = vmatprep.mubr.msk.f32.mxu0 %vm17213_vm4, %v22297_v10  ;;  %14787 = vmatprep.mubr.msk.f32.mxu1 %vm17213_vm4, %v22297_v10 }
 0x3db   : > { %14266 = vmatmul.mubr.msk.f32.gmra.mrb[148].mxu0 %vm3987_vm5, %v20211_v56  ;;  %14788 = vmatmul.mubr.msk.f32.gmra.mrb[166].mxu1 %vm3987_vm5, %v7616_v57  ;;  %v17087_v56 = vld [vmem:[#allocation2 + $0x140] sm:$0xff] }
 0x3dc   : > { %14268 = vmatprep.mubr.msk.f32.mxu0 %vm17213_vm4, %v22297_v10  ;;  %14790 = vmatprep.mubr.msk.f32.mxu1 %vm17213_vm4, %v22297_v10 }
 0x3df   : > { %14269 = vmatmul.mubr.msk.f32.gmra.mrb[150].mxu0 %vm3987_vm5, %v20221_v60  ;;  %14791 = vmatmul.mubr.msk.f32.gmra.mrb[168].mxu1 %vm3987_vm5, %v7617_v39  ;;  %v17088_v60 = vld [vmem:[#allocation2 + $0x148] sm:$0xff]  ;;  %v17105_v39 = vld [vmem:[#allocation2 + $0x198] sm:$0xff] }
 0x3e0   : > { %14271 = vmatprep.mubr.msk.f32.mxu0 %vm17213_vm4, %v22297_v10  ;;  %14793 = vmatprep.mubr.msk.f32.mxu1 %vm17213_vm4, %v22297_v10 }
 0x3e3   : > { %14272 = vmatmul.mubr.msk.f32.gmra.mrb[152].mxu0 %vm3987_vm5, %v20231_v37  ;;  %14794 = vmatmul.mubr.msk.f32.gmra.mrb[170].mxu1 %vm3987_vm5, %v7618_v13  ;;  %v17089_v37 = vld [vmem:[#allocation2 + $0x150] sm:$0xff] }
 0x3e4   : > { %14274 = vmatprep.mubr.msk.f32.mxu0 %vm17213_vm4, %v22297_v10  ;;  %14796 = vmatprep.mubr.msk.f32.mxu1 %vm17213_vm4, %v22297_v10  ;;  %v17106_v13 = vld [vmem:[#allocation2 + $0x1e9] sm:$0xff] }
 0x3e7   : > { %14275 = vmatmul.mubr.msk.f32.gmra.mrb[154].mxu0 %vm3987_vm5, %v20241_v8  ;;  %14797 = vmatmul.mubr.msk.f32.gmra.mrb[172].mxu1 %vm3987_vm5, %v7619_v4  ;;  %v17090_v8 = vld [vmem:[#allocation2 + $0x158] sm:$0xff] }
 0x3e8   : > { %14277 = vmatprep.mubr.msk.f32.mxu0 %vm17213_vm4, %v22297_v10  ;;  %14799 = vmatprep.mubr.msk.f32.mxu1 %vm17213_vm4, %v22297_v10 }
 0x3eb   : > { %14278 = vmatmul.mubr.msk.f32.gmra.mrb[156].mxu0 %vm3987_vm5, %v20251_v45  ;;  %14800 = vmatmul.mubr.msk.f32.gmra.mrb[174].mxu1 %vm3987_vm5, %v7620_v47  ;;  %v17091_v45 = vld [vmem:[#allocation2 + $0x160] sm:$0xff] }
 0x3ec   : > { %14280 = vmatprep.mubr.msk.f32.mxu0 %vm17213_vm4, %v22297_v10  ;;  %14802 = vmatprep.mubr.msk.f32.mxu1 %vm17213_vm4, %v22297_v10 }
 0x3ef   : > { %14281 = vmatmul.mubr.msk.f32.gmra.mrb[158].mxu0 %vm3987_vm5, %v20261_v12  ;;  %14803 = vmatmul.mubr.msk.f32.gmra.mrb[176].mxu1 %vm3987_vm5, %v7621_v48  ;;  %v17093_v12 = vld [vmem:[#allocation2 + $0x168] sm:$0xff]  ;;  %v17107_v48 = vld [vmem:[#allocation2 + $0x1a0] sm:$0x7f] }
 0x3f0   : > { %14283 = vmatprep.mubr.msk.f32.mxu0 %vm17213_vm4, %v22297_v10  ;;  %15304 = vmatprep.mubr.msk.f32.mxu1 %vm17213_vm4, %v22297_v10 }
 0x3f3   : > { %14284 = vmatmul.mubr.msk.f32.gmra.mrb[160].mxu0 %vm3987_vm5, %v20270_v29  ;;  %15305 = vmatmul.mubr.msk.f32.vlgmr.msra.gmra.mrb[178].mxu1 %vm3987_vm5, %v19707_v17  ;;  %v17066_v17 = vld [vmem:[#allocation2 + $0x1b0] sm:$0xff] }
 0x3f4   : > { %14286 = vmatprep.mubr.msk.f32.mxu0 %vm17213_vm4, %v22297_v10  ;;  %15307 = vmatprep.mubr.msk.f32.mxu1 %vm17213_vm4, %v22297_v10 }
 0x3f5   : > { %15921 = vmatpush3.bf16.msra.mxu1 %v18712_v16 }
 0x3f6   : > { %15922 = vmatprep.subr.bf16.mxu1 %v22299_v21 }
 0x3f7   : > { %14287 = vmatmul.mubr.msk.f32.gmra.mrb[162].mxu0 %vm3987_vm5, %v20279_v41  ;;  %15308 = vmatmul.mubr.msk.f32.gmra.mrb[180].mxu1 %vm3987_vm5, %v19717_v31  ;;  %v17067_v31 = vld [vmem:[#allocation2 + $0x1b8] sm:$0xff] }
 0x3f8   : > { %14289 = vmatprep.mubr.msk.f32.mxu0 %vm17213_vm4, %v22297_v10  ;;  %15310 = vmatprep.mubr.msk.f32.mxu1 %vm17213_vm4, %v22297_v10 }
 0x3fb   : > { %14290 = vmatmul.mubr.msk.f32.gmra.mrb[164].mxu0 %vm3987_vm5, %v20291_v34  ;;  %15311 = vmatmul.mubr.msk.f32.gmra.mrb[182].mxu1 %vm3987_vm5, %v19727_v0  ;;  %v17069_v0 = vld [vmem:[#allocation2 + $0x1c8] sm:$0xff]  ;;  %v17095_v34 = vld [vmem:[#allocation2 + $0x170] sm:$0xff] }
 0x3fc   : > { %14292 = vmatprep.mubr.msk.f32.mxu0 %vm17213_vm4, %v22297_v10  ;;  %15313 = vmatprep.mubr.msk.f32.mxu1 %vm17213_vm4, %v22297_v10 }
 0x3ff   : > { %14293 = vmatmul.mubr.msk.f32.gmra.mrb[166].mxu0 %vm3987_vm5, %v20301_v30  ;;  %15314 = vmatmul.mubr.msk.f32.gmra.mrb[184].mxu1 %vm3987_vm5, %v19736_v50  ;;  %v17070_v50 = vld [vmem:[#allocation2 + $0x1d0] sm:$0xff]  ;;  %v17096_v30 = vld [vmem:[#allocation2 + $0x1c1] sm:$0xff] }
 0x400   : > { %14295 = vmatprep.mubr.msk.f32.mxu0 %vm17213_vm4, %v22297_v10  ;;  %15316 = vmatprep.mubr.msk.f32.mxu1 %vm17213_vm4, %v22297_v10 }
 0x403   : > { %14296 = vmatmul.mubr.msk.f32.gmra.mrb[168].mxu0 %vm3987_vm5, %v20311_v22  ;;  %15317 = vmatmul.mubr.msk.f32.gmra.mrb[186].mxu1 %vm3987_vm5, %v19745_v61  ;;  %v17071_v61 = vld [vmem:[#allocation2 + $0x1d8] sm:$0xff] }
 0x404   : > { %14298 = vmatprep.mubr.msk.f32.mxu0 %vm17213_vm4, %v22297_v10  ;;  %15319 = vmatprep.mubr.msk.f32.mxu1 %vm17213_vm4, %v22297_v10 }
 0x407   : > { %14299 = vmatmul.mubr.msk.f32.gmra.mrb[170].mxu0 %vm3987_vm5, %v20321_v49  ;;  %15320 = vmatmul.mubr.msk.f32.gmra.mrb[188].mxu1 %vm3987_vm5, %v19754_v19  ;;  %v17072_v19 = vld [vmem:[#allocation2 + $0x1e0] sm:$0xff] }
 0x408   : > { %14301 = vmatprep.mubr.msk.f32.mxu0 %vm17213_vm4, %v22297_v10  ;;  %15322 = vmatprep.mubr.msk.f32.mxu1 %vm17213_vm4, %v22297_v10 }
 0x40b   : > { %14302 = vmatmul.mubr.msk.f32.gmra.mrb[172].mxu0 %vm3987_vm5, %v20331_v15  ;;  %15323 = vmatmul.mubr.msk.f32.gmra.mrb[190].mxu1 %vm3987_vm5, %v19763_v25  ;;  %v17073_v25 = vld [vmem:[#allocation2 + $0x1e8] sm:$0xff]  ;;  %v17097_v15 = vld [vmem:[#allocation2 + $0x178] sm:$0xff] }
 0x40c   : > { %14304 = vmatprep.mubr.msk.f32.mxu0 %vm17213_vm4, %v22297_v10  ;;  %15325 = vmatprep.mubr.msk.f32.mxu1 %vm17213_vm4, %v22297_v10 }
 0x40f   : > { %14305 = vmatmul.mubr.msk.f32.gmra.mrb[174].mxu0 %vm3987_vm5, %v20341_v26  ;;  %15326 = vmatmul.mubr.msk.f32.gmra.mrb[192].mxu1 %vm3987_vm5, %v19772_v3  ;;  %v17074_v3 = vld [vmem:[#allocation2 + $0x1f0] sm:$0xff] }
 0x410   : > { %14307 = vmatprep.mubr.msk.f32.mxu0 %vm17213_vm4, %v22297_v10  ;;  %15328 = vmatprep.mubr.msk.f32.mxu1 %vm17213_vm4, %v22297_v10  ;;  %v17098_v26 = vld [vmem:[#allocation2 + $0x1c9] sm:$0xff] }
 0x413   : > { %14308 = vmatmul.mubr.msk.f32.gmra.mrb[176].mxu0 %vm3987_vm5, %v20351_v11  ;;  %15329 = vmatmul.mubr.msk.f32.gmra.mrb[194].mxu1 %vm3987_vm5, %v19781_v42  ;;  %v17075_v42 = vld [vmem:[#allocation2 + $0x1f8] sm:$0xff] }
 0x414   : > { %14809 = vmatprep.mubr.msk.f32.mxu0 %vm17213_vm4, %v22297_v10  ;;  %15331 = vmatprep.mubr.msk.f32.mxu1 %vm17213_vm4, %v22297_v10 }
 0x417   : > { %14810 = vmatmul.mubr.msk.f32.vlgmr.msra.gmra.mrb[178].mxu0 %vm3987_vm5, %v17066_v17  ;;  %15332 = vmatmul.mubr.msk.f32.gmra.mrb[196].mxu1 %vm3987_vm5, %v19790_v55  ;;  %v17076_v55 = vld [vmem:[#allocation2 + $0x200] sm:$0xff] }
 0x418   : > { %15894 = vmatpush3.bf16.msra.mxu0 %v18712_v16  ;;  %14812 = vmatprep.mubr.msk.f32.mxu0 %vm17213_vm4, %v22297_v10  ;;  %v17068_v16 = vld [vmem:[#allocation2 + $0x1c0] sm:$0xff] }
 0x419   : > { %15334 = vmatprep.mubr.msk.f32.mxu1 %vm17213_vm4, %v22297_v10  ;;  %15895 = vmatprep.subr.bf16.mxu0 %v22299_v21 }
 0x41b   : > { %14813 = vmatmul.mubr.msk.f32.gmra.mrb[180].mxu0 %vm3987_vm5, %v17067_v31  ;;  %15335 = vmatmul.mubr.msk.f32.gmra.mrb[198].mxu1 %vm3987_vm5, %v19802_v6  ;;  %v17077_v6 = vld [vmem:[#allocation2 + $0x208] sm:$0xff] }
 0x41c   : > { %14815 = vmatprep.mubr.msk.f32.mxu0 %vm17213_vm4, %v22297_v10  ;;  %15337 = vmatprep.mubr.msk.f32.mxu1 %vm17213_vm4, %v22297_v10 }
 0x41f   : > { %14816 = vmatmul.mubr.msk.f32.gmra.mrb[182].mxu0 %vm3987_vm5, %v17068_v16  ;;  %15338 = vmatmul.mubr.msk.f32.gmra.mrb[200].mxu1 %vm3987_vm5, %v19812_v46  ;;  %v17078_v46 = vld [vmem:[#allocation2 + $0x210] sm:$0xff] }
 0x420   : > { %14818 = vmatprep.mubr.msk.f32.mxu0 %vm17213_vm4, %v22297_v10  ;;  %15340 = vmatprep.mubr.msk.f32.mxu1 %vm17213_vm4, %v22297_v10 }
 0x423   : > { %14819 = vmatmul.mubr.msk.f32.gmra.mrb[184].mxu0 %vm3987_vm5, %v17069_v0  ;;  %15341 = vmatmul.mubr.msk.f32.gmra.mrb[202].mxu1 %vm3987_vm5, %v19822_v53  ;;  %v17079_v53 = vld [vmem:[#allocation2 + $0x218] sm:$0xff] }
 0x424   : > { %14821 = vmatprep.mubr.msk.f32.mxu0 %vm17213_vm4, %v22297_v10  ;;  %15343 = vmatprep.mubr.msk.f32.mxu1 %vm17213_vm4, %v22297_v10 }
 0x427   : > { %14822 = vmatmul.mubr.msk.f32.gmra.mrb[186].mxu0 %vm3987_vm5, %v17070_v50  ;;  %15344 = vmatmul.mubr.msk.f32.gmra.mrb[204].mxu1 %vm3987_vm5, %v19832_v52  ;;  %v17080_v52 = vld [vmem:[#allocation2 + $0x220] sm:$0xff] }
 0x428   : > { %14824 = vmatprep.mubr.msk.f32.mxu0 %vm17213_vm4, %v22297_v10  ;;  %15346 = vmatprep.mubr.msk.f32.mxu1 %vm17213_vm4, %v22297_v10 }
 0x42b   : > { %14825 = vmatmul.mubr.msk.f32.gmra.mrb[188].mxu0 %vm3987_vm5, %v17071_v61  ;;  %15347 = vmatmul.mubr.msk.f32.gmra.mrb[206].mxu1 %vm3987_vm5, %v19842_v51  ;;  %v17081_v51 = vld [vmem:[#allocation2 + $0x228] sm:$0xff] }
 0x42c   : > { %14827 = vmatprep.mubr.msk.f32.mxu0 %vm17213_vm4, %v22297_v10  ;;  %15349 = vmatprep.mubr.msk.f32.mxu1 %vm17213_vm4, %v22297_v10 }
 0x42f   : > { %14828 = vmatmul.mubr.msk.f32.gmra.mrb[190].mxu0 %vm3987_vm5, %v17072_v19  ;;  %15350 = vmatmul.mubr.msk.f32.gmra.mrb[208].mxu1 %vm3987_vm5, %v19852_v28  ;;  %v17082_v28 = vld [vmem:[#allocation2 + $0x230] sm:$0x7f] }
 0x430   : > { %14830 = vmatprep.mubr.msk.f32.mxu0 %vm17213_vm4, %v22297_v10  ;;  %15352 = vmatprep.mubr.msk.f32.mxu1 %vm17213_vm4, %v22297_v10 }
 0x433   : > { %14831 = vmatmul.mubr.msk.f32.gmra.mrb[192].mxu0 %vm3987_vm5, %v17073_v25  ;;  %15353 = vmatmul.mubr.msk.f32.gmra.mrb[210].mxu1 %vm3987_vm5, %v19862_v24  ;;  %v17083_v24 = vld [vmem:[#allocation2 + $0x120] sm:$0xff] }
 0x434   : > { %14833 = vmatprep.mubr.msk.f32.mxu0 %vm17213_vm4, %v22297_v10  ;;  %15359 = vmatprep.mubr.msk.f32.mxu1 %vm17213_vm4, %v22297_v10 }
 0x437   : > { %14834 = vmatmul.mubr.msk.f32.gmra.mrb[194].mxu0 %vm3987_vm5, %v17074_v3  ;;  %15360 = vmatmul.mubr.msk.f32.vlgmr.msra.gmra.mrb[178].mxu1 %vm3987_vm5, %v17066_v17  ;;  %v17108_v17 = vld [vmem:[#allocation2 + $0x1f1] sm:$0xff] }
 0x438   : > { %14836 = vmatprep.mubr.msk.f32.mxu0 %vm17213_vm4, %v22297_v10  ;;  %15362 = vmatprep.mubr.msk.f32.mxu1 %vm17213_vm4, %v22297_v10 }
 0x439   : > { %15924 = vmatpush3.bf16.msra.mxu1 %v19051_v62 }
 0x43a   : > { %15925 = vmatprep.subr.bf16.mxu1 %v22299_v21 }
 0x43b   : > { %14837 = vmatmul.mubr.msk.f32.gmra.mrb[196].mxu0 %vm3987_vm5, %v17075_v42  ;;  %15363 = vmatmul.mubr.msk.f32.gmra.mrb[180].mxu1 %vm3987_vm5, %v17067_v31 }
 0x43c   : > { %14839 = vmatprep.mubr.msk.f32.mxu0 %vm17213_vm4, %v22297_v10  ;;  %15365 = vmatprep.mubr.msk.f32.mxu1 %vm17213_vm4, %v22297_v10 }
 0x43f   : > { %14840 = vmatmul.mubr.msk.f32.gmra.mrb[198].mxu0 %vm3987_vm5, %v17076_v55  ;;  %15366 = vmatmul.mubr.msk.f32.gmra.mrb[182].mxu1 %vm3987_vm5, %v17068_v16 }
 0x440   : > { %14842 = vmatprep.mubr.msk.f32.mxu0 %vm17213_vm4, %v22297_v10  ;;  %15368 = vmatprep.mubr.msk.f32.mxu1 %vm17213_vm4, %v22297_v10 }
 0x443   : > { %14843 = vmatmul.mubr.msk.f32.gmra.mrb[200].mxu0 %vm3987_vm5, %v17077_v6  ;;  %15369 = vmatmul.mubr.msk.f32.gmra.mrb[184].mxu1 %vm3987_vm5, %v17069_v0  ;;  %v17109_v0 = vld [vmem:[#allocation2 + $0x121] sm:$0xff] }
 0x444   : > { %14845 = vmatprep.mubr.msk.f32.mxu0 %vm17213_vm4, %v22297_v10  ;;  %15371 = vmatprep.mubr.msk.f32.mxu1 %vm17213_vm4, %v22297_v10 }
 0x447   : > { %14846 = vmatmul.mubr.msk.f32.gmra.mrb[202].mxu0 %vm3987_vm5, %v17078_v46  ;;  %15372 = vmatmul.mubr.msk.f32.gmra.mrb[186].mxu1 %vm3987_vm5, %v17070_v50  ;;  %v17110_v50 = vld [vmem:[#allocation2 + $0x1f9] sm:$0xff] }
 0x448   : > { %14848 = vmatprep.mubr.msk.f32.mxu0 %vm17213_vm4, %v22297_v10  ;;  %15374 = vmatprep.mubr.msk.f32.mxu1 %vm17213_vm4, %v22297_v10 }
 0x44b   : > { %14849 = vmatmul.mubr.msk.f32.gmra.mrb[204].mxu0 %vm3987_vm5, %v17079_v53  ;;  %15375 = vmatmul.mubr.msk.f32.gmra.mrb[188].mxu1 %vm3987_vm5, %v17071_v61 }
 0x44c   : > { %14851 = vmatprep.mubr.msk.f32.mxu0 %vm17213_vm4, %v22297_v10  ;;  %15377 = vmatprep.mubr.msk.f32.mxu1 %vm17213_vm4, %v22297_v10 }
 0x44f   : > { %14852 = vmatmul.mubr.msk.f32.gmra.mrb[206].mxu0 %vm3987_vm5, %v17080_v52  ;;  %15378 = vmatmul.mubr.msk.f32.gmra.mrb[190].mxu1 %vm3987_vm5, %v17072_v19 }
 0x450   : > { %14854 = vmatprep.mubr.msk.f32.mxu0 %vm17213_vm4, %v22297_v10  ;;  %15380 = vmatprep.mubr.msk.f32.mxu1 %vm17213_vm4, %v22297_v10 }
 0x453   : > { %14855 = vmatmul.mubr.msk.f32.gmra.mrb[208].mxu0 %vm3987_vm5, %v17081_v51  ;;  %15381 = vmatmul.mubr.msk.f32.gmra.mrb[192].mxu1 %vm3987_vm5, %v17073_v25  ;;  %v17111_v25 = vld [vmem:[#allocation2 + $0x129] sm:$0xff] }
 0x454   : > { %14857 = vmatprep.mubr.msk.f32.mxu0 %vm17213_vm4, %v22297_v10  ;;  %15383 = vmatprep.mubr.msk.f32.mxu1 %vm17213_vm4, %v22297_v10 }
 0x457   : > { %14858 = vmatmul.mubr.msk.f32.gmra.mrb[210].mxu0 %vm3987_vm5, %v17082_v28  ;;  %15384 = vmatmul.mubr.msk.f32.gmra.mrb[194].mxu1 %vm3987_vm5, %v17074_v3  ;;  %v17112_v3 = vld [vmem:[#allocation2 + $0x201] sm:$0xff] }
 0x458   : > { %14864 = vmatprep.mubr.msk.f32.mxu0 %vm17213_vm4, %v22297_v10  ;;  %15386 = vmatprep.mubr.msk.f32.mxu1 %vm17213_vm4, %v22297_v10 }
 0x45b   : > { %14865 = vmatmul.mubr.msk.f32.vlgmr.msra.gmra.mrb[178].mxu0 %vm3987_vm5, %v17083_v24  ;;  %15387 = vmatmul.mubr.msk.f32.gmra.mrb[196].mxu1 %vm3987_vm5, %v17075_v42  ;;  %v21117_v24 = vld [vmem:[#allocation2 + $0x21] sm:$0xff] }
 0x45c   : > { %15897 = vmatpush3.bf16.msra.mxu0 %v19051_v62  ;;  %14867 = vmatprep.mubr.msk.f32.mxu0 %vm17213_vm4, %v22297_v10  ;;  %v17085_v62 = vld [vmem:[#allocation2 + $0x130] sm:$0xff] }
 0x45d   : > { %15389 = vmatprep.mubr.msk.f32.mxu1 %vm17213_vm4, %v22297_v10  ;;  %15898 = vmatprep.subr.bf16.mxu0 %v22299_v21 }
 0x45f   : > { %14868 = vmatmul.mubr.msk.f32.gmra.mrb[180].mxu0 %vm3987_vm5, %v17084_v54  ;;  %15390 = vmatmul.mubr.msk.f32.gmra.mrb[198].mxu1 %vm3987_vm5, %v17076_v55  ;;  %v21126_v55 = vld [vmem:[#allocation2 + $0x29] sm:$0xff] }
 0x460   : > { %14870 = vmatprep.mubr.msk.f32.mxu0 %vm17213_vm4, %v22297_v10  ;;  %15392 = vmatprep.mubr.msk.f32.mxu1 %vm17213_vm4, %v22297_v10 }
 0x463   : > { %14871 = vmatmul.mubr.msk.f32.gmra.mrb[182].mxu0 %vm3987_vm5, %v17085_v62  ;;  %15393 = vmatmul.mubr.msk.f32.gmra.mrb[200].mxu1 %vm3987_vm5, %v17077_v6 }
 0x464   : > { %14873 = vmatprep.mubr.msk.f32.mxu0 %vm17213_vm4, %v22297_v10  ;;  %15395 = vmatprep.mubr.msk.f32.mxu1 %vm17213_vm4, %v22297_v10 }
 0x467   : > { %14874 = vmatmul.mubr.msk.f32.gmra.mrb[184].mxu0 %vm3987_vm5, %v17086_v20  ;;  %15396 = vmatmul.mubr.msk.f32.gmra.mrb[202].mxu1 %vm3987_vm5, %v17078_v46  ;;  %v17115_v20 = vld [vmem:[#allocation2 + $0x139] sm:$0xff] }
 0x468   : > { %14876 = vmatprep.mubr.msk.f32.mxu0 %vm17213_vm4, %v22297_v10  ;;  %15398 = vmatprep.mubr.msk.f32.mxu1 %vm17213_vm4, %v22297_v10 }
 0x46b   : > { %14877 = vmatmul.mubr.msk.f32.gmra.mrb[186].mxu0 %vm3987_vm5, %v17087_v56  ;;  %15399 = vmatmul.mubr.msk.f32.gmra.mrb[204].mxu1 %vm3987_vm5, %v17079_v53  ;;  %v17113_v53 = vld [vmem:[#allocation2 + $0x131] sm:$0xff] }
 0x46c   : > { %14879 = vmatprep.mubr.msk.f32.mxu0 %vm17213_vm4, %v22297_v10  ;;  %15401 = vmatprep.mubr.msk.f32.mxu1 %vm17213_vm4, %v22297_v10  ;;  %v17116_v56 = vld [vmem:[#allocation2 + $0x211] sm:$0xff] }
 0x46f   : > { %14880 = vmatmul.mubr.msk.f32.gmra.mrb[188].mxu0 %vm3987_vm5, %v17088_v60  ;;  %15402 = vmatmul.mubr.msk.f32.gmra.mrb[206].mxu1 %vm3987_vm5, %v17080_v52  ;;  %v17114_v52 = vld [vmem:[#allocation2 + $0x209] sm:$0xff] }
 0x470   : > { %14882 = vmatprep.mubr.msk.f32.mxu0 %vm17213_vm4, %v22297_v10  ;;  %15404 = vmatprep.mubr.msk.f32.mxu1 %vm17213_vm4, %v22297_v10 }
 0x473   : > { %14883 = vmatmul.mubr.msk.f32.gmra.mrb[190].mxu0 %vm3987_vm5, %v17089_v37  ;;  %15405 = vmatmul.mubr.msk.f32.gmra.mrb[208].mxu1 %vm3987_vm5, %v17081_v51 }
 0x474   : > { %14885 = vmatprep.mubr.msk.f32.mxu0 %vm17213_vm4, %v22297_v10  ;;  %15407 = vmatprep.mubr.msk.f32.mxu1 %vm17213_vm4, %v22297_v10 }
 0x477   : > { %14886 = vmatmul.mubr.msk.f32.gmra.mrb[192].mxu0 %vm3987_vm5, %v17090_v8  ;;  %15408 = vmatmul.mubr.msk.f32.gmra.mrb[210].mxu1 %vm3987_vm5, %v17082_v28  ;;  %v21108_v8 = vld [vmem:[#allocation2 + $0x19] sm:$0xff] }
 0x478   : > { %14888 = vmatprep.mubr.msk.f32.mxu0 %vm17213_vm4, %v22297_v10  ;;  %15414 = vmatprep.mubr.msk.f32.mxu1 %vm17213_vm4, %v22297_v10 }
 0x47b   : > { %14889 = vmatmul.mubr.msk.f32.gmra.mrb[194].mxu0 %vm3987_vm5, %v17091_v45  ;;  %15415 = vmatmul.mubr.msk.f32.vlgmr.msra.gmra.mrb[178].mxu1 %vm3987_vm5, %v17092_v38 }
 0x47c   : > { %14891 = vmatprep.mubr.msk.f32.mxu0 %vm17213_vm4, %v22297_v10  ;;  %15417 = vmatprep.mubr.msk.f32.mxu1 %vm17213_vm4, %v22297_v10 }
 0x47d   : > { %15927 = vmatpush3.bf16.msra.mxu1 %v19401_v44 }
 0x47e   : > { %15928 = vmatprep.subr.bf16.mxu1 %v22299_v21 }
 0x47f   : > { %14892 = vmatmul.mubr.msk.f32.gmra.mrb[196].mxu0 %vm3987_vm5, %v17093_v12  ;;  %15418 = vmatmul.mubr.msk.f32.gmra.mrb[180].mxu1 %vm3987_vm5, %v17094_v40  ;;  %v17117_v12 = vld [vmem:[#allocation2 + $0x141] sm:$0xff]  ;;  %v17118_v40 = vld [vmem:[#allocation2 + $0x219] sm:$0xff] }
 0x480   : > { %14894 = vmatprep.mubr.msk.f32.mxu0 %vm17213_vm4, %v22297_v10  ;;  %15420 = vmatprep.mubr.msk.f32.mxu1 %vm17213_vm4, %v22297_v10 }
 0x482   : > { %v20736_v29 = vpop.f32.mrb[144].mxu1 }
 0x483   : > { %v14756_v41 = vpop.f32.mrb[145].mxu1  ;;  %14895 = vmatmul.mubr.msk.f32.gmra.mrb[198].mxu0 %vm3987_vm5, %v17095_v34  ;;  %15421 = vmatmul.mubr.msk.f32.gmra.mrb[182].mxu1 %vm3987_vm5, %v17096_v30  ;;  %v21099_v30 = vld [vmem:[#allocation2 + $0x11] sm:$0xff] }
 0x484   : > { %14897 = vmatprep.mubr.msk.f32.mxu0 %vm17213_vm4, %v22297_v10  ;;  %15423 = vmatprep.mubr.msk.f32.mxu1 %vm17213_vm4, %v22297_v10 }
 0x486   : > { %v20744_v22 = vpop.f32.mrb[146].mxu1 }
 0x487   : > { %v14759_v49 = vpop.f32.mrb[147].mxu1  ;;  %14898 = vmatmul.mubr.msk.f32.gmra.mrb[200].mxu0 %vm3987_vm5, %v17097_v15  ;;  %15424 = vmatmul.mubr.msk.f32.gmra.mrb[184].mxu1 %vm3987_vm5, %v17098_v26  ;;  %v17119_v26 = vld [vmem:[#allocation2 + $0x149] sm:$0xff] }
 0x488   : > { %14900 = vmatprep.mubr.msk.f32.mxu0 %vm17213_vm4, %v22297_v10  ;;  %15426 = vmatprep.mubr.msk.f32.mxu1 %vm17213_vm4, %v22297_v10 }
 0x48a   : > { %v20752_v11 = vpop.f32.mrb[148].mxu1 }
 0x48b   : > { %v14762_v35 = vpop.f32.mrb[149].mxu1  ;;  %14901 = vmatmul.mubr.msk.f32.gmra.mrb[202].mxu0 %vm3987_vm5, %v17099_v32  ;;  %15427 = vmatmul.mubr.msk.f32.gmra.mrb[186].mxu1 %vm3987_vm5, %v17100_v27 }
 0x48c   : > { %14903 = vmatprep.mubr.msk.f32.mxu0 %vm17213_vm4, %v22297_v10  ;;  %15429 = vmatprep.mubr.msk.f32.mxu1 %vm17213_vm4, %v22297_v10  ;;  %v17120_v35 = vld [vmem:[#allocation2 + $0x221] sm:$0xff] }
 0x48e   : > { %v20760_v36 = vpop.f32.mrb[150].mxu1 }
 0x48f   : > { %v14765_v2 = vpop.f32.mrb[151].mxu1  ;;  %14904 = vmatmul.mubr.msk.f32.gmra.mrb[204].mxu0 %vm3987_vm5, %v17101_v58  ;;  %15430 = vmatmul.mubr.msk.f32.gmra.mrb[188].mxu1 %vm3987_vm5, %v17102_v43 }
 0x490   : > { %14906 = vmatprep.mubr.msk.f32.mxu0 %vm17213_vm4, %v22297_v10  ;;  %15432 = vmatprep.mubr.msk.f32.mxu1 %vm17213_vm4, %v22297_v10  ;;  %v21088_v2 = vld [vmem:[#allocation2 + $0x9] sm:$0xff] }
 0x492   : > { %v20768_v5 = vpop.f32.mrb[152].mxu1 }
 0x493   : > { %v14768_v33 = vpop.f32.mrb[153].mxu1  ;;  %14907 = vmatmul.mubr.msk.f32.gmra.mrb[206].mxu0 %vm3987_vm5, %v17103_v9  ;;  %15433 = vmatmul.mubr.msk.f32.gmra.mrb[190].mxu1 %vm3987_vm5, %v17104_v7  ;;  %v17122_v9 = vld [vmem:[#allocation2 + $0x229] sm:$0xff] }
 0x494   : > { %14909 = vmatprep.mubr.msk.f32.mxu0 %vm17213_vm4, %v22297_v10  ;;  %15435 = vmatprep.mubr.msk.f32.mxu1 %vm17213_vm4, %v22297_v10  ;;  %v17121_v33 = vld [vmem:[#allocation2 + $0x151] sm:$0xff] }
 0x496   : > { %v20776_v14 = vpop.f32.mrb[154].mxu1 }
 0x497   : > { %v14771_v57 = vpop.f32.mrb[155].mxu1  ;;  %14910 = vmatmul.mubr.msk.f32.gmra.mrb[208].mxu0 %vm3987_vm5, %v17105_v39  ;;  %15436 = vmatmul.mubr.msk.f32.gmra.mrb[192].mxu1 %vm3987_vm5, %v17106_v13  ;;  %v21079_v39 = vld [vmem:[#allocation2 + $0x118] sm:$0x7f] }
 0x498   : > { %14912 = vmatprep.mubr.msk.f32.mxu0 %vm17213_vm4, %v22297_v10  ;;  %15438 = vmatprep.mubr.msk.f32.mxu1 %vm17213_vm4, %v22297_v10 }
 0x49a   : > { %v20784_v4 = vpop.f32.mrb[156].mxu1 }
 0x49b   : > { %v14774_v47 = vpop.f32.mrb[157].mxu1  ;;  %14913 = vmatmul.mubr.msk.f32.gmra.mrb[210].mxu0 %vm3987_vm5, %v17107_v48  ;;  %15439 = vmatmul.mubr.msk.f32.gmra.mrb[194].mxu1 %vm3987_vm5, %v17108_v17  ;;  %v17123_v48 = vld [vmem:[#allocation2 + $0x159] sm:$0xff]  ;;  %v17124_v17 = vld [vmem:[#allocation2 + $0x231] sm:$0x7f] }
 0x49c   : > { %14919 = vmatprep.mubr.msk.f32.mxu0 %vm17213_vm4, %v22297_v10  ;;  %15441 = vmatprep.mubr.msk.f32.mxu1 %vm17213_vm4, %v22297_v10 }
 0x49e   : > { %v20792_v31 = vpop.f32.mrb[158].mxu1 }
 0x49f   : > { %v14777_v16 = vpop.f32.mrb[159].mxu1  ;;  %14920 = vmatmul.mubr.msk.f32.vlgmr.msra.gmra.mrb[178].mxu0 %vm3987_vm5, %v17109_v0  ;;  %15442 = vmatmul.mubr.msk.f32.gmra.mrb[196].mxu1 %vm3987_vm5, %v17110_v50  ;;  %v21070_v50 = vld [vmem:[#allocation2 + $0x110] sm:$0xff] }
 0x4a0   : > { %15900 = vmatpush3.bf16.msra.mxu0 %v19401_v44  ;;  %14922 = vmatprep.mubr.msk.f32.mxu0 %vm17213_vm4, %v22297_v10 }
 0x4a1   : > { %15444 = vmatprep.mubr.msk.f32.mxu1 %vm17213_vm4, %v22297_v10  ;;  %15901 = vmatprep.subr.bf16.mxu0 %v22299_v21 }
 0x4a2   : > { %v20802_v61 = vpop.f32.mrb[160].mxu1 }
 0x4a3   : > { %v14780_v19 = vpop.f32.mrb[161].mxu1  ;;  %14923 = vmatmul.mubr.msk.f32.gmra.mrb[180].mxu0 %vm3987_vm5, %v17111_v25  ;;  %15445 = vmatmul.mubr.msk.f32.gmra.mrb[198].mxu1 %vm3987_vm5, %v17112_v3  ;;  %v17125_v3 = vld [vmem:[#allocation2 + $0x161] sm:$0xff] }
 0x4a4   : > { %14925 = vmatprep.mubr.msk.f32.mxu0 %vm17213_vm4, %v22297_v10  ;;  %15447 = vmatprep.mubr.msk.f32.mxu1 %vm17213_vm4, %v22297_v10 }
 0x4a6   : > { %v20810_v44 = vpop.f32.mrb[144].mxu0  ;;  %v20812_v42 = vpop.f32.mrb[162].mxu1 }
 0x4a7   : > { %v14261_v6 = vpop.f32.mrb[145].mxu0  ;;  %v14783_v46 = vpop.f32.mrb[163].mxu1  ;;  %14926 = vmatmul.mubr.msk.f32.gmra.mrb[182].mxu0 %vm3987_vm5, %v17113_v53  ;;  %15448 = vmatmul.mubr.msk.f32.gmra.mrb[200].mxu1 %vm3987_vm5, %v17114_v52  ;;  %v21061_v52 = vld [vmem:[#allocation2 + $0x108] sm:$0xff] }
 0x4a8   : > { %14928 = vmatprep.mubr.msk.f32.mxu0 %vm17213_vm4, %v22297_v10  ;;  %15450 = vmatprep.mubr.msk.f32.mxu1 %vm17213_vm4, %v22297_v10  ;;  %v20889_v6 = vld [vmem:[#allocation2 + $0x98] sm:$0xff] }
 0x4aa   : > { %v20822_v51 = vpop.f32.mrb[146].mxu0  ;;  %v20824_v28 = vpop.f32.mrb[164].mxu1 }
 0x4ab   : > { %v14264_v54 = vpop.f32.mrb[147].mxu0  ;;  %v14786_v62 = vpop.f32.mrb[165].mxu1  ;;  %14929 = vmatmul.mubr.msk.f32.gmra.mrb[184].mxu0 %vm3987_vm5, %v17115_v20  ;;  %15451 = vmatmul.mubr.msk.f32.gmra.mrb[202].mxu1 %vm3987_vm5, %v17116_v56  ;;  %v17127_v20 = vld [vmem:[#allocation2 + $0x169] sm:$0xff]  ;;  %v20906_v56 = vld [vmem:[#allocation2 + $0xa0] sm:$0xff] }
 0x4ac   : > { %14931 = vmatprep.mubr.msk.f32.mxu0 %vm17213_vm4, %v22297_v10  ;;  %15453 = vmatprep.mubr.msk.f32.mxu1 %vm17213_vm4, %v22297_v10 }
 0x4ae   : > { %v20834_v60 = vpop.f32.mrb[148].mxu0  ;;  %v20836_v37 = vpop.f32.mrb[166].mxu1 }
 0x4af   : > { %v14267_v45 = vpop.f32.mrb[149].mxu0  ;;  %v14789_v38 = vpop.f32.mrb[167].mxu1  ;;  %14932 = vmatmul.mubr.msk.f32.gmra.mrb[186].mxu0 %vm3987_vm5, %v17117_v12  ;;  %15454 = vmatmul.mubr.msk.f32.gmra.mrb[204].mxu1 %vm3987_vm5, %v17118_v40  ;;  %v17129_v40 = vld [vmem:[#allocation2 + $0x171] sm:$0xff] }
 0x4b0   : > { %14934 = vmatprep.mubr.msk.f32.mxu0 %vm17213_vm4, %v22297_v10  ;;  %15456 = vmatprep.mubr.msk.f32.mxu1 %vm17213_vm4, %v22297_v10  ;;  %v21034_v38 = vld [vmem:[#allocation2 + $0xf0] sm:$0xff] }
 0x4b2   : > { %v20846_v41 = vpop.f32.mrb[150].mxu0  ;;  %v20848_v34 = vpop.f32.mrb[168].mxu1 }
 0x4b3   : > { %v14270_v49 = vpop.f32.mrb[151].mxu0  ;;  %v14792_v15 = vpop.f32.mrb[169].mxu1  ;;  %14935 = vmatmul.mubr.msk.f32.gmra.mrb[188].mxu0 %vm3987_vm5, %v17119_v26  ;;  %15457 = vmatmul.mubr.msk.f32.gmra.mrb[206].mxu1 %vm3987_vm5, %v17120_v35  ;;  %v21025_v26 = vld [vmem:[#allocation2 + $0xe8] sm:$0xff] }
 0x4b4   : > { %14937 = vmatprep.mubr.msk.f32.mxu0 %vm17213_vm4, %v22297_v10  ;;  %15459 = vmatprep.mubr.msk.f32.mxu1 %vm17213_vm4, %v22297_v10  ;;  %v20919_v49 = vld [vmem:[#allocation2 + $0xa8] sm:$0xff] }
 0x4b6   : > { %v20858_v32 = vpop.f32.mrb[152].mxu0  ;;  %v20860_v27 = vpop.f32.mrb[170].mxu1 }
 0x4b7   : > { %v14273_v58 = vpop.f32.mrb[153].mxu0  ;;  %v14795_v43 = vpop.f32.mrb[171].mxu1  ;;  %14938 = vmatmul.mubr.msk.f32.gmra.mrb[190].mxu0 %vm3987_vm5, %v17121_v33  ;;  %15460 = vmatmul.mubr.msk.f32.gmra.mrb[208].mxu1 %vm3987_vm5, %v17122_v9  ;;  %v17145_v9 = vld [vmem:[#allocation2 + $0x10] sm:$0xff] }
 0x4b8   : > { %14940 = vmatprep.mubr.msk.f32.mxu0 %vm17213_vm4, %v22297_v10  ;;  %15462 = vmatprep.mubr.msk.f32.mxu1 %vm17213_vm4, %v22297_v10  ;;  %v17131_v58 = vld [vmem:[#allocation2 + $0x179] sm:$0xff]  ;;  %v20932_v43 = vld [vmem:[#allocation2 + $0xb0] sm:$0xff] }
 0x4ba   : > { %v20870_v7 = vpop.f32.mrb[154].mxu0  ;;  %v20872_v57 = vpop.f32.mrb[172].mxu1 }
 0x4bb   : > { %v14276_v13 = vpop.f32.mrb[155].mxu0  ;;  %v14798_v47 = vpop.f32.mrb[173].mxu1  ;;  %14941 = vmatmul.mubr.msk.f32.gmra.mrb[192].mxu0 %vm3987_vm5, %v17123_v48  ;;  %15463 = vmatmul.mubr.msk.f32.gmra.mrb[210].mxu1 %vm3987_vm5, %v17124_v17  ;;  %v20945_v48 = vld [vmem:[#allocation2 + $0xb8] sm:$0xff] }
 0x4bc   : > { %14943 = vmatprep.mubr.msk.f32.mxu0 %vm17213_vm4, %v22297_v10  ;;  %15469 = vmatprep.mubr.msk.f32.mxu1 %vm17213_vm4, %v22297_v10  ;;  %v17133_v47 = vld [vmem:[#allocation2 + $0x181] sm:$0xff] }
 0x4be   : > { %v20882_v16 = vpop.f32.mrb[156].mxu0  ;;  %v20884_v0 = vpop.f32.mrb[174].mxu1 }
 0x4bf   : > { %22512 = vst [vmem:[#allocation17_spill] sm:$0xff] %v20884_v0  ;;  %v14279_v19 = vpop.f32.mrb[157].mxu0  ;;  %v14801_v25 = vpop.f32.mrb[175].mxu1  ;;  %14944 = vmatmul.mubr.msk.f32.gmra.mrb[194].mxu0 %vm3987_vm5, %v17125_v3  ;;  %15470 = vmatmul.mubr.msk.f32.vlgmr.msra.gmra.mrb[178].mxu1 %vm3987_vm5, %v20889_v6  ;;  %v17135_v3 = vld [vmem:[#allocation2 + $0x189] sm:$0xff]  ;;  %v21153_v0 = vld [vmem:[#allocation2 + $0x41] sm:$0xff] }
 0x4c0   : > { %14946 = vmatprep.mubr.msk.f32.mxu0 %vm17213_vm4, %v22297_v10  ;;  %15472 = vmatprep.mubr.msk.f32.mxu1 %vm17213_vm4, %v22297_v10  ;;  %v17143_v19 = vld [vmem:[#allocation2 + $0x8] sm:$0xff] }
 0x4c1   : > { %15930 = vmatpush3.bf16.msra.mxu1 %v19539_v63 }
 0x4c2   : > { %v20898_v46 = vpop.f32.mrb[158].mxu0  ;;  %v20900_v53 = vpop.f32.mrb[176].mxu1  ;;  %15931 = vmatprep.subr.bf16.mxu1 %v22299_v21 }
 0x4c3   : > { %22513 = vst [vmem:[#allocation16_spill] sm:$0xff] %v20900_v53  ;;  %v14282_v54 = vpop.f32.mrb[159].mxu0  ;;  %v14804_v62 = vpop.f32.mrb[177].mxu1  ;;  %14947 = vmatmul.mubr.msk.f32.gmra.mrb[196].mxu0 %vm3987_vm5, %v17127_v20  ;;  %15473 = vmatmul.mubr.msk.f32.gmra.mrb[180].mxu1 %vm3987_vm5, %v20906_v56  ;;  %v21135_v53 = vld [vmem:[#allocation2 + $0x31] sm:$0xff] }
 0x4c4   : > { %14949 = vmatprep.mubr.msk.f32.mxu0 %vm17213_vm4, %v22297_v10  ;;  %15475 = vmatprep.mubr.msk.f32.mxu1 %vm17213_vm4, %v22297_v10  ;;  %v20958_v54 = vld [vmem:[#allocation2 + $0xc0] sm:$0xff] }
 0x4c6   : > { %v20914_v45 = vpop.f32.mrb[160].mxu0 }
 0x4c7   : > { %v14285_v12 = vpop.f32.mrb[161].mxu0  ;;  %14950 = vmatmul.mubr.msk.f32.gmra.mrb[198].mxu0 %vm3987_vm5, %v17129_v40  ;;  %15476 = vmatmul.mubr.msk.f32.gmra.mrb[182].mxu1 %vm3987_vm5, %v20919_v49  ;;  %v17137_v40 = vld [vmem:[#allocation2 + $0x191] sm:$0xff] }
 0x4c8   : > { %14952 = vmatprep.mubr.msk.f32.mxu0 %vm17213_vm4, %v22297_v10  ;;  %15478 = vmatprep.mubr.msk.f32.mxu1 %vm17213_vm4, %v22297_v10 }
 0x4ca   : > { %v20927_v15 = vpop.f32.mrb[162].mxu0 }
 0x4cb   : > { %v14288_v35 = vpop.f32.mrb[163].mxu0  ;;  %14953 = vmatmul.mubr.msk.f32.gmra.mrb[200].mxu0 %vm3987_vm5, %v17131_v58  ;;  %15479 = vmatmul.mubr.msk.f32.gmra.mrb[184].mxu1 %vm3987_vm5, %v20932_v43 }
 0x4cc   : > { %14955 = vmatprep.mubr.msk.f32.mxu0 %vm17213_vm4, %v22297_v10  ;;  %15481 = vmatprep.mubr.msk.f32.mxu1 %vm17213_vm4, %v22297_v10  ;;  %v20971_v35 = vld [vmem:[#allocation2 + $0xc8] sm:$0xff] }
 0x4ce   : > { %v20940_v33 = vpop.f32.mrb[164].mxu0 }
 0x4cf   : > { %v14291_v13 = vpop.f32.mrb[165].mxu0  ;;  %14956 = vmatmul.mubr.msk.f32.gmra.mrb[202].mxu0 %vm3987_vm5, %v17133_v47  ;;  %15482 = vmatmul.mubr.msk.f32.gmra.mrb[186].mxu1 %vm3987_vm5, %v20945_v48 }
 0x4d0   : > { %14958 = vmatprep.mubr.msk.f32.mxu0 %vm17213_vm4, %v22297_v10  ;;  %15484 = vmatprep.mubr.msk.f32.mxu1 %vm17213_vm4, %v22297_v10  ;;  %v17141_v13 = vld [vmem:[#allocation2 + $0x1a1] sm:$0x7f] }
 0x4d2   : > { %v20953_v17 = vpop.f32.mrb[166].mxu0 }
 0x4d3   : > { %v14294_v25 = vpop.f32.mrb[167].mxu0  ;;  %14959 = vmatmul.mubr.msk.f32.gmra.mrb[204].mxu0 %vm3987_vm5, %v17135_v3  ;;  %15485 = vmatmul.mubr.msk.f32.gmra.mrb[188].mxu1 %vm3987_vm5, %v20958_v54  ;;  %v20984_v3 = vld [vmem:[#allocation2 + $0xd0] sm:$0xff] }
 0x4d4   : > { %14961 = vmatprep.mubr.msk.f32.mxu0 %vm17213_vm4, %v22297_v10  ;;  %15487 = vmatprep.mubr.msk.f32.mxu1 %vm17213_vm4, %v22297_v10  ;;  %v17139_v25 = vld [vmem:[#allocation2 + $0x199] sm:$0xff] }
 0x4d6   : > { %v20966_v62 = vpop.f32.mrb[168].mxu0 }
 0x4d7   : > { %v14297_v12 = vpop.f32.mrb[169].mxu0  ;;  %14962 = vmatmul.mubr.msk.f32.gmra.mrb[206].mxu0 %vm3987_vm5, %v17137_v40  ;;  %15488 = vmatmul.mubr.msk.f32.gmra.mrb[190].mxu1 %vm3987_vm5, %v20971_v35 }
 0x4d8   : > { %14964 = vmatprep.mubr.msk.f32.mxu0 %vm17213_vm4, %v22297_v10  ;;  %15490 = vmatprep.mubr.msk.f32.mxu1 %vm17213_vm4, %v22297_v10 }
 0x4da   : > { %v20979_v58 = vpop.f32.mrb[170].mxu0 }
 0x4db   : > { %v14300_v47 = vpop.f32.mrb[171].mxu0  ;;  %14965 = vmatmul.mubr.msk.f32.gmra.mrb[208].mxu0 %vm3987_vm5, %v17139_v25  ;;  %15491 = vmatmul.mubr.msk.f32.gmra.mrb[192].mxu1 %vm3987_vm5, %v20984_v3  ;;  %v20997_v25 = vld [vmem:[#allocation2 + $0xd8] sm:$0xff] }
 0x4dc   : > { %14967 = vmatprep.mubr.msk.f32.mxu0 %vm17213_vm4, %v22297_v10  ;;  %15493 = vmatprep.mubr.msk.f32.mxu1 %vm17213_vm4, %v22297_v10 }
 0x4de   : > { %v20992_v12 = vpop.f32.mrb[172].mxu0 }
 0x4df   : > { %v14303_v47 = vpop.f32.mrb[173].mxu0  ;;  %14968 = vmatmul.mubr.msk.f32.gmra.mrb[210].mxu0 %vm3987_vm5, %v17141_v13  ;;  %15494 = vmatmul.mubr.msk.f32.gmra.mrb[194].mxu1 %vm3987_vm5, %v20997_v25  ;;  %v21010_v13 = vld [vmem:[#allocation2 + $0xe0] sm:$0xff] }
 0x4e0   : > { %14974 = vmatprep.mubr.msk.f32.mxu0 %vm17213_vm4, %v22297_v10  ;;  %15496 = vmatprep.mubr.msk.f32.mxu1 %vm17213_vm4, %v22297_v10 }
 0x4e2   : > { %v21005_v20 = vpop.f32.mrb[174].mxu0 }
 0x4e3   : > { %22514 = vst [vmem:[#allocation19_spill] sm:$0xff] %v21005_v20  ;;  %v14306_v47 = vpop.f32.mrb[175].mxu0  ;;  %14975 = vmatmul.mubr.msk.f32.vlgmr.msra.gmra.mrb[178].mxu0 %vm3987_vm5, %v17143_v19  ;;  %15497 = vmatmul.mubr.msk.f32.gmra.mrb[196].mxu1 %vm3987_vm5, %v21010_v13  ;;  %v21052_v19 = vld [vmem:[#allocation2 + $0x100] sm:$0xff]  ;;  %v21162_v20 = vld [vmem:[#allocation2 + $0x49] sm:$0xff] }
 0x4e4   : > { %15903 = vmatpush3.bf16.msra.mxu0 %v19539_v63  ;;  %14977 = vmatprep.mubr.msk.f32.mxu0 %vm17213_vm4, %v22297_v10  ;;  %v17147_v63 = vld [vmem:[#allocation2 + $0x18] sm:$0xff] }
 0x4e5   : > { %15499 = vmatprep.mubr.msk.f32.mxu1 %vm17213_vm4, %v22297_v10  ;;  %15904 = vmatprep.subr.bf16.mxu0 %v22299_v21 }
 0x4e6   : > { %v21020_v40 = vpop.f32.mrb[176].mxu0 }
 0x4e7   : > { %22515 = vst [vmem:[#allocation20_spill] sm:$0xff] %v21020_v40  ;;  %v14309_v47 = vpop.f32.mrb[177].mxu0  ;;  %14978 = vmatmul.mubr.msk.f32.gmra.mrb[180].mxu0 %vm3987_vm5, %v17145_v9  ;;  %15500 = vmatmul.mubr.msk.f32.gmra.mrb[198].mxu1 %vm3987_vm5, %v21025_v26  ;;  %v17149_v9 = vld [vmem:[#allocation2 + $0x20] sm:$0xff] }
 0x4e8   : > { %14980 = vmatprep.mubr.msk.f32.mxu0 %vm17213_vm4, %v22297_v10  ;;  %15502 = vmatprep.mubr.msk.f32.mxu1 %vm17213_vm4, %v22297_v10  ;;  %v21043_v47 = vld [vmem:[#allocation2 + $0xf8] sm:$0xff] }
 0x4e9   : > { %v21144_v40 = vld [vmem:[#allocation2 + $0x39] sm:$0xff] }
 0x4eb   : > { %14981 = vmatmul.mubr.msk.f32.gmra.mrb[182].mxu0 %vm3987_vm5, %v17147_v63  ;;  %15503 = vmatmul.mubr.msk.f32.gmra.mrb[200].mxu1 %vm3987_vm5, %v21034_v38  ;;  %v17151_v63 = vld [vmem:[#allocation2 + $0x28] sm:$0xff] }
 0x4ec   : > { %14983 = vmatprep.mubr.msk.f32.mxu0 %vm17213_vm4, %v22297_v10  ;;  %15505 = vmatprep.mubr.msk.f32.mxu1 %vm17213_vm4, %v22297_v10 }
 0x4ef   : > { %14984 = vmatmul.mubr.msk.f32.gmra.mrb[184].mxu0 %vm3987_vm5, %v17149_v9  ;;  %15506 = vmatmul.mubr.msk.f32.gmra.mrb[202].mxu1 %vm3987_vm5, %v21043_v47  ;;  %v17153_v9 = vld [vmem:[#allocation2 + $0x30] sm:$0xff] }
 0x4f0   : > { %14986 = vmatprep.mubr.msk.f32.mxu0 %vm17213_vm4, %v22297_v10  ;;  %15508 = vmatprep.mubr.msk.f32.mxu1 %vm17213_vm4, %v22297_v10 }
 0x4f3   : > { %14987 = vmatmul.mubr.msk.f32.gmra.mrb[186].mxu0 %vm3987_vm5, %v17151_v63  ;;  %15509 = vmatmul.mubr.msk.f32.gmra.mrb[204].mxu1 %vm3987_vm5, %v21052_v19  ;;  %v17155_v63 = vld [vmem:[#allocation2 + $0x38] sm:$0xff] }
 0x4f4   : > { %14989 = vmatprep.mubr.msk.f32.mxu0 %vm17213_vm4, %v22297_v10  ;;  %15511 = vmatprep.mubr.msk.f32.mxu1 %vm17213_vm4, %v22297_v10 }
 0x4f7   : > { %14990 = vmatmul.mubr.msk.f32.gmra.mrb[188].mxu0 %vm3987_vm5, %v17153_v9  ;;  %15512 = vmatmul.mubr.msk.f32.gmra.mrb[206].mxu1 %vm3987_vm5, %v21061_v52  ;;  %v17157_v9 = vld [vmem:[#allocation2 + $0x40] sm:$0xff] }
 0x4f8   : > { %14992 = vmatprep.mubr.msk.f32.mxu0 %vm17213_vm4, %v22297_v10  ;;  %15514 = vmatprep.mubr.msk.f32.mxu1 %vm17213_vm4, %v22297_v10 }
 0x4fb   : > { %14993 = vmatmul.mubr.msk.f32.gmra.mrb[190].mxu0 %vm3987_vm5, %v17155_v63  ;;  %15515 = vmatmul.mubr.msk.f32.gmra.mrb[208].mxu1 %vm3987_vm5, %v21070_v50  ;;  %v17159_v63 = vld [vmem:[#allocation2 + $0x48] sm:$0xff] }
 0x4fc   : > { %14995 = vmatprep.mubr.msk.f32.mxu0 %vm17213_vm4, %v22297_v10  ;;  %15517 = vmatprep.mubr.msk.f32.mxu1 %vm17213_vm4, %v22297_v10 }
 0x4ff   : > { %14996 = vmatmul.mubr.msk.f32.gmra.mrb[192].mxu0 %vm3987_vm5, %v17157_v9  ;;  %15518 = vmatmul.mubr.msk.f32.gmra.mrb[210].mxu1 %vm3987_vm5, %v21079_v39  ;;  %v17161_v9 = vld [vmem:[#allocation2 + $0x50] sm:$0xff] }
 0x500   : > { %14998 = vmatprep.mubr.msk.f32.mxu0 %vm17213_vm4, %v22297_v10  ;;  %15524 = vmatprep.mubr.msk.f32.mxu1 %vm17213_vm4, %v22297_v10 }
 0x503   : > { %14999 = vmatmul.mubr.msk.f32.gmra.mrb[194].mxu0 %vm3987_vm5, %v17159_v63  ;;  %15525 = vmatmul.mubr.msk.f32.vlgmr.msra.gmra.mrb[178].mxu1 %vm3987_vm5, %v21088_v2  ;;  %v17163_v63 = vld [vmem:[#allocation2 + $0x58] sm:$0xff] }
 0x504   : > { %15001 = vmatprep.mubr.msk.f32.mxu0 %vm17213_vm4, %v22297_v10  ;;  %15527 = vmatprep.mubr.msk.f32.mxu1 %vm17213_vm4, %v22297_v10 }
 0x505   : > { %15933 = vmatpush3.bf16.msra.mxu1 %v19705_v23 }
 0x506   : > { %15934 = vmatprep.subr.bf16.mxu1 %v22299_v21 }
 0x507   : > { %15002 = vmatmul.mubr.msk.f32.gmra.mrb[196].mxu0 %vm3987_vm5, %v17161_v9  ;;  %15528 = vmatmul.mubr.msk.f32.gmra.mrb[180].mxu1 %vm3987_vm5, %v21099_v30  ;;  %v17165_v9 = vld [vmem:[#allocation2 + $0x60] sm:$0xff] }
 0x508   : > { %15004 = vmatprep.mubr.msk.f32.mxu0 %vm17213_vm4, %v22297_v10  ;;  %15530 = vmatprep.mubr.msk.f32.mxu1 %vm17213_vm4, %v22297_v10 }
 0x50b   : > { %15005 = vmatmul.mubr.msk.f32.gmra.mrb[198].mxu0 %vm3987_vm5, %v17163_v63  ;;  %15531 = vmatmul.mubr.msk.f32.gmra.mrb[182].mxu1 %vm3987_vm5, %v21108_v8  ;;  %v17167_v63 = vld [vmem:[#allocation2 + $0x68] sm:$0xff] }
 0x50c   : > { %15007 = vmatprep.mubr.msk.f32.mxu0 %vm17213_vm4, %v22297_v10  ;;  %15533 = vmatprep.mubr.msk.f32.mxu1 %vm17213_vm4, %v22297_v10 }
 0x50f   : > { %15008 = vmatmul.mubr.msk.f32.gmra.mrb[200].mxu0 %vm3987_vm5, %v17165_v9  ;;  %15534 = vmatmul.mubr.msk.f32.gmra.mrb[184].mxu1 %vm3987_vm5, %v21117_v24  ;;  %v17169_v9 = vld [vmem:[#allocation2 + $0x70] sm:$0xff] }
 0x510   : > { %15010 = vmatprep.mubr.msk.f32.mxu0 %vm17213_vm4, %v22297_v10  ;;  %15536 = vmatprep.mubr.msk.f32.mxu1 %vm17213_vm4, %v22297_v10 }
 0x513   : > { %15011 = vmatmul.mubr.msk.f32.gmra.mrb[202].mxu0 %vm3987_vm5, %v17167_v63  ;;  %15537 = vmatmul.mubr.msk.f32.gmra.mrb[186].mxu1 %vm3987_vm5, %v21126_v55  ;;  %v17171_v63 = vld [vmem:[#allocation2 + $0x78] sm:$0xff] }
 0x514   : > { %15013 = vmatprep.mubr.msk.f32.mxu0 %vm17213_vm4, %v22297_v10  ;;  %15539 = vmatprep.mubr.msk.f32.mxu1 %vm17213_vm4, %v22297_v10 }
 0x517   : > { %15014 = vmatmul.mubr.msk.f32.gmra.mrb[204].mxu0 %vm3987_vm5, %v17169_v9  ;;  %15540 = vmatmul.mubr.msk.f32.gmra.mrb[188].mxu1 %vm3987_vm5, %v21135_v53  ;;  %v17173_v9 = vld [vmem:[#allocation2 + $0x80] sm:$0xff] }
 0x518   : > { %15016 = vmatprep.mubr.msk.f32.mxu0 %vm17213_vm4, %v22297_v10  ;;  %15542 = vmatprep.mubr.msk.f32.mxu1 %vm17213_vm4, %v22297_v10 }
 0x51b   : > { %15017 = vmatmul.mubr.msk.f32.gmra.mrb[206].mxu0 %vm3987_vm5, %v17171_v63  ;;  %15543 = vmatmul.mubr.msk.f32.gmra.mrb[190].mxu1 %vm3987_vm5, %v21144_v40  ;;  %v17175_v63 = vld [vmem:[#allocation2 + $0x88] sm:$0x7f] }
 0x51c   : > { %15019 = vmatprep.mubr.msk.f32.mxu0 %vm17213_vm4, %v22297_v10  ;;  %15545 = vmatprep.mubr.msk.f32.mxu1 %vm17213_vm4, %v22297_v10 }
 0x51f   : > { %15020 = vmatmul.mubr.msk.f32.gmra.mrb[208].mxu0 %vm3987_vm5, %v17173_v9  ;;  %15546 = vmatmul.mubr.msk.f32.gmra.mrb[192].mxu1 %vm3987_vm5, %v21153_v0  ;;  %v21172_v9 = vld [vmem:[#allocation2 + $0x51] sm:$0xff] }
 0x520   : > { %15022 = vmatprep.mubr.msk.f32.mxu0 %vm17213_vm4, %v22297_v10  ;;  %15548 = vmatprep.mubr.msk.f32.mxu1 %vm17213_vm4, %v22297_v10 }
 0x523   : > { %15023 = vmatmul.mubr.msk.f32.gmra.mrb[210].mxu0 %vm3987_vm5, %v17175_v63  ;;  %15549 = vmatmul.mubr.msk.f32.gmra.mrb[194].mxu1 %vm3987_vm5, %v21162_v20  ;;  %v21184_v63 = vld [vmem:[#allocation2 + $0x59] sm:$0xff] }
 0x524   : > { %15029 = vmatprep.mubr.msk.f32.mxu0 %vm17213_vm4, %v22297_v10  ;;  %15551 = vmatprep.mubr.msk.f32.mxu1 %vm17213_vm4, %v22297_v10 }
 0x527   : > { %15030 = vmatmul.mubr.msk.f32.vlgmr.msra.gmra.mrb[178].mxu0 %vm3987_vm5, %v20889_v6  ;;  %15552 = vmatmul.mubr.msk.f32.gmra.mrb[196].mxu1 %vm3987_vm5, %v21172_v9  ;;  %v21204_v6 = vld [vmem:[#allocation2 + $0x69] sm:$0xff] }
 0x528   : > { %15906 = vmatpush3.bf16.msra.mxu0 %v19705_v23  ;;  %15032 = vmatprep.mubr.msk.f32.mxu0 %vm17213_vm4, %v22297_v10  ;;  %v21194_v23 = vld [vmem:[#allocation2 + $0x61] sm:$0xff] }
 0x529   : > { %15554 = vmatprep.mubr.msk.f32.mxu1 %vm17213_vm4, %v22297_v10  ;;  %15907 = vmatprep.subr.bf16.mxu0 %v22299_v21 }
 0x52b   : > { %15033 = vmatmul.mubr.msk.f32.gmra.mrb[180].mxu0 %vm3987_vm5, %v20906_v56  ;;  %15555 = vmatmul.mubr.msk.f32.gmra.mrb[198].mxu1 %vm3987_vm5, %v21184_v63  ;;  %v21214_v56 = vld [vmem:[#allocation2 + $0x71] sm:$0xff] }
 0x52c   : > { %15035 = vmatprep.mubr.msk.f32.mxu0 %vm17213_vm4, %v22297_v10  ;;  %15557 = vmatprep.mubr.msk.f32.mxu1 %vm17213_vm4, %v22297_v10 }
 0x52f   : > { %15036 = vmatmul.mubr.msk.f32.gmra.mrb[182].mxu0 %vm3987_vm5, %v20919_v49  ;;  %15558 = vmatmul.mubr.msk.f32.gmra.mrb[200].mxu1 %vm3987_vm5, %v21194_v23  ;;  %v21224_v49 = vld [vmem:[#allocation2 + $0x79] sm:$0xff] }
 0x530   : > { %15038 = vmatprep.mubr.msk.f32.mxu0 %vm17213_vm4, %v22297_v10  ;;  %15560 = vmatprep.mubr.msk.f32.mxu1 %vm17213_vm4, %v22297_v10 }
 0x533   : > { %15039 = vmatmul.mubr.msk.f32.gmra.mrb[184].mxu0 %vm3987_vm5, %v20932_v43  ;;  %15561 = vmatmul.mubr.msk.f32.gmra.mrb[202].mxu1 %vm3987_vm5, %v21204_v6  ;;  %v21234_v43 = vld [vmem:[#allocation2 + $0x81] sm:$0xff] }
 0x534   : > { %15041 = vmatprep.mubr.msk.f32.mxu0 %vm17213_vm4, %v22297_v10  ;;  %15563 = vmatprep.mubr.msk.f32.mxu1 %vm17213_vm4, %v22297_v10 }
 0x537   : > { %15042 = vmatmul.mubr.msk.f32.gmra.mrb[186].mxu0 %vm3987_vm5, %v20945_v48  ;;  %15564 = vmatmul.mubr.msk.f32.gmra.mrb[204].mxu1 %vm3987_vm5, %v21214_v56  ;;  %v21244_v48 = vld [vmem:[#allocation2 + $0x89] sm:$0x7f] }
 0x538   : > { %15044 = vmatprep.mubr.msk.f32.mxu0 %vm17213_vm4, %v22297_v10  ;;  %15566 = vmatprep.mubr.msk.f32.mxu1 %vm17213_vm4, %v22297_v10 }
 0x53b   : > { %15045 = vmatmul.mubr.msk.f32.gmra.mrb[188].mxu0 %vm3987_vm5, %v20958_v54  ;;  %15567 = vmatmul.mubr.msk.f32.gmra.mrb[206].mxu1 %vm3987_vm5, %v21224_v49  ;;  %v17185_v54 = vld [vmem:[#allocation2 + $0x99] sm:$0xff] }
 0x53c   : > { %15047 = vmatprep.mubr.msk.f32.mxu0 %vm17213_vm4, %v22297_v10  ;;  %15569 = vmatprep.mubr.msk.f32.mxu1 %vm17213_vm4, %v22297_v10 }
 0x53f   : > { %15048 = vmatmul.mubr.msk.f32.gmra.mrb[190].mxu0 %vm3987_vm5, %v20971_v35  ;;  %15570 = vmatmul.mubr.msk.f32.gmra.mrb[208].mxu1 %vm3987_vm5, %v21234_v43  ;;  %v17186_v35 = vld [vmem:[#allocation2 + $0xa1] sm:$0xff] }
 0x540   : > { %15050 = vmatprep.mubr.msk.f32.mxu0 %vm17213_vm4, %v22297_v10  ;;  %15572 = vmatprep.mubr.msk.f32.mxu1 %vm17213_vm4, %v22297_v10 }
 0x543   : > { %15051 = vmatmul.mubr.msk.f32.gmra.mrb[192].mxu0 %vm3987_vm5, %v20984_v3  ;;  %15573 = vmatmul.mubr.msk.f32.gmra.mrb[210].mxu1 %vm3987_vm5, %v21244_v48  ;;  %v17187_v3 = vld [vmem:[#allocation2 + $0xa9] sm:$0xff] }
 0x544   : > { %15053 = vmatprep.mubr.msk.f32.mxu0 %vm17213_vm4, %v22297_v10  ;;  %15579 = vmatprep.mubr.msk.f32.mxu1 %vm17213_vm4, %v22297_v10 }
 0x547   : > { %15054 = vmatmul.mubr.msk.f32.gmra.mrb[194].mxu0 %vm3987_vm5, %v20997_v25  ;;  %15580 = vmatmul.mubr.msk.f32.vlgmr.msra.gmra.mrb[178].mxu1 %vm3987_vm5, %v17185_v54  ;;  %v17188_v25 = vld [vmem:[#allocation2 + $0xb1] sm:$0xff] }
 0x548   : > { %15056 = vmatprep.mubr.msk.f32.mxu0 %vm17213_vm4, %v22297_v10  ;;  %15582 = vmatprep.mubr.msk.f32.mxu1 %vm17213_vm4, %v22297_v10  ;;  %v21487_v54 = vld [vmem:[#allocation2 + $0x210] sm:$0xff] }
 0x549   : > { %15936 = vmatpush3.bf16.msra.mxu1 %v19878_v1 }
 0x54a   : > { %15937 = vmatprep.subr.bf16.mxu1 %v22299_v21 }
 0x54b   : > { %15057 = vmatmul.mubr.msk.f32.gmra.mrb[196].mxu0 %vm3987_vm5, %v21010_v13  ;;  %15583 = vmatmul.mubr.msk.f32.gmra.mrb[180].mxu1 %vm3987_vm5, %v17186_v35  ;;  %v17191_v13 = vld [vmem:[#allocation2 + $0xc9] sm:$0xff]  ;;  %v21496_v35 = vld [vmem:[#allocation2 + $0x218] sm:$0xff] }
 0x54c   : > { %15059 = vmatprep.mubr.msk.f32.mxu0 %vm17213_vm4, %v22297_v10  ;;  %15585 = vmatprep.mubr.msk.f32.mxu1 %vm17213_vm4, %v22297_v10 }
 0x54f   : > { %15060 = vmatmul.mubr.msk.f32.gmra.mrb[198].mxu0 %vm3987_vm5, %v21025_v26  ;;  %15586 = vmatmul.mubr.msk.f32.gmra.mrb[182].mxu1 %vm3987_vm5, %v17187_v3  ;;  %v17189_v26 = vld [vmem:[#allocation2 + $0xb9] sm:$0xff]  ;;  %v8829_v3 = vld [vmem:[#allocation2 + $0x148] sm:$0xff] }
 0x550   : > { %15062 = vmatprep.mubr.msk.f32.mxu0 %vm17213_vm4, %v22297_v10  ;;  %15588 = vmatprep.mubr.msk.f32.mxu1 %vm17213_vm4, %v22297_v10 }
 0x553   : > { %15063 = vmatmul.mubr.msk.f32.gmra.mrb[200].mxu0 %vm3987_vm5, %v21034_v38  ;;  %15589 = vmatmul.mubr.msk.f32.gmra.mrb[184].mxu1 %vm3987_vm5, %v17188_v25  ;;  %v17190_v38 = vld [vmem:[#allocation2 + $0xc1] sm:$0xff] }
 0x554   : > { %15065 = vmatprep.mubr.msk.f32.mxu0 %vm17213_vm4, %v22297_v10  ;;  %15591 = vmatprep.mubr.msk.f32.mxu1 %vm17213_vm4, %v22297_v10  ;;  %v21505_v25 = vld [vmem:[#allocation2 + $0x220] sm:$0xff] }
 0x557   : > { %15066 = vmatmul.mubr.msk.f32.gmra.mrb[202].mxu0 %vm3987_vm5, %v21043_v47  ;;  %15592 = vmatmul.mubr.msk.f32.gmra.mrb[186].mxu1 %vm3987_vm5, %v17189_v26  ;;  %v21417_v47 = vld [vmem:[#allocation2 + $0x1d8] sm:$0xff]  ;;  %v8830_v26 = vld [vmem:[#allocation2 + $0x150] sm:$0xff] }
 0x558   : > { %15068 = vmatprep.mubr.msk.f32.mxu0 %vm17213_vm4, %v22297_v10  ;;  %15594 = vmatprep.mubr.msk.f32.mxu1 %vm17213_vm4, %v22297_v10 }
 0x55b   : > { %15069 = vmatmul.mubr.msk.f32.gmra.mrb[204].mxu0 %vm3987_vm5, %v21052_v19  ;;  %15595 = vmatmul.mubr.msk.f32.gmra.mrb[188].mxu1 %vm3987_vm5, %v17190_v38  ;;  %v17192_v19 = vld [vmem:[#allocation2 + $0xd1] sm:$0xff]  ;;  %v21514_v38 = vld [vmem:[#allocation2 + $0x228] sm:$0xff] }
 0x55c   : > { %15071 = vmatprep.mubr.msk.f32.mxu0 %vm17213_vm4, %v22297_v10  ;;  %15597 = vmatprep.mubr.msk.f32.mxu1 %vm17213_vm4, %v22297_v10 }
 0x55f   : > { %15072 = vmatmul.mubr.msk.f32.gmra.mrb[206].mxu0 %vm3987_vm5, %v21061_v52  ;;  %15598 = vmatmul.mubr.msk.f32.gmra.mrb[190].mxu1 %vm3987_vm5, %v17191_v13  ;;  %v17193_v52 = vld [vmem:[#allocation2 + $0xd9] sm:$0xff] }
 0x560   : > { %15074 = vmatprep.mubr.msk.f32.mxu0 %vm17213_vm4, %v22297_v10  ;;  %15600 = vmatprep.mubr.msk.f32.mxu1 %vm17213_vm4, %v22297_v10  ;;  %v8831_v13 = vld [vmem:[#allocation2 + $0x158] sm:$0xff] }
 0x563   : > { %15075 = vmatmul.mubr.msk.f32.gmra.mrb[208].mxu0 %vm3987_vm5, %v21070_v50  ;;  %15601 = vmatmul.mubr.msk.f32.gmra.mrb[192].mxu1 %vm3987_vm5, %v17192_v19  ;;  %v17194_v50 = vld [vmem:[#allocation2 + $0xe1] sm:$0xff]  ;;  %v21523_v19 = vld [vmem:[#allocation2 + $0x230] sm:$0xff] }
 0x564   : > { %15077 = vmatprep.mubr.msk.f32.mxu0 %vm17213_vm4, %v22297_v10  ;;  %15603 = vmatprep.mubr.msk.f32.mxu1 %vm17213_vm4, %v22297_v10 }
 0x567   : > { %15078 = vmatmul.mubr.msk.f32.gmra.mrb[210].mxu0 %vm3987_vm5, %v21079_v39  ;;  %15604 = vmatmul.mubr.msk.f32.gmra.mrb[194].mxu1 %vm3987_vm5, %v17193_v52  ;;  %v17195_v39 = vld [vmem:[#allocation2 + $0xe9] sm:$0xff]  ;;  %v8832_v52 = vld [vmem:[#allocation2 + $0x160] sm:$0xff] }
 0x568   : > { %15084 = vmatprep.mubr.msk.f32.mxu0 %vm17213_vm4, %v22297_v10  ;;  %15606 = vmatprep.mubr.msk.f32.mxu1 %vm17213_vm4, %v22297_v10 }
 0x56b   : > { %15085 = vmatmul.mubr.msk.f32.vlgmr.msra.gmra.mrb[178].mxu0 %vm3987_vm5, %v21088_v2  ;;  %15607 = vmatmul.mubr.msk.f32.gmra.mrb[196].mxu1 %vm3987_vm5, %v17194_v50  ;;  %v17201_v2 = vld [vmem:[#allocation2 + $0x119] sm:$0x7f] }
 0x56c   : > { %15909 = vmatpush3.bf16.msra.mxu0 %v19878_v1  ;;  %15087 = vmatprep.mubr.msk.f32.mxu0 %vm17213_vm4, %v22297_v10  ;;  %v17196_v1 = vld [vmem:[#allocation2 + $0xf1] sm:$0xff] }
 0x56d   : > { %15609 = vmatprep.mubr.msk.f32.mxu1 %vm17213_vm4, %v22297_v10  ;;  %15910 = vmatprep.subr.bf16.mxu0 %v22299_v21  ;;  %v21532_v50 = vld [vmem:[#allocation2 + $0x238] sm:$0x7f] }
 0x56f   : > { %15088 = vmatmul.mubr.msk.f32.gmra.mrb[180].mxu0 %vm3987_vm5, %v21099_v30  ;;  %15610 = vmatmul.mubr.msk.f32.gmra.mrb[198].mxu1 %vm3987_vm5, %v17195_v39  ;;  %v17197_v30 = vld [vmem:[#allocation2 + $0xf9] sm:$0xff]  ;;  %v8833_v39 = vld [vmem:[#allocation2 + $0x168] sm:$0xff] }
 0x570   : > { %15090 = vmatprep.mubr.msk.f32.mxu0 %vm17213_vm4, %v22297_v10  ;;  %15612 = vmatprep.mubr.msk.f32.mxu1 %vm17213_vm4, %v22297_v10 }
 0x573   : > { %15091 = vmatmul.mubr.msk.f32.gmra.mrb[182].mxu0 %vm3987_vm5, %v21108_v8  ;;  %15613 = vmatmul.mubr.msk.f32.gmra.mrb[200].mxu1 %vm3987_vm5, %v17196_v1  ;;  %v17198_v8 = vld [vmem:[#allocation2 + $0x101] sm:$0xff]  ;;  %v21541_v1 = vld [vmem:[#allocation2 + $0x129] sm:$0xff] }
 0x574   : > { %15093 = vmatprep.mubr.msk.f32.mxu0 %vm17213_vm4, %v22297_v10  ;;  %15615 = vmatprep.mubr.msk.f32.mxu1 %vm17213_vm4, %v22297_v10 }
 0x577   : > { %15094 = vmatmul.mubr.msk.f32.gmra.mrb[184].mxu0 %vm3987_vm5, %v21117_v24  ;;  %15616 = vmatmul.mubr.msk.f32.gmra.mrb[202].mxu1 %vm3987_vm5, %v17197_v30  ;;  %v17199_v24 = vld [vmem:[#allocation2 + $0x109] sm:$0xff] }
 0x578   : > { %15096 = vmatprep.mubr.msk.f32.mxu0 %vm17213_vm4, %v22297_v10  ;;  %15618 = vmatprep.mubr.msk.f32.mxu1 %vm17213_vm4, %v22297_v10  ;;  %v8834_v30 = vld [vmem:[#allocation2 + $0x170] sm:$0xff] }
 0x57b   : > { %15097 = vmatmul.mubr.msk.f32.gmra.mrb[186].mxu0 %vm3987_vm5, %v21126_v55  ;;  %15619 = vmatmul.mubr.msk.f32.gmra.mrb[204].mxu1 %vm3987_vm5, %v17198_v8  ;;  %v17200_v55 = vld [vmem:[#allocation2 + $0x111] sm:$0xff] }
 0x57c   : > { %15099 = vmatprep.mubr.msk.f32.mxu0 %vm17213_vm4, %v22297_v10  ;;  %15621 = vmatprep.mubr.msk.f32.mxu1 %vm17213_vm4, %v22297_v10  ;;  %v21551_v8 = vld [vmem:[#allocation2 + $0x131] sm:$0xff] }
 0x57f   : > { %15100 = vmatmul.mubr.msk.f32.gmra.mrb[188].mxu0 %vm3987_vm5, %v21135_v53  ;;  %15622 = vmatmul.mubr.msk.f32.gmra.mrb[206].mxu1 %vm3987_vm5, %v17199_v24  ;;  %v21375_v53 = vld [vmem:[#allocation2 + $0x1b8] sm:$0xff] }
 0x580   : > { %15102 = vmatprep.mubr.msk.f32.mxu0 %vm17213_vm4, %v22297_v10  ;;  %15624 = vmatprep.mubr.msk.f32.mxu1 %vm17213_vm4, %v22297_v10  ;;  %v8835_v24 = vld [vmem:[#allocation2 + $0x178] sm:$0xff] }
 0x583   : > { %15103 = vmatmul.mubr.msk.f32.gmra.mrb[190].mxu0 %vm3987_vm5, %v21144_v40  ;;  %15625 = vmatmul.mubr.msk.f32.gmra.mrb[208].mxu1 %vm3987_vm5, %v17200_v55  ;;  %v21407_v40 = vld [vmem:[#allocation2 + $0x1d0] sm:$0xff]  ;;  %v21560_v55 = vld [vmem:[#allocation2 + $0x139] sm:$0xff] }
 0x584   : > { %15105 = vmatprep.mubr.msk.f32.mxu0 %vm17213_vm4, %v22297_v10  ;;  %15627 = vmatprep.mubr.msk.f32.mxu1 %vm17213_vm4, %v22297_v10 }
 0x587   : > { %15106 = vmatmul.mubr.msk.f32.gmra.mrb[192].mxu0 %vm3987_vm5, %v21153_v0  ;;  %15628 = vmatmul.mubr.msk.f32.gmra.mrb[210].mxu1 %vm3987_vm5, %v17201_v2  ;;  %v21386_v0 = vld [vmem:[#allocation2 + $0x1c0] sm:$0xff] }
 0x588   : > { %15108 = vmatprep.mubr.msk.f32.mxu0 %vm17213_vm4, %v22297_v10  ;;  %15634 = vmatprep.mubr.msk.f32.mxu1 %vm17213_vm4, %v22297_v10  ;;  %v8836_v2 = vld [vmem:[#allocation2 + $0x180] sm:$0xff] }
 0x58b   : > { %15109 = vmatmul.mubr.msk.f32.gmra.mrb[194].mxu0 %vm3987_vm5, %v21162_v20  ;;  %15635 = vmatmul.mubr.msk.f32.vlgmr.msra.gmra.mrb[178].mxu1 %vm3987_vm5, %v21375_v53  ;;  %v21397_v20 = vld [vmem:[#allocation2 + $0x1c8] sm:$0xff] }
 0x58c   : > { %15111 = vmatprep.mubr.msk.f32.mxu0 %vm17213_vm4, %v22297_v10  ;;  %15637 = vmatprep.mubr.msk.f32.mxu1 %vm17213_vm4, %v22297_v10 }
 0x58d   : > { %15939 = vmatpush3.bf16.msra.mxu1 %v20009_v59 }
 0x58e   : > { %15940 = vmatprep.subr.bf16.mxu1 %v22299_v21 }
 0x58f   : > { %15112 = vmatmul.mubr.msk.f32.gmra.mrb[196].mxu0 %vm3987_vm5, %v21172_v9  ;;  %15638 = vmatmul.mubr.msk.f32.gmra.mrb[180].mxu1 %vm3987_vm5, %v21386_v0  ;;  %v21427_v9 = vld [vmem:[#allocation2 + $0x1e0] sm:$0xff] }
 0x590   : > { %15114 = vmatprep.mubr.msk.f32.mxu0 %vm17213_vm4, %v22297_v10  ;;  %15640 = vmatprep.mubr.msk.f32.mxu1 %vm17213_vm4, %v22297_v10 }
 0x593   : > { %15115 = vmatmul.mubr.msk.f32.gmra.mrb[198].mxu0 %vm3987_vm5, %v21184_v63  ;;  %15641 = vmatmul.mubr.msk.f32.gmra.mrb[182].mxu1 %vm3987_vm5, %v21397_v20  ;;  %v21437_v63 = vld [vmem:[#allocation2 + $0x1e8] sm:$0xff] }
 0x594   : > { %15117 = vmatprep.mubr.msk.f32.mxu0 %vm17213_vm4, %v22297_v10  ;;  %15643 = vmatprep.mubr.msk.f32.mxu1 %vm17213_vm4, %v22297_v10 }
 0x597   : > { %15118 = vmatmul.mubr.msk.f32.gmra.mrb[200].mxu0 %vm3987_vm5, %v21194_v23  ;;  %15644 = vmatmul.mubr.msk.f32.gmra.mrb[184].mxu1 %vm3987_vm5, %v21407_v40  ;;  %v21447_v23 = vld [vmem:[#allocation2 + $0x1f0] sm:$0xff] }
 0x598   : > { %15120 = vmatprep.mubr.msk.f32.mxu0 %vm17213_vm4, %v22297_v10  ;;  %15646 = vmatprep.mubr.msk.f32.mxu1 %vm17213_vm4, %v22297_v10 }
 0x59b   : > { %15121 = vmatmul.mubr.msk.f32.gmra.mrb[202].mxu0 %vm3987_vm5, %v21204_v6  ;;  %15647 = vmatmul.mubr.msk.f32.gmra.mrb[186].mxu1 %vm3987_vm5, %v21417_v47  ;;  %v21457_v6 = vld [vmem:[#allocation2 + $0x1f8] sm:$0xff] }
 0x59c   : > { %15123 = vmatprep.mubr.msk.f32.mxu0 %vm17213_vm4, %v22297_v10  ;;  %15649 = vmatprep.mubr.msk.f32.mxu1 %vm17213_vm4, %v22297_v10 }
 0x59f   : > { %15124 = vmatmul.mubr.msk.f32.gmra.mrb[204].mxu0 %vm3987_vm5, %v21214_v56  ;;  %15650 = vmatmul.mubr.msk.f32.gmra.mrb[188].mxu1 %vm3987_vm5, %v21427_v9  ;;  %v8825_v56 = vld [vmem:[#allocation2 + $0x128] sm:$0xff] }
 0x5a0   : > { %15126 = vmatprep.mubr.msk.f32.mxu0 %vm17213_vm4, %v22297_v10  ;;  %15652 = vmatprep.mubr.msk.f32.mxu1 %vm17213_vm4, %v22297_v10 }
 0x5a3   : > { %15127 = vmatmul.mubr.msk.f32.gmra.mrb[206].mxu0 %vm3987_vm5, %v21224_v49  ;;  %15653 = vmatmul.mubr.msk.f32.gmra.mrb[190].mxu1 %vm3987_vm5, %v21437_v63  ;;  %v21467_v49 = vld [vmem:[#allocation2 + $0x200] sm:$0xff] }
 0x5a4   : > { %15129 = vmatprep.mubr.msk.f32.mxu0 %vm17213_vm4, %v22297_v10  ;;  %15655 = vmatprep.mubr.msk.f32.mxu1 %vm17213_vm4, %v22297_v10 }
 0x5a7   : > { %15130 = vmatmul.mubr.msk.f32.gmra.mrb[208].mxu0 %vm3987_vm5, %v21234_v43  ;;  %15656 = vmatmul.mubr.msk.f32.gmra.mrb[192].mxu1 %vm3987_vm5, %v21447_v23  ;;  %v8826_v43 = vld [vmem:[#allocation2 + $0x130] sm:$0xff] }
 0x5a8   : > { %15132 = vmatprep.mubr.msk.f32.mxu0 %vm17213_vm4, %v22297_v10  ;;  %15658 = vmatprep.mubr.msk.f32.mxu1 %vm17213_vm4, %v22297_v10 }
 0x5ab   : > { %15133 = vmatmul.mubr.msk.f32.gmra.mrb[210].mxu0 %vm3987_vm5, %v21244_v48  ;;  %15659 = vmatmul.mubr.msk.f32.gmra.mrb[194].mxu1 %vm3987_vm5, %v21457_v6  ;;  %v21478_v48 = vld [vmem:[#allocation2 + $0x208] sm:$0xff] }
 0x5ac   : > { %15139 = vmatprep.mubr.msk.f32.mxu0 %vm17213_vm4, %v22297_v10  ;;  %15661 = vmatprep.mubr.msk.f32.mxu1 %vm17213_vm4, %v22297_v10 }
 0x5af   : > { %15140 = vmatmul.mubr.msk.f32.vlgmr.msra.gmra.mrb[178].mxu0 %vm3987_vm5, %v8825_v56  ;;  %15662 = vmatmul.mubr.msk.f32.gmra.mrb[196].mxu1 %vm3987_vm5, %v21467_v49  ;;  %v21569_v56 = vld [vmem:[#allocation2 + $0x141] sm:$0xff] }
 0x5b0   : > { %15912 = vmatpush3.bf16.msra.mxu0 %v20009_v59  ;;  %15142 = vmatprep.mubr.msk.f32.mxu0 %vm17213_vm4, %v22297_v10  ;;  %v8827_v59 = vld [vmem:[#allocation2 + $0x138] sm:$0xff] }
 0x5b1   : > { %15664 = vmatprep.mubr.msk.f32.mxu1 %vm17213_vm4, %v22297_v10  ;;  %15913 = vmatprep.subr.bf16.mxu0 %v22299_v21  ;;  %v8828_v21 = vld [vmem:[#allocation2 + $0x140] sm:$0xff] }
 0x5b3   : > { %15143 = vmatmul.mubr.msk.f32.gmra.mrb[180].mxu0 %vm3987_vm5, %v8826_v43  ;;  %15665 = vmatmul.mubr.msk.f32.gmra.mrb[198].mxu1 %vm3987_vm5, %v21478_v48  ;;  %v8837_v43 = vld [vmem:[#allocation2 + $0x188] sm:$0xff] }
 0x5b4   : > { %15145 = vmatprep.mubr.msk.f32.mxu0 %vm17213_vm4, %v22297_v10  ;;  %15667 = vmatprep.mubr.msk.f32.mxu1 %vm17213_vm4, %v22297_v10 }
 0x5b7   : > { %15146 = vmatmul.mubr.msk.f32.gmra.mrb[182].mxu0 %vm3987_vm5, %v8827_v59  ;;  %15668 = vmatmul.mubr.msk.f32.gmra.mrb[200].mxu1 %vm3987_vm5, %v21487_v54  ;;  %v21578_v59 = vld [vmem:[#allocation2 + $0x149] sm:$0xff] }
 0x5b8   : > { %15148 = vmatprep.mubr.msk.f32.mxu0 %vm17213_vm4, %v22297_v10  ;;  %15670 = vmatprep.mubr.msk.f32.mxu1 %vm17213_vm4, %v22297_v10 }
 0x5bb   : > { %15149 = vmatmul.mubr.msk.f32.gmra.mrb[184].mxu0 %vm3987_vm5, %v8828_v21  ;;  %15671 = vmatmul.mubr.msk.f32.gmra.mrb[202].mxu1 %vm3987_vm5, %v21496_v35  ;;  %v8838_v21 = vld [vmem:[#allocation2 + $0x190] sm:$0xff] }
 0x5bc   : > { %15151 = vmatprep.mubr.msk.f32.mxu0 %vm17213_vm4, %v22297_v10  ;;  %15673 = vmatprep.mubr.msk.f32.mxu1 %vm17213_vm4, %v22297_v10 }
 0x5bf   : > { %15152 = vmatmul.mubr.msk.f32.gmra.mrb[186].mxu0 %vm3987_vm5, %v8829_v3  ;;  %15674 = vmatmul.mubr.msk.f32.gmra.mrb[204].mxu1 %vm3987_vm5, %v21505_v25  ;;  %v21587_v3 = vld [vmem:[#allocation2 + $0x151] sm:$0xff] }
 0x5c0   : > { %15154 = vmatprep.mubr.msk.f32.mxu0 %vm17213_vm4, %v22297_v10  ;;  %15676 = vmatprep.mubr.msk.f32.mxu1 %vm17213_vm4, %v22297_v10 }
 0x5c3   : > { %15155 = vmatmul.mubr.msk.f32.gmra.mrb[188].mxu0 %vm3987_vm5, %v8830_v26  ;;  %15677 = vmatmul.mubr.msk.f32.gmra.mrb[206].mxu1 %vm3987_vm5, %v21514_v38  ;;  %v8839_v26 = vld [vmem:[#allocation2 + $0x198] sm:$0xff] }
 0x5c4   : > { %15157 = vmatprep.mubr.msk.f32.mxu0 %vm17213_vm4, %v22297_v10  ;;  %15679 = vmatprep.mubr.msk.f32.mxu1 %vm17213_vm4, %v22297_v10 }
 0x5c7   : > { %15158 = vmatmul.mubr.msk.f32.gmra.mrb[190].mxu0 %vm3987_vm5, %v8831_v13  ;;  %15680 = vmatmul.mubr.msk.f32.gmra.mrb[208].mxu1 %vm3987_vm5, %v21523_v19  ;;  %v21596_v13 = vld [vmem:[#allocation2 + $0x159] sm:$0xff] }
 0x5c8   : > { %15160 = vmatprep.mubr.msk.f32.mxu0 %vm17213_vm4, %v22297_v10  ;;  %15682 = vmatprep.mubr.msk.f32.mxu1 %vm17213_vm4, %v22297_v10 }
 0x5cb   : > { %15161 = vmatmul.mubr.msk.f32.gmra.mrb[192].mxu0 %vm3987_vm5, %v8832_v52  ;;  %15683 = vmatmul.mubr.msk.f32.gmra.mrb[210].mxu1 %vm3987_vm5, %v21532_v50  ;;  %v8840_v52 = vld [vmem:[#allocation2 + $0x1a0] sm:$0xff] }
 0x5cc   : > { %15163 = vmatprep.mubr.msk.f32.mxu0 %vm17213_vm4, %v22297_v10  ;;  %15689 = vmatprep.mubr.msk.f32.mxu1 %vm17213_vm4, %v22297_v10 }
 0x5cf   : > { %15164 = vmatmul.mubr.msk.f32.gmra.mrb[194].mxu0 %vm3987_vm5, %v8833_v39  ;;  %15690 = vmatmul.mubr.msk.f32.vlgmr.msra.gmra.mrb[178].mxu1 %vm3987_vm5, %v21541_v1  ;;  %v21605_v39 = vld [vmem:[#allocation2 + $0x161] sm:$0xff] }
 0x5d0   : > { %15166 = vmatprep.mubr.msk.f32.mxu0 %vm17213_vm4, %v22297_v10  ;;  %15692 = vmatprep.mubr.msk.f32.mxu1 %vm17213_vm4, %v22297_v10 }
 0x5d1   : > { %15942 = vmatpush3.bf16.msra.mxu1 %v20187_v18 }
 0x5d3   : > { %15167 = vmatmul.mubr.msk.f32.gmra.mrb[196].mxu0 %vm3987_vm5, %v8834_v30  ;;  %15693 = vmatmul.mubr.msk.f32.gmra.mrb[180].mxu1 %vm3987_vm5, %v21551_v8  ;;  %v8841_v30 = vld [vmem:[#allocation2 + $0x1a8] sm:$0x7f] }
 0x5d4   : > { %15169 = vmatprep.mubr.msk.f32.mxu0 %vm17213_vm4, %v22297_v10  ;;  %15695 = vmatprep.mubr.msk.f32.mxu1 %vm17213_vm4, %v22297_v10 }
 0x5d7   : > { %15170 = vmatmul.mubr.msk.f32.gmra.mrb[198].mxu0 %vm3987_vm5, %v8835_v24  ;;  %15696 = vmatmul.mubr.msk.f32.gmra.mrb[182].mxu1 %vm3987_vm5, %v21560_v55  ;;  %v21614_v24 = vld [vmem:[#allocation2 + $0x169] sm:$0xff] }
 0x5d8   : > { %15172 = vmatprep.mubr.msk.f32.mxu0 %vm17213_vm4, %v22297_v10  ;;  %15698 = vmatprep.mubr.msk.f32.mxu1 %vm17213_vm4, %v22297_v10 }
 0x5db   : > { %15173 = vmatmul.mubr.msk.f32.gmra.mrb[200].mxu0 %vm3987_vm5, %v8836_v2  ;;  %15699 = vmatmul.mubr.msk.f32.gmra.mrb[184].mxu1 %vm3987_vm5, %v21569_v56  ;;  %v21623_v2 = vld [vmem:[#allocation2 + $0x171] sm:$0xff] }
 0x5dc   : > { %15175 = vmatprep.mubr.msk.f32.mxu0 %vm17213_vm4, %v22297_v10  ;;  %15701 = vmatprep.mubr.msk.f32.mxu1 %vm17213_vm4, %v22297_v10 }
 0x5df   : > { %15176 = vmatmul.mubr.msk.f32.gmra.mrb[202].mxu0 %vm3987_vm5, %v8837_v43  ;;  %15702 = vmatmul.mubr.msk.f32.gmra.mrb[186].mxu1 %vm3987_vm5, %v21578_v59  ;;  %v21634_v43 = vld [vmem:[#allocation2 + $0x179] sm:$0xff] }
 0x5e0   : > { %15178 = vmatprep.mubr.msk.f32.mxu0 %vm17213_vm4, %v22297_v10  ;;  %15704 = vmatprep.mubr.msk.f32.mxu1 %vm17213_vm4, %v22297_v10 }
 0x5e3   : > { %15179 = vmatmul.mubr.msk.f32.gmra.mrb[204].mxu0 %vm3987_vm5, %v8838_v21  ;;  %15705 = vmatmul.mubr.msk.f32.gmra.mrb[188].mxu1 %vm3987_vm5, %v21587_v3 }
 0x5e4   : > { %15181 = vmatprep.mubr.msk.f32.mxu0 %vm17213_vm4, %v22297_v10  ;;  %15707 = vmatprep.mubr.msk.f32.mxu1 %vm17213_vm4, %v22297_v10 }
 0x5e7   : > { %15182 = vmatmul.mubr.msk.f32.gmra.mrb[206].mxu0 %vm3987_vm5, %v8839_v26  ;;  %15708 = vmatmul.mubr.msk.f32.gmra.mrb[190].mxu1 %vm3987_vm5, %v21596_v13 }
 0x5e8   : > { %15184 = vmatprep.mubr.msk.f32.mxu0 %vm17213_vm4, %v22297_v10  ;;  %15710 = vmatprep.mubr.msk.f32.mxu1 %vm17213_vm4, %v22297_v10 }
 0x5eb   : > { %15185 = vmatmul.mubr.msk.f32.gmra.mrb[208].mxu0 %vm3987_vm5, %v8840_v52  ;;  %15711 = vmatmul.mubr.msk.f32.gmra.mrb[192].mxu1 %vm3987_vm5, %v21605_v39 }
 0x5ec   : > { %15187 = vmatprep.mubr.msk.f32.mxu0 %vm17213_vm4, %v22297_v10  ;;  %15713 = vmatprep.mubr.msk.f32.mxu1 %vm17213_vm4, %v22297_v10 }
 0x5ef   : > { %15188 = vmatmul.mubr.msk.f32.gmra.mrb[210].mxu0 %vm3987_vm5, %v8841_v30  ;;  %15714 = vmatmul.mubr.msk.f32.gmra.mrb[194].mxu1 %vm3987_vm5, %v21614_v24 }
 0x5f0   : > { %15194 = vmatprep.mubr.msk.f32.mxu0 %vm17213_vm4, %v22297_v10  ;;  %15716 = vmatprep.mubr.msk.f32.mxu1 %vm17213_vm4, %v22297_v10 }
 0x5f3   : > { %15195 = vmatmul.mubr.msk.f32.vlgmr.msra.gmra.mrb[178].mxu0 %vm3987_vm5, %v21375_v53  ;;  %15717 = vmatmul.mubr.msk.f32.gmra.mrb[196].mxu1 %vm3987_vm5, %v21623_v2  ;;  %v21654_v53 = vld [vmem:[#allocation2 + $0x189] sm:$0xff] }
 0x5f4   : > { %15915 = vmatpush3.bf16.msra.mxu0 %v20187_v18  ;;  %15197 = vmatprep.mubr.msk.f32.mxu0 %vm17213_vm4, %v22297_v10  ;;  %v21644_v18 = vld [vmem:[#allocation2 + $0x181] sm:$0xff] }
 0x5f5   : > { %15719 = vmatprep.mubr.msk.f32.mxu1 %vm17213_vm4, %v22297_v10 }
 0x5f7   : > { %15198 = vmatmul.mubr.msk.f32.gmra.mrb[180].mxu0 %vm3987_vm5, %v21386_v0  ;;  %15720 = vmatmul.mubr.msk.f32.gmra.mrb[198].mxu1 %vm3987_vm5, %v21634_v43  ;;  %v21664_v0 = vld [vmem:[#allocation2 + $0x191] sm:$0xff] }
 0x5f8   : > { %15200 = vmatprep.mubr.msk.f32.mxu0 %vm17213_vm4, %v22297_v10  ;;  %15722 = vmatprep.mubr.msk.f32.mxu1 %vm17213_vm4, %v22297_v10 }
 0x5fb   : > { %15201 = vmatmul.mubr.msk.f32.gmra.mrb[182].mxu0 %vm3987_vm5, %v21397_v20  ;;  %15723 = vmatmul.mubr.msk.f32.gmra.mrb[200].mxu1 %vm3987_vm5, %v21644_v18  ;;  %v21674_v20 = vld [vmem:[#allocation2 + $0x199] sm:$0xff] }
 0x5fc   : > { %15203 = vmatprep.mubr.msk.f32.mxu0 %vm17213_vm4, %v22297_v10  ;;  %15725 = vmatprep.mubr.msk.f32.mxu1 %vm17213_vm4, %v22297_v10 }
 0x5ff   : > { %15204 = vmatmul.mubr.msk.f32.gmra.mrb[184].mxu0 %vm3987_vm5, %v21407_v40  ;;  %15726 = vmatmul.mubr.msk.f32.gmra.mrb[202].mxu1 %vm3987_vm5, %v21654_v53  ;;  %v21684_v40 = vld [vmem:[#allocation2 + $0x1a1] sm:$0xff] }
 0x600   : > { %15206 = vmatprep.mubr.msk.f32.mxu0 %vm17213_vm4, %v22297_v10  ;;  %15728 = vmatprep.mubr.msk.f32.mxu1 %vm17213_vm4, %v22297_v10 }
 0x603   : > { %15207 = vmatmul.mubr.msk.f32.gmra.mrb[186].mxu0 %vm3987_vm5, %v21417_v47  ;;  %15729 = vmatmul.mubr.msk.f32.gmra.mrb[204].mxu1 %vm3987_vm5, %v21664_v0  ;;  %v21694_v47 = vld [vmem:[#allocation2 + $0x1a9] sm:$0x7f] }
 0x604   : > { %15209 = vmatprep.mubr.msk.f32.mxu0 %vm17213_vm4, %v22297_v10  ;;  %15731 = vmatprep.mubr.msk.f32.mxu1 %vm17213_vm4, %v22297_v10 }
 0x607   : > { %15210 = vmatmul.mubr.msk.f32.gmra.mrb[188].mxu0 %vm3987_vm5, %v21427_v9  ;;  %15732 = vmatmul.mubr.msk.f32.gmra.mrb[206].mxu1 %vm3987_vm5, %v21674_v20  ;;  %v10849_v9 = vld [vmem:[#allocation2 + $0x1b9] sm:$0xff] }
 0x608   : > { %15212 = vmatprep.mubr.msk.f32.mxu0 %vm17213_vm4, %v22297_v10  ;;  %15734 = vmatprep.mubr.msk.f32.mxu1 %vm17213_vm4, %v22297_v10 }
 0x60b   : > { %15213 = vmatmul.mubr.msk.f32.gmra.mrb[190].mxu0 %vm3987_vm5, %v21437_v63  ;;  %15735 = vmatmul.mubr.msk.f32.gmra.mrb[208].mxu1 %vm3987_vm5, %v21684_v40  ;;  %v10850_v63 = vld [vmem:[#allocation2 + $0x1c1] sm:$0xff] }
 0x60c   : > { %15215 = vmatprep.mubr.msk.f32.mxu0 %vm17213_vm4, %v22297_v10  ;;  %15737 = vmatprep.mubr.msk.f32.mxu1 %vm17213_vm4, %v22297_v10 }
 0x60f   : > { %15216 = vmatmul.mubr.msk.f32.gmra.mrb[192].mxu0 %vm3987_vm5, %v21447_v23  ;;  %15738 = vmatmul.mubr.msk.f32.gmra.mrb[210].mxu1 %vm3987_vm5, %v21694_v47  ;;  %v10851_v23 = vld [vmem:[#allocation2 + $0x1c9] sm:$0xff] }
 0x610   : > { %15218 = vmatprep.mubr.msk.f32.mxu0 %vm17213_vm4, %v22297_v10  ;;  %15744 = vmatprep.mubr.msk.f32.mxu1 %vm17213_vm4, %v22297_v10 }
 0x613   : > { %15219 = vmatmul.mubr.msk.f32.gmra.mrb[194].mxu0 %vm3987_vm5, %v21457_v6  ;;  %15745 = vmatmul.mubr.msk.f32.vlgmr.msra.gmra.mrb[178].mxu1 %vm3987_vm5, %v10849_v9  ;;  %v10852_v6 = vld [vmem:[#allocation2 + $0x1d1] sm:$0xff] }
 0x614   : > { %15221 = vmatprep.mubr.msk.f32.mxu0 %vm17213_vm4, %v22297_v10  ;;  %15747 = vmatprep.mubr.msk.f32.mxu1 %vm17213_vm4, %v22297_v10 }
 0x617   : > { %15222 = vmatmul.mubr.msk.f32.gmra.mrb[196].mxu0 %vm3987_vm5, %v21467_v49  ;;  %15748 = vmatmul.mubr.msk.f32.gmra.mrb[180].mxu1 %vm3987_vm5, %v10850_v63  ;;  %v10853_v49 = vld [vmem:[#allocation2 + $0x1d9] sm:$0xff] }
 0x618   : > { %15224 = vmatprep.mubr.msk.f32.mxu0 %vm17213_vm4, %v22297_v10  ;;  %15750 = vmatprep.mubr.msk.f32.mxu1 %vm17213_vm4, %v22297_v10 }
 0x61b   : > { %15225 = vmatmul.mubr.msk.f32.gmra.mrb[198].mxu0 %vm3987_vm5, %v21478_v48  ;;  %15751 = vmatmul.mubr.msk.f32.gmra.mrb[182].mxu1 %vm3987_vm5, %v10851_v23  ;;  %v10854_v48 = vld [vmem:[#allocation2 + $0x1e1] sm:$0xff] }
 0x61c   : > { %15227 = vmatprep.mubr.msk.f32.mxu0 %vm17213_vm4, %v22297_v10  ;;  %15753 = vmatprep.mubr.msk.f32.mxu1 %vm17213_vm4, %v22297_v10 }
 0x61f   : > { %15228 = vmatmul.mubr.msk.f32.gmra.mrb[200].mxu0 %vm3987_vm5, %v21487_v54  ;;  %15754 = vmatmul.mubr.msk.f32.gmra.mrb[184].mxu1 %vm3987_vm5, %v10852_v6  ;;  %v10855_v54 = vld [vmem:[#allocation2 + $0x1e9] sm:$0xff]  ;;  %v22516_v6 = vmax.f32 %v20810_v44, %v20736_v29 }
 0x620   : > { %15230 = vmatprep.mubr.msk.f32.mxu0 %vm17213_vm4, %v22297_v10  ;;  %15756 = vmatprep.mubr.msk.f32.mxu1 %vm17213_vm4, %v22297_v10 }
 0x623   : > { %15231 = vmatmul.mubr.msk.f32.gmra.mrb[202].mxu0 %vm3987_vm5, %v21496_v35  ;;  %15757 = vmatmul.mubr.msk.f32.gmra.mrb[186].mxu1 %vm3987_vm5, %v10853_v49  ;;  %v10856_v35 = vld [vmem:[#allocation2 + $0x1f1] sm:$0xff] }
 0x624   : > { %15233 = vmatprep.mubr.msk.f32.mxu0 %vm17213_vm4, %v22297_v10  ;;  %15759 = vmatprep.mubr.msk.f32.mxu1 %vm17213_vm4, %v22297_v10 }
 0x627   : > { %15234 = vmatmul.mubr.msk.f32.gmra.mrb[204].mxu0 %vm3987_vm5, %v21505_v25  ;;  %15760 = vmatmul.mubr.msk.f32.gmra.mrb[188].mxu1 %vm3987_vm5, %v10854_v48  ;;  %v10857_v25 = vld [vmem:[#allocation2 + $0x1f9] sm:$0xff] }
 0x628   : > { %15236 = vmatprep.mubr.msk.f32.mxu0 %vm17213_vm4, %v22297_v10  ;;  %15762 = vmatprep.mubr.msk.f32.mxu1 %vm17213_vm4, %v22297_v10 }
 0x62b   : > { %15237 = vmatmul.mubr.msk.f32.gmra.mrb[206].mxu0 %vm3987_vm5, %v21514_v38  ;;  %15763 = vmatmul.mubr.msk.f32.gmra.mrb[190].mxu1 %vm3987_vm5, %v10855_v54  ;;  %v10858_v38 = vld [vmem:[#allocation2 + $0x201] sm:$0xff] }
 0x62c   : > { %15239 = vmatprep.mubr.msk.f32.mxu0 %vm17213_vm4, %v22297_v10  ;;  %15765 = vmatprep.mubr.msk.f32.mxu1 %vm17213_vm4, %v22297_v10 }
 0x62f   : > { %15240 = vmatmul.mubr.msk.f32.gmra.mrb[208].mxu0 %vm3987_vm5, %v21523_v19  ;;  %15766 = vmatmul.mubr.msk.f32.gmra.mrb[192].mxu1 %vm3987_vm5, %v10856_v35  ;;  %v10859_v19 = vld [vmem:[#allocation2 + $0x209] sm:$0xff]  ;;  %v21872_v35 = vld [vmem:[%s22011_s5] ss:$0 sm:$0xff] }
 0x630   : > { %15242 = vmatprep.mubr.msk.f32.mxu0 %vm17213_vm4, %v22297_v10  ;;  %15768 = vmatprep.mubr.msk.f32.mxu1 %vm17213_vm4, %v22297_v10 }
 0x633   : > { %15243 = vmatmul.mubr.msk.f32.gmra.mrb[210].mxu0 %vm3987_vm5, %v21532_v50  ;;  %15769 = vmatmul.mubr.msk.f32.gmra.mrb[194].mxu1 %vm3987_vm5, %v10857_v25  ;;  %v10860_v50 = vld [vmem:[#allocation2 + $0x211] sm:$0xff] }
 0x634   : > { %15249 = vmatprep.mubr.msk.f32.mxu0 %vm17213_vm4, %v22297_v10  ;;  %15771 = vmatprep.mubr.msk.f32.mxu1 %vm17213_vm4, %v22297_v10 }
 0x637   : > { %15250 = vmatmul.mubr.msk.f32.vlgmr.msra.gmra.mrb[178].mxu0 %vm3987_vm5, %v21541_v1  ;;  %15772 = vmatmul.mubr.msk.f32.gmra.mrb[196].mxu1 %vm3987_vm5, %v10858_v38  ;;  %v10861_v1 = vld [vmem:[#allocation2 + $0x219] sm:$0xff] }
 0x638   : > { %15252 = vmatprep.mubr.msk.f32.mxu0 %vm17213_vm4, %v22297_v10  ;;  %15774 = vmatprep.mubr.msk.f32.mxu1 %vm17213_vm4, %v22297_v10 }
 0x63b   : > { %15253 = vmatmul.mubr.msk.f32.gmra.mrb[180].mxu0 %vm3987_vm5, %v21551_v8  ;;  %15775 = vmatmul.mubr.msk.f32.gmra.mrb[198].mxu1 %vm3987_vm5, %v10859_v19  ;;  %v10862_v8 = vld [vmem:[#allocation2 + $0x221] sm:$0xff] }
 0x63c   : > { %15255 = vmatprep.mubr.msk.f32.mxu0 %vm17213_vm4, %v22297_v10  ;;  %15777 = vmatprep.mubr.msk.f32.mxu1 %vm17213_vm4, %v22297_v10 }
 0x63f   : > { %15256 = vmatmul.mubr.msk.f32.gmra.mrb[182].mxu0 %vm3987_vm5, %v21560_v55  ;;  %15778 = vmatmul.mubr.msk.f32.gmra.mrb[200].mxu1 %vm3987_vm5, %v10860_v50  ;;  %v10863_v55 = vld [vmem:[#allocation2 + $0x229] sm:$0xff] }
 0x640   : > { %15258 = vmatprep.mubr.msk.f32.mxu0 %vm17213_vm4, %v22297_v10  ;;  %15780 = vmatprep.mubr.msk.f32.mxu1 %vm17213_vm4, %v22297_v10 }
 0x643   : > { %15259 = vmatmul.mubr.msk.f32.gmra.mrb[184].mxu0 %vm3987_vm5, %v21569_v56  ;;  %15781 = vmatmul.mubr.msk.f32.gmra.mrb[202].mxu1 %vm3987_vm5, %v10861_v1  ;;  %v10864_v56 = vld [vmem:[#allocation2 + $0x231] sm:$0xff]  ;;  %v22517_v1 = vmax.f32 %v20822_v51, %v20744_v22  ;;  %v22518_v51 = vmax.f32 %v20834_v60, %v20752_v11 }
 0x644   : > { %15261 = vmatprep.mubr.msk.f32.mxu0 %vm17213_vm4, %v22297_v10  ;;  %15783 = vmatprep.mubr.msk.f32.mxu1 %vm17213_vm4, %v22297_v10 }
 0x647   : > { %15262 = vmatmul.mubr.msk.f32.gmra.mrb[186].mxu0 %vm3987_vm5, %v21578_v59  ;;  %15784 = vmatmul.mubr.msk.f32.gmra.mrb[204].mxu1 %vm3987_vm5, %v10862_v8  ;;  %v10865_v59 = vld [vmem:[#allocation2 + $0x239] sm:$0x7f] }
 0x648   : > { %15264 = vmatprep.mubr.msk.f32.mxu0 %vm17213_vm4, %v22297_v10  ;;  %15786 = vmatprep.mubr.msk.f32.mxu1 %vm17213_vm4, %v22297_v10 }
 0x64b   : > { %15265 = vmatmul.mubr.msk.f32.gmra.mrb[188].mxu0 %vm3987_vm5, %v21587_v3  ;;  %15787 = vmatmul.mubr.msk.f32.gmra.mrb[206].mxu1 %vm3987_vm5, %v10863_v55 }
 0x64c   : > { %15267 = vmatprep.mubr.msk.f32.mxu0 %vm17213_vm4, %v22297_v10  ;;  %15789 = vmatprep.mubr.msk.f32.mxu1 %vm17213_vm4, %v22297_v10 }
 0x64f   : > { %15268 = vmatmul.mubr.msk.f32.gmra.mrb[190].mxu0 %vm3987_vm5, %v21596_v13  ;;  %15790 = vmatmul.mubr.msk.f32.gmra.mrb[208].mxu1 %vm3987_vm5, %v10864_v56 }
 0x650   : > { %15270 = vmatprep.mubr.msk.f32.mxu0 %vm17213_vm4, %v22297_v10  ;;  %15792 = vmatprep.mubr.msk.f32.mxu1 %vm17213_vm4, %v22297_v10 }
 0x653   : > { %15271 = vmatmul.mubr.msk.f32.gmra.mrb[192].mxu0 %vm3987_vm5, %v21605_v39  ;;  %15793 = vmatmul.mubr.msk.f32.gmra.mrb[210].mxu1 %vm3987_vm5, %v10865_v59 }
 0x654   : > { %15273 = vmatprep.mubr.msk.f32.mxu0 %vm17213_vm4, %v22297_v10 }
 0x657   : > { %15274 = vmatmul.mubr.msk.f32.gmra.mrb[194].mxu0 %vm3987_vm5, %v21614_v24 }
 0x658   : > { %15276 = vmatprep.mubr.msk.f32.mxu0 %vm17213_vm4, %v22297_v10 }
 0x65b   : > { %15277 = vmatmul.mubr.msk.f32.gmra.mrb[196].mxu0 %vm3987_vm5, %v21623_v2 }
 0x65c   : > { %15279 = vmatprep.mubr.msk.f32.mxu0 %vm17213_vm4, %v22297_v10 }
 0x65f   : > { %15280 = vmatmul.mubr.msk.f32.gmra.mrb[198].mxu0 %vm3987_vm5, %v21634_v43 }
 0x660   : > { %15282 = vmatprep.mubr.msk.f32.mxu0 %vm17213_vm4, %v22297_v10 }
 0x663   : > { %15283 = vmatmul.mubr.msk.f32.gmra.mrb[200].mxu0 %vm3987_vm5, %v21644_v18 }
 0x664   : > { %15285 = vmatprep.mubr.msk.f32.mxu0 %vm17213_vm4, %v22297_v10 }
 0x667   : > { %15286 = vmatmul.mubr.msk.f32.gmra.mrb[202].mxu0 %vm3987_vm5, %v21654_v53 }
 0x668   : > { %15288 = vmatprep.mubr.msk.f32.mxu0 %vm17213_vm4, %v22297_v10 }
 0x66b   : > { %15289 = vmatmul.mubr.msk.f32.gmra.mrb[204].mxu0 %vm3987_vm5, %v21664_v0 }
 0x66c   : > { %15291 = vmatprep.mubr.msk.f32.mxu0 %vm17213_vm4, %v22297_v10 }
 0x66f   : > { %15292 = vmatmul.mubr.msk.f32.gmra.mrb[206].mxu0 %vm3987_vm5, %v21674_v20 }
 0x670   : > { %15294 = vmatprep.mubr.msk.f32.mxu0 %vm17213_vm4, %v22297_v10 }
 0x673   : > { %15295 = vmatmul.mubr.msk.f32.gmra.mrb[208].mxu0 %vm3987_vm5, %v21684_v40 }
 0x674   : > { %15297 = vmatprep.mubr.msk.f32.mxu0 %vm17213_vm4, %v22297_v10 }
 0x677   : > { %15298 = vmatmul.mubr.msk.f32.gmra.mrb[210].mxu0 %vm3987_vm5, %v21694_v47 }
 0x6e6   : > { %v10983_v21 = vpop.f32.mrb[178].mxu1 }
 0x6e7   : > { %v15746_v3 = vpop.f32.mrb[179].mxu1 }
 0x6ea   : > { %v10988_v26 = vpop.f32.mrb[180].mxu1 }
 0x6eb   : > { %v15749_v13 = vpop.f32.mrb[181].mxu1 }
 0x6ee   : > { %v10993_v52 = vpop.f32.mrb[182].mxu1 }
 0x6ef   : > { %v15752_v39 = vpop.f32.mrb[183].mxu1 }
 0x6f2   : > { %v10998_v30 = vpop.f32.mrb[184].mxu1 }
 0x6f3   : > { %v15755_v24 = vpop.f32.mrb[185].mxu1 }
 0x6f6   : > { %v11003_v2 = vpop.f32.mrb[186].mxu1 }
 0x6f7   : > { %v15758_v43 = vpop.f32.mrb[187].mxu1 }
 0x6fa   : > { %v21855_v18 = vpop.f32.mrb[188].mxu1 }
 0x6fb   : > { %v15761_v53 = vpop.f32.mrb[189].mxu1 }
 0x6fe   : > { %v21857_v0 = vpop.f32.mrb[190].mxu1 }
 0x6ff   : > { %v15764_v10 = vpop.f32.mrb[191].mxu1 }
 0x702   : > { %v21859_v20 = vpop.f32.mrb[192].mxu1 }
 0x703   : > { %v15767_v40 = vpop.f32.mrb[193].mxu1 }
 0x704   : > { %v22519_v40 = vmax.f32 %v20846_v41, %v20760_v36 }
 0x706   : > { %v21861_v47 = vpop.f32.mrb[194].mxu1 }
 0x707   : > { %v15770_v9 = vpop.f32.mrb[195].mxu1 }
 0x70a   : > { %v9429_v63 = vpop.f32.mrb[178].mxu0  ;;  %v21863_v23 = vpop.f32.mrb[196].mxu1 }
 0x70b   : > { %v9530_v49 = vmax.f32 %v22516_v6, %v9429_v63  ;;  %v15251_v48 = vpop.f32.mrb[179].mxu0  ;;  %v15773_v54 = vpop.f32.mrb[197].mxu1 }
 0x70c   : > { %v22520_v54 = vmax.f32 %v20858_v32, %v20768_v5 }
 0x70d   : > { %v11084_v25 = vmax.f32 %v9530_v49, %v10983_v21 }
 0x70e   : > { %v9434_v38 = vpop.f32.mrb[180].mxu0  ;;  %v21874_v19 = vpop.f32.mrb[198].mxu1 }
 0x70f   : > { %v11108_v50 = vadd.f32 %v21872_v35, %v11084_v25  ;;  %v9531_v8 = vmax.f32 %v22517_v1, %v9434_v38  ;;  %v15254_v29 = vpop.f32.mrb[181].mxu0  ;;  %v15776_v44 = vpop.f32.mrb[199].mxu1 }
 0x710   : > { %v22521_v29 = vmax.f32 %v20870_v7, %v20776_v14 }
 0x711   : > { %v11125_v55 = vmax.f32 %v11108_v50, 0.0  ;;  %v11085_v56 = vmax.f32 %v9531_v8, %v10988_v26 }
 0x712   : > { %v9439_v59 = vpop.f32.mrb[182].mxu0  ;;  %v21885_v21 = vpop.f32.mrb[200].mxu1 }
 0x713   : > { %11143 = vst.msk [vmem:[%s21883_s22] sm:$0xff] %vm11142_vm6, %v11125_v55  ;;  %v11109_v22 = vadd.f32 %v21872_v35, %v11085_v56  ;;  %v9532_v3 = vmax.f32 %v22518_v51, %v9439_v59  ;;  %v15257_v13 = vpop.f32.mrb[183].mxu0  ;;  %v15779_v39 = vpop.f32.mrb[201].mxu1  ;;  %v22522_v51 = vmax.f32 %v20882_v16, %v20784_v4 }
 0x715   : > { %v11126_v24 = vmax.f32 %v11109_v22, 0.0  ;;  %v11086_v43 = vmax.f32 %v9532_v3, %v10993_v52 }
 0x716   : > { %v9444_v53 = vpop.f32.mrb[184].mxu0  ;;  %v21893_v10 = vpop.f32.mrb[202].mxu1 }
 0x717   : > { %11144 = vst.msk [vmem:[%s21883_s22 + $0x8] sm:$0xff] %vm11142_vm6, %v11126_v24  ;;  %v11110_v26 = vadd.f32 %v21872_v35, %v11086_v43  ;;  %v9533_v9 = vmax.f32 %v22519_v40, %v9444_v53  ;;  %v15260_v63 = vpop.f32.mrb[185].mxu0  ;;  %v15782_v11 = vpop.f32.mrb[203].mxu1  ;;  %v22523_v53 = vmax.f32 %v20898_v46, %v20792_v31 }
 0x718   : > { %v22524_v11 = vmax.f32 %v20914_v45, %v20802_v61 }
 0x719   : > { %v11127_v60 = vmax.f32 %v11110_v26, 0.0  ;;  %v11087_v6 = vmax.f32 %v9533_v9, %v10998_v30 }
 0x71a   : > { %v9449_v49 = vpop.f32.mrb[186].mxu0  ;;  %v21901_v48 = vpop.f32.mrb[204].mxu1 }
 0x71b   : > { %11145 = vst.msk [vmem:[%s21883_s22 + $0x10] sm:$0xff] %vm11142_vm6, %v11127_v60  ;;  %v11111_v52 = vadd.f32 %v21872_v35, %v11087_v6  ;;  %v9534_v25 = vmax.f32 %v22520_v54, %v9449_v49  ;;  %v15263_v38 = vpop.f32.mrb[187].mxu0  ;;  %v15785_v36 = vpop.f32.mrb[205].mxu1 }
 0x71d   : > { %v11128_v41 = vmax.f32 %v11111_v52, 0.0  ;;  %v11088_v50 = vmax.f32 %v9534_v25, %v11003_v2  ;;  %v22525_v52 = vmax.f32 %v20927_v15, %v20812_v42 }
 0x71e   : > { %v9454_v1 = vpop.f32.mrb[188].mxu0  ;;  %v21909_v8 = vpop.f32.mrb[206].mxu1 }
 0x71f   : > { %11146 = vst.msk [vmem:[%s21883_s22 + $0x18] sm:$0xff] %vm11142_vm6, %v11128_v41  ;;  %v11112_v30 = vadd.f32 %v21872_v35, %v11088_v50  ;;  %v9535_v44 = vmax.f32 %v22521_v29, %v9454_v1  ;;  %v15266_v55 = vpop.f32.mrb[189].mxu0  ;;  %v15788_v5 = vpop.f32.mrb[207].mxu1 }
 0x721   : > { %v11129_v32 = vmax.f32 %v11112_v30, 0.0  ;;  %v11089_v56 = vmax.f32 %v9535_v44, %v21855_v18 }
 0x722   : > { %v9459_v59 = vpop.f32.mrb[190].mxu0  ;;  %v21918_v22 = vpop.f32.mrb[208].mxu1 }
 0x723   : > { %11147 = vst.msk [vmem:[%s21883_s22 + $0x20] sm:$0xff] %vm11142_vm6, %v11129_v32  ;;  %v11113_v2 = vadd.f32 %v21872_v35, %v11089_v56  ;;  %v9536_v3 = vmax.f32 %v22522_v51, %v9459_v59  ;;  %v15269_v14 = vpop.f32.mrb[191].mxu0  ;;  %v15791_v7 = vpop.f32.mrb[209].mxu1 }
 0x725   : > { %v11130_v13 = vmax.f32 %v11113_v2, 0.0  ;;  %v11090_v39 = vmax.f32 %v9536_v3, %v21857_v0 }
 0x726   : > { %v9464_v24 = vpop.f32.mrb[192].mxu0  ;;  %v21927_v43 = vpop.f32.mrb[210].mxu1 }
 0x727   : > { %11148 = vst.msk [vmem:[%s21883_s22 + $0x28] sm:$0xff] %vm11142_vm6, %v11130_v13  ;;  %v11114_v18 = vadd.f32 %v21872_v35, %v11090_v39  ;;  %v9537_v26 = vmax.f32 %v22523_v53, %v9464_v24  ;;  %v15272_v4 = vpop.f32.mrb[193].mxu0  ;;  %v15794_v16 = vpop.f32.mrb[211].mxu1  ;;  %v22532_v53 = vld [vmem:[#allocation17_spill] sm:$0xff] }
 0x729   : > { %v11131_v40 = vmax.f32 %v11114_v18, 0.0  ;;  %v11091_v9 = vmax.f32 %v9537_v26, %v21859_v20  ;;  %v22531_v18 = vld [vmem:[#allocation19_spill] sm:$0xff] }
 0x72a   : > { %v9469_v63 = vpop.f32.mrb[194].mxu0  ;;  %v22533_v26 = vmax.f32 %v22531_v18, %v22532_v53 }
 0x72b   : > { %11149 = vst.msk [vmem:[%s21883_s22 + $0x30] sm:$0xff] %vm11142_vm6, %v11131_v40  ;;  %v11115_v0 = vadd.f32 %v21872_v35, %v11091_v9  ;;  %v9538_v60 = vmax.f32 %v22524_v11, %v9469_v63  ;;  %v15275_v6 = vpop.f32.mrb[195].mxu0  ;;  %v22535_v63 = vld [vmem:[#allocation16_spill] sm:$0xff] }
 0x72d   : > { %v11132_v49 = vmax.f32 %v11115_v0, 0.0  ;;  %v11092_v31 = vmax.f32 %v9538_v60, %v21861_v47  ;;  %v22526_v47 = vmax.f32 %v20940_v33, %v20824_v28 }
 0x72e   : > { %v9474_v46 = vpop.f32.mrb[196].mxu0 }
 0x72f   : > { %11150 = vst.msk [vmem:[%s21883_s22 + $0x38] sm:$0xff] %vm11142_vm6, %v11132_v49  ;;  %v11116_v20 = vadd.f32 %v21872_v35, %v11092_v31  ;;  %v9539_v54 = vmax.f32 %v22525_v52, %v9474_v46  ;;  %v15278_v25 = vpop.f32.mrb[197].mxu0 }
 0x731   : > { %v11133_v38 = vmax.f32 %v11116_v20, 0.0  ;;  %v11093_v36 = vmax.f32 %v9539_v54, %v21863_v23  ;;  %v22527_v23 = vmax.f32 %v20953_v17, %v20836_v37 }
 0x732   : > { %v9479_v61 = vpop.f32.mrb[198].mxu0 }
 0x733   : > { %11151 = vst.msk [vmem:[%s21883_s22 + $0x40] sm:$0xff] %vm11142_vm6, %v11133_v38  ;;  %v11117_v45 = vadd.f32 %v21872_v35, %v11093_v36  ;;  %v9540_v41 = vmax.f32 %v22526_v47, %v9479_v61  ;;  %v15281_v50 = vpop.f32.mrb[199].mxu0 }
 0x735   : > { %v11134_v1 = vmax.f32 %v11117_v45, 0.0  ;;  %v11094_v30 = vmax.f32 %v9540_v41, %v21874_v19  ;;  %v22528_v19 = vmax.f32 %v20966_v62, %v20848_v34 }
 0x736   : > { %v9484_v42 = vpop.f32.mrb[200].mxu0 }
 0x737   : > { %11152 = vst.msk [vmem:[%s21883_s22 + $0x48] sm:$0xff] %vm11142_vm6, %v11134_v1  ;;  %v11118_v15 = vadd.f32 %v21872_v35, %v11094_v30  ;;  %v9541_v29 = vmax.f32 %v22527_v23, %v9484_v42  ;;  %v15284_v44 = vpop.f32.mrb[201].mxu0 }
 0x739   : > { %v11135_v55 = vmax.f32 %v11118_v15, 0.0  ;;  %v11095_v5 = vmax.f32 %v9541_v29, %v21885_v21  ;;  %v22529_v21 = vmax.f32 %v20979_v58, %v20860_v27 }
 0x73a   : > { %v9489_v28 = vpop.f32.mrb[202].mxu0 }
 0x73b   : > { %11153 = vst.msk [vmem:[%s21883_s22 + $0x50] sm:$0xff] %vm11142_vm6, %v11135_v55  ;;  %v11119_v33 = vadd.f32 %v21872_v35, %v11095_v5  ;;  %v9542_v32 = vmax.f32 %v22528_v19, %v9489_v28  ;;  %v15287_v56 = vpop.f32.mrb[203].mxu0 }
 0x73d   : > { %v11136_v59 = vmax.f32 %v11119_v33, 0.0  ;;  %v11096_v2 = vmax.f32 %v9542_v32, %v21893_v10  ;;  %v22530_v10 = vmax.f32 %v20992_v12, %v20872_v57 }
 0x73e   : > { %v9494_v37 = vpop.f32.mrb[204].mxu0 }
 0x73f   : > { %11154 = vst.msk [vmem:[%s21883_s22 + $0x58] sm:$0xff] %vm11142_vm6, %v11136_v59  ;;  %v11120_v17 = vadd.f32 %v21872_v35, %v11096_v2  ;;  %v9543_v51 = vmax.f32 %v22529_v21, %v9494_v37  ;;  %v15290_v3 = vpop.f32.mrb[205].mxu0 }
 0x741   : > { %v11137_v14 = vmax.f32 %v11120_v17, 0.0  ;;  %v11097_v7 = vmax.f32 %v9543_v51, %v21901_v48 }
 0x742   : > { %v9499_v34 = vpop.f32.mrb[206].mxu0 }
 0x743   : > { %11155 = vst.msk [vmem:[%s21883_s22 + $0x60] sm:$0xff] %vm11142_vm6, %v11137_v14  ;;  %v11121_v62 = vadd.f32 %v21872_v35, %v11097_v7  ;;  %v9544_v13 = vmax.f32 %v22530_v10, %v9499_v34  ;;  %v15293_v39 = vpop.f32.mrb[207].mxu0 }
 0x745   : > { %v11138_v24 = vmax.f32 %v11121_v62, 0.0  ;;  %v11098_v27 = vmax.f32 %v9544_v13, %v21909_v8  ;;  %v22534_v8 = vld [vmem:[#allocation20_spill] sm:$0xff] }
 0x746   : > { %v9504_v58 = vpop.f32.mrb[208].mxu0  ;;  %v22536_v0 = vmax.f32 %v22534_v8, %v22535_v63 }
 0x747   : > { %11156 = vst.msk [vmem:[%s21883_s22 + $0x68] sm:$0xff] %vm11142_vm6, %v11138_v24  ;;  %v11122_v48 = vadd.f32 %v21872_v35, %v11098_v27  ;;  %v9545_v4 = vmax.f32 %v22533_v26, %v9504_v58  ;;  %v15296_v16 = vpop.f32.mrb[209].mxu0 }
 0x749   : > { %v11139_v40 = vmax.f32 %v11122_v48, 0.0  ;;  %v11099_v57 = vmax.f32 %v9545_v4, %v21918_v22 }
 0x74a   : > { %v9509_v12 = vpop.f32.mrb[210].mxu0 }
 0x74b   : > { %11157 = vst.msk [vmem:[%s21883_s22 + $0x70] sm:$0xff] %vm11142_vm6, %v11139_v40  ;;  %v11123_v9 = vadd.f32 %v21872_v35, %v11099_v57  ;;  %v9546_v11 = vmax.f32 %v22536_v0, %v9509_v12  ;;  %v15299_v60 = vpop.f32.mrb[211].mxu0 }
 0x74d   : > { %v11140_v6 = vmax.f32 %v11123_v9, 0.0  ;;  %v11100_v49 = vmax.f32 %v9546_v11, %v21927_v43 }
 0x74f   : > { %11158 = vst.msk [vmem:[%s21883_s22 + $0x78] sm:$0xff] %vm11142_vm6, %v11140_v6  ;;  %v11124_v31 = vadd.f32 %v21872_v35, %v11100_v49 }
 0x751   : > { %v11141_v46 = vmax.f32 %v11124_v31, 0.0 }
 0x753   : > { %11160 = vst.msk [vmem:[%s21883_s22 + $0x80] sm:$0x7f] %vm11159_vm7, %v11141_v46 }
 0x754 PF: > { %s16_s21 = sadd.s32 1, %s17208_s21  }
 0x755   : > { %p13_p4 = scmp.ge.s32.totalorder %s16_s21, 4  }
 0x757   :  { %15 = sbr.rel (!%p13_p4) target bundleno = 1 (0x1), region = 85 }

</bundles_post_ra>
